<compile_context>
chip_gen: v6e
topology: v6e:2x2x1
jax: 0.10.0
libtpu: 0.0.40
codegen_flags: <defaults>
</compile_context>

<pallas_src>
import functools

import jax
import jax.numpy as jnp
from jax import lax
from jax.experimental import pallas as pl
from jax.experimental.pallas import tpu as pltpu


def _model3_kernel(x_ref, w1_ref, b1_ref, w2_ref, b2_ref, wrow_ref, b3_ref,
                   o_ref, pad_ref, slab_ref, *, h, w, pad_base, batch):
    c1 = pad_ref.shape[2]            # 128
    c2 = w2_ref.shape[2]             # 256
    m = (h - 2) * w                  # full-width flat rows of the (h-2) planes
    ma = m - 2                       # layer-1 rows computed (keeps patch reads in-bounds)
    pstart = pad_base - (w + 1)      # flat start of the zero-padded layer-1 plane

    zero_head = jnp.zeros((w + 1, c1), jnp.float32)
    zero_tail = jnp.zeros((w + 3, c1), jnp.float32)
    zero_pair = jnp.zeros((2, c1), jnp.float32)
    lane = lax.broadcasted_iota(jnp.int32, (1, batch), 1)
    out_vec = jnp.zeros((1, batch), jnp.float32)

    for b in range(batch):
        # ---- layer 1: single K=9*Cin bf16 matmul (f32 acc), BN folded, ReLU --
        acc1 = jnp.dot(x_ref[b], w1_ref[...], preferred_element_type=jnp.float32)
        y1 = jnp.maximum(acc1 + b1_ref[...], 0.0)                    # (ma, c1) f32

        # ---- zero-padded (pad=1) layer-1 plane, flattened with width w -------
        # pad_ref[b, pstart + r*w + c] == padded[r, c]; only the border rows
        # that layer 2 can read are zeroed (everything else is overwritten).
        pad_ref[b, pl.ds(pstart, w + 1), :] = zero_head
        pad_ref[b, pl.ds(pad_base + ma, w + 3), :] = zero_tail
        pad_ref[b, pl.ds(pad_base, ma), :] = y1
        # Columns that wrapped across a row boundary are not real layer-1
        # outputs; they are exactly the right/left zero padding of conv2.
        for q in range(h - 3):
            pad_ref[b, pl.ds(pad_base + q * w + (w - 2), 2), :] = zero_pair

        # ---- layer 2: 3x3 same conv 128->256, kw taps merged along K=3*c1 ----
        acc2 = None
        for kh in range(3):
            off = pstart + kh * w
            slot = (b * 3 + kh) & 1                     # double-buffer the slab
            for kw in range(3):
                slab_ref[slot, :, kw * c1:(kw + 1) * c1] = (
                    pad_ref[b, pl.ds(off + kw, m), :].astype(jnp.bfloat16))
            d = jnp.dot(slab_ref[slot], w2_ref[kh],
                        preferred_element_type=jnp.float32)          # (m, c2)
            acc2 = d if acc2 is None else acc2 + d

        # ---- layer 3 conv(256->1) + spatial mean as one weighted reduction ---
        y2 = jnp.maximum(acc2 + b2_ref[...], 0.0)                    # (m, c2)
        part = jnp.sum(y2 * wrow_ref[...], axis=0, keepdims=True)    # (1, c2)
        total = jnp.sum(part, axis=1, keepdims=True) + b3_ref[...]   # (1, 1)
        out_vec = jnp.where(lane == b, total, out_vec)

    o_ref[0] = out_vec                                               # (1, batch)


def _build_wrow(w3, h, w):
    """Per-flat-row coefficients folding conv3 + spatial mean into one reduce.

    Wrow[i*w + j, c] = (1/(h3*w3)) * sum of w3[kh, kw, c] over all output
    positions whose 3x3 window covers input (i, j).  Wrapped-row garbage
    columns (j >= w-2) automatically get coefficient 0.
    """
    c2 = w3.shape[2]
    h3, w3o = h - 4, w - 4
    i_idx = jnp.arange(h - 2)[:, None]
    j_idx = jnp.arange(w)[None, :]
    coef = jnp.zeros((h - 2, w, c2), jnp.float32)
    for kh in range(3):
        for kw in range(3):
            cover = ((i_idx >= kh) & (i_idx < h3 + kh) &
                     (j_idx >= kw) & (j_idx < w3o + kw)).astype(jnp.float32)
            coef = coef + cover[:, :, None] * w3[kh, kw, :, 0][None, None, :]
    return (coef * (1.0 / float(h3 * w3o))).reshape((h - 2) * w, c2)


def model3_forward(x_nchw, params, *, batch_block=8):
    """x_nchw: (N, 4, H, W) f32 -> (N, 1) f32, matching Model3.forward."""
    w1f, b1, w2q, b2, w3, b3 = params
    n, cin, h, w = x_nchw.shape
    assert h >= 5 and w >= 5, "Model3 needs spatial size >= 5"
    c1 = w1f.shape[1]
    c2 = w2q.shape[3]
    m = (h - 2) * w
    ma = m - 2
    pad_base = ((w + 1 + 7) // 8) * 8          # 8-aligned start of the interior
    pad_rows = pad_base + m + w + 8            # covers the furthest tap read

    bb = max(1, min(batch_block, n))           # images per grid step
    nb = pl.cdiv(n, bb)
    n_pad = nb * bb

    # Layer-1 im2col in the wrapper -> one K=9*Cin matmul per image in-kernel.
    x_flat = jnp.transpose(x_nchw, (0, 2, 3, 1)).reshape(n, h * w, cin)
    patches = jnp.concatenate(
        [x_flat[:, kh * w + kw:kh * w + kw + ma, :]
         for kh in range(3) for kw in range(3)], axis=-1).astype(jnp.bfloat16)
    if n_pad != n:
        patches = jnp.pad(patches, ((0, n_pad - n), (0, 0), (0, 0)))

    w2m = w2q.reshape(3, 3 * c1, c2)           # kw taps merged along K
    wrow = _build_wrow(w3, h, w)               # (m, c2) f32

    kernel = functools.partial(_model3_kernel, h=h, w=w,
                               pad_base=pad_base, batch=bb)
    out = pl.pallas_call(
        kernel,
        out_shape=jax.ShapeDtypeStruct((nb, 1, bb), jnp.float32),
        grid=(nb,),
        in_specs=[
            pl.BlockSpec((bb, ma, 9 * cin), lambda i: (i, 0, 0)),   # x patches (bf16)
            pl.BlockSpec((9 * cin, c1), lambda i: (0, 0)),          # w1 folded (bf16)
            pl.BlockSpec((1, c1), lambda i: (0, 0)),                # b1 (f32)
            pl.BlockSpec((3, 3 * c1, c2), lambda i: (0, 0, 0)),     # w2 merged (bf16)
            pl.BlockSpec((1, c2), lambda i: (0, 0)),                # b2 (f32)
            pl.BlockSpec((m, c2), lambda i: (0, 0)),                # Wrow (f32)
            pl.BlockSpec((1, 1), lambda i: (0, 0)),                 # b3
        ],
        out_specs=pl.BlockSpec((1, 1, bb), lambda i: (i, 0, 0)),
        scratch_shapes=[
            pltpu.VMEM((bb, pad_rows, c1), jnp.float32),            # padded layer-1 act
            pltpu.VMEM((2, m, 3 * c1), jnp.bfloat16),               # K-merged tap slabs
        ],
        compiler_params=pltpu.CompilerParams(
            dimension_semantics=("parallel",)),
    )(patches, w1f, b1, w2m, b2, wrow, b3)
    return out.reshape(-1)[:n].reshape(n, 1)


# ----------------------------------------------------------------------------
# Deterministic parameters (shapes from Model3.__init__), BN folded (inference)
# ----------------------------------------------------------------------------
def init_params(key):
    cin, c1, c2 = 4, 128, 256
    ks = jax.random.split(key, 13)
    # Conv2d(4,128,3,bias=False) + BN(128)  -> folded into (w1f, b1)
    w1 = jax.random.normal(ks[0], (3, 3, cin, c1), jnp.float32) / jnp.sqrt(cin * 9.0)
    g1 = jax.random.uniform(ks[1], (c1,), jnp.float32, 0.5, 1.5)
    beta1 = jax.random.normal(ks[2], (c1,), jnp.float32) * 0.1
    rm1 = jax.random.normal(ks[3], (c1,), jnp.float32) * 0.1
    rv1 = jax.random.uniform(ks[4], (c1,), jnp.float32, 0.5, 1.5)
    s1 = g1 / jnp.sqrt(rv1 + 1e-5)
    b1 = beta1 - s1 * rm1
    w1f = (w1.reshape(9 * cin, c1) * s1[None, :]).astype(jnp.bfloat16)
    # Conv2d(128,256,3,padding=1) + BN(256) -> folded into (w2q, b2)
    w2 = jax.random.normal(ks[5], (3, 3, c1, c2), jnp.float32) / jnp.sqrt(c1 * 9.0)
    cb2 = jax.random.normal(ks[6], (c2,), jnp.float32) * 0.05
    g2 = jax.random.uniform(ks[7], (c2,), jnp.float32, 0.5, 1.5)
    beta2 = jax.random.normal(ks[8], (c2,), jnp.float32) * 0.1
    rm2 = jax.random.normal(ks[9], (c2,), jnp.float32) * 0.1
    rv2 = jax.random.uniform(ks[10], (c2,), jnp.float32, 0.5, 1.5)
    s2 = g2 / jnp.sqrt(rv2 + 1e-5)
    b2 = beta2 + s2 * (cb2 - rm2)
    w2q = (w2 * s2[None, None, None, :]).astype(jnp.bfloat16)
    # Dropout (identity at inference) + Conv2d(256,1,3)
    w3 = jax.random.normal(ks[11], (3, 3, c2, 1), jnp.float32) / jnp.sqrt(c2 * 9.0)
    b3 = jax.random.normal(ks[12], (1,), jnp.float32) * 0.05
    return (w1f, b1.reshape(1, c1), w2q, b2.reshape(1, c2), w3, b3.reshape(1, 1))


# ----------------------------------------------------------------------------
# Pure-JAX reference (same BN folding and bf16 quantization points as kernel)
# ----------------------------------------------------------------------------
def model3_reference(x_nchw, params):
    w1f, b1, w2q, b2, w3, b3 = params
    cin = x_nchw.shape[1]
    c1 = w1f.shape[1]
    dn = ("NHWC", "HWIO", "NHWC")
    x = jnp.transpose(x_nchw, (0, 2, 3, 1))
    y = lax.conv_general_dilated(
        x.astype(jnp.bfloat16), w1f.reshape(3, 3, cin, c1), (1, 1), "VALID",
        dimension_numbers=dn, preferred_element_type=jnp.float32)
    y = jnp.maximum(y + b1.reshape(1, 1, 1, -1), 0.0)
    y = lax.conv_general_dilated(
        y.astype(jnp.bfloat16), w2q, (1, 1), [(1, 1), (1, 1)],
        dimension_numbers=dn, preferred_element_type=jnp.float32)
    y = jnp.maximum(y + b2.reshape(1, 1, 1, -1), 0.0)
    # Dropout(p=0.5) is identity in inference mode.
    y = lax.conv_general_dilated(y, w3, (1, 1), "VALID", dimension_numbers=dn)
    y = y + b3.reshape(1, 1, 1, 1)
    return jnp.mean(y, axis=(1, 2))                  # (N, 1)


if __name__ == "__main__":
    key = jax.random.PRNGKey(0)
    kp, kx = jax.random.split(key)
    params = init_params(kp)

    # Input (NCHW like PyTorch): batch=2, channels=4, spatial=16x16.
    x = jax.random.normal(kx, (2, 4, 16, 16), jnp.float32)

    out = jax.block_until_ready(jax.jit(model3_forward)(x, params))
    ref = jax.block_until_ready(jax.jit(model3_reference)(x, params))

    assert out.shape == (2, 1), out.shape
    if not bool(jnp.allclose(out, ref, rtol=2e-3, atol=2e-3)):
        raise AssertionError(f"mismatch: pallas={out} ref={ref}")
    print("KERNEL_OK")
</pallas_src>

<mosaic_0001>
module attributes {stable_mosaic.version = 11 : i64} {
  func.func @_model3_kernel(%arg0: i32, %arg1: memref<2x222x36xbf16, #tpu.memory_space<vmem>>, %arg2: memref<36x128xbf16, #tpu.memory_space<vmem>>, %arg3: memref<1x128xf32, #tpu.memory_space<vmem>>, %arg4: memref<3x384x256xbf16, #tpu.memory_space<vmem>>, %arg5: memref<1x256xf32, #tpu.memory_space<vmem>>, %arg6: memref<224x256xf32, #tpu.memory_space<vmem>>, %arg7: memref<1x1xf32, #tpu.memory_space<vmem>>, %arg8: memref<1x1x2xf32, #tpu.memory_space<vmem>>, %arg9: memref<2x272x128xf32, #tpu.memory_space<vmem>>, %arg10: memref<2x224x384xbf16, #tpu.memory_space<vmem>>) attributes {dimension_semantics = [#tpu.dimension_semantics<parallel>], iteration_bounds = array<i64: 1>, scalar_prefetch = 0 : i64, scratch_operands = 2 : i64, tpu.core_type = #tpu.core_type<tc>, window_params = [{transform_indices = @transform_0, window_bounds = array<i64: 2, 222, 36>}, {pipeline_mode = #tpu.pipeline_mode<synchronous>, transform_indices = @transform_1, window_bounds = array<i64: 36, 128>}, {pipeline_mode = #tpu.pipeline_mode<synchronous>, transform_indices = @transform_2, window_bounds = array<i64: 1, 128>}, {pipeline_mode = #tpu.pipeline_mode<synchronous>, transform_indices = @transform_3, window_bounds = array<i64: 3, 384, 256>}, {pipeline_mode = #tpu.pipeline_mode<synchronous>, transform_indices = @transform_4, window_bounds = array<i64: 1, 256>}, {pipeline_mode = #tpu.pipeline_mode<synchronous>, transform_indices = @transform_5, window_bounds = array<i64: 224, 256>}, {pipeline_mode = #tpu.pipeline_mode<synchronous>, transform_indices = @transform_6, window_bounds = array<i64: 1, 1>}, {transform_indices = @transform_7, window_bounds = array<i64: 1, 1, 2>}]} {
    %cst = arith.constant 0.000000e+00 : f32
    %0 = vector.broadcast %cst : f32 to vector<17x128xf32>
    %cst_0 = arith.constant 0.000000e+00 : f32
    %1 = vector.broadcast %cst_0 : f32 to vector<19x128xf32>
    %cst_1 = arith.constant 0.000000e+00 : f32
    %2 = vector.broadcast %cst_1 : f32 to vector<2x128xf32>
    %3 = tpu.iota {dimensions = array<i32: 1>} : vector<1x2xi32>
    %cst_2 = arith.constant 0.000000e+00 : f32
    %4 = vector.broadcast %cst_2 : f32 to vector<1x2xf32>
    %c0 = arith.constant 0 : index
    %c0_3 = arith.constant 0 : index
    %c0_4 = arith.constant 0 : index
    %5 = vector.load %arg1[%c0, %c0_3, %c0_4] : memref<2x222x36xbf16, #tpu.memory_space<vmem>>, vector<1x222x36xbf16>
    %6 = vector.shape_cast %5 : vector<1x222x36xbf16> to vector<222x36xbf16>
    %c0_5 = arith.constant 0 : index
    %c0_6 = arith.constant 0 : index
    %7 = vector.load %arg2[%c0_5, %c0_6] : memref<36x128xbf16, #tpu.memory_space<vmem>>, vector<36x128xbf16>
    %cst_7 = arith.constant dense<0.000000e+00> : vector<222x128xf32>
    %8 = tpu.matmul %6, %7, %cst_7 {dimension_numbers = #tpu.dot_dimension_numbers<[1], [0], [0], [1], [0, 0, 1, 1], [], []>} : vector<222x36xbf16>, vector<36x128xbf16>, vector<222x128xf32> -> vector<222x128xf32>
    %c0_8 = arith.constant 0 : index
    %c0_9 = arith.constant 0 : index
    %9 = vector.load %arg3[%c0_8, %c0_9] : memref<1x128xf32, #tpu.memory_space<vmem>>, vector<1x128xf32>
    %10 = vector.broadcast %9 : vector<1x128xf32> to vector<222x128xf32>
    %11 = arith.addf %8, %10 : vector<222x128xf32>
    %cst_10 = arith.constant 0.000000e+00 : f32
    %12 = vector.broadcast %cst_10 : f32 to vector<222x128xf32>
    %13 = arith.maximumf %11, %12 : vector<222x128xf32>
    %c0_11 = arith.constant 0 : index
    %c7 = arith.constant 7 : index
    %c0_12 = arith.constant 0 : index
    %14 = vector.load %arg9[%c0_11, %c7, %c0_12] : memref<2x272x128xf32, #tpu.memory_space<vmem>>, vector<1x17x128xf32>
    %15 = vector.shape_cast %14 : vector<1x17x128xf32> to vector<17x128xf32>
    %16 = vector.shape_cast %0 : vector<17x128xf32> to vector<1x17x128xf32>
    tpu.vector_store %arg9[%c0_11, %c7, %c0_12], %16 {strides = array<i32>} : memref<2x272x128xf32, #tpu.memory_space<vmem>>, vector<1x17x128xf32>,
    %c0_13 = arith.constant 0 : index
    %c246 = arith.constant 246 : index
    %c0_14 = arith.constant 0 : index
    %17 = vector.load %arg9[%c0_13, %c246, %c0_14] : memref<2x272x128xf32, #tpu.memory_space<vmem>>, vector<1x19x128xf32>
    %18 = vector.shape_cast %17 : vector<1x19x128xf32> to vector<19x128xf32>
    %19 = vector.shape_cast %1 : vector<19x128xf32> to vector<1x19x128xf32>
    tpu.vector_store %arg9[%c0_13, %c246, %c0_14], %19 {strides = array<i32>} : memref<2x272x128xf32, #tpu.memory_space<vmem>>, vector<1x19x128xf32>,
    %c0_15 = arith.constant 0 : index
    %c24 = arith.constant 24 : index
    %c0_16 = arith.constant 0 : index
    %20 = vector.load %arg9[%c0_15, %c24, %c0_16] : memref<2x272x128xf32, #tpu.memory_space<vmem>>, vector<1x222x128xf32>
    %21 = vector.shape_cast %20 : vector<1x222x128xf32> to vector<222x128xf32>
    %22 = vector.shape_cast %13 : vector<222x128xf32> to vector<1x222x128xf32>
    tpu.vector_store %arg9[%c0_15, %c24, %c0_16], %22 {strides = array<i32>} : memref<2x272x128xf32, #tpu.memory_space<vmem>>, vector<1x222x128xf32>,
    %c0_17 = arith.constant 0 : index
    %c38 = arith.constant 38 : index
    %c0_18 = arith.constant 0 : index
    %23 = vector.load %arg9[%c0_17, %c38, %c0_18] : memref<2x272x128xf32, #tpu.memory_space<vmem>>, vector<1x2x128xf32>
    %24 = vector.shape_cast %23 : vector<1x2x128xf32> to vector<2x128xf32>
    %25 = vector.shape_cast %2 : vector<2x128xf32> to vector<1x2x128xf32>
    tpu.vector_store %arg9[%c0_17, %c38, %c0_18], %25 {strides = array<i32>} : memref<2x272x128xf32, #tpu.memory_space<vmem>>, vector<1x2x128xf32>,
    %c0_19 = arith.constant 0 : index
    %c54 = arith.constant 54 : index
    %c0_20 = arith.constant 0 : index
    %26 = vector.load %arg9[%c0_19, %c54, %c0_20] : memref<2x272x128xf32, #tpu.memory_space<vmem>>, vector<1x2x128xf32>
    %27 = vector.shape_cast %26 : vector<1x2x128xf32> to vector<2x128xf32>
    %28 = vector.shape_cast %2 : vector<2x128xf32> to vector<1x2x128xf32>
    tpu.vector_store %arg9[%c0_19, %c54, %c0_20], %28 {strides = array<i32>} : memref<2x272x128xf32, #tpu.memory_space<vmem>>, vector<1x2x128xf32>,
    %c0_21 = arith.constant 0 : index
    %c70 = arith.constant 70 : index
    %c0_22 = arith.constant 0 : index
    %29 = vector.load %arg9[%c0_21, %c70, %c0_22] : memref<2x272x128xf32, #tpu.memory_space<vmem>>, vector<1x2x128xf32>
    %30 = vector.shape_cast %29 : vector<1x2x128xf32> to vector<2x128xf32>
    %31 = vector.shape_cast %2 : vector<2x128xf32> to vector<1x2x128xf32>
    tpu.vector_store %arg9[%c0_21, %c70, %c0_22], %31 {strides = array<i32>} : memref<2x272x128xf32, #tpu.memory_space<vmem>>, vector<1x2x128xf32>,
    %c0_23 = arith.constant 0 : index
    %c86 = arith.constant 86 : index
    %c0_24 = arith.constant 0 : index
    %32 = vector.load %arg9[%c0_23, %c86, %c0_24] : memref<2x272x128xf32, #tpu.memory_space<vmem>>, vector<1x2x128xf32>
    %33 = vector.shape_cast %32 : vector<1x2x128xf32> to vector<2x128xf32>
    %34 = vector.shape_cast %2 : vector<2x128xf32> to vector<1x2x128xf32>
    tpu.vector_store %arg9[%c0_23, %c86, %c0_24], %34 {strides = array<i32>} : memref<2x272x128xf32, #tpu.memory_space<vmem>>, vector<1x2x128xf32>,
    %c0_25 = arith.constant 0 : index
    %c102 = arith.constant 102 : index
    %c0_26 = arith.constant 0 : index
    %35 = vector.load %arg9[%c0_25, %c102, %c0_26] : memref<2x272x128xf32, #tpu.memory_space<vmem>>, vector<1x2x128xf32>
    %36 = vector.shape_cast %35 : vector<1x2x128xf32> to vector<2x128xf32>
    %37 = vector.shape_cast %2 : vector<2x128xf32> to vector<1x2x128xf32>
    tpu.vector_store %arg9[%c0_25, %c102, %c0_26], %37 {strides = array<i32>} : memref<2x272x128xf32, #tpu.memory_space<vmem>>, vector<1x2x128xf32>,
    %c0_27 = arith.constant 0 : index
    %c118 = arith.constant 118 : index
    %c0_28 = arith.constant 0 : index
    %38 = vector.load %arg9[%c0_27, %c118, %c0_28] : memref<2x272x128xf32, #tpu.memory_space<vmem>>, vector<1x2x128xf32>
    %39 = vector.shape_cast %38 : vector<1x2x128xf32> to vector<2x128xf32>
    %40 = vector.shape_cast %2 : vector<2x128xf32> to vector<1x2x128xf32>
    tpu.vector_store %arg9[%c0_27, %c118, %c0_28], %40 {strides = array<i32>} : memref<2x272x128xf32, #tpu.memory_space<vmem>>, vector<1x2x128xf32>,
    %c0_29 = arith.constant 0 : index
    %c134 = arith.constant 134 : index
    %c0_30 = arith.constant 0 : index
    %41 = vector.load %arg9[%c0_29, %c134, %c0_30] : memref<2x272x128xf32, #tpu.memory_space<vmem>>, vector<1x2x128xf32>
    %42 = vector.shape_cast %41 : vector<1x2x128xf32> to vector<2x128xf32>
    %43 = vector.shape_cast %2 : vector<2x128xf32> to vector<1x2x128xf32>
    tpu.vector_store %arg9[%c0_29, %c134, %c0_30], %43 {strides = array<i32>} : memref<2x272x128xf32, #tpu.memory_space<vmem>>, vector<1x2x128xf32>,
    %c0_31 = arith.constant 0 : index
    %c150 = arith.constant 150 : index
    %c0_32 = arith.constant 0 : index
    %44 = vector.load %arg9[%c0_31, %c150, %c0_32] : memref<2x272x128xf32, #tpu.memory_space<vmem>>, vector<1x2x128xf32>
    %45 = vector.shape_cast %44 : vector<1x2x128xf32> to vector<2x128xf32>
    %46 = vector.shape_cast %2 : vector<2x128xf32> to vector<1x2x128xf32>
    tpu.vector_store %arg9[%c0_31, %c150, %c0_32], %46 {strides = array<i32>} : memref<2x272x128xf32, #tpu.memory_space<vmem>>, vector<1x2x128xf32>,
    %c0_33 = arith.constant 0 : index
    %c166 = arith.constant 166 : index
    %c0_34 = arith.constant 0 : index
    %47 = vector.load %arg9[%c0_33, %c166, %c0_34] : memref<2x272x128xf32, #tpu.memory_space<vmem>>, vector<1x2x128xf32>
    %48 = vector.shape_cast %47 : vector<1x2x128xf32> to vector<2x128xf32>
    %49 = vector.shape_cast %2 : vector<2x128xf32> to vector<1x2x128xf32>
    tpu.vector_store %arg9[%c0_33, %c166, %c0_34], %49 {strides = array<i32>} : memref<2x272x128xf32, #tpu.memory_space<vmem>>, vector<1x2x128xf32>,
    %c0_35 = arith.constant 0 : index
    %c182 = arith.constant 182 : index
    %c0_36 = arith.constant 0 : index
    %50 = vector.load %arg9[%c0_35, %c182, %c0_36] : memref<2x272x128xf32, #tpu.memory_space<vmem>>, vector<1x2x128xf32>
    %51 = vector.shape_cast %50 : vector<1x2x128xf32> to vector<2x128xf32>
    %52 = vector.shape_cast %2 : vector<2x128xf32> to vector<1x2x128xf32>
    tpu.vector_store %arg9[%c0_35, %c182, %c0_36], %52 {strides = array<i32>} : memref<2x272x128xf32, #tpu.memory_space<vmem>>, vector<1x2x128xf32>,
    %c0_37 = arith.constant 0 : index
    %c198 = arith.constant 198 : index
    %c0_38 = arith.constant 0 : index
    %53 = vector.load %arg9[%c0_37, %c198, %c0_38] : memref<2x272x128xf32, #tpu.memory_space<vmem>>, vector<1x2x128xf32>
    %54 = vector.shape_cast %53 : vector<1x2x128xf32> to vector<2x128xf32>
    %55 = vector.shape_cast %2 : vector<2x128xf32> to vector<1x2x128xf32>
    tpu.vector_store %arg9[%c0_37, %c198, %c0_38], %55 {strides = array<i32>} : memref<2x272x128xf32, #tpu.memory_space<vmem>>, vector<1x2x128xf32>,
    %c0_39 = arith.constant 0 : index
    %c214 = arith.constant 214 : index
    %c0_40 = arith.constant 0 : index
    %56 = vector.load %arg9[%c0_39, %c214, %c0_40] : memref<2x272x128xf32, #tpu.memory_space<vmem>>, vector<1x2x128xf32>
    %57 = vector.shape_cast %56 : vector<1x2x128xf32> to vector<2x128xf32>
    %58 = vector.shape_cast %2 : vector<2x128xf32> to vector<1x2x128xf32>
    tpu.vector_store %arg9[%c0_39, %c214, %c0_40], %58 {strides = array<i32>} : memref<2x272x128xf32, #tpu.memory_space<vmem>>, vector<1x2x128xf32>,
    %c0_41 = arith.constant 0 : index
    %c230 = arith.constant 230 : index
    %c0_42 = arith.constant 0 : index
    %59 = vector.load %arg9[%c0_41, %c230, %c0_42] : memref<2x272x128xf32, #tpu.memory_space<vmem>>, vector<1x2x128xf32>
    %60 = vector.shape_cast %59 : vector<1x2x128xf32> to vector<2x128xf32>
    %61 = vector.shape_cast %2 : vector<2x128xf32> to vector<1x2x128xf32>
    tpu.vector_store %arg9[%c0_41, %c230, %c0_42], %61 {strides = array<i32>} : memref<2x272x128xf32, #tpu.memory_space<vmem>>, vector<1x2x128xf32>,
    %c0_43 = arith.constant 0 : index
    %c7_44 = arith.constant 7 : index
    %c0_45 = arith.constant 0 : index
    %62 = vector.load %arg9[%c0_43, %c7_44, %c0_45] : memref<2x272x128xf32, #tpu.memory_space<vmem>>, vector<1x224x128xf32>
    %63 = vector.shape_cast %62 : vector<1x224x128xf32> to vector<224x128xf32>
    %64 = arith.truncf %63 : vector<224x128xf32> to vector<224x128xbf16>
    %c0_46 = arith.constant 0 : index
    %c0_47 = arith.constant 0 : index
    %c0_48 = arith.constant 0 : index
    %65 = vector.load %arg10[%c0_46, %c0_47, %c0_48] : memref<2x224x384xbf16, #tpu.memory_space<vmem>>, vector<1x224x128xbf16>
    %66 = vector.shape_cast %65 : vector<1x224x128xbf16> to vector<224x128xbf16>
    %67 = vector.shape_cast %64 : vector<224x128xbf16> to vector<1x224x128xbf16>
    tpu.vector_store %arg10[%c0_46, %c0_47, %c0_48], %67 {strides = array<i32>} : memref<2x224x384xbf16, #tpu.memory_space<vmem>>, vector<1x224x128xbf16>,
    %c0_49 = arith.constant 0 : index
    %c8 = arith.constant 8 : index
    %c0_50 = arith.constant 0 : index
    %68 = vector.load %arg9[%c0_49, %c8, %c0_50] : memref<2x272x128xf32, #tpu.memory_space<vmem>>, vector<1x224x128xf32>
    %69 = vector.shape_cast %68 : vector<1x224x128xf32> to vector<224x128xf32>
    %70 = arith.truncf %69 : vector<224x128xf32> to vector<224x128xbf16>
    %c0_51 = arith.constant 0 : index
    %c0_52 = arith.constant 0 : index
    %c128 = arith.constant 128 : index
    %71 = vector.load %arg10[%c0_51, %c0_52, %c128] : memref<2x224x384xbf16, #tpu.memory_space<vmem>>, vector<1x224x128xbf16>
    %72 = vector.shape_cast %71 : vector<1x224x128xbf16> to vector<224x128xbf16>
    %73 = vector.shape_cast %70 : vector<224x128xbf16> to vector<1x224x128xbf16>
    tpu.vector_store %arg10[%c0_51, %c0_52, %c128], %73 {strides = array<i32>} : memref<2x224x384xbf16, #tpu.memory_space<vmem>>, vector<1x224x128xbf16>,
    %c0_53 = arith.constant 0 : index
    %c9 = arith.constant 9 : index
    %c0_54 = arith.constant 0 : index
    %74 = vector.load %arg9[%c0_53, %c9, %c0_54] : memref<2x272x128xf32, #tpu.memory_space<vmem>>, vector<1x224x128xf32>
    %75 = vector.shape_cast %74 : vector<1x224x128xf32> to vector<224x128xf32>
    %76 = arith.truncf %75 : vector<224x128xf32> to vector<224x128xbf16>
    %c0_55 = arith.constant 0 : index
    %c0_56 = arith.constant 0 : index
    %c256 = arith.constant 256 : index
    %77 = vector.load %arg10[%c0_55, %c0_56, %c256] : memref<2x224x384xbf16, #tpu.memory_space<vmem>>, vector<1x224x128xbf16>
    %78 = vector.shape_cast %77 : vector<1x224x128xbf16> to vector<224x128xbf16>
    %79 = vector.shape_cast %76 : vector<224x128xbf16> to vector<1x224x128xbf16>
    tpu.vector_store %arg10[%c0_55, %c0_56, %c256], %79 {strides = array<i32>} : memref<2x224x384xbf16, #tpu.memory_space<vmem>>, vector<1x224x128xbf16>,
    %c0_57 = arith.constant 0 : index
    %c0_58 = arith.constant 0 : index
    %c0_59 = arith.constant 0 : index
    %80 = vector.load %arg10[%c0_57, %c0_58, %c0_59] : memref<2x224x384xbf16, #tpu.memory_space<vmem>>, vector<1x224x384xbf16>
    %81 = vector.shape_cast %80 : vector<1x224x384xbf16> to vector<224x384xbf16>
    %c0_60 = arith.constant 0 : index
    %c0_61 = arith.constant 0 : index
    %c0_62 = arith.constant 0 : index
    %82 = vector.load %arg4[%c0_60, %c0_61, %c0_62] : memref<3x384x256xbf16, #tpu.memory_space<vmem>>, vector<1x384x256xbf16>
    %83 = vector.shape_cast %82 : vector<1x384x256xbf16> to vector<384x256xbf16>
    %cst_63 = arith.constant dense<0.000000e+00> : vector<224x256xf32>
    %84 = tpu.matmul %81, %83, %cst_63 {dimension_numbers = #tpu.dot_dimension_numbers<[1], [0], [0], [1], [0, 0, 1, 1], [], []>} : vector<224x384xbf16>, vector<384x256xbf16>, vector<224x256xf32> -> vector<224x256xf32>
    %c0_64 = arith.constant 0 : index
    %c23 = arith.constant 23 : index
    %c0_65 = arith.constant 0 : index
    %85 = vector.load %arg9[%c0_64, %c23, %c0_65] : memref<2x272x128xf32, #tpu.memory_space<vmem>>, vector<1x224x128xf32>
    %86 = vector.shape_cast %85 : vector<1x224x128xf32> to vector<224x128xf32>
    %87 = arith.truncf %86 : vector<224x128xf32> to vector<224x128xbf16>
    %c1 = arith.constant 1 : index
    %c0_66 = arith.constant 0 : index
    %c0_67 = arith.constant 0 : index
    %88 = vector.load %arg10[%c1, %c0_66, %c0_67] : memref<2x224x384xbf16, #tpu.memory_space<vmem>>, vector<1x224x128xbf16>
    %89 = vector.shape_cast %88 : vector<1x224x128xbf16> to vector<224x128xbf16>
    %90 = vector.shape_cast %87 : vector<224x128xbf16> to vector<1x224x128xbf16>
    tpu.vector_store %arg10[%c1, %c0_66, %c0_67], %90 {strides = array<i32>} : memref<2x224x384xbf16, #tpu.memory_space<vmem>>, vector<1x224x128xbf16>,
    %c0_68 = arith.constant 0 : index
    %c24_69 = arith.constant 24 : index
    %c0_70 = arith.constant 0 : index
    %91 = vector.load %arg9[%c0_68, %c24_69, %c0_70] : memref<2x272x128xf32, #tpu.memory_space<vmem>>, vector<1x224x128xf32>
    %92 = vector.shape_cast %91 : vector<1x224x128xf32> to vector<224x128xf32>
    %93 = arith.truncf %92 : vector<224x128xf32> to vector<224x128xbf16>
    %c1_71 = arith.constant 1 : index
    %c0_72 = arith.constant 0 : index
    %c128_73 = arith.constant 128 : index
    %94 = vector.load %arg10[%c1_71, %c0_72, %c128_73] : memref<2x224x384xbf16, #tpu.memory_space<vmem>>, vector<1x224x128xbf16>
    %95 = vector.shape_cast %94 : vector<1x224x128xbf16> to vector<224x128xbf16>
    %96 = vector.shape_cast %93 : vector<224x128xbf16> to vector<1x224x128xbf16>
    tpu.vector_store %arg10[%c1_71, %c0_72, %c128_73], %96 {strides = array<i32>} : memref<2x224x384xbf16, #tpu.memory_space<vmem>>, vector<1x224x128xbf16>,
    %c0_74 = arith.constant 0 : index
    %c25 = arith.constant 25 : index
    %c0_75 = arith.constant 0 : index
    %97 = vector.load %arg9[%c0_74, %c25, %c0_75] : memref<2x272x128xf32, #tpu.memory_space<vmem>>, vector<1x224x128xf32>
    %98 = vector.shape_cast %97 : vector<1x224x128xf32> to vector<224x128xf32>
    %99 = arith.truncf %98 : vector<224x128xf32> to vector<224x128xbf16>
    %c1_76 = arith.constant 1 : index
    %c0_77 = arith.constant 0 : index
    %c256_78 = arith.constant 256 : index
    %100 = vector.load %arg10[%c1_76, %c0_77, %c256_78] : memref<2x224x384xbf16, #tpu.memory_space<vmem>>, vector<1x224x128xbf16>
    %101 = vector.shape_cast %100 : vector<1x224x128xbf16> to vector<224x128xbf16>
    %102 = vector.shape_cast %99 : vector<224x128xbf16> to vector<1x224x128xbf16>
    tpu.vector_store %arg10[%c1_76, %c0_77, %c256_78], %102 {strides = array<i32>} : memref<2x224x384xbf16, #tpu.memory_space<vmem>>, vector<1x224x128xbf16>,
    %c1_79 = arith.constant 1 : index
    %c0_80 = arith.constant 0 : index
    %c0_81 = arith.constant 0 : index
    %103 = vector.load %arg10[%c1_79, %c0_80, %c0_81] : memref<2x224x384xbf16, #tpu.memory_space<vmem>>, vector<1x224x384xbf16>
    %104 = vector.shape_cast %103 : vector<1x224x384xbf16> to vector<224x384xbf16>
    %c1_82 = arith.constant 1 : index
    %c0_83 = arith.constant 0 : index
    %c0_84 = arith.constant 0 : index
    %105 = vector.load %arg4[%c1_82, %c0_83, %c0_84] : memref<3x384x256xbf16, #tpu.memory_space<vmem>>, vector<1x384x256xbf16>
    %106 = vector.shape_cast %105 : vector<1x384x256xbf16> to vector<384x256xbf16>
    %cst_85 = arith.constant dense<0.000000e+00> : vector<224x256xf32>
    %107 = tpu.matmul %104, %106, %cst_85 {dimension_numbers = #tpu.dot_dimension_numbers<[1], [0], [0], [1], [0, 0, 1, 1], [], []>} : vector<224x384xbf16>, vector<384x256xbf16>, vector<224x256xf32> -> vector<224x256xf32>
    %108 = arith.addf %84, %107 : vector<224x256xf32>
    %c0_86 = arith.constant 0 : index
    %c39 = arith.constant 39 : index
    %c0_87 = arith.constant 0 : index
    %109 = vector.load %arg9[%c0_86, %c39, %c0_87] : memref<2x272x128xf32, #tpu.memory_space<vmem>>, vector<1x224x128xf32>
    %110 = vector.shape_cast %109 : vector<1x224x128xf32> to vector<224x128xf32>
    %111 = arith.truncf %110 : vector<224x128xf32> to vector<224x128xbf16>
    %c0_88 = arith.constant 0 : index
    %c0_89 = arith.constant 0 : index
    %c0_90 = arith.constant 0 : index
    %112 = vector.load %arg10[%c0_88, %c0_89, %c0_90] : memref<2x224x384xbf16, #tpu.memory_space<vmem>>, vector<1x224x128xbf16>
    %113 = vector.shape_cast %112 : vector<1x224x128xbf16> to vector<224x128xbf16>
    %114 = vector.shape_cast %111 : vector<224x128xbf16> to vector<1x224x128xbf16>
    tpu.vector_store %arg10[%c0_88, %c0_89, %c0_90], %114 {strides = array<i32>} : memref<2x224x384xbf16, #tpu.memory_space<vmem>>, vector<1x224x128xbf16>,
    %c0_91 = arith.constant 0 : index
    %c40 = arith.constant 40 : index
    %c0_92 = arith.constant 0 : index
    %115 = vector.load %arg9[%c0_91, %c40, %c0_92] : memref<2x272x128xf32, #tpu.memory_space<vmem>>, vector<1x224x128xf32>
    %116 = vector.shape_cast %115 : vector<1x224x128xf32> to vector<224x128xf32>
    %117 = arith.truncf %116 : vector<224x128xf32> to vector<224x128xbf16>
    %c0_93 = arith.constant 0 : index
    %c0_94 = arith.constant 0 : index
    %c128_95 = arith.constant 128 : index
    %118 = vector.load %arg10[%c0_93, %c0_94, %c128_95] : memref<2x224x384xbf16, #tpu.memory_space<vmem>>, vector<1x224x128xbf16>
    %119 = vector.shape_cast %118 : vector<1x224x128xbf16> to vector<224x128xbf16>
    %120 = vector.shape_cast %117 : vector<224x128xbf16> to vector<1x224x128xbf16>
    tpu.vector_store %arg10[%c0_93, %c0_94, %c128_95], %120 {strides = array<i32>} : memref<2x224x384xbf16, #tpu.memory_space<vmem>>, vector<1x224x128xbf16>,
    %c0_96 = arith.constant 0 : index
    %c41 = arith.constant 41 : index
    %c0_97 = arith.constant 0 : index
    %121 = vector.load %arg9[%c0_96, %c41, %c0_97] : memref<2x272x128xf32, #tpu.memory_space<vmem>>, vector<1x224x128xf32>
    %122 = vector.shape_cast %121 : vector<1x224x128xf32> to vector<224x128xf32>
    %123 = arith.truncf %122 : vector<224x128xf32> to vector<224x128xbf16>
    %c0_98 = arith.constant 0 : index
    %c0_99 = arith.constant 0 : index
    %c256_100 = arith.constant 256 : index
    %124 = vector.load %arg10[%c0_98, %c0_99, %c256_100] : memref<2x224x384xbf16, #tpu.memory_space<vmem>>, vector<1x224x128xbf16>
    %125 = vector.shape_cast %124 : vector<1x224x128xbf16> to vector<224x128xbf16>
    %126 = vector.shape_cast %123 : vector<224x128xbf16> to vector<1x224x128xbf16>
    tpu.vector_store %arg10[%c0_98, %c0_99, %c256_100], %126 {strides = array<i32>} : memref<2x224x384xbf16, #tpu.memory_space<vmem>>, vector<1x224x128xbf16>,
    %c0_101 = arith.constant 0 : index
    %c0_102 = arith.constant 0 : index
    %c0_103 = arith.constant 0 : index
    %127 = vector.load %arg10[%c0_101, %c0_102, %c0_103] : memref<2x224x384xbf16, #tpu.memory_space<vmem>>, vector<1x224x384xbf16>
    %128 = vector.shape_cast %127 : vector<1x224x384xbf16> to vector<224x384xbf16>
    %c2 = arith.constant 2 : index
    %c0_104 = arith.constant 0 : index
    %c0_105 = arith.constant 0 : index
    %129 = vector.load %arg4[%c2, %c0_104, %c0_105] : memref<3x384x256xbf16, #tpu.memory_space<vmem>>, vector<1x384x256xbf16>
    %130 = vector.shape_cast %129 : vector<1x384x256xbf16> to vector<384x256xbf16>
    %cst_106 = arith.constant dense<0.000000e+00> : vector<224x256xf32>
    %131 = tpu.matmul %128, %130, %cst_106 {dimension_numbers = #tpu.dot_dimension_numbers<[1], [0], [0], [1], [0, 0, 1, 1], [], []>} : vector<224x384xbf16>, vector<384x256xbf16>, vector<224x256xf32> -> vector<224x256xf32>
    %132 = arith.addf %108, %131 : vector<224x256xf32>
    %c0_107 = arith.constant 0 : index
    %c0_108 = arith.constant 0 : index
    %133 = vector.load %arg5[%c0_107, %c0_108] : memref<1x256xf32, #tpu.memory_space<vmem>>, vector<1x256xf32>
    %134 = vector.broadcast %133 : vector<1x256xf32> to vector<224x256xf32>
    %135 = arith.addf %132, %134 : vector<224x256xf32>
    %cst_109 = arith.constant 0.000000e+00 : f32
    %136 = vector.broadcast %cst_109 : f32 to vector<224x256xf32>
    %137 = arith.maximumf %135, %136 : vector<224x256xf32>
    %c0_110 = arith.constant 0 : index
    %c0_111 = arith.constant 0 : index
    %138 = vector.load %arg6[%c0_110, %c0_111] : memref<224x256xf32, #tpu.memory_space<vmem>>, vector<224x256xf32>
    %139 = arith.mulf %137, %138 : vector<224x256xf32>
    %cst_112 = arith.constant dense<0.000000e+00> : vector<256xf32>
    %140 = vector.multi_reduction <add>, %139, %cst_112 [0] : vector<224x256xf32> to vector<256xf32>
    %141 = vector.shape_cast %140 : vector<256xf32> to vector<1x256xf32>
    %cst_113 = arith.constant dense<0.000000e+00> : vector<1xf32>
    %142 = vector.multi_reduction <add>, %141, %cst_113 [1] : vector<1x256xf32> to vector<1xf32>
    %143 = vector.shape_cast %142 : vector<1xf32> to vector<1x1xf32>
    %c0_114 = arith.constant 0 : index
    %c0_115 = arith.constant 0 : index
    %144 = vector.load %arg7[%c0_114, %c0_115] : memref<1x1xf32, #tpu.memory_space<vmem>>, vector<1x1xf32>
    %145 = arith.addf %143, %144 : vector<1x1xf32>
    %c0_i32 = arith.constant 0 : i32
    %146 = vector.broadcast %c0_i32 : i32 to vector<1x2xi32>
    %147 = arith.cmpi eq, %3, %146 : vector<1x2xi32>
    %148 = vector.shape_cast %145 : vector<1x1xf32> to vector<1x1xf32>
    %149 = vector.broadcast %148 : vector<1x1xf32> to vector<1x2xf32>
    %150 = arith.select %147, %149, %4 : vector<1x2xi1>, vector<1x2xf32>
    %c1_116 = arith.constant 1 : index
    %c0_117 = arith.constant 0 : index
    %c0_118 = arith.constant 0 : index
    %151 = vector.load %arg1[%c1_116, %c0_117, %c0_118] : memref<2x222x36xbf16, #tpu.memory_space<vmem>>, vector<1x222x36xbf16>
    %152 = vector.shape_cast %151 : vector<1x222x36xbf16> to vector<222x36xbf16>
    %c0_119 = arith.constant 0 : index
    %c0_120 = arith.constant 0 : index
    %153 = vector.load %arg2[%c0_119, %c0_120] : memref<36x128xbf16, #tpu.memory_space<vmem>>, vector<36x128xbf16>
    %cst_121 = arith.constant dense<0.000000e+00> : vector<222x128xf32>
    %154 = tpu.matmul %152, %153, %cst_121 {dimension_numbers = #tpu.dot_dimension_numbers<[1], [0], [0], [1], [0, 0, 1, 1], [], []>} : vector<222x36xbf16>, vector<36x128xbf16>, vector<222x128xf32> -> vector<222x128xf32>
    %c0_122 = arith.constant 0 : index
    %c0_123 = arith.constant 0 : index
    %155 = vector.load %arg3[%c0_122, %c0_123] : memref<1x128xf32, #tpu.memory_space<vmem>>, vector<1x128xf32>
    %156 = vector.broadcast %155 : vector<1x128xf32> to vector<222x128xf32>
    %157 = arith.addf %154, %156 : vector<222x128xf32>
    %cst_124 = arith.constant 0.000000e+00 : f32
    %158 = vector.broadcast %cst_124 : f32 to vector<222x128xf32>
    %159 = arith.maximumf %157, %158 : vector<222x128xf32>
    %c1_125 = arith.constant 1 : index
    %c7_126 = arith.constant 7 : index
    %c0_127 = arith.constant 0 : index
    %160 = vector.load %arg9[%c1_125, %c7_126, %c0_127] : memref<2x272x128xf32, #tpu.memory_space<vmem>>, vector<1x17x128xf32>
    %161 = vector.shape_cast %160 : vector<1x17x128xf32> to vector<17x128xf32>
    %162 = vector.shape_cast %0 : vector<17x128xf32> to vector<1x17x128xf32>
    tpu.vector_store %arg9[%c1_125, %c7_126, %c0_127], %162 {strides = array<i32>} : memref<2x272x128xf32, #tpu.memory_space<vmem>>, vector<1x17x128xf32>,
    %c1_128 = arith.constant 1 : index
    %c246_129 = arith.constant 246 : index
    %c0_130 = arith.constant 0 : index
    %163 = vector.load %arg9[%c1_128, %c246_129, %c0_130] : memref<2x272x128xf32, #tpu.memory_space<vmem>>, vector<1x19x128xf32>
    %164 = vector.shape_cast %163 : vector<1x19x128xf32> to vector<19x128xf32>
    %165 = vector.shape_cast %1 : vector<19x128xf32> to vector<1x19x128xf32>
    tpu.vector_store %arg9[%c1_128, %c246_129, %c0_130], %165 {strides = array<i32>} : memref<2x272x128xf32, #tpu.memory_space<vmem>>, vector<1x19x128xf32>,
    %c1_131 = arith.constant 1 : index
    %c24_132 = arith.constant 24 : index
    %c0_133 = arith.constant 0 : index
    %166 = vector.load %arg9[%c1_131, %c24_132, %c0_133] : memref<2x272x128xf32, #tpu.memory_space<vmem>>, vector<1x222x128xf32>
    %167 = vector.shape_cast %166 : vector<1x222x128xf32> to vector<222x128xf32>
    %168 = vector.shape_cast %159 : vector<222x128xf32> to vector<1x222x128xf32>
    tpu.vector_store %arg9[%c1_131, %c24_132, %c0_133], %168 {strides = array<i32>} : memref<2x272x128xf32, #tpu.memory_space<vmem>>, vector<1x222x128xf32>,
    %c1_134 = arith.constant 1 : index
    %c38_135 = arith.constant 38 : index
    %c0_136 = arith.constant 0 : index
    %169 = vector.load %arg9[%c1_134, %c38_135, %c0_136] : memref<2x272x128xf32, #tpu.memory_space<vmem>>, vector<1x2x128xf32>
    %170 = vector.shape_cast %169 : vector<1x2x128xf32> to vector<2x128xf32>
    %171 = vector.shape_cast %2 : vector<2x128xf32> to vector<1x2x128xf32>
    tpu.vector_store %arg9[%c1_134, %c38_135, %c0_136], %171 {strides = array<i32>} : memref<2x272x128xf32, #tpu.memory_space<vmem>>, vector<1x2x128xf32>,
    %c1_137 = arith.constant 1 : index
    %c54_138 = arith.constant 54 : index
    %c0_139 = arith.constant 0 : index
    %172 = vector.load %arg9[%c1_137, %c54_138, %c0_139] : memref<2x272x128xf32, #tpu.memory_space<vmem>>, vector<1x2x128xf32>
    %173 = vector.shape_cast %172 : vector<1x2x128xf32> to vector<2x128xf32>
    %174 = vector.shape_cast %2 : vector<2x128xf32> to vector<1x2x128xf32>
    tpu.vector_store %arg9[%c1_137, %c54_138, %c0_139], %174 {strides = array<i32>} : memref<2x272x128xf32, #tpu.memory_space<vmem>>, vector<1x2x128xf32>,
    %c1_140 = arith.constant 1 : index
    %c70_141 = arith.constant 70 : index
    %c0_142 = arith.constant 0 : index
    %175 = vector.load %arg9[%c1_140, %c70_141, %c0_142] : memref<2x272x128xf32, #tpu.memory_space<vmem>>, vector<1x2x128xf32>
    %176 = vector.shape_cast %175 : vector<1x2x128xf32> to vector<2x128xf32>
    %177 = vector.shape_cast %2 : vector<2x128xf32> to vector<1x2x128xf32>
    tpu.vector_store %arg9[%c1_140, %c70_141, %c0_142], %177 {strides = array<i32>} : memref<2x272x128xf32, #tpu.memory_space<vmem>>, vector<1x2x128xf32>,
    %c1_143 = arith.constant 1 : index
    %c86_144 = arith.constant 86 : index
    %c0_145 = arith.constant 0 : index
    %178 = vector.load %arg9[%c1_143, %c86_144, %c0_145] : memref<2x272x128xf32, #tpu.memory_space<vmem>>, vector<1x2x128xf32>
    %179 = vector.shape_cast %178 : vector<1x2x128xf32> to vector<2x128xf32>
    %180 = vector.shape_cast %2 : vector<2x128xf32> to vector<1x2x128xf32>
    tpu.vector_store %arg9[%c1_143, %c86_144, %c0_145], %180 {strides = array<i32>} : memref<2x272x128xf32, #tpu.memory_space<vmem>>, vector<1x2x128xf32>,
    %c1_146 = arith.constant 1 : index
    %c102_147 = arith.constant 102 : index
    %c0_148 = arith.constant 0 : index
    %181 = vector.load %arg9[%c1_146, %c102_147, %c0_148] : memref<2x272x128xf32, #tpu.memory_space<vmem>>, vector<1x2x128xf32>
    %182 = vector.shape_cast %181 : vector<1x2x128xf32> to vector<2x128xf32>
    %183 = vector.shape_cast %2 : vector<2x128xf32> to vector<1x2x128xf32>
    tpu.vector_store %arg9[%c1_146, %c102_147, %c0_148], %183 {strides = array<i32>} : memref<2x272x128xf32, #tpu.memory_space<vmem>>, vector<1x2x128xf32>,
    %c1_149 = arith.constant 1 : index
    %c118_150 = arith.constant 118 : index
    %c0_151 = arith.constant 0 : index
    %184 = vector.load %arg9[%c1_149, %c118_150, %c0_151] : memref<2x272x128xf32, #tpu.memory_space<vmem>>, vector<1x2x128xf32>
    %185 = vector.shape_cast %184 : vector<1x2x128xf32> to vector<2x128xf32>
    %186 = vector.shape_cast %2 : vector<2x128xf32> to vector<1x2x128xf32>
    tpu.vector_store %arg9[%c1_149, %c118_150, %c0_151], %186 {strides = array<i32>} : memref<2x272x128xf32, #tpu.memory_space<vmem>>, vector<1x2x128xf32>,
    %c1_152 = arith.constant 1 : index
    %c134_153 = arith.constant 134 : index
    %c0_154 = arith.constant 0 : index
    %187 = vector.load %arg9[%c1_152, %c134_153, %c0_154] : memref<2x272x128xf32, #tpu.memory_space<vmem>>, vector<1x2x128xf32>
    %188 = vector.shape_cast %187 : vector<1x2x128xf32> to vector<2x128xf32>
    %189 = vector.shape_cast %2 : vector<2x128xf32> to vector<1x2x128xf32>
    tpu.vector_store %arg9[%c1_152, %c134_153, %c0_154], %189 {strides = array<i32>} : memref<2x272x128xf32, #tpu.memory_space<vmem>>, vector<1x2x128xf32>,
    %c1_155 = arith.constant 1 : index
    %c150_156 = arith.constant 150 : index
    %c0_157 = arith.constant 0 : index
    %190 = vector.load %arg9[%c1_155, %c150_156, %c0_157] : memref<2x272x128xf32, #tpu.memory_space<vmem>>, vector<1x2x128xf32>
    %191 = vector.shape_cast %190 : vector<1x2x128xf32> to vector<2x128xf32>
    %192 = vector.shape_cast %2 : vector<2x128xf32> to vector<1x2x128xf32>
    tpu.vector_store %arg9[%c1_155, %c150_156, %c0_157], %192 {strides = array<i32>} : memref<2x272x128xf32, #tpu.memory_space<vmem>>, vector<1x2x128xf32>,
    %c1_158 = arith.constant 1 : index
    %c166_159 = arith.constant 166 : index
    %c0_160 = arith.constant 0 : index
    %193 = vector.load %arg9[%c1_158, %c166_159, %c0_160] : memref<2x272x128xf32, #tpu.memory_space<vmem>>, vector<1x2x128xf32>
    %194 = vector.shape_cast %193 : vector<1x2x128xf32> to vector<2x128xf32>
    %195 = vector.shape_cast %2 : vector<2x128xf32> to vector<1x2x128xf32>
    tpu.vector_store %arg9[%c1_158, %c166_159, %c0_160], %195 {strides = array<i32>} : memref<2x272x128xf32, #tpu.memory_space<vmem>>, vector<1x2x128xf32>,
    %c1_161 = arith.constant 1 : index
    %c182_162 = arith.constant 182 : index
    %c0_163 = arith.constant 0 : index
    %196 = vector.load %arg9[%c1_161, %c182_162, %c0_163] : memref<2x272x128xf32, #tpu.memory_space<vmem>>, vector<1x2x128xf32>
    %197 = vector.shape_cast %196 : vector<1x2x128xf32> to vector<2x128xf32>
    %198 = vector.shape_cast %2 : vector<2x128xf32> to vector<1x2x128xf32>
    tpu.vector_store %arg9[%c1_161, %c182_162, %c0_163], %198 {strides = array<i32>} : memref<2x272x128xf32, #tpu.memory_space<vmem>>, vector<1x2x128xf32>,
    %c1_164 = arith.constant 1 : index
    %c198_165 = arith.constant 198 : index
    %c0_166 = arith.constant 0 : index
    %199 = vector.load %arg9[%c1_164, %c198_165, %c0_166] : memref<2x272x128xf32, #tpu.memory_space<vmem>>, vector<1x2x128xf32>
    %200 = vector.shape_cast %199 : vector<1x2x128xf32> to vector<2x128xf32>
    %201 = vector.shape_cast %2 : vector<2x128xf32> to vector<1x2x128xf32>
    tpu.vector_store %arg9[%c1_164, %c198_165, %c0_166], %201 {strides = array<i32>} : memref<2x272x128xf32, #tpu.memory_space<vmem>>, vector<1x2x128xf32>,
    %c1_167 = arith.constant 1 : index
    %c214_168 = arith.constant 214 : index
    %c0_169 = arith.constant 0 : index
    %202 = vector.load %arg9[%c1_167, %c214_168, %c0_169] : memref<2x272x128xf32, #tpu.memory_space<vmem>>, vector<1x2x128xf32>
    %203 = vector.shape_cast %202 : vector<1x2x128xf32> to vector<2x128xf32>
    %204 = vector.shape_cast %2 : vector<2x128xf32> to vector<1x2x128xf32>
    tpu.vector_store %arg9[%c1_167, %c214_168, %c0_169], %204 {strides = array<i32>} : memref<2x272x128xf32, #tpu.memory_space<vmem>>, vector<1x2x128xf32>,
    %c1_170 = arith.constant 1 : index
    %c230_171 = arith.constant 230 : index
    %c0_172 = arith.constant 0 : index
    %205 = vector.load %arg9[%c1_170, %c230_171, %c0_172] : memref<2x272x128xf32, #tpu.memory_space<vmem>>, vector<1x2x128xf32>
    %206 = vector.shape_cast %205 : vector<1x2x128xf32> to vector<2x128xf32>
    %207 = vector.shape_cast %2 : vector<2x128xf32> to vector<1x2x128xf32>
    tpu.vector_store %arg9[%c1_170, %c230_171, %c0_172], %207 {strides = array<i32>} : memref<2x272x128xf32, #tpu.memory_space<vmem>>, vector<1x2x128xf32>,
    %c1_173 = arith.constant 1 : index
    %c7_174 = arith.constant 7 : index
    %c0_175 = arith.constant 0 : index
    %208 = vector.load %arg9[%c1_173, %c7_174, %c0_175] : memref<2x272x128xf32, #tpu.memory_space<vmem>>, vector<1x224x128xf32>
    %209 = vector.shape_cast %208 : vector<1x224x128xf32> to vector<224x128xf32>
    %210 = arith.truncf %209 : vector<224x128xf32> to vector<224x128xbf16>
    %c1_176 = arith.constant 1 : index
    %c0_177 = arith.constant 0 : index
    %c0_178 = arith.constant 0 : index
    %211 = vector.load %arg10[%c1_176, %c0_177, %c0_178] : memref<2x224x384xbf16, #tpu.memory_space<vmem>>, vector<1x224x128xbf16>
    %212 = vector.shape_cast %211 : vector<1x224x128xbf16> to vector<224x128xbf16>
    %213 = vector.shape_cast %210 : vector<224x128xbf16> to vector<1x224x128xbf16>
    tpu.vector_store %arg10[%c1_176, %c0_177, %c0_178], %213 {strides = array<i32>} : memref<2x224x384xbf16, #tpu.memory_space<vmem>>, vector<1x224x128xbf16>,
    %c1_179 = arith.constant 1 : index
    %c8_180 = arith.constant 8 : index
    %c0_181 = arith.constant 0 : index
    %214 = vector.load %arg9[%c1_179, %c8_180, %c0_181] : memref<2x272x128xf32, #tpu.memory_space<vmem>>, vector<1x224x128xf32>
    %215 = vector.shape_cast %214 : vector<1x224x128xf32> to vector<224x128xf32>
    %216 = arith.truncf %215 : vector<224x128xf32> to vector<224x128xbf16>
    %c1_182 = arith.constant 1 : index
    %c0_183 = arith.constant 0 : index
    %c128_184 = arith.constant 128 : index
    %217 = vector.load %arg10[%c1_182, %c0_183, %c128_184] : memref<2x224x384xbf16, #tpu.memory_space<vmem>>, vector<1x224x128xbf16>
    %218 = vector.shape_cast %217 : vector<1x224x128xbf16> to vector<224x128xbf16>
    %219 = vector.shape_cast %216 : vector<224x128xbf16> to vector<1x224x128xbf16>
    tpu.vector_store %arg10[%c1_182, %c0_183, %c128_184], %219 {strides = array<i32>} : memref<2x224x384xbf16, #tpu.memory_space<vmem>>, vector<1x224x128xbf16>,
    %c1_185 = arith.constant 1 : index
    %c9_186 = arith.constant 9 : index
    %c0_187 = arith.constant 0 : index
    %220 = vector.load %arg9[%c1_185, %c9_186, %c0_187] : memref<2x272x128xf32, #tpu.memory_space<vmem>>, vector<1x224x128xf32>
    %221 = vector.shape_cast %220 : vector<1x224x128xf32> to vector<224x128xf32>
    %222 = arith.truncf %221 : vector<224x128xf32> to vector<224x128xbf16>
    %c1_188 = arith.constant 1 : index
    %c0_189 = arith.constant 0 : index
    %c256_190 = arith.constant 256 : index
    %223 = vector.load %arg10[%c1_188, %c0_189, %c256_190] : memref<2x224x384xbf16, #tpu.memory_space<vmem>>, vector<1x224x128xbf16>
    %224 = vector.shape_cast %223 : vector<1x224x128xbf16> to vector<224x128xbf16>
    %225 = vector.shape_cast %222 : vector<224x128xbf16> to vector<1x224x128xbf16>
    tpu.vector_store %arg10[%c1_188, %c0_189, %c256_190], %225 {strides = array<i32>} : memref<2x224x384xbf16, #tpu.memory_space<vmem>>, vector<1x224x128xbf16>,
    %c1_191 = arith.constant 1 : index
    %c0_192 = arith.constant 0 : index
    %c0_193 = arith.constant 0 : index
    %226 = vector.load %arg10[%c1_191, %c0_192, %c0_193] : memref<2x224x384xbf16, #tpu.memory_space<vmem>>, vector<1x224x384xbf16>
    %227 = vector.shape_cast %226 : vector<1x224x384xbf16> to vector<224x384xbf16>
    %c0_194 = arith.constant 0 : index
    %c0_195 = arith.constant 0 : index
    %c0_196 = arith.constant 0 : index
    %228 = vector.load %arg4[%c0_194, %c0_195, %c0_196] : memref<3x384x256xbf16, #tpu.memory_space<vmem>>, vector<1x384x256xbf16>
    %229 = vector.shape_cast %228 : vector<1x384x256xbf16> to vector<384x256xbf16>
    %cst_197 = arith.constant dense<0.000000e+00> : vector<224x256xf32>
    %230 = tpu.matmul %227, %229, %cst_197 {dimension_numbers = #tpu.dot_dimension_numbers<[1], [0], [0], [1], [0, 0, 1, 1], [], []>} : vector<224x384xbf16>, vector<384x256xbf16>, vector<224x256xf32> -> vector<224x256xf32>
    %c1_198 = arith.constant 1 : index
    %c23_199 = arith.constant 23 : index
    %c0_200 = arith.constant 0 : index
    %231 = vector.load %arg9[%c1_198, %c23_199, %c0_200] : memref<2x272x128xf32, #tpu.memory_space<vmem>>, vector<1x224x128xf32>
    %232 = vector.shape_cast %231 : vector<1x224x128xf32> to vector<224x128xf32>
    %233 = arith.truncf %232 : vector<224x128xf32> to vector<224x128xbf16>
    %c0_201 = arith.constant 0 : index
    %c0_202 = arith.constant 0 : index
    %c0_203 = arith.constant 0 : index
    %234 = vector.load %arg10[%c0_201, %c0_202, %c0_203] : memref<2x224x384xbf16, #tpu.memory_space<vmem>>, vector<1x224x128xbf16>
    %235 = vector.shape_cast %234 : vector<1x224x128xbf16> to vector<224x128xbf16>
    %236 = vector.shape_cast %233 : vector<224x128xbf16> to vector<1x224x128xbf16>
    tpu.vector_store %arg10[%c0_201, %c0_202, %c0_203], %236 {strides = array<i32>} : memref<2x224x384xbf16, #tpu.memory_space<vmem>>, vector<1x224x128xbf16>,
    %c1_204 = arith.constant 1 : index
    %c24_205 = arith.constant 24 : index
    %c0_206 = arith.constant 0 : index
    %237 = vector.load %arg9[%c1_204, %c24_205, %c0_206] : memref<2x272x128xf32, #tpu.memory_space<vmem>>, vector<1x224x128xf32>
    %238 = vector.shape_cast %237 : vector<1x224x128xf32> to vector<224x128xf32>
    %239 = arith.truncf %238 : vector<224x128xf32> to vector<224x128xbf16>
    %c0_207 = arith.constant 0 : index
    %c0_208 = arith.constant 0 : index
    %c128_209 = arith.constant 128 : index
    %240 = vector.load %arg10[%c0_207, %c0_208, %c128_209] : memref<2x224x384xbf16, #tpu.memory_space<vmem>>, vector<1x224x128xbf16>
    %241 = vector.shape_cast %240 : vector<1x224x128xbf16> to vector<224x128xbf16>
    %242 = vector.shape_cast %239 : vector<224x128xbf16> to vector<1x224x128xbf16>
    tpu.vector_store %arg10[%c0_207, %c0_208, %c128_209], %242 {strides = array<i32>} : memref<2x224x384xbf16, #tpu.memory_space<vmem>>, vector<1x224x128xbf16>,
    %c1_210 = arith.constant 1 : index
    %c25_211 = arith.constant 25 : index
    %c0_212 = arith.constant 0 : index
    %243 = vector.load %arg9[%c1_210, %c25_211, %c0_212] : memref<2x272x128xf32, #tpu.memory_space<vmem>>, vector<1x224x128xf32>
    %244 = vector.shape_cast %243 : vector<1x224x128xf32> to vector<224x128xf32>
    %245 = arith.truncf %244 : vector<224x128xf32> to vector<224x128xbf16>
    %c0_213 = arith.constant 0 : index
    %c0_214 = arith.constant 0 : index
    %c256_215 = arith.constant 256 : index
    %246 = vector.load %arg10[%c0_213, %c0_214, %c256_215] : memref<2x224x384xbf16, #tpu.memory_space<vmem>>, vector<1x224x128xbf16>
    %247 = vector.shape_cast %246 : vector<1x224x128xbf16> to vector<224x128xbf16>
    %248 = vector.shape_cast %245 : vector<224x128xbf16> to vector<1x224x128xbf16>
    tpu.vector_store %arg10[%c0_213, %c0_214, %c256_215], %248 {strides = array<i32>} : memref<2x224x384xbf16, #tpu.memory_space<vmem>>, vector<1x224x128xbf16>,
    %c0_216 = arith.constant 0 : index
    %c0_217 = arith.constant 0 : index
    %c0_218 = arith.constant 0 : index
    %249 = vector.load %arg10[%c0_216, %c0_217, %c0_218] : memref<2x224x384xbf16, #tpu.memory_space<vmem>>, vector<1x224x384xbf16>
    %250 = vector.shape_cast %249 : vector<1x224x384xbf16> to vector<224x384xbf16>
    %c1_219 = arith.constant 1 : index
    %c0_220 = arith.constant 0 : index
    %c0_221 = arith.constant 0 : index
    %251 = vector.load %arg4[%c1_219, %c0_220, %c0_221] : memref<3x384x256xbf16, #tpu.memory_space<vmem>>, vector<1x384x256xbf16>
    %252 = vector.shape_cast %251 : vector<1x384x256xbf16> to vector<384x256xbf16>
    %cst_222 = arith.constant dense<0.000000e+00> : vector<224x256xf32>
    %253 = tpu.matmul %250, %252, %cst_222 {dimension_numbers = #tpu.dot_dimension_numbers<[1], [0], [0], [1], [0, 0, 1, 1], [], []>} : vector<224x384xbf16>, vector<384x256xbf16>, vector<224x256xf32> -> vector<224x256xf32>
    %254 = arith.addf %230, %253 : vector<224x256xf32>
    %c1_223 = arith.constant 1 : index
    %c39_224 = arith.constant 39 : index
    %c0_225 = arith.constant 0 : index
    %255 = vector.load %arg9[%c1_223, %c39_224, %c0_225] : memref<2x272x128xf32, #tpu.memory_space<vmem>>, vector<1x224x128xf32>
    %256 = vector.shape_cast %255 : vector<1x224x128xf32> to vector<224x128xf32>
    %257 = arith.truncf %256 : vector<224x128xf32> to vector<224x128xbf16>
    %c1_226 = arith.constant 1 : index
    %c0_227 = arith.constant 0 : index
    %c0_228 = arith.constant 0 : index
    %258 = vector.load %arg10[%c1_226, %c0_227, %c0_228] : memref<2x224x384xbf16, #tpu.memory_space<vmem>>, vector<1x224x128xbf16>
    %259 = vector.shape_cast %258 : vector<1x224x128xbf16> to vector<224x128xbf16>
    %260 = vector.shape_cast %257 : vector<224x128xbf16> to vector<1x224x128xbf16>
    tpu.vector_store %arg10[%c1_226, %c0_227, %c0_228], %260 {strides = array<i32>} : memref<2x224x384xbf16, #tpu.memory_space<vmem>>, vector<1x224x128xbf16>,
    %c1_229 = arith.constant 1 : index
    %c40_230 = arith.constant 40 : index
    %c0_231 = arith.constant 0 : index
    %261 = vector.load %arg9[%c1_229, %c40_230, %c0_231] : memref<2x272x128xf32, #tpu.memory_space<vmem>>, vector<1x224x128xf32>
    %262 = vector.shape_cast %261 : vector<1x224x128xf32> to vector<224x128xf32>
    %263 = arith.truncf %262 : vector<224x128xf32> to vector<224x128xbf16>
    %c1_232 = arith.constant 1 : index
    %c0_233 = arith.constant 0 : index
    %c128_234 = arith.constant 128 : index
    %264 = vector.load %arg10[%c1_232, %c0_233, %c128_234] : memref<2x224x384xbf16, #tpu.memory_space<vmem>>, vector<1x224x128xbf16>
    %265 = vector.shape_cast %264 : vector<1x224x128xbf16> to vector<224x128xbf16>
    %266 = vector.shape_cast %263 : vector<224x128xbf16> to vector<1x224x128xbf16>
    tpu.vector_store %arg10[%c1_232, %c0_233, %c128_234], %266 {strides = array<i32>} : memref<2x224x384xbf16, #tpu.memory_space<vmem>>, vector<1x224x128xbf16>,
    %c1_235 = arith.constant 1 : index
    %c41_236 = arith.constant 41 : index
    %c0_237 = arith.constant 0 : index
    %267 = vector.load %arg9[%c1_235, %c41_236, %c0_237] : memref<2x272x128xf32, #tpu.memory_space<vmem>>, vector<1x224x128xf32>
    %268 = vector.shape_cast %267 : vector<1x224x128xf32> to vector<224x128xf32>
    %269 = arith.truncf %268 : vector<224x128xf32> to vector<224x128xbf16>
    %c1_238 = arith.constant 1 : index
    %c0_239 = arith.constant 0 : index
    %c256_240 = arith.constant 256 : index
    %270 = vector.load %arg10[%c1_238, %c0_239, %c256_240] : memref<2x224x384xbf16, #tpu.memory_space<vmem>>, vector<1x224x128xbf16>
    %271 = vector.shape_cast %270 : vector<1x224x128xbf16> to vector<224x128xbf16>
    %272 = vector.shape_cast %269 : vector<224x128xbf16> to vector<1x224x128xbf16>
    tpu.vector_store %arg10[%c1_238, %c0_239, %c256_240], %272 {strides = array<i32>} : memref<2x224x384xbf16, #tpu.memory_space<vmem>>, vector<1x224x128xbf16>,
    %c1_241 = arith.constant 1 : index
    %c0_242 = arith.constant 0 : index
    %c0_243 = arith.constant 0 : index
    %273 = vector.load %arg10[%c1_241, %c0_242, %c0_243] : memref<2x224x384xbf16, #tpu.memory_space<vmem>>, vector<1x224x384xbf16>
    %274 = vector.shape_cast %273 : vector<1x224x384xbf16> to vector<224x384xbf16>
    %c2_244 = arith.constant 2 : index
    %c0_245 = arith.constant 0 : index
    %c0_246 = arith.constant 0 : index
    %275 = vector.load %arg4[%c2_244, %c0_245, %c0_246] : memref<3x384x256xbf16, #tpu.memory_space<vmem>>, vector<1x384x256xbf16>
    %276 = vector.shape_cast %275 : vector<1x384x256xbf16> to vector<384x256xbf16>
    %cst_247 = arith.constant dense<0.000000e+00> : vector<224x256xf32>
    %277 = tpu.matmul %274, %276, %cst_247 {dimension_numbers = #tpu.dot_dimension_numbers<[1], [0], [0], [1], [0, 0, 1, 1], [], []>} : vector<224x384xbf16>, vector<384x256xbf16>, vector<224x256xf32> -> vector<224x256xf32>
    %278 = arith.addf %254, %277 : vector<224x256xf32>
    %c0_248 = arith.constant 0 : index
    %c0_249 = arith.constant 0 : index
    %279 = vector.load %arg5[%c0_248, %c0_249] : memref<1x256xf32, #tpu.memory_space<vmem>>, vector<1x256xf32>
    %280 = vector.broadcast %279 : vector<1x256xf32> to vector<224x256xf32>
    %281 = arith.addf %278, %280 : vector<224x256xf32>
    %cst_250 = arith.constant 0.000000e+00 : f32
    %282 = vector.broadcast %cst_250 : f32 to vector<224x256xf32>
    %283 = arith.maximumf %281, %282 : vector<224x256xf32>
    %c0_251 = arith.constant 0 : index
    %c0_252 = arith.constant 0 : index
    %284 = vector.load %arg6[%c0_251, %c0_252] : memref<224x256xf32, #tpu.memory_space<vmem>>, vector<224x256xf32>
    %285 = arith.mulf %283, %284 : vector<224x256xf32>
    %cst_253 = arith.constant dense<0.000000e+00> : vector<256xf32>
    %286 = vector.multi_reduction <add>, %285, %cst_253 [0] : vector<224x256xf32> to vector<256xf32>
    %287 = vector.shape_cast %286 : vector<256xf32> to vector<1x256xf32>
    %cst_254 = arith.constant dense<0.000000e+00> : vector<1xf32>
    %288 = vector.multi_reduction <add>, %287, %cst_254 [1] : vector<1x256xf32> to vector<1xf32>
    %289 = vector.shape_cast %288 : vector<1xf32> to vector<1x1xf32>
    %c0_255 = arith.constant 0 : index
    %c0_256 = arith.constant 0 : index
    %290 = vector.load %arg7[%c0_255, %c0_256] : memref<1x1xf32, #tpu.memory_space<vmem>>, vector<1x1xf32>
    %291 = arith.addf %289, %290 : vector<1x1xf32>
    %c1_i32 = arith.constant 1 : i32
    %292 = vector.broadcast %c1_i32 : i32 to vector<1x2xi32>
    %293 = arith.cmpi eq, %3, %292 : vector<1x2xi32>
    %294 = vector.shape_cast %291 : vector<1x1xf32> to vector<1x1xf32>
    %295 = vector.broadcast %294 : vector<1x1xf32> to vector<1x2xf32>
    %296 = arith.select %293, %295, %150 : vector<1x2xi1>, vector<1x2xf32>
    %c0_257 = arith.constant 0 : index
    %c0_258 = arith.constant 0 : index
    %c0_259 = arith.constant 0 : index
    %297 = vector.load %arg8[%c0_257, %c0_258, %c0_259] : memref<1x1x2xf32, #tpu.memory_space<vmem>>, vector<1x1x2xf32>
    %298 = vector.shape_cast %297 : vector<1x1x2xf32> to vector<1x2xf32>
    %299 = vector.shape_cast %296 : vector<1x2xf32> to vector<1x1x2xf32>
    tpu.vector_store %arg8[%c0_257, %c0_258, %c0_259], %299 {strides = array<i32>} : memref<1x1x2xf32, #tpu.memory_space<vmem>>, vector<1x1x2xf32>,
    return
  }
  func.func @transform_0(%arg0: i32) -> (i32, i32, i32) {
    %c0_i32 = arith.constant 0 : i32
    %c0_i32_0 = arith.constant 0 : i32
    %c0_i32_1 = arith.constant 0 : i32
    return %arg0, %c0_i32, %c0_i32_0 : i32, i32, i32
  }
  func.func @transform_1(%arg0: i32) -> (i32, i32) {
    %c0_i32 = arith.constant 0 : i32
    %c0_i32_0 = arith.constant 0 : i32
    %c0_i32_1 = arith.constant 0 : i32
    return %c0_i32, %c0_i32_0 : i32, i32
  }
  func.func @transform_2(%arg0: i32) -> (i32, i32) {
    %c0_i32 = arith.constant 0 : i32
    %c0_i32_0 = arith.constant 0 : i32
    %c0_i32_1 = arith.constant 0 : i32
    return %c0_i32, %c0_i32_0 : i32, i32
  }
  func.func @transform_3(%arg0: i32) -> (i32, i32, i32) {
    %c0_i32 = arith.constant 0 : i32
    %c0_i32_0 = arith.constant 0 : i32
    %c0_i32_1 = arith.constant 0 : i32
    %c0_i32_2 = arith.constant 0 : i32
    return %c0_i32, %c0_i32_0, %c0_i32_1 : i32, i32, i32
  }
  func.func @transform_4(%arg0: i32) -> (i32, i32) {
    %c0_i32 = arith.constant 0 : i32
    %c0_i32_0 = arith.constant 0 : i32
    %c0_i32_1 = arith.constant 0 : i32
    return %c0_i32, %c0_i32_0 : i32, i32
  }
  func.func @transform_5(%arg0: i32) -> (i32, i32) {
    %c0_i32 = arith.constant 0 : i32
    %c0_i32_0 = arith.constant 0 : i32
    %c0_i32_1 = arith.constant 0 : i32
    return %c0_i32, %c0_i32_0 : i32, i32
  }
  func.func @transform_6(%arg0: i32) -> (i32, i32) {
    %c0_i32 = arith.constant 0 : i32
    %c0_i32_0 = arith.constant 0 : i32
    %c0_i32_1 = arith.constant 0 : i32
    return %c0_i32, %c0_i32_0 : i32, i32
  }
  func.func @transform_7(%arg0: i32) -> (i32, i32, i32) {
    %c0_i32 = arith.constant 0 : i32
    %c0_i32_0 = arith.constant 0 : i32
    %c0_i32_1 = arith.constant 0 : i32
    return %arg0, %c0_i32, %c0_i32_0 : i32, i32, i32
  }
}

</mosaic_0001>

<bundles_post_ra>
// kernel: model3_forward.1
= control target key start
LH: loop header
LB: loop body
LE: loop exit
PB: predicated region body
PF: predicated region fallthrough
CT: control target
= control target key end

     0   :  { %s15718_s0 = inlined_call_operand.vmem [shape: bf16[2,222,36], index: 0, kind: input, shape index: {}]   ;;  %s15719_s1 = inlined_call_operand.vmem [shape: bf16[36,128], index: 1, kind: input, shape index: {}]   ;;  %s15720_s2 = inlined_call_operand.vmem [shape: f32[1,128], index: 2, kind: input, shape index: {}]   ;;  %s15721_s3 = inlined_call_operand.vmem [shape: bf16[3,384,256], index: 3, kind: input, shape index: {}]   ;;  %s15722_s4 = inlined_call_operand.vmem [shape: f32[1,256], index: 4, kind: input, shape index: {}]   ;;  %s15723_s5 = inlined_call_operand.vmem [shape: f32[224,256], index: 5, kind: input, shape index: {}]   ;;  %s15724_s6 = inlined_call_operand.<no memory space> [shape: f32[1,1], index: 6, kind: input, shape index: {}]   ;;  %s15725_s7 = inlined_call_operand.hbm [shape: f32[1,1,2], index: 7, kind: output, shape index: {}]  }
   0x1   :  { %v12_v0 = vstv %s15724_s6 }
   0x2   :  { %13 = vst [vmem:[#allocation4] sm:$0x1] %v12_v0 }
   0x3   :  { %v12048_v1 = vld [vmem:[%s15719_s1 + $0x10] ss:$0 sps:$4 sm:$0x33]   ;;  %vm200_vm0 = vcmask 1041408   ;;  %v12049_v2 = vld [vmem:[%s15719_s1 + $0x8] sm:$0xff]   ;;  %vm157_vm1 = vcmask 293888  }
   0x4   :  { %12041 = vmatprep.subr.msk.bf16.mxu0 %vm200_vm0, %v12048_v1  ;;  %v202_v3 = vsel %vm200_vm0, %v12048_v1, 0  ;;  %v12051_v4 = vld [vmem:[%s15718_s0] sm:$0xff]   ;;  %v12052_v6 = vld [vmem:[%s15718_s0 + $0x8] sm:$0xff]   ;;  %v12053_v7 = vld [vmem:[%s15718_s0 + $0x10] sm:$0xff]   ;;  %v12847_v36 = vmov 0.0   ;;  %v12848_v57 = vmov 0.0|0.0  }
   0x5   :  { %11958 = vmatpush3.bf16.msra.mxu0 %v202_v3  ;;  %v12050_v5 = vld [vmem:[%s15719_s1] sm:$0xff]   ;;  %11963 = vmatprep.mubr.msk.bf16.mxu0 %vm157_vm1, %v12051_v4  ;;  %v12054_v8 = vld [vmem:[%s15718_s0 + $0x18] sm:$0xff]   ;;  %v12056_v15 = vld [vmem:[%s15718_s0 + $0x28] sm:$0xff]   ;;  %379 = vst [vmem:[#allocation2 + $0x17] sm:$0x1] %v12847_v36 }
   0x6   :  { %11959 = vmatprep.subr.bf16.mxu0 %v12049_v2  ;;  %v12065_v9 = vld [vmem:[%s15721_s3 + $0x1f4] ss:$8 sps:$4 sm:$0xff]   ;;  %v12067_v10 = vld [vmem:[%s15721_s3 + $0x1f0] ss:$8 sps:$4 sm:$0xff]   ;;  %v12055_v11 = vld [vmem:[%s15718_s0 + $0x20] sm:$0xff]   ;;  %377 = vst [vmem:[#allocation2 + $0x7] sm:$0xff] %v12847_v36 }
   0x7   :  { %2106 = vmatprep.subr.bf16.mxu1 %v12065_v9  ;;  %v12068_v12 = vld [vmem:[%s15721_s3 + $0x1e4] ss:$8 sps:$4 sm:$0xff]   ;;  %v12070_v13 = vld [vmem:[%s15721_s3 + $0x1e0] ss:$8 sps:$4 sm:$0xff]   ;;  %v12071_v14 = vld [vmem:[%s15721_s3 + $0x1d4] ss:$8 sps:$4 sm:$0xff]  }
   0x8   :  { %2107 = vmatpush1.bf16.msra.mxu1 %v12067_v10  ;;  %v12073_v16 = vld [vmem:[%s15721_s3 + $0x1d0] ss:$8 sps:$4 sm:$0xff]   ;;  %v12074_v17 = vld [vmem:[%s15721_s3 + $0x1c4] ss:$8 sps:$4 sm:$0xff]   ;;  %v12076_v19 = vld [vmem:[%s15721_s3 + $0x1c0] ss:$8 sps:$4 sm:$0xff]  }
   0x9   :  { %11960 = vmatpush3.bf16.msra.mxu0 %v12049_v2  ;;  %2108 = vmatprep.subr.bf16.mxu1 %v12068_v12  ;;  %v12057_v18 = vld [vmem:[%s15718_s0 + $0x30] sm:$0xff]   ;;  %v12080_v22 = vld [vmem:[%s15721_s3 + $0x1a4] ss:$8 sps:$4 sm:$0xff]   ;;  %v12058_v23 = vld [vmem:[%s15718_s0 + $0x38] sm:$0xff]   ;;  %378 = vst [vmem:[#allocation2 + $0xf] sm:$0xff] %v12847_v36 }
   0xa   :  { %11961 = vmatprep.subr.bf16.mxu0 %v12050_v5  ;;  %v12077_v20 = vld [vmem:[%s15721_s3 + $0x1b4] ss:$8 sps:$4 sm:$0xff]   ;;  %v12079_v21 = vld [vmem:[%s15721_s3 + $0x1b0] ss:$8 sps:$4 sm:$0xff]   ;;  %v12059_v24 = vld [vmem:[%s15718_s0 + $0x40] sm:$0xff]   ;;  %380 = vst [vmem:[#allocation2 + $0xf6] sm:$0xff] %v12847_v36 }
   0xb   :  { %v12082_v25 = vld [vmem:[%s15721_s3 + $0x1a0] ss:$8 sps:$4 sm:$0xff]   ;;  %v12083_v26 = vld [vmem:[%s15721_s3 + $0x194] ss:$8 sps:$4 sm:$0xff]   ;;  %v12085_v27 = vld [vmem:[%s15721_s3 + $0x190] ss:$8 sps:$4 sm:$0xff]  }
   0xc   :  { %2109 = vmatpush1.bf16.msra.mxu1 %v12070_v13  ;;  %v12086_v28 = vld [vmem:[%s15721_s3 + $0x184] ss:$8 sps:$4 sm:$0xff]   ;;  %v12061_v30 = vld [vmem:[%s15718_s0 + $0x50] sm:$0xff]   ;;  %v12088_v31 = vld [vmem:[%s15721_s3 + $0x180] ss:$8 sps:$4 sm:$0xff]   ;;  %381 = vst [vmem:[#allocation2 + $0xfe] sm:$0xff] %v12847_v36 }
   0xd   :  { %11962 = vmatpush3.bf16.msra.mxu0 %v12050_v5  ;;  %2110 = vmatprep.subr.bf16.mxu1 %v12071_v14  ;;  %v12060_v29 = vld [vmem:[%s15718_s0 + $0x48] sm:$0xff]   ;;  %v12062_v32 = vld [vmem:[%s15718_s0 + $0x58] sm:$0xff]   ;;  %v12063_v33 = vld [vmem:[%s15718_s0 + $0x60] sm:$0xff]   ;;  %382 = vst [vmem:[#allocation2 + $0x106] sm:$0x7] %v12847_v36 }
   0xe   :  { %v12064_v34 = vld [vmem:[%s15718_s0 + $0x68] sm:$0x7f]   ;;  %v12093_v35 = vld [vmem:[%s15721_s3 + $0x2f4] ss:$8 sps:$4 sm:$0xff]   ;;  %5400 = vst [vmem:[#allocation2 + $0x117] sm:$0xff] %v12847_v36  ;;  %5401 = vst [vmem:[#allocation2 + $0x11f] sm:$0xff] %v12847_v36 }
   0xf   :  { %5402 = vst [vmem:[#allocation2 + $0x127] sm:$0x1] %v12847_v36  ;;  %5403 = vst [vmem:[#allocation2 + $0x206] sm:$0xff] %v12847_v36  ;;  %v12089_v37 = vld [vmem:[%s15721_s3 + $0x274] ss:$8 sps:$4 sm:$0xff]   ;;  %2279 = vmatprep.subr.bf16.mxu0 %v12093_v35 }
  0x10   :  { %11964 = vmatmul.mubr.msk.bf16.vlgmr.msra.gmra.mxu0 %vm157_vm1, %v12052_v6  ;;  %2111 = vmatpush1.bf16.msra.mxu1 %v12073_v16  ;;  %5404 = vst [vmem:[#allocation2 + $0x20e] sm:$0xff] %v12847_v36  ;;  %5405 = vst [vmem:[#allocation2 + $0x216] sm:$0x7] %v12847_v36  ;;  %v12091_v38 = vld [vmem:[%s15721_s3 + $0x2f0] ss:$8 sps:$4 sm:$0xff]   ;;  %v592_v51 = vld [vmem:[#allocation2 + $0x8] sm:$0xff] }
  0x11   :  { %11967 = vmatprep.mubr.msk.bf16.mxu0 %vm157_vm1, %v12053_v7  ;;  %2112 = vmatprep.subr.bf16.mxu1 %v12074_v17  ;;  %v12094_v39 = vld [vmem:[%s15721_s3 + $0x270] ss:$8 sps:$4 sm:$0xff]   ;;  %v12099_v40 = vld [vmem:[%s15721_s3 + $0x2e4] ss:$8 sps:$4 sm:$0xff]   ;;  %v12097_v42 = vld [vmem:[%s15721_s3 + $0x2e0] ss:$8 sps:$4 sm:$0xff]   ;;  %v11447_v54 = vpack.c.bf16 %v592_v51, %v592_v51 }
  0x12   :  { %2280 = vmatpush1.bf16.msra.mxu0 %v12091_v38  ;;  %v12095_v41 = vld [vmem:[%s15721_s3 + $0x264] ss:$8 sps:$4 sm:$0xff]   ;;  %v12100_v43 = vld [vmem:[%s15721_s3 + $0x260] ss:$8 sps:$4 sm:$0xff]   ;;  %v12105_v44 = vld [vmem:[%s15721_s3 + $0x2d4] ss:$8 sps:$4 sm:$0xff]  }
  0x13   :  { %2281 = vmatprep.subr.bf16.mxu0 %v12099_v40  ;;  %v12101_v45 = vld [vmem:[%s15721_s3 + $0x254] ss:$8 sps:$4 sm:$0xff]   ;;  %v12103_v46 = vld [vmem:[%s15721_s3 + $0x2d0] ss:$8 sps:$4 sm:$0xff]   ;;  %v12111_v48 = vld [vmem:[%s15721_s3 + $0x2c4] ss:$8 sps:$4 sm:$0xff]  }
  0x14   :  { %2113 = vmatpush1.bf16.msra.mxu1 %v12076_v19  ;;  %v12106_v47 = vld [vmem:[%s15721_s3 + $0x250] ss:$8 sps:$4 sm:$0xff]   ;;  %v12107_v49 = vld [vmem:[%s15721_s3 + $0x244] ss:$8 sps:$4 sm:$0xff]   ;;  %v12109_v50 = vld [vmem:[%s15721_s3 + $0x2c0] ss:$8 sps:$4 sm:$0xff]  }
  0x15   :  { %2114 = vmatprep.subr.bf16.mxu1 %v12077_v20  ;;  %v12112_v52 = vld [vmem:[%s15721_s3 + $0x240] ss:$8 sps:$4 sm:$0xff]   ;;  %v593_v53 = vld [vmem:[#allocation2 + $0x10] sm:$0xff]  ;;  %564 = vst [vmem:[#allocation3] sm:$0xf] %v12848_v57 }
  0x16   :  { %2282 = vmatpush1.bf16.msra.mxu0 %v12097_v42  ;;  %v11448_v55 = vpack.c.bf16 %v593_v53, %v593_v53  ;;  %v12117_v56 = vld [vmem:[%s15721_s3 + $0x2b4] ss:$8 sps:$4 sm:$0xff]   ;;  %565 = vst [vmem:[#allocation3 + $0xc] sm:$0xf] %v12848_v57  ;;  %732 = vst [vmem:[#allocation3 + $0x4] sm:$0xf] %v11447_v54 }
  0x17   :  { %2283 = vmatprep.subr.bf16.mxu0 %v12105_v44  ;;  %v12113_v58 = vld [vmem:[%s15721_s3 + $0x234] ss:$8 sps:$4 sm:$0xff]   ;;  %v12115_v59 = vld [vmem:[%s15721_s3 + $0x2b0] ss:$8 sps:$4 sm:$0xff]   ;;  %v12123_v61 = vld [vmem:[%s15721_s3 + $0x2a4] ss:$8 sps:$4 sm:$0xff]  }
  0x18   :  { %11968 = vmatmul.mubr.msk.bf16.gmra.mxu0 %vm157_vm1, %v12054_v8  ;;  %2115 = vmatpush1.bf16.msra.mxu1 %v12079_v21  ;;  %733 = vst [vmem:[#allocation3 + $0x10] sm:$0xf] %v11448_v55  ;;  %v12118_v60 = vld [vmem:[%s15721_s3 + $0x230] ss:$8 sps:$4 sm:$0xff]   ;;  %v12119_v62 = vld [vmem:[%s15721_s3 + $0x224] ss:$8 sps:$4 sm:$0xff]  }
  0x19   :  { %11971 = vmatprep.mubr.msk.bf16.mxu0 %vm157_vm1, %v12055_v11  ;;  %2116 = vmatprep.subr.bf16.mxu1 %v12080_v22  ;;  %v12121_v63 = vld [vmem:[%s15721_s3 + $0x2a0] ss:$8 sps:$4 sm:$0xff]   ;;  %v12129_v2 = vld [vmem:[%s15721_s3 + $0x294] ss:$8 sps:$4 sm:$0xff]   ;;  %v12127_v5 = vld [vmem:[%s15721_s3 + $0x290] ss:$8 sps:$4 sm:$0xff]  }
  0x1a   :  { %2284 = vmatpush1.bf16.msra.mxu0 %v12103_v46  ;;  %v12124_v0 = vld [vmem:[%s15721_s3 + $0x220] ss:$8 sps:$4 sm:$0xff]   ;;  %v12125_v4 = vld [vmem:[%s15721_s3 + $0x214] ss:$8 sps:$4 sm:$0xff]   ;;  %v12130_v6 = vld [vmem:[%s15721_s3 + $0x210] ss:$8 sps:$4 sm:$0xff]  }
  0x1b   :  { %2285 = vmatprep.subr.bf16.mxu0 %v12111_v48  ;;  %v760_v1 = vld [vmem:[#allocation2 + $0x9] sm:$0xff]  ;;  %v15726_v11 = vmov 0   ;;  %v12142_v12 = vld [vmem:[%s15721_s3 + $0x74] ss:$8 sps:$4 sm:$0xff]  }
  0x1c   :  { %2117 = vmatpush1.bf16.msra.mxu1 %v12082_v25  ;;  %v11475_v3 = vpack.c.bf16 %v760_v1, %v760_v1  ;;  %v12135_v7 = vld [vmem:[%s15721_s3 + $0x284] ss:$8 sps:$4 sm:$0xff]   ;;  %v12133_v9 = vld [vmem:[%s15721_s3 + $0x280] ss:$8 sps:$4 sm:$0xff]   ;;  %12046 = vset.pattern.permute.xlu1 %v15726_v11 }
  0x1d   :  { %2118 = vmatprep.subr.bf16.mxu1 %v12083_v26  ;;  %v12131_v8 = vld [vmem:[%s15721_s3 + $0x204] ss:$8 sps:$4 sm:$0xff]   ;;  %v12136_v10 = vld [vmem:[%s15721_s3 + $0x200] ss:$8 sps:$4 sm:$0xff]   ;;  %12047 = vset.pattern.permute.xlu0 %v15726_v11 }
  0x1e   :  { %2286 = vmatpush1.bf16.msra.mxu0 %v12109_v50  ;;  %900 = vst [vmem:[#allocation3 + $0x8] sm:$0xf] %v11475_v3 }
  0x1f   :  { %2287 = vmatprep.subr.bf16.mxu0 %v12117_v56 }
  0x20   :  { %11972 = vmatmul.mubr.msk.bf16.gmra.mxu0 %vm157_vm1, %v12056_v15  ;;  %2119 = vmatpush1.bf16.msra.mxu1 %v12085_v27 }
  0x21   :  { %11975 = vmatprep.mubr.msk.bf16.mxu0 %vm157_vm1, %v12057_v18  ;;  %2120 = vmatprep.subr.bf16.mxu1 %v12086_v28 }
  0x22   :  { %2288 = vmatpush1.bf16.msra.mxu0 %v12115_v59 }
  0x23   :  { %2289 = vmatprep.subr.bf16.mxu0 %v12123_v61 }
  0x24   :  { %2121 = vmatpush1.bf16.msra.mxu1 %v12088_v31 }
  0x25   :  { %2122 = vmatprep.subr.bf16.mxu1 %v12089_v37 }
  0x26   :  { %2290 = vmatpush1.bf16.msra.mxu0 %v12121_v63 }
  0x27   :  { %2291 = vmatprep.subr.bf16.mxu0 %v12129_v2 }
  0x28   :  { %11976 = vmatmul.mubr.msk.bf16.gmra.mxu0 %vm157_vm1, %v12058_v23  ;;  %2123 = vmatpush2.bf16.msra.mxu1 %v12094_v39 }
  0x29   :  { %11979 = vmatprep.mubr.msk.bf16.mxu0 %vm157_vm1, %v12059_v24  ;;  %2124 = vmatprep.subr.bf16.mxu1 %v12095_v41 }
  0x2a   :  { %2292 = vmatpush1.bf16.msra.mxu0 %v12127_v5 }
  0x2b   :  { %2293 = vmatprep.subr.bf16.mxu0 %v12135_v7 }
  0x2c   :  { %2125 = vmatpush2.bf16.msra.mxu1 %v12100_v43 }
  0x2d   :  { %2126 = vmatprep.subr.bf16.mxu1 %v12101_v45 }
  0x2e   :  { %2294 = vmatpush1.bf16.msra.mxu0 %v12133_v9 }
  0x30   :  { %11980 = vmatmul.mubr.msk.bf16.gmra.mxu0 %vm157_vm1, %v12060_v29  ;;  %2127 = vmatpush2.bf16.msra.mxu1 %v12106_v47 }
  0x31   :  { %11983 = vmatprep.mubr.msk.bf16.mxu0 %vm157_vm1, %v12061_v30  ;;  %2128 = vmatprep.subr.bf16.mxu1 %v12107_v49 }
  0x34   :  { %2129 = vmatpush2.bf16.msra.mxu1 %v12112_v52 }
  0x35   :  { %2130 = vmatprep.subr.bf16.mxu1 %v12113_v58 }
  0x38   :  { %11984 = vmatmul.mubr.msk.bf16.gmra.mxu0 %vm157_vm1, %v12062_v32  ;;  %2131 = vmatpush2.bf16.msra.mxu1 %v12118_v60 }
  0x39   :  { %11987 = vmatprep.mubr.msk.bf16.mxu0 %vm157_vm1, %v12063_v33  ;;  %2132 = vmatprep.subr.bf16.mxu1 %v12119_v62 }
  0x3c   :  { %2133 = vmatpush2.bf16.msra.mxu1 %v12124_v0 }
  0x3d   :  { %2134 = vmatprep.subr.bf16.mxu1 %v12125_v4 }
  0x40   :  { %11988 = vmatmul.mubr.msk.bf16.gmra.mxu0 %vm157_vm1, %v12064_v34  ;;  %2135 = vmatpush2.bf16.msra.mxu1 %v12130_v6 }
  0x41   :  { %2136 = vmatprep.subr.bf16.mxu1 %v12131_v8  ;;  %2311 = vmatprep.mubr.bf16.mxu0 %v15726_v11 }
  0x44   :  { %2137 = vmatpush2.bf16.msra.mxu1 %v12136_v10 }
  0x45   :  { %2916 = vmatprep.subr.bf16.mxu1 %v12142_v12 }
  0x46   :  { %14 = vsyncpa [#allocation6], 0  ;;  %v12217_v13 = vld [vmem:[%s15721_s3 + $0x174] ss:$8 sps:$4 sm:$0xff]   ;;  %v13129_v14 = vld [vmem:[%s15720_s2] ss:$0 sm:$0xff] }
  0x47   :  { %3089 = vmatprep.subr.bf16.mxu0 %v12217_v13  ;;  %v13139_v35 = vld [vmem:[#allocation3 + $0x4] ss:$12 sps:$4 sm:$0xff]   ;;  %vm10075_vm4 = vcmask 8192  }
  0xd0   :  { %v11965_v15 = vpop.f32.mrf.mxu0 }
  0xd1   :  { %v247_v16 = vadd.f32 %v11965_v15, %v13129_v14 }
  0xd2   :  { %v238_v17 = vpop.f32.mrf.mxu0 }
  0xd3   :  { %v351_v18 = vmax.f32 %v247_v16, 0.0  ;;  %v239_v19 = vadd.f32 %v13129_v14, %v238_v17 }
  0xd4   :  { %v11966_v20 = vpop.f32.mrf.mxu0 }
  0xd5   :  { %385 = vst [vmem:[#allocation2 + $0x28] sm:$0xff] %v351_v18  ;;  %v11533_v21 = vpack.c.bf16 %v351_v18, %v351_v18  ;;  %v349_v22 = vmax.f32 %v239_v19, 0.0  ;;  %v250_v23 = vadd.f32 %v11966_v20, %v13129_v14 }
  0xd6   :  { %v241_v24 = vpop.f32.mrf.mxu0 }
  0xd7   :  { %1343 = vst [vmem:[#allocation3 + $0x16c] sm:$0xf] %v11533_v21  ;;  %383 = vst [vmem:[#allocation2 + $0x18] sm:$0xff] %v349_v22  ;;  %v11531_v25 = vpack.c.bf16 %v349_v22, %v349_v22  ;;  %v352_v26 = vmax.f32 %v250_v23, 0.0  ;;  %v242_v27 = vadd.f32 %v13129_v14, %v241_v24 }
  0xd8   :  { %v11969_v28 = vpop.f32.mrf.mxu0 }
  0xd9   :  { %1341 = vst [vmem:[#allocation3 + $0x154] sm:$0xf] %v11531_v25  ;;  %386 = vst [vmem:[#allocation2 + $0x30] sm:$0xff] %v352_v26  ;;  %v350_v29 = vmax.f32 %v242_v27, 0.0  ;;  %v263_v30 = vadd.f32 %v11969_v28, %v13129_v14 }
  0xda   :  { %412 = vst [vmem:[#allocation2 + $0x36] sm:$0x3] %v12847_v36  ;;  %v254_v31 = vpop.f32.mrf.mxu0 }
  0xdb   :  { %384 = vst [vmem:[#allocation2 + $0x20] sm:$0xff] %v350_v29  ;;  %v355_v32 = vmax.f32 %v263_v30, 0.0  ;;  %v255_v33 = vadd.f32 %v13129_v14, %v254_v31 }
  0xdc   :  { %411 = vst [vmem:[#allocation2 + $0x26] sm:$0x3] %v12847_v36  ;;  %v11970_v34 = vpop.f32.mrf.mxu0  ;;  %v3430_v37 = vld [vmem:[#allocation2 + $0x28] sm:$0xff] }
  0xdd   :  { %389 = vst [vmem:[#allocation2 + $0x48] sm:$0xff] %v355_v32  ;;  %v11537_v38 = vpack.c.bf16 %v355_v32, %v355_v32  ;;  %v353_v39 = vmax.f32 %v255_v33, 0.0  ;;  %v266_v40 = vadd.f32 %v11970_v34, %v13129_v14  ;;  %v11615_v41 = vpack.c.bf16 %v3430_v37, %v3430_v37 }
  0xde   :  { %v1032_v42 = vld [vmem:[#allocation2 + $0x17] sm:$0xff]  ;;  %v257_v43 = vpop.f32.mrf.mxu0 }
  0xdf   :  { %v761_v44 = vld [vmem:[#allocation2 + $0x11] sm:$0xff]  ;;  %v11503_v46 = vpack.c.bf16 %v1032_v42, %v1032_v42  ;;  %1347 = vst [vmem:[#allocation3 + $0x19c] sm:$0xf] %v11537_v38  ;;  %387 = vst [vmem:[#allocation2 + $0x38] sm:$0xff] %v353_v39  ;;  %v11535_v47 = vpack.c.bf16 %v353_v39, %v353_v39  ;;  %v356_v48 = vmax.f32 %v266_v40, 0.0  ;;  %v258_v49 = vadd.f32 %v13129_v14, %v257_v43 }
  0xe0   :  { %v426_v45 = vld [vmem:[#allocation2 + $0x17] sm:$0xff]  ;;  %3570 = vst [vmem:[#allocation3 + $0x4] sm:$0xf] %v11615_v41  ;;  %736 = vst [vmem:[#allocation3 + $0x34] sm:$0xf] %v11615_v41  ;;  %v1371_v51 = vld [vmem:[#allocation2 + $0x29] sm:$0xff]  ;;  %v11973_v52 = vpop.f32.mrf.mxu0  ;;  %v11476_v53 = vpack.c.bf16 %v761_v44, %v761_v44 }
  0xe1   :  { %v594_v50 = vld [vmem:[#allocation2 + $0x18] sm:$0xff]  ;;  %v3598_v54 = vld [vmem:[#allocation2 + $0x29] sm:$0xff]  ;;  %v11421_v55 = vpack.c.bf16 %v426_v45, %v426_v45  ;;  %1173 = vst [vmem:[#allocation3 + $0x150] sm:$0xf] %v11503_v46  ;;  %v11561_v59 = vpack.c.bf16 %v1371_v51, %v1371_v51  ;;  %1345 = vst [vmem:[#allocation3 + $0x184] sm:$0xf] %v11535_v47  ;;  %v279_v61 = vadd.f32 %v11973_v52, %v13129_v14 }
  0xe2   :  { %v11449_v56 = vpack.c.bf16 %v594_v50, %v594_v50  ;;  %v1035_v57 = vld [vmem:[#allocation2 + $0x2f] sm:$0xff]  ;;  %390 = vst [vmem:[#allocation2 + $0x50] sm:$0xff] %v356_v48  ;;  %v354_v60 = vmax.f32 %v258_v49, 0.0  ;;  %v13144_v63 = vpack.c.bf16 %v3598_v54, %v3598_v54  ;;  %v270_v2 = vpop.f32.mrf.mxu0  ;;  %v1369_v3 = vld [vmem:[#allocation2 + $0x19] sm:$0xff]  ;;  %901 = vst [vmem:[#allocation3 + $0x14] sm:$0xf] %v11476_v53 }
  0xe3   :  { %v1204_v58 = vld [vmem:[#allocation2 + $0x30] sm:$0xff]  ;;  %v11506_v0 = vpack.c.bf16 %v1035_v57, %v1035_v57  ;;  %414 = vst [vmem:[#allocation2 + $0x56] sm:$0x3] %v12847_v36  ;;  %566 = vst [vmem:[#allocation3 + $0x18] sm:$0xf] %v11421_v55  ;;  %v1033_v6 = vld [vmem:[#allocation2 + $0x1f] sm:$0xff]  ;;  %v271_v10 = vadd.f32 %v13129_v14, %v270_v2  ;;  %v11559_v12 = vpack.c.bf16 %v1369_v3, %v1369_v3 }
  0xe4   :  { %v3263_v62 = vld [vmem:[#allocation2 + $0x2f] sm:$0xff]  ;;  %v11534_v1 = vpack.c.bf16 %v1204_v58, %v1204_v58  ;;  %734 = vst [vmem:[#allocation3 + $0x1c] sm:$0xf] %v11449_v56  ;;  %1511 = vst [vmem:[#allocation3 + $0x170] sm:$0xf] %v11561_v59  ;;  %v1202_v7 = vld [vmem:[#allocation2 + $0x20] sm:$0xff]  ;;  %v11504_v15 = vpack.c.bf16 %v1033_v6, %v1033_v6  ;;  %v11974_v18 = vpop.f32.mrf.mxu0 }
  0xe5   :  { %v11588_v4 = vpack.c.bf16 %v3263_v62, %v3263_v62  ;;  %v3431_v5 = vld [vmem:[#allocation2 + $0x30] sm:$0xff]  ;;  %v1370_v8 = vld [vmem:[#allocation2 + $0x21] sm:$0xff]  ;;  %388 = vst [vmem:[#allocation2 + $0x40] sm:$0xff] %v354_v60  ;;  %v359_v9 = vmax.f32 %v279_v61, 0.0  ;;  %904 = vst [vmem:[#allocation3 + $0x38] sm:$0xf] %v13144_v63  ;;  %v11532_v16 = vpack.c.bf16 %v1202_v7, %v1202_v7  ;;  %v282_v24 = vadd.f32 %v11974_v18, %v13129_v14 }
  0xe6   :  { %v11616_v13 = vpack.c.bf16 %v3431_v5, %v3431_v5  ;;  %1176 = vst [vmem:[#allocation3 + $0x174] sm:$0xf] %v11506_v0  ;;  %1344 = vst [vmem:[#allocation3 + $0x178] sm:$0xf] %v11534_v1  ;;  %v11560_v17 = vpack.c.bf16 %v1370_v8, %v1370_v8  ;;  %v1034_v19 = vld [vmem:[#allocation2 + $0x27] sm:$0xff]  ;;  %v427_v20 = vld [vmem:[#allocation2 + $0x1f] sm:$0xff]  ;;  %v273_v29 = vpop.f32.mrf.mxu0 }
  0xe7   :  { %413 = vst [vmem:[#allocation2 + $0x46] sm:$0x3] %v12847_v36  ;;  %3403 = vst [vmem:[#allocation3 + $0xc] sm:$0xf] %v11588_v4  ;;  %v595_v21 = vld [vmem:[#allocation2 + $0x20] sm:$0xff]  ;;  %v11541_v22 = vpack.c.bf16 %v359_v9, %v359_v9  ;;  %v357_v23 = vmax.f32 %v271_v10, 0.0  ;;  %v11505_v25 = vpack.c.bf16 %v1034_v19, %v1034_v19  ;;  %v11422_v31 = vpack.c.bf16 %v427_v20, %v427_v20 }
  0xe8   :  { %569 = vst [vmem:[#allocation3 + $0x3c] sm:$0xf] %v11588_v4  ;;  %393 = vst [vmem:[#allocation2 + $0x68] sm:$0xff] %v359_v9  ;;  %v762_v26 = vld [vmem:[#allocation2 + $0x19] sm:$0xff]  ;;  %v1372_v28 = vld [vmem:[#allocation2 + $0x31] sm:$0xff]  ;;  %v11450_v32 = vpack.c.bf16 %v595_v21, %v595_v21  ;;  %v360_v39 = vmax.f32 %v282_v24, 0.0  ;;  %v274_v44 = vadd.f32 %v13129_v14, %v273_v29  ;;  %v11977_v45 = vpop.f32.mrf.mxu0 }
  0xe9   :  { %1509 = vst [vmem:[#allocation3 + $0x158] sm:$0xf] %v11559_v12  ;;  %3571 = vst [vmem:[#allocation3 + $0x10] sm:$0xf] %v11616_v13  ;;  %v1036_v27 = vld [vmem:[#allocation2 + $0x37] sm:$0xff]  ;;  %v11477_v33 = vpack.c.bf16 %v762_v26, %v762_v26  ;;  %v11562_v37 = vpack.c.bf16 %v1372_v28, %v1372_v28  ;;  %v11539_v38 = vpack.c.bf16 %v357_v23, %v357_v23  ;;  %v763_v42 = vld [vmem:[#allocation2 + $0x21] sm:$0xff] }
  0xea   :  { %737 = vst [vmem:[#allocation3 + $0x40] sm:$0xf] %v11616_v13  ;;  %1174 = vst [vmem:[#allocation3 + $0x15c] sm:$0xf] %v11504_v15  ;;  %v3599_v30 = vld [vmem:[#allocation2 + $0x31] sm:$0xff]  ;;  %v11507_v34 = vpack.c.bf16 %v1036_v27, %v1036_v27  ;;  %v1375_v43 = vld [vmem:[#allocation2 + $0x49] sm:$0xff]  ;;  %v295_v54 = vadd.f32 %v11977_v45, %v13129_v14  ;;  %v11478_v55 = vpack.c.bf16 %v763_v42, %v763_v42  ;;  %v286_v61 = vpop.f32.mrf.mxu0 }
  0xeb   :  { %1342 = vst [vmem:[#allocation3 + $0x160] sm:$0xf] %v11532_v16  ;;  %1510 = vst [vmem:[#allocation3 + $0x164] sm:$0xf] %v11560_v17  ;;  %v3264_v40 = vld [vmem:[#allocation2 + $0x37] sm:$0xff]  ;;  %v11644_v47 = vpack.c.bf16 %v3599_v30, %v3599_v30  ;;  %v428_v50 = vld [vmem:[#allocation2 + $0x27] sm:$0xff]  ;;  %v11565_v53 = vpack.c.bf16 %v1375_v43, %v1375_v43  ;;  %v287_v5 = vadd.f32 %v13129_v14, %v286_v61 }
  0xec   :  { %1351 = vst [vmem:[#allocation3 + $0x1cc] sm:$0xf] %v11541_v22  ;;  %391 = vst [vmem:[#allocation2 + $0x58] sm:$0xff] %v357_v23  ;;  %v3432_v41 = vld [vmem:[#allocation2 + $0x38] sm:$0xff]  ;;  %v13154_v48 = vpack.c.bf16 %v3264_v40, %v3264_v40  ;;  %v1039_v51 = vld [vmem:[#allocation2 + $0x4f] sm:$0xff]  ;;  %v11423_v56 = vpack.c.bf16 %v428_v50, %v428_v50  ;;  %v358_v60 = vmax.f32 %v274_v44, 0.0  ;;  %v11978_v15 = vpop.f32.mrf.mxu0 }
  0xed   :  { %1175 = vst [vmem:[#allocation3 + $0x168] sm:$0xf] %v11505_v25  ;;  %3402 = vst [vmem:[#allocation3] sm:$0xf] %v11505_v25  ;;  %v13152_v46 = vld [vmem:[#allocation2 + $0x119] sm:$0xff]  ;;  %v13156_v49 = vpack.c.bf16 %v3432_v41, %v3432_v41  ;;  %v1208_v52 = vld [vmem:[#allocation2 + $0x50] sm:$0xff]  ;;  %v11510_v57 = vpack.c.bf16 %v1039_v51, %v1039_v51  ;;  %v298_v20 = vadd.f32 %v11978_v15, %v13129_v14 }
  0xee   :  { %567 = vst [vmem:[#allocation3 + $0x24] sm:$0xf] %v11422_v31  ;;  %735 = vst [vmem:[#allocation3 + $0x28] sm:$0xf] %v11450_v32  ;;  %v11538_v58 = vpack.c.bf16 %v1208_v52, %v1208_v52  ;;  %v1373_v59 = vld [vmem:[#allocation2 + $0x39] sm:$0xff]  ;;  %v1374_v2 = vld [vmem:[#allocation2 + $0x41] sm:$0xff]  ;;  %v11727_v7 = vpack.c.bf16 %v13152_v46, %v13152_v46  ;;  %v289_v26 = vpop.f32.mrf.mxu0 }
  0xef   :  { %902 = vst [vmem:[#allocation3 + $0x20] sm:$0xf] %v11477_v33  ;;  %1177 = vst [vmem:[#allocation3 + $0x180] sm:$0xf] %v11507_v34  ;;  %v13160_v62 = vld [vmem:[#allocation3 + $0x8] ss:$12 sps:$4 sm:$0xff]   ;;  %v11563_v3 = vpack.c.bf16 %v1373_v59, %v1373_v59  ;;  %v11564_v12 = vpack.c.bf16 %v1374_v2, %v1374_v2 }
  0xf0   :  { %1512 = vst [vmem:[#allocation3 + $0x17c] sm:$0xf] %v11562_v37  ;;  %1349 = vst [vmem:[#allocation3 + $0x1b4] sm:$0xf] %v11539_v38  ;;  %v1037_v0 = vld [vmem:[#allocation2 + $0x3f] sm:$0xff]  ;;  %v363_v4 = vmax.f32 %v295_v54, 0.0  ;;  %v290_v37 = vadd.f32 %v13129_v14, %v289_v26  ;;  %v11981_v38 = vpop.f32.mrf.mxu0 }
  0xf1   :  { %394 = vst [vmem:[#allocation2 + $0x70] sm:$0xff] %v360_v39  ;;  %905 = vst [vmem:[#allocation3 + $0x44] sm:$0xf] %v11644_v47  ;;  %v1206_v1 = vld [vmem:[#allocation2 + $0x40] sm:$0xff]  ;;  %v1537_v6 = vld [vmem:[#allocation3 + $0x150] sm:$0xff]  ;;  %v11508_v9 = vpack.c.bf16 %v1037_v0, %v1037_v0  ;;  %v361_v17 = vmax.f32 %v287_v5, 0.0  ;;  %v311_v44 = vadd.f32 %v11981_v38, %v13129_v14 }
  0xf2   :  { %416 = vst [vmem:[#allocation2 + $0x76] sm:$0x3] %v12847_v36  ;;  %570 = vst [vmem:[#allocation3 + $0x48] sm:$0xf] %v13154_v48  ;;  %v12140_v8 = vld [vmem:[%s15721_s3 + $0x70] ss:$8 sps:$4 sm:$0xff]   ;;  %v11536_v10 = vpack.c.bf16 %v1206_v1, %v1206_v1  ;;  %v302_v50 = vpop.f32.mrf.mxu0 }
  0xf3   :  { %738 = vst [vmem:[#allocation3 + $0x4c] sm:$0xf] %v13156_v49  ;;  %1515 = vst [vmem:[#allocation3 + $0x1a0] sm:$0xf] %v11565_v53  ;;  %v12147_v13 = vld [vmem:[%s15721_s3 + $0x64] ss:$8 sps:$4 sm:$0xff]   ;;  %v11543_v29 = vpack.c.bf16 %v361_v17, %v361_v17  ;;  %v303_v54 = vadd.f32 %v13129_v14, %v302_v50 }
  0xf4   :  { %3738 = vst [vmem:[#allocation3 + $0x8] sm:$0xf] %v13144_v63  ;;  %3739 = vst [vmem:[#allocation3 + $0x14] sm:$0xf] %v11644_v47  ;;  %v1038_v16 = vld [vmem:[#allocation2 + $0x47] sm:$0xff]  ;;  %v11545_v63 = vpack.c.bf16 %v363_v4, %v363_v4  ;;  %v1539_v18 = vld [vmem:[#allocation3 + $0x15c] sm:$0xff]  ;;  %v11982_v61 = vpop.f32.mrf.mxu0 }
  0xf5   :  { %903 = vst [vmem:[#allocation3 + $0x2c] sm:$0xf] %v11478_v55  ;;  %568 = vst [vmem:[#allocation3 + $0x30] sm:$0xf] %v11423_v56  ;;  %v12137_v19 = vld [vmem:[#allocation3 + $0x154] ss:$12 sps:$4 sm:$0xff]   ;;  %v11509_v21 = vpack.c.bf16 %v1038_v16, %v1038_v16  ;;  %v10339_v25 = vcombine.low %v1537_v6, %v1539_v18 }
  0xf6   :  { %1180 = vst [vmem:[#allocation3 + $0x1a4] sm:$0xf] %v11510_v57  ;;  %1348 = vst [vmem:[#allocation3 + $0x1a8] sm:$0xf] %v11538_v58  ;;  %v1040_v22 = vld [vmem:[#allocation2 + $0x57] sm:$0xff]  ;;  %2138 = vmatprep.mubr.bf16.mxu1 %v12137_v19  ;;  %v364_v32 = vmax.f32 %v298_v20, 0.0 }
  0xf7   :  { %392 = vst [vmem:[#allocation2 + $0x60] sm:$0xff] %v358_v60  ;;  %1513 = vst [vmem:[#allocation3 + $0x188] sm:$0xf] %v11563_v3  ;;  %v1376_v23 = vld [vmem:[#allocation2 + $0x51] sm:$0xff]  ;;  %v11511_v27 = vpack.c.bf16 %v1040_v22, %v1040_v22  ;;  %v12145_v31 = vld [vmem:[%s15721_s3 + $0x60] ss:$8 sps:$4 sm:$0xff]   ;;  %2139 = vmatmul.mubr.bf16.vlgmr.msra.gmra.mxu1 %v10339_v25 }
  0xf8   :  { %415 = vst [vmem:[#allocation2 + $0x66] sm:$0x3] %v12847_v36  ;;  %397 = vst [vmem:[#allocation2 + $0x88] sm:$0xff] %v363_v4  ;;  %v12139_v24 = vld [vmem:[#allocation3 + $0x158] ss:$12 sps:$4 sm:$0xff]   ;;  %v11566_v28 = vpack.c.bf16 %v1376_v23, %v1376_v23  ;;  %v1379_v34 = vld [vmem:[#allocation2 + $0x69] sm:$0xff]  ;;  %2917 = vmatpush1.bf16.msra.mxu1 %v12140_v8 }
  0xf9   :  { %1178 = vst [vmem:[#allocation3 + $0x18c] sm:$0xf] %v11508_v9  ;;  %1346 = vst [vmem:[#allocation3 + $0x190] sm:$0xf] %v11536_v10  ;;  %v12143_v30 = vld [vmem:[#allocation3 + $0x16c] ss:$12 sps:$4 sm:$0xff]   ;;  %2312 = vmatmul.mubr.bf16.vlgmr.msra.gmra.mxu0 %v12139_v24  ;;  %v11569_v43 = vpack.c.bf16 %v1379_v34, %v1379_v34  ;;  %2918 = vmatprep.subr.bf16.mxu1 %v12147_v13  ;;  %v314_v9 = vadd.f32 %v11982_v61, %v13129_v14  ;;  %v305_v10 = vpop.f32.mrf.mxu0 }
  0xfa   :  { %1514 = vst [vmem:[#allocation3 + $0x194] sm:$0xf] %v11564_v12  ;;  %1355 = vst [vmem:[#allocation3 + $0x1fc] sm:$0xf] %v11545_v63  ;;  %v12215_v33 = vld [vmem:[%s15721_s3 + $0x170] ss:$8 sps:$4 sm:$0xff]   ;;  %2148 = vmatprep.mubr.bf16.mxu1 %v12143_v30  ;;  %2321 = vmatprep.mubr.bf16.mxu0 %v15726_v11  ;;  %v306_v16 = vadd.f32 %v13129_v14, %v305_v10 }
  0xfb   :  { %395 = vst [vmem:[#allocation2 + $0x78] sm:$0xff] %v361_v17  ;;  %5923 = vst [vmem:[#allocation3 + $0x158] sm:$0xf] %v11727_v7  ;;  %v12154_v39 = vld [vmem:[%s15721_s3 + $0x54] ss:$8 sps:$4 sm:$0xff]   ;;  %v362_v47 = vmax.f32 %v290_v37, 0.0  ;;  %3090 = vmatpush1.bf16.msra.mxu0 %v12215_v33 }
  0xfc   :  { %1179 = vst [vmem:[#allocation3 + $0x198] sm:$0xf] %v11509_v21  ;;  %v12226_v40 = vld [vmem:[%s15721_s3 + $0x164] ss:$8 sps:$4 sm:$0xff]   ;;  %1181 = vst [vmem:[#allocation3 + $0x1b0] sm:$0xf] %v11511_v27  ;;  %2919 = vmatpush1.bf16.msra.mxu1 %v12145_v31  ;;  %v11985_v21 = vpop.f32.mrf.mxu0 }
  0xfd   :  { %1516 = vst [vmem:[#allocation3 + $0x1ac] sm:$0xf] %v11566_v28  ;;  %v1043_v41 = vld [vmem:[#allocation2 + $0x6f] sm:$0xff]  ;;  %1353 = vst [vmem:[#allocation3 + $0x1e4] sm:$0xf] %v11543_v29  ;;  %v367_v53 = vmax.f32 %v311_v44, 0.0  ;;  %3091 = vmatprep.subr.bf16.mxu0 %v12226_v40  ;;  %2920 = vmatprep.subr.bf16.mxu1 %v12154_v39  ;;  %v327_v28 = vadd.f32 %v11985_v21, %v13129_v14 }
  0xfe   :  { %v1212_v42 = vld [vmem:[#allocation2 + $0x70] sm:$0xff]  ;;  %398 = vst [vmem:[#allocation2 + $0x90] sm:$0xff] %v364_v32  ;;  %v11514_v45 = vpack.c.bf16 %v1043_v41, %v1043_v41  ;;  %v12224_v51 = vld [vmem:[%s15721_s3 + $0x160] ss:$8 sps:$4 sm:$0xff]   ;;  %1519 = vst [vmem:[#allocation3 + $0x1d0] sm:$0xf] %v11569_v43  ;;  %v318_v31 = vpop.f32.mrf.mxu0 }
  0xff   :  { %v11542_v46 = vpack.c.bf16 %v1212_v42, %v1212_v42  ;;  %418 = vst [vmem:[#allocation2 + $0x96] sm:$0x3] %v12847_v36  ;;  %v1377_v52 = vld [vmem:[#allocation2 + $0x59] sm:$0xff]  ;;  %v1378_v58 = vld [vmem:[#allocation2 + $0x61] sm:$0xff]  ;;  %396 = vst [vmem:[#allocation2 + $0x80] sm:$0xff] %v362_v47  ;;  %v11549_v6 = vpack.c.bf16 %v367_v53, %v367_v53  ;;  %3092 = vmatpush1.bf16.msra.mxu0 %v12224_v51  ;;  %v368_v20 = vmax.f32 %v314_v9, 0.0 }
 0x100   :  { %v13196_v55 = vld [vmem:[#allocation3 + $0x1c] ss:$12 sps:$4 sm:$0xff]   ;;  %1184 = vst [vmem:[#allocation3 + $0x1d4] sm:$0xf] %v11514_v45  ;;  %v1210_v57 = vld [vmem:[#allocation2 + $0x60] sm:$0xff]  ;;  %v11567_v36 = vpack.c.bf16 %v1377_v52, %v1377_v52  ;;  %v11568_v3 = vpack.c.bf16 %v1378_v58, %v1378_v58  ;;  %401 = vst [vmem:[#allocation2 + $0xa8] sm:$0xff] %v367_v53  ;;  %v319_v38 = vadd.f32 %v13129_v14, %v318_v31 }
 0x101   :  { %1352 = vst [vmem:[#allocation3 + $0x1d8] sm:$0xf] %v11542_v46  ;;  %v1041_v56 = vld [vmem:[#allocation2 + $0x5f] sm:$0xff]  ;;  %v12149_v59 = vld [vmem:[#allocation3 + $0x168] ss:$12 sps:$4 sm:$0xff]   ;;  %v11540_v2 = vpack.c.bf16 %v1210_v57, %v1210_v57  ;;  %v366_v26 = vmax.f32 %v306_v16, 0.0  ;;  %v11986_v46 = vpop.f32.mrf.mxu0 }
 0x102   :  { %v12152_v60 = vld [vmem:[%s15721_s3 + $0x50] ss:$8 sps:$4 sm:$0xff]   ;;  %v12230_v0 = vld [vmem:[%s15721_s3 + $0x154] ss:$8 sps:$4 sm:$0xff]   ;;  %3404 = vst [vmem:[#allocation3 + $0x18] sm:$0xf] %v13154_v48  ;;  %v11512_v1 = vpack.c.bf16 %v1041_v56, %v1041_v56  ;;  %2149 = vmatmul.mubr.bf16.gmra.mxu1 %v12149_v59 }
 0x103   :  { %3572 = vst [vmem:[#allocation3 + $0x1c] sm:$0xf] %v13156_v49  ;;  %v12148_v4 = vld [vmem:[#allocation3 + $0x170] ss:$12 sps:$4 sm:$0xff]   ;;  %v13206_v5 = vld [vmem:[#allocation2 + $0x7] sm:$0xff]  ;;  %v365_v49 = vmax.f32 %v303_v54, 0.0  ;;  %2921 = vmatpush1.bf16.msra.mxu1 %v12152_v60  ;;  %3093 = vmatprep.subr.bf16.mxu0 %v12230_v0  ;;  %v330_v60 = vadd.f32 %v11986_v46, %v13129_v14  ;;  %v321_v61 = vpop.f32.mrf.mxu0 }
 0x104   :  { %417 = vst [vmem:[#allocation2 + $0x86] sm:$0x3] %v13206_v5  ;;  %v12161_v7 = vld [vmem:[%s15721_s3 + $0x44] ss:$8 sps:$4 sm:$0xff]   ;;  %1517 = vst [vmem:[#allocation3 + $0x1b8] sm:$0xf] %v11567_v36  ;;  %2322 = vmatmul.mubr.bf16.gmra.mxu0 %v12148_v4 }
 0x105   :  { %v1044_v8 = vld [vmem:[#allocation2 + $0x77] sm:$0xff]  ;;  %1182 = vst [vmem:[#allocation3 + $0x1bc] sm:$0xf] %v11512_v1  ;;  %1350 = vst [vmem:[#allocation3 + $0x1c0] sm:$0xf] %v11540_v2  ;;  %v1383_v17 = vld [vmem:[#allocation2 + $0x89] sm:$0xff]  ;;  %v11547_v18 = vpack.c.bf16 %v365_v49, %v365_v49  ;;  %2331 = vmatprep.mubr.bf16.mxu0 %v15726_v11  ;;  %2922 = vmatprep.subr.bf16.mxu1 %v12161_v7  ;;  %v11989_v9 = vpop.f32.mrf.mxu0 }
 0x106   :  { %v1380_v48 = vld [vmem:[#allocation2 + $0x71] sm:$0xff]  ;;  %1518 = vst [vmem:[#allocation3 + $0x1c4] sm:$0xf] %v11568_v3  ;;  %v11515_v12 = vpack.c.bf16 %v1044_v8, %v1044_v8  ;;  %1359 = vst [vmem:[#allocation3 + $0x22c] sm:$0xf] %v11549_v6  ;;  %v11573_v25 = vpack.c.bf16 %v1383_v17, %v1383_v17  ;;  %v1042_v32 = vld [vmem:[#allocation2 + $0x67] sm:$0xff]  ;;  %v322_v6 = vadd.f32 %v13129_v14, %v321_v61 }
 0x107   :  { %v11570_v13 = vpack.c.bf16 %v1380_v48, %v1380_v48  ;;  %v12150_v15 = vld [vmem:[#allocation3 + $0x184] ss:$12 sps:$4 sm:$0xff]   ;;  %399 = vst [vmem:[#allocation2 + $0x98] sm:$0xff] %v365_v49  ;;  %v12159_v19 = vld [vmem:[%s15721_s3 + $0x40] ss:$8 sps:$4 sm:$0xff]   ;;  %402 = vst [vmem:[#allocation2 + $0xb0] sm:$0xff] %v368_v20  ;;  %v11513_v39 = vpack.c.bf16 %v1042_v32, %v1042_v32 }
 0x108   :  { %v12228_v63 = vld [vmem:[%s15721_s3 + $0x150] ss:$8 sps:$4 sm:$0xff]   ;;  %v12239_v22 = vld [vmem:[%s15721_s3 + $0x144] ss:$8 sps:$4 sm:$0xff]   ;;  %1185 = vst [vmem:[#allocation3 + $0x1e0] sm:$0xf] %v11515_v12  ;;  %2158 = vmatprep.mubr.bf16.mxu1 %v12150_v15  ;;  %2923 = vmatpush1.bf16.msra.mxu1 %v12159_v19 }
 0x109   :  { %1520 = vst [vmem:[#allocation3 + $0x1dc] sm:$0xf] %v11570_v13  ;;  %v1047_v23 = vld [vmem:[#allocation2 + $0x8f] sm:$0xff]  ;;  %1357 = vst [vmem:[#allocation3 + $0x214] sm:$0xf] %v11547_v18  ;;  %v1381_v34 = vld [vmem:[#allocation2 + $0x79] sm:$0xff]  ;;  %3094 = vmatpush1.bf16.msra.mxu0 %v12228_v63  ;;  %v343_v63 = vadd.f32 %v11989_v9, %v13129_v14 }
 0x10a   :  { %v1216_v24 = vld [vmem:[#allocation2 + $0x90] sm:$0xff]  ;;  %v11518_v29 = vpack.c.bf16 %v1047_v23, %v1047_v23  ;;  %v12237_v33 = vld [vmem:[%s15721_s3 + $0x140] ss:$8 sps:$4 sm:$0xff]   ;;  %1523 = vst [vmem:[#allocation3 + $0x200] sm:$0xf] %v11573_v25  ;;  %400 = vst [vmem:[#allocation2 + $0xa0] sm:$0xff] %v366_v26  ;;  %v11571_v43 = vpack.c.bf16 %v1381_v34, %v1381_v34  ;;  %3095 = vmatprep.subr.bf16.mxu0 %v12239_v22  ;;  %v334_v23 = vpop.f32.mrf.mxu0 }
 0x10b   :  { %v12168_v27 = vld [vmem:[%s15721_s3 + $0x34] ss:$8 sps:$4 sm:$0xff]   ;;  %v11546_v30 = vpack.c.bf16 %v1216_v24, %v1216_v24  ;;  %420 = vst [vmem:[#allocation2 + $0xb6] sm:$0x3] %v13206_v5  ;;  %v371_v37 = vmax.f32 %v327_v28, 0.0  ;;  %v1214_v41 = vld [vmem:[#allocation2 + $0x80] sm:$0xff] }
 0x10c   :  { %1188 = vst [vmem:[#allocation3 + $0x204] sm:$0xf] %v11518_v29  ;;  %v1045_v40 = vld [vmem:[#allocation2 + $0x7f] sm:$0xff]  ;;  %v12155_v44 = vld [vmem:[#allocation3 + $0x188] ss:$12 sps:$4 sm:$0xff]   ;;  %v11544_v51 = vpack.c.bf16 %v1214_v41, %v1214_v41  ;;  %v369_v59 = vmax.f32 %v319_v38, 0.0  ;;  %2924 = vmatprep.subr.bf16.mxu1 %v12168_v27 }
 0x10d   :  { %1356 = vst [vmem:[#allocation3 + $0x208] sm:$0xf] %v11546_v30  ;;  %v1382_v42 = vld [vmem:[#allocation2 + $0x81] sm:$0xff]  ;;  %419 = vst [vmem:[#allocation2 + $0xa6] sm:$0x3] %v13206_v5  ;;  %v11516_v50 = vpack.c.bf16 %v1045_v40, %v1045_v40  ;;  %v11553_v53 = vpack.c.bf16 %v371_v37, %v371_v37  ;;  %3096 = vmatpush1.bf16.msra.mxu0 %v12237_v33  ;;  %v372_v13 = vmax.f32 %v330_v60, 0.0  ;;  %v11990_v40 = vpop.f32.mrf.mxu0 }
 0x10e   :  { %v12166_v45 = vld [vmem:[%s15721_s3 + $0x30] ss:$8 sps:$4 sm:$0xff]   ;;  %v12243_v47 = vld [vmem:[%s15721_s3 + $0x134] ss:$8 sps:$4 sm:$0xff]   ;;  %v11572_v52 = vpack.c.bf16 %v1382_v42, %v1382_v42  ;;  %405 = vst [vmem:[#allocation2 + $0xc8] sm:$0xff] %v371_v37  ;;  %v1046_v56 = vld [vmem:[#allocation2 + $0x87] sm:$0xff]  ;;  %2332 = vmatmul.mubr.bf16.gmra.mxu0 %v12155_v44  ;;  %v11551_v48 = vpack.c.bf16 %v369_v59, %v369_v59  ;;  %v346_v44 = vadd.f32 %v11990_v40, %v13129_v14 }
 0x10f   :  { %1183 = vst [vmem:[#allocation3 + $0x1c8] sm:$0xf] %v11513_v39  ;;  %v12175_v54 = vld [vmem:[%s15721_s3 + $0x24] ss:$8 sps:$4 sm:$0xff]   ;;  %v12241_v57 = vld [vmem:[%s15721_s3 + $0x130] ss:$8 sps:$4 sm:$0xff]   ;;  %v11517_v0 = vpack.c.bf16 %v1046_v56, %v1046_v56  ;;  %2341 = vmatprep.mubr.bf16.mxu0 %v15726_v11  ;;  %2925 = vmatpush1.bf16.msra.mxu1 %v12166_v45  ;;  %v335_v39 = vadd.f32 %v13129_v14, %v334_v23 }
 0x110   :  { %v3265_v58 = vld [vmem:[#allocation2 + $0x3f] sm:$0xff]  ;;  %1521 = vst [vmem:[#allocation3 + $0x1e8] sm:$0xf] %v11571_v43  ;;  %1186 = vst [vmem:[#allocation3 + $0x1ec] sm:$0xf] %v11516_v50  ;;  %v1048_v2 = vld [vmem:[#allocation2 + $0x97] sm:$0xff]  ;;  %3097 = vmatprep.subr.bf16.mxu0 %v12243_v47  ;;  %2926 = vmatprep.subr.bf16.mxu1 %v12175_v54  ;;  %v337_v50 = vpop.f32.mrf.mxu0 }
 0x111   :  { %v12156_v36 = vld [vmem:[#allocation3 + $0x180] ss:$12 sps:$4 sm:$0xff]   ;;  %v11590_v1 = vpack.c.bf16 %v3265_v58, %v3265_v58  ;;  %1354 = vst [vmem:[#allocation3 + $0x1f0] sm:$0xf] %v11544_v51  ;;  %1522 = vst [vmem:[#allocation3 + $0x1f4] sm:$0xf] %v11572_v52  ;;  %v11519_v7 = vpack.c.bf16 %v1048_v2, %v1048_v2  ;;  %3098 = vmatpush1.bf16.msra.mxu0 %v12241_v57  ;;  %v338_v56 = vadd.f32 %v13129_v14, %v337_v50 }
 0x112   :  { %v1384_v3 = vld [vmem:[#allocation2 + $0x91] sm:$0xff]  ;;  %v12157_v4 = vld [vmem:[#allocation3 + $0x19c] ss:$12 sps:$4 sm:$0xff]   ;;  %1363 = vst [vmem:[#allocation3 + $0x25c] sm:$0xf] %v11553_v53  ;;  %2159 = vmatmul.mubr.bf16.gmra.mxu1 %v12156_v36  ;;  %403 = vst [vmem:[#allocation2 + $0xb8] sm:$0xff] %v369_v59 }
 0x113   :  { %v11574_v8 = vpack.c.bf16 %v1384_v3, %v1384_v3  ;;  %v12173_v49 = vld [vmem:[%s15721_s3 + $0x20] ss:$8 sps:$4 sm:$0xff]   ;;  %1187 = vst [vmem:[#allocation3 + $0x1f8] sm:$0xf] %v11517_v0  ;;  %v12252_v10 = vld [vmem:[%s15721_s3 + $0x124] ss:$8 sps:$4 sm:$0xff]   ;;  %2168 = vmatprep.mubr.bf16.mxu1 %v12157_v4 }
 0x114   :  { %3405 = vst [vmem:[#allocation3 + $0x24] sm:$0xf] %v11590_v1  ;;  %571 = vst [vmem:[#allocation3 + $0x54] sm:$0xf] %v11590_v1  ;;  %v1387_v12 = vld [vmem:[#allocation2 + $0xa9] sm:$0xff]  ;;  %v370_v16 = vmax.f32 %v322_v6, 0.0  ;;  %3099 = vmatprep.subr.bf16.mxu0 %v12252_v10  ;;  %2927 = vmatpush1.bf16.msra.mxu1 %v12173_v49 }
 0x115   :  { %v12182_v15 = vld [vmem:[%s15721_s3 + $0x14] ss:$8 sps:$4 sm:$0xff]   ;;  %v12250_v17 = vld [vmem:[%s15721_s3 + $0x120] ss:$8 sps:$4 sm:$0xff]   ;;  %1189 = vst [vmem:[#allocation3 + $0x210] sm:$0xf] %v11519_v7  ;;  %v11577_v21 = vpack.c.bf16 %v1387_v12, %v1387_v12 }
 0x116   :  { %v3433_v18 = vld [vmem:[#allocation2 + $0x40] sm:$0xff]  ;;  %1524 = vst [vmem:[#allocation3 + $0x20c] sm:$0xf] %v11574_v8  ;;  %v1051_v19 = vld [vmem:[#allocation2 + $0xaf] sm:$0xff]  ;;  %1361 = vst [vmem:[#allocation3 + $0x244] sm:$0xf] %v11551_v48  ;;  %2928 = vmatprep.subr.bf16.mxu1 %v12182_v15  ;;  %3100 = vmatpush1.bf16.msra.mxu0 %v12250_v17 }
 0x117   :  { %v1220_v20 = vld [vmem:[#allocation2 + $0xb0] sm:$0xff]  ;;  %v1385_v22 = vld [vmem:[#allocation2 + $0x99] sm:$0xff]  ;;  %v11618_v24 = vpack.c.bf16 %v3433_v18, %v3433_v18  ;;  %v11522_v25 = vpack.c.bf16 %v1051_v19, %v1051_v19  ;;  %v1386_v29 = vld [vmem:[#allocation2 + $0xa1] sm:$0xff]  ;;  %406 = vst [vmem:[#allocation2 + $0xd0] sm:$0xff] %v372_v13  ;;  %v375_v31 = vmax.f32 %v343_v63, 0.0  ;;  %v373_v47 = vmax.f32 %v335_v39, 0.0 }
 0x118   :  { %v11550_v26 = vpack.c.bf16 %v1220_v20, %v1220_v20  ;;  %v1049_v27 = vld [vmem:[#allocation2 + $0x9f] sm:$0xff]  ;;  %v11575_v30 = vpack.c.bf16 %v1385_v22, %v1385_v22  ;;  %404 = vst [vmem:[#allocation2 + $0xc0] sm:$0xff] %v370_v16  ;;  %1527 = vst [vmem:[#allocation3 + $0x230] sm:$0xf] %v11577_v21  ;;  %v11576_v37 = vpack.c.bf16 %v1386_v29, %v1386_v29  ;;  %v12180_v38 = vld [vmem:[%s15721_s3 + $0x10] ss:$8 sps:$4 sm:$0xff]  }
 0x119   :  { %v1218_v28 = vld [vmem:[#allocation2 + $0xa0] sm:$0xff]  ;;  %v11520_v33 = vpack.c.bf16 %v1049_v27, %v1049_v27  ;;  %422 = vst [vmem:[#allocation2 + $0xd6] sm:$0x3] %v13206_v5  ;;  %421 = vst [vmem:[#allocation2 + $0xc6] sm:$0x3] %v13206_v5  ;;  %v11557_v42 = vpack.c.bf16 %v375_v31, %v375_v31  ;;  %v1052_v52 = vld [vmem:[#allocation2 + $0xb7] sm:$0xff]  ;;  %v11555_v36 = vpack.c.bf16 %v373_v47, %v373_v47  ;;  %2929 = vmatpush1.bf16.msra.mxu1 %v12180_v38 }
 0x11a   :  { %v12162_v32 = vld [vmem:[#allocation3 + $0x1a0] ss:$12 sps:$4 sm:$0xff]   ;;  %v11548_v34 = vpack.c.bf16 %v1218_v28, %v1218_v28  ;;  %v12256_v41 = vld [vmem:[%s15721_s3 + $0x114] ss:$8 sps:$4 sm:$0xff]   ;;  %3573 = vst [vmem:[#allocation3 + $0x28] sm:$0xf] %v11618_v24  ;;  %v11523_v57 = vpack.c.bf16 %v1052_v52, %v1052_v52 }
 0x11b   :  { %739 = vst [vmem:[#allocation3 + $0x58] sm:$0xf] %v11618_v24  ;;  %1192 = vst [vmem:[#allocation3 + $0x234] sm:$0xf] %v11522_v25  ;;  %v12187_v43 = vld [vmem:[%s15721_s3 + $0x4] ss:$8 sps:$4 sm:$0xff]   ;;  %2342 = vmatmul.mubr.bf16.gmra.mxu0 %v12162_v32  ;;  %3101 = vmatprep.subr.bf16.mxu0 %v12256_v41 }
 0x11c   :  { %1360 = vst [vmem:[#allocation3 + $0x238] sm:$0xf] %v11550_v26  ;;  %1525 = vst [vmem:[#allocation3 + $0x218] sm:$0xf] %v11575_v30  ;;  %v12254_v45 = vld [vmem:[%s15721_s3 + $0x110] ss:$8 sps:$4 sm:$0xff]   ;;  %2351 = vmatprep.mubr.bf16.mxu0 %v15726_v11  ;;  %2930 = vmatprep.subr.bf16.mxu1 %v12187_v43 }
 0x11d   :  { %409 = vst [vmem:[#allocation2 + $0xe8] sm:$0xff] %v375_v31  ;;  %v12163_v46 = vld [vmem:[#allocation3 + $0x198] ss:$12 sps:$4 sm:$0xff]   ;;  %1190 = vst [vmem:[#allocation3 + $0x21c] sm:$0xf] %v11520_v33  ;;  %v376_v54 = vmax.f32 %v346_v44, 0.0  ;;  %3102 = vmatpush1.bf16.msra.mxu0 %v12254_v45 }
 0x11e   :  { %1358 = vst [vmem:[#allocation3 + $0x220] sm:$0xf] %v11548_v34  ;;  %1526 = vst [vmem:[#allocation3 + $0x224] sm:$0xf] %v11576_v37  ;;  %v12164_v51 = vld [vmem:[#allocation3 + $0x1b4] ss:$12 sps:$4 sm:$0xff]   ;;  %2169 = vmatmul.mubr.bf16.gmra.mxu1 %v12163_v46 }
 0x11f   :  { %v1388_v53 = vld [vmem:[#allocation2 + $0xb1] sm:$0xff]  ;;  %1367 = vst [vmem:[#allocation3 + $0x28c] sm:$0xf] %v11557_v42  ;;  %407 = vst [vmem:[#allocation2 + $0xd8] sm:$0xff] %v373_v47  ;;  %v12185_v59 = vld [vmem:[%s15721_s3] ss:$8 sps:$4 sm:$0xff]   ;;  %2178 = vmatprep.mubr.bf16.mxu1 %v12164_v51 }
 0x120   :  { %v11578_v58 = vpack.c.bf16 %v1388_v53, %v1388_v53  ;;  %v12263_v60 = vld [vmem:[%s15721_s3 + $0x104] ss:$8 sps:$4 sm:$0xff]   ;;  %v12193_v14 = vld [vmem:[%s15721_s3 + $0xf4] ss:$8 sps:$4 sm:$0xff]   ;;  %410 = vst [vmem:[#allocation2 + $0xf0] sm:$0x3f] %v376_v54  ;;  %2931 = vmatpush1.bf16.msra.mxu1 %v12185_v59 }
 0x121   :  { %v12261_v61 = vld [vmem:[%s15721_s3 + $0x100] ss:$8 sps:$4 sm:$0xff]   ;;  %1193 = vst [vmem:[#allocation3 + $0x240] sm:$0xf] %v11523_v57  ;;  %1365 = vst [vmem:[#allocation3 + $0x274] sm:$0xf] %v11555_v36  ;;  %3103 = vmatprep.subr.bf16.mxu0 %v12263_v60  ;;  %2932 = vmatprep.subr.bf16.mxu1 %v12193_v14 }
 0x122   :  { %1528 = vst [vmem:[#allocation3 + $0x23c] sm:$0xf] %v11578_v58  ;;  %v1391_v0 = vld [vmem:[#allocation2 + $0xc9] sm:$0xff]  ;;  %v1389_v1 = vld [vmem:[#allocation2 + $0xb9] sm:$0xff]  ;;  %v374_v2 = vmax.f32 %v338_v56, 0.0  ;;  %v1390_v12 = vld [vmem:[#allocation2 + $0xc1] sm:$0xff]  ;;  %3104 = vmatpush1.bf16.msra.mxu0 %v12261_v61 }
 0x123   :  { %v1055_v3 = vld [vmem:[#allocation2 + $0xcf] sm:$0xff]  ;;  %v11581_v6 = vpack.c.bf16 %v1391_v0, %v1391_v0  ;;  %v1053_v7 = vld [vmem:[#allocation2 + $0xbf] sm:$0xff]  ;;  %v11579_v8 = vpack.c.bf16 %v1389_v1, %v1389_v1  ;;  %v11580_v63 = vpack.c.bf16 %v1390_v12, %v1390_v12  ;;  %v1050_v20 = vld [vmem:[#allocation2 + $0xa7] sm:$0xff] }
 0x124   :  { %v1224_v4 = vld [vmem:[#allocation2 + $0xd0] sm:$0xff]  ;;  %v11526_v48 = vpack.c.bf16 %v1055_v3, %v1055_v3  ;;  %v11524_v9 = vpack.c.bf16 %v1053_v7, %v1053_v7  ;;  %v1222_v10 = vld [vmem:[#allocation2 + $0xc0] sm:$0xff]  ;;  %408 = vst [vmem:[#allocation2 + $0xe0] sm:$0xff] %v374_v2  ;;  %v12171_v19 = vld [vmem:[#allocation3 + $0x1cc] ss:$12 sps:$4 sm:$0xff]   ;;  %v11521_v23 = vpack.c.bf16 %v1050_v20, %v1050_v20 }
 0x125   :  { %v11554_v49 = vpack.c.bf16 %v1224_v4, %v1224_v4  ;;  %v12191_v13 = vld [vmem:[%s15721_s3 + $0xf0] ss:$8 sps:$4 sm:$0xff]   ;;  %1531 = vst [vmem:[#allocation3 + $0x260] sm:$0xf] %v11581_v6  ;;  %v11552_v16 = vpack.c.bf16 %v1222_v10, %v1222_v10  ;;  %1529 = vst [vmem:[#allocation3 + $0x248] sm:$0xf] %v11579_v8 }
 0x126   :  { %v12169_v15 = vld [vmem:[#allocation3 + $0x1b8] ss:$12 sps:$4 sm:$0xff]   ;;  %423 = vst [vmem:[#allocation2 + $0xe6] sm:$0x3] %v13206_v5  ;;  %v12170_v18 = vld [vmem:[#allocation3 + $0x1b0] ss:$12 sps:$4 sm:$0xff]   ;;  %2933 = vmatpush2.bf16.msra.mxu1 %v12191_v13 }
 0x127   :  { %v12199_v17 = vld [vmem:[%s15721_s3 + $0xe4] ss:$8 sps:$4 sm:$0xff]   ;;  %1196 = vst [vmem:[#allocation3 + $0x264] sm:$0xf] %v11526_v48  ;;  %1364 = vst [vmem:[#allocation3 + $0x268] sm:$0xf] %v11554_v49  ;;  %2352 = vmatmul.mubr.bf16.gmra.mxu0 %v12169_v15  ;;  %2179 = vmatmul.mubr.bf16.gmra.mxu1 %v12170_v18 }
 0x128   :  { %1194 = vst [vmem:[#allocation3 + $0x24c] sm:$0xf] %v11524_v9  ;;  %1362 = vst [vmem:[#allocation3 + $0x250] sm:$0xf] %v11552_v16  ;;  %v1056_v21 = vld [vmem:[#allocation2 + $0xd7] sm:$0xff]  ;;  %v1059_v25 = vld [vmem:[#allocation2 + $0xef] sm:$0xff]  ;;  %2188 = vmatprep.mubr.bf16.mxu1 %v12171_v19  ;;  %2361 = vmatprep.mubr.bf16.mxu0 %v15726_v11 }
 0x129   :  { %1530 = vst [vmem:[#allocation3 + $0x254] sm:$0xf] %v11580_v63  ;;  %v1392_v22 = vld [vmem:[#allocation2 + $0xd1] sm:$0xff]  ;;  %v11527_v5 = vpack.c.bf16 %v1056_v21, %v1056_v21  ;;  %v1395_v27 = vld [vmem:[#allocation2 + $0xe9] sm:$0xff]  ;;  %v11530_v29 = vpack.c.bf16 %v1059_v25, %v1059_v25  ;;  %1191 = vst [vmem:[#allocation3 + $0x228] sm:$0xf] %v11521_v23  ;;  %2934 = vmatprep.subr.bf16.mxu1 %v12199_v17 }
 0x12a   :  { %v11582_v24 = vpack.c.bf16 %v1392_v22, %v1392_v22  ;;  %v1228_v26 = vld [vmem:[#allocation2 + $0xf0] sm:$0xff]  ;;  %v12197_v28 = vld [vmem:[%s15721_s3 + $0xe0] ss:$8 sps:$4 sm:$0xff]   ;;  %v11585_v32 = vpack.c.bf16 %v1395_v27, %v1395_v27  ;;  %v12213_v53 = vld [vmem:[%s15721_s3 + $0xc4] ss:$8 sps:$4 sm:$0xff]  }
 0x12b   :  { %v11558_v30 = vpack.c.bf16 %v1228_v26, %v1228_v26  ;;  %v1396_v31 = vld [vmem:[#allocation2 + $0xf1] sm:$0xff]  ;;  %1197 = vst [vmem:[#allocation3 + $0x270] sm:$0xf] %v11527_v5  ;;  %v1054_v37 = vld [vmem:[#allocation2 + $0xc7] sm:$0xff]  ;;  %1200 = vst [vmem:[#allocation3 + $0x294] sm:$0xf] %v11530_v29  ;;  %2935 = vmatpush2.bf16.msra.mxu1 %v12197_v28 }
 0x12c   :  { %1532 = vst [vmem:[#allocation3 + $0x26c] sm:$0xf] %v11582_v24  ;;  %v11586_v33 = vpack.c.bf16 %v1396_v31, %v1396_v31  ;;  %v12206_v34 = vld [vmem:[%s15721_s3 + $0xd4] ss:$8 sps:$4 sm:$0xff]   ;;  %1535 = vst [vmem:[#allocation3 + $0x290] sm:$0xf] %v11585_v32  ;;  %v11525_v39 = vpack.c.bf16 %v1054_v37, %v1054_v37 }
 0x12d   :  { %1368 = vst [vmem:[#allocation3 + $0x298] sm:$0xf] %v11558_v30  ;;  %v1393_v38 = vld [vmem:[#allocation2 + $0xd9] sm:$0xff]  ;;  %v1394_v43 = vld [vmem:[#allocation2 + $0xe1] sm:$0xff]  ;;  %2936 = vmatprep.subr.bf16.mxu1 %v12206_v34  ;;  %v3267_v8 = vld [vmem:[#allocation2 + $0x4f] sm:$0xff] }
 0x12e   :  { %v12176_v40 = vld [vmem:[#allocation3 + $0x1d0] ss:$12 sps:$4 sm:$0xff]   ;;  %1536 = vst [vmem:[#allocation3 + $0x29c] sm:$0xf] %v11586_v33  ;;  %v1226_v42 = vld [vmem:[#allocation2 + $0xe0] sm:$0xff]  ;;  %v11583_v44 = vpack.c.bf16 %v1393_v38, %v1393_v38  ;;  %v11584_v50 = vpack.c.bf16 %v1394_v43, %v1394_v43  ;;  %v11592_v49 = vpack.c.bf16 %v3267_v8, %v3267_v8  ;;  %v3434_v10 = vld [vmem:[#allocation2 + $0x48] sm:$0xff] }
 0x12f   :  { %v1057_v41 = vld [vmem:[#allocation2 + $0xdf] sm:$0xff]  ;;  %v12204_v45 = vld [vmem:[%s15721_s3 + $0xd0] ss:$8 sps:$4 sm:$0xff]   ;;  %v11556_v47 = vpack.c.bf16 %v1226_v42, %v1226_v42  ;;  %1195 = vst [vmem:[#allocation3 + $0x258] sm:$0xf] %v11525_v39  ;;  %v1058_v54 = vld [vmem:[#allocation2 + $0xe7] sm:$0xff]  ;;  %2362 = vmatmul.mubr.bf16.gmra.mxu0 %v12176_v40  ;;  %v11619_v15 = vpack.c.bf16 %v3434_v10, %v3434_v10 }
 0x130   :  { %v11528_v46 = vpack.c.bf16 %v1057_v41, %v1057_v41  ;;  %v12177_v51 = vld [vmem:[#allocation3 + $0x1c8] ss:$12 sps:$4 sm:$0xff]   ;;  %1533 = vst [vmem:[#allocation3 + $0x278] sm:$0xf] %v11583_v44  ;;  %v12178_v52 = vld [vmem:[#allocation3 + $0x1e4] ss:$12 sps:$4 sm:$0xff]   ;;  %v11529_v56 = vpack.c.bf16 %v1058_v54, %v1058_v54  ;;  %2371 = vmatprep.mubr.bf16.mxu0 %v15726_v11  ;;  %2937 = vmatpush2.bf16.msra.mxu1 %v12204_v45 }
 0x131   :  { %1366 = vst [vmem:[#allocation3 + $0x280] sm:$0xf] %v11556_v47  ;;  %1534 = vst [vmem:[#allocation3 + $0x284] sm:$0xf] %v11584_v50  ;;  %2189 = vmatmul.mubr.bf16.gmra.mxu1 %v12177_v51  ;;  %v12211_v57 = vld [vmem:[%s15721_s3 + $0xc0] ss:$8 sps:$4 sm:$0xff]   ;;  %2938 = vmatprep.subr.bf16.mxu1 %v12213_v53 }
 0x132   :  { %1198 = vst [vmem:[#allocation3 + $0x27c] sm:$0xf] %v11528_v46  ;;  %2198 = vmatprep.mubr.bf16.mxu1 %v12178_v52  ;;  %v12223_v58 = vld [vmem:[%s15721_s3 + $0xb4] ss:$8 sps:$4 sm:$0xff]   ;;  %1199 = vst [vmem:[#allocation3 + $0x288] sm:$0xf] %v11529_v56 }
 0x133   :  { %v13319_v36 = vld [vmem:[#allocation3 + $0x20] ss:$12 sps:$4 sm:$0xff]   ;;  %v12221_v60 = vld [vmem:[%s15721_s3 + $0xb0] ss:$8 sps:$4 sm:$0xff]   ;;  %v12183_v61 = vld [vmem:[#allocation3 + $0x1e8] ss:$12 sps:$4 sm:$0xff]  }
 0x134   :  { %v3600_v59 = vld [vmem:[#allocation2 + $0x39] sm:$0xff]  ;;  %v3601_v0 = vld [vmem:[#allocation2 + $0x41] sm:$0xff]  ;;  %2939 = vmatpush2.bf16.msra.mxu1 %v12211_v57  ;;  %v3435_v12 = vld [vmem:[#allocation2 + $0x50] sm:$0xff]  ;;  %3407 = vst [vmem:[#allocation3 + $0x3c] sm:$0xf] %v11592_v49 }
 0x135   :  { %v11645_v14 = vpack.c.bf16 %v3600_v59, %v3600_v59  ;;  %v12184_v1 = vld [vmem:[#allocation3 + $0x1e0] ss:$12 sps:$4 sm:$0xff]   ;;  %v11646_v2 = vpack.c.bf16 %v3601_v0, %v3601_v0  ;;  %v12188_v3 = vld [vmem:[#allocation3 + $0x1fc] ss:$12 sps:$4 sm:$0xff]   ;;  %2940 = vmatprep.subr.bf16.mxu1 %v12223_v58  ;;  %v11620_v16 = vpack.c.bf16 %v3435_v12, %v3435_v12  ;;  %573 = vst [vmem:[#allocation3 + $0x6c] sm:$0xf] %v11592_v49 }
 0x136   :  { %v12236_v4 = vld [vmem:[%s15721_s3 + $0xa4] ss:$8 sps:$4 sm:$0xff]   ;;  %v13327_v6 = vld [vmem:[#allocation3 + $0x34] ss:$12 sps:$4 sm:$0xff]   ;;  %v12247_v21 = vld [vmem:[%s15721_s3 + $0x90] ss:$8 sps:$4 sm:$0xff]  }
 0x137   :  { %3740 = vst [vmem:[#allocation3 + $0x20] sm:$0xf] %v11645_v14  ;;  %906 = vst [vmem:[#allocation3 + $0x50] sm:$0xf] %v11645_v14  ;;  %2372 = vmatmul.mubr.bf16.gmra.mxu0 %v12183_v61  ;;  %v3266_v7 = vld [vmem:[#allocation2 + $0x47] sm:$0xff]  ;;  %v3603_v18 = vld [vmem:[#allocation2 + $0x51] sm:$0xff] }
 0x138   :  { %3741 = vst [vmem:[#allocation3 + $0x2c] sm:$0xf] %v11646_v2  ;;  %907 = vst [vmem:[#allocation3 + $0x5c] sm:$0xf] %v11646_v2  ;;  %2381 = vmatprep.mubr.bf16.mxu0 %v15726_v11  ;;  %v11591_v48 = vpack.c.bf16 %v3266_v7, %v3266_v7  ;;  %2941 = vmatpush2.bf16.msra.mxu1 %v12221_v60  ;;  %v12234_v9 = vld [vmem:[%s15721_s3 + $0xa0] ss:$8 sps:$4 sm:$0xff]   ;;  %v11648_v23 = vpack.c.bf16 %v3603_v18, %v3603_v18 }
 0x139   :  { %2199 = vmatmul.mubr.bf16.gmra.mxu1 %v12184_v1  ;;  %2942 = vmatprep.subr.bf16.mxu1 %v12236_v4  ;;  %v12249_v13 = vld [vmem:[%s15721_s3 + $0x94] ss:$8 sps:$4 sm:$0xff]   ;;  %v13336_v63 = vld [vmem:[#allocation3 + $0x38] ss:$12 sps:$4 sm:$0xff]   ;;  %v3602_v17 = vld [vmem:[#allocation2 + $0x49] sm:$0xff] }
 0x13a   :  { %2208 = vmatprep.mubr.bf16.mxu1 %v12188_v3  ;;  %3406 = vst [vmem:[#allocation3 + $0x30] sm:$0xf] %v11591_v48  ;;  %572 = vst [vmem:[#allocation3 + $0x60] sm:$0xf] %v11591_v48  ;;  %v12190_v19 = vld [vmem:[#allocation3 + $0x200] ss:$12 sps:$4 sm:$0xff]   ;;  %v11647_v22 = vpack.c.bf16 %v3602_v17, %v3602_v17 }
 0x13b   :  { %v12194_v20 = vld [vmem:[#allocation3 + $0x1f8] ss:$12 sps:$4 sm:$0xff]   ;;  %3574 = vst [vmem:[#allocation3 + $0x34] sm:$0xf] %v11619_v15  ;;  %3575 = vst [vmem:[#allocation3 + $0x40] sm:$0xf] %v11620_v16 }
 0x13c   :  { %740 = vst [vmem:[#allocation3 + $0x64] sm:$0xf] %v11619_v15  ;;  %741 = vst [vmem:[#allocation3 + $0x70] sm:$0xf] %v11620_v16  ;;  %2943 = vmatpush2.bf16.msra.mxu1 %v12234_v9  ;;  %v3268_v5 = vld [vmem:[#allocation2 + $0x57] sm:$0xff]  ;;  %v3269_v24 = vld [vmem:[#allocation2 + $0x5f] sm:$0xff] }
 0x13d   :  { %v3436_v25 = vld [vmem:[#allocation2 + $0x58] sm:$0xff]  ;;  %v12195_v26 = vld [vmem:[#allocation3 + $0x214] ss:$12 sps:$4 sm:$0xff]   ;;  %2944 = vmatprep.subr.bf16.mxu1 %v12249_v13  ;;  %v12260_v27 = vld [vmem:[%s15721_s3 + $0x84] ss:$8 sps:$4 sm:$0xff]   ;;  %v11593_v28 = vpack.c.bf16 %v3268_v5, %v3268_v5  ;;  %v11594_v29 = vpack.c.bf16 %v3269_v24, %v3269_v24 }
 0x13e   :  { %3742 = vst [vmem:[#allocation3 + $0x38] sm:$0xf] %v11647_v22  ;;  %3743 = vst [vmem:[#allocation3 + $0x44] sm:$0xf] %v11648_v23  ;;  %v3437_v30 = vld [vmem:[#allocation2 + $0x60] sm:$0xff]  ;;  %v11621_v31 = vpack.c.bf16 %v3436_v25, %v3436_v25  ;;  %v3271_v42 = vld [vmem:[#allocation2 + $0x6f] sm:$0xff] }
 0x13f   :  { %908 = vst [vmem:[#allocation3 + $0x68] sm:$0xf] %v11647_v22  ;;  %909 = vst [vmem:[#allocation3 + $0x74] sm:$0xf] %v11648_v23  ;;  %2382 = vmatmul.mubr.bf16.gmra.mxu0 %v12190_v19  ;;  %v12258_v32 = vld [vmem:[%s15721_s3 + $0x80] ss:$8 sps:$4 sm:$0xff]   ;;  %v11622_v34 = vpack.c.bf16 %v3437_v30, %v3437_v30  ;;  %v11596_v50 = vpack.c.bf16 %v3271_v42, %v3271_v42 }
 0x140   :  { %v13347_v33 = vld [vmem:[#allocation3 + $0x4c] ss:$12 sps:$4 sm:$0xff]   ;;  %2391 = vmatprep.mubr.bf16.mxu0 %v15726_v11  ;;  %3408 = vst [vmem:[#allocation3 + $0x48] sm:$0xf] %v11593_v28  ;;  %3409 = vst [vmem:[#allocation3 + $0x54] sm:$0xf] %v11594_v29  ;;  %2945 = vmatpush2.bf16.msra.mxu1 %v12247_v21 }
 0x141   :  { %2209 = vmatmul.mubr.bf16.gmra.mxu1 %v12194_v20  ;;  %3576 = vst [vmem:[#allocation3 + $0x4c] sm:$0xf] %v11621_v31  ;;  %v3604_v37 = vld [vmem:[#allocation2 + $0x59] sm:$0xff]  ;;  %v3605_v38 = vld [vmem:[#allocation2 + $0x61] sm:$0xff]  ;;  %574 = vst [vmem:[#allocation3 + $0x78] sm:$0xf] %v11593_v28  ;;  %2946 = vmatprep.subr.bf16.mxu1 %v12260_v27 }
 0x142   :  { %2218 = vmatprep.mubr.bf16.mxu1 %v12195_v26  ;;  %v3270_v39 = vld [vmem:[#allocation2 + $0x67] sm:$0xff]  ;;  %575 = vst [vmem:[#allocation3 + $0x84] sm:$0xf] %v11594_v29  ;;  %742 = vst [vmem:[#allocation3 + $0x7c] sm:$0xf] %v11621_v31  ;;  %v11649_v40 = vpack.c.bf16 %v3604_v37, %v3604_v37  ;;  %v11650_v41 = vpack.c.bf16 %v3605_v38, %v3605_v38  ;;  %v3439_v45 = vld [vmem:[#allocation2 + $0x70] sm:$0xff] }
 0x143   :  { %3577 = vst [vmem:[#allocation3 + $0x58] sm:$0xf] %v11622_v34  ;;  %v11595_v43 = vpack.c.bf16 %v3270_v39, %v3270_v39  ;;  %v3438_v44 = vld [vmem:[#allocation2 + $0x68] sm:$0xff]  ;;  %743 = vst [vmem:[#allocation3 + $0x88] sm:$0xf] %v11622_v34  ;;  %v11624_v52 = vpack.c.bf16 %v3439_v45, %v3439_v45  ;;  %v3607_v59 = vld [vmem:[#allocation2 + $0x71] sm:$0xff] }
 0x144   :  { %v12269_v46 = vld [vmem:[%s15721_s3 + $0x374] ss:$8 sps:$4 sm:$0xff]   ;;  %v11623_v51 = vpack.c.bf16 %v3438_v44, %v3438_v44  ;;  %v3606_v53 = vld [vmem:[#allocation2 + $0x69] sm:$0xff]  ;;  %v12200_v54 = vld [vmem:[#allocation3 + $0x218] ss:$12 sps:$4 sm:$0xff]   ;;  %2947 = vmatpush2.bf16.msra.mxu1 %v12258_v32  ;;  %v11652_v0 = vpack.c.bf16 %v3607_v59, %v3607_v59 }
 0x145   :  { %v13353_v47 = vld [vmem:[#allocation3 + $0x50] ss:$12 sps:$4 sm:$0xff]   ;;  %v11651_v58 = vpack.c.bf16 %v3606_v53, %v3606_v53  ;;  %910 = vst [vmem:[#allocation3 + $0x80] sm:$0xf] %v11649_v40  ;;  %911 = vst [vmem:[#allocation3 + $0x8c] sm:$0xf] %v11650_v41  ;;  %4335 = vmatprep.subr.bf16.mxu1 %v12269_v46 }
 0x146   :  { %v12201_v56 = vld [vmem:[#allocation3 + $0x210] ss:$12 sps:$4 sm:$0xff]   ;;  %3744 = vst [vmem:[#allocation3 + $0x50] sm:$0xf] %v11649_v40  ;;  %3745 = vst [vmem:[#allocation3 + $0x5c] sm:$0xf] %v11650_v41 }
 0x147   :  { %v13355_v57 = vld [vmem:[#allocation3 + $0x64] ss:$12 sps:$4 sm:$0xff]   ;;  %576 = vst [vmem:[#allocation3 + $0x90] sm:$0xf] %v11595_v43  ;;  %3410 = vst [vmem:[#allocation3 + $0x60] sm:$0xf] %v11595_v43  ;;  %2392 = vmatmul.mubr.bf16.gmra.mxu0 %v12200_v54 }
 0x148   :  { %3411 = vst [vmem:[#allocation3 + $0x6c] sm:$0xf] %v11596_v50  ;;  %3578 = vst [vmem:[#allocation3 + $0x64] sm:$0xf] %v11623_v51  ;;  %v3272_v60 = vld [vmem:[#allocation2 + $0x77] sm:$0xff]  ;;  %v3273_v14 = vld [vmem:[#allocation2 + $0x7f] sm:$0xff]  ;;  %2401 = vmatprep.mubr.bf16.mxu0 %v15726_v11 }
 0x149   :  { %3579 = vst [vmem:[#allocation3 + $0x70] sm:$0xf] %v11624_v52  ;;  %577 = vst [vmem:[#allocation3 + $0x9c] sm:$0xf] %v11596_v50  ;;  %v13357_v61 = vld [vmem:[#allocation3 + $0x68] ss:$12 sps:$4 sm:$0xff]   ;;  %v11597_v1 = vpack.c.bf16 %v3272_v60, %v3272_v60  ;;  %v11598_v2 = vpack.c.bf16 %v3273_v14, %v3273_v14  ;;  %2219 = vmatmul.mubr.bf16.gmra.mxu1 %v12201_v56 }
 0x14a   :  { %744 = vst [vmem:[#allocation3 + $0x94] sm:$0xf] %v11623_v51  ;;  %745 = vst [vmem:[#allocation3 + $0xa0] sm:$0xf] %v11624_v52  ;;  %v12202_v3 = vld [vmem:[#allocation3 + $0x22c] ss:$12 sps:$4 sm:$0xff]  }
 0x14b   :  { %912 = vst [vmem:[#allocation3 + $0x98] sm:$0xf] %v11651_v58  ;;  %3746 = vst [vmem:[#allocation3 + $0x68] sm:$0xf] %v11651_v58  ;;  %v3440_v4 = vld [vmem:[#allocation2 + $0x78] sm:$0xff]  ;;  %v3441_v7 = vld [vmem:[#allocation2 + $0x80] sm:$0xff]  ;;  %2228 = vmatprep.mubr.bf16.mxu1 %v12202_v3 }
 0x14c   :  { %3747 = vst [vmem:[#allocation3 + $0x74] sm:$0xf] %v11652_v0  ;;  %v11625_v8 = vpack.c.bf16 %v3440_v4, %v3440_v4  ;;  %v11626_v48 = vpack.c.bf16 %v3441_v7, %v3441_v7  ;;  %v3608_v49 = vld [vmem:[#allocation2 + $0x79] sm:$0xff]  ;;  %913 = vst [vmem:[#allocation3 + $0xa4] sm:$0xf] %v11652_v0  ;;  %v3609_v10 = vld [vmem:[#allocation2 + $0x81] sm:$0xff] }
 0x14d   :  { %578 = vst [vmem:[#allocation3 + $0xa8] sm:$0xf] %v11597_v1  ;;  %579 = vst [vmem:[#allocation3 + $0xb4] sm:$0xf] %v11598_v2  ;;  %v13360_v9 = vld [vmem:[#allocation3 + $0x7c] ss:$12 sps:$4 sm:$0xff]   ;;  %v11653_v12 = vpack.c.bf16 %v3608_v49, %v3608_v49  ;;  %v11654_v13 = vpack.c.bf16 %v3609_v10, %v3609_v10 }
 0x14e   :  { %3412 = vst [vmem:[#allocation3 + $0x78] sm:$0xf] %v11597_v1  ;;  %3413 = vst [vmem:[#allocation3 + $0x84] sm:$0xf] %v11598_v2  ;;  %v3274_v15 = vld [vmem:[#allocation2 + $0x87] sm:$0xff]  ;;  %v3275_v16 = vld [vmem:[#allocation2 + $0x8f] sm:$0xff] }
 0x14f   :  { %3580 = vst [vmem:[#allocation3 + $0x7c] sm:$0xf] %v11625_v8  ;;  %3581 = vst [vmem:[#allocation3 + $0x88] sm:$0xf] %v11626_v48  ;;  %v3442_v17 = vld [vmem:[#allocation2 + $0x88] sm:$0xff]  ;;  %v11599_v19 = vpack.c.bf16 %v3274_v15, %v3274_v15  ;;  %v11600_v20 = vpack.c.bf16 %v3275_v16, %v3275_v16  ;;  %v3443_v24 = vld [vmem:[#allocation2 + $0x90] sm:$0xff] }
 0x150   :  { %746 = vst [vmem:[#allocation3 + $0xac] sm:$0xf] %v11625_v8  ;;  %747 = vst [vmem:[#allocation3 + $0xb8] sm:$0xf] %v11626_v48  ;;  %v13362_v18 = vld [vmem:[#allocation3 + $0x80] ss:$12 sps:$4 sm:$0xff]   ;;  %v11627_v21 = vpack.c.bf16 %v3442_v17, %v3442_v17  ;;  %v11628_v25 = vpack.c.bf16 %v3443_v24, %v3443_v24 }
 0x151   :  { %914 = vst [vmem:[#allocation3 + $0xb0] sm:$0xf] %v11653_v12  ;;  %3748 = vst [vmem:[#allocation3 + $0x80] sm:$0xf] %v11653_v12  ;;  %v13364_v22 = vld [vmem:[#allocation3 + $0x94] ss:$12 sps:$4 sm:$0xff]  }
 0x152   :  { %3749 = vst [vmem:[#allocation3 + $0x8c] sm:$0xf] %v11654_v13  ;;  %915 = vst [vmem:[#allocation3 + $0xbc] sm:$0xf] %v11654_v13  ;;  %v12207_v23 = vld [vmem:[#allocation3 + $0x230] ss:$12 sps:$4 sm:$0xff]  }
 0x153   :  { %v12208_v5 = vld [vmem:[#allocation3 + $0x228] ss:$12 sps:$4 sm:$0xff]   ;;  %3414 = vst [vmem:[#allocation3 + $0x90] sm:$0xf] %v11599_v19  ;;  %3415 = vst [vmem:[#allocation3 + $0x9c] sm:$0xf] %v11600_v20  ;;  %2402 = vmatmul.mubr.bf16.gmra.mxu0 %v12207_v23 }
 0x154   :  { %3582 = vst [vmem:[#allocation3 + $0x94] sm:$0xf] %v11627_v21  ;;  %580 = vst [vmem:[#allocation3 + $0xc0] sm:$0xf] %v11599_v19  ;;  %v3610_v26 = vld [vmem:[#allocation2 + $0x89] sm:$0xff]  ;;  %v3611_v27 = vld [vmem:[#allocation2 + $0x91] sm:$0xff]  ;;  %2229 = vmatmul.mubr.bf16.gmra.mxu1 %v12208_v5  ;;  %2411 = vmatprep.mubr.bf16.mxu0 %v15726_v11 }
 0x155   :  { %581 = vst [vmem:[#allocation3 + $0xcc] sm:$0xf] %v11600_v20  ;;  %748 = vst [vmem:[#allocation3 + $0xc4] sm:$0xf] %v11627_v21  ;;  %v12209_v28 = vld [vmem:[#allocation3 + $0x244] ss:$12 sps:$4 sm:$0xff]   ;;  %v11655_v29 = vpack.c.bf16 %v3610_v26, %v3610_v26  ;;  %v11656_v30 = vpack.c.bf16 %v3611_v27, %v3611_v27 }
 0x156   :  { %3583 = vst [vmem:[#allocation3 + $0xa0] sm:$0xf] %v11628_v25  ;;  %v13366_v31 = vld [vmem:[#allocation3 + $0x98] ss:$12 sps:$4 sm:$0xff]   ;;  %749 = vst [vmem:[#allocation3 + $0xd0] sm:$0xf] %v11628_v25  ;;  %2238 = vmatprep.mubr.bf16.mxu1 %v12209_v28 }
 0x157   :  { %v3276_v32 = vld [vmem:[#allocation2 + $0x97] sm:$0xff]  ;;  %v3277_v34 = vld [vmem:[#allocation2 + $0x9f] sm:$0xff]  ;;  %3750 = vst [vmem:[#allocation3 + $0x98] sm:$0xf] %v11655_v29  ;;  %3751 = vst [vmem:[#allocation3 + $0xa4] sm:$0xf] %v11656_v30 }
 0x158   :  { %v13369_v37 = vld [vmem:[#allocation3 + $0xac] ss:$12 sps:$4 sm:$0xff]   ;;  %v11601_v38 = vpack.c.bf16 %v3276_v32, %v3276_v32  ;;  %v11602_v39 = vpack.c.bf16 %v3277_v34, %v3277_v34  ;;  %916 = vst [vmem:[#allocation3 + $0xc8] sm:$0xf] %v11655_v29  ;;  %917 = vst [vmem:[#allocation3 + $0xd4] sm:$0xf] %v11656_v30 }
 0x159   :  { %v3444_v40 = vld [vmem:[#allocation2 + $0x98] sm:$0xff]  ;;  %v3445_v41 = vld [vmem:[#allocation2 + $0xa0] sm:$0xff]  ;;  %v12214_v45 = vld [vmem:[#allocation3 + $0x248] ss:$12 sps:$4 sm:$0xff]  }
 0x15a   :  { %3416 = vst [vmem:[#allocation3 + $0xa8] sm:$0xf] %v11601_v38  ;;  %3417 = vst [vmem:[#allocation3 + $0xb4] sm:$0xf] %v11602_v39  ;;  %v11629_v42 = vpack.c.bf16 %v3444_v40, %v3444_v40  ;;  %v11630_v43 = vpack.c.bf16 %v3445_v41, %v3445_v41  ;;  %v3612_v44 = vld [vmem:[#allocation2 + $0x99] sm:$0xff]  ;;  %v3613_v46 = vld [vmem:[#allocation2 + $0xa1] sm:$0xff] }
 0x15b   :  { %582 = vst [vmem:[#allocation3 + $0xd8] sm:$0xf] %v11601_v38  ;;  %583 = vst [vmem:[#allocation3 + $0xe4] sm:$0xf] %v11602_v39  ;;  %v11657_v50 = vpack.c.bf16 %v3612_v44, %v3612_v44  ;;  %v13371_v51 = vld [vmem:[#allocation3 + $0xb0] ss:$12 sps:$4 sm:$0xff]   ;;  %v11658_v52 = vpack.c.bf16 %v3613_v46, %v3613_v46  ;;  %2412 = vmatmul.mubr.bf16.gmra.mxu0 %v12214_v45 }
 0x15c   :  { %3584 = vst [vmem:[#allocation3 + $0xac] sm:$0xf] %v11629_v42  ;;  %3585 = vst [vmem:[#allocation3 + $0xb8] sm:$0xf] %v11630_v43  ;;  %v3278_v53 = vld [vmem:[#allocation2 + $0xa7] sm:$0xff]  ;;  %v3279_v54 = vld [vmem:[#allocation2 + $0xaf] sm:$0xff]  ;;  %2421 = vmatprep.mubr.bf16.mxu0 %v15726_v11 }
 0x15d   :  { %750 = vst [vmem:[#allocation3 + $0xdc] sm:$0xf] %v11629_v42  ;;  %751 = vst [vmem:[#allocation3 + $0xe8] sm:$0xf] %v11630_v43  ;;  %v12218_v56 = vld [vmem:[#allocation3 + $0x240] ss:$12 sps:$4 sm:$0xff]   ;;  %v11603_v58 = vpack.c.bf16 %v3278_v53, %v3278_v53  ;;  %v11604_v59 = vpack.c.bf16 %v3279_v54, %v3279_v54 }
 0x15e   :  { %3752 = vst [vmem:[#allocation3 + $0xb0] sm:$0xf] %v11657_v50  ;;  %v3446_v60 = vld [vmem:[#allocation2 + $0xa8] sm:$0xff]  ;;  %v3447_v14 = vld [vmem:[#allocation2 + $0xb0] sm:$0xff]  ;;  %918 = vst [vmem:[#allocation3 + $0xe0] sm:$0xf] %v11657_v50  ;;  %2239 = vmatmul.mubr.bf16.gmra.mxu1 %v12218_v56 }
 0x15f   :  { %v12219_v0 = vld [vmem:[#allocation3 + $0x25c] ss:$12 sps:$4 sm:$0xff]   ;;  %3753 = vst [vmem:[#allocation3 + $0xbc] sm:$0xf] %v11658_v52  ;;  %v13373_v1 = vld [vmem:[#allocation3 + $0xc4] ss:$12 sps:$4 sm:$0xff]   ;;  %v11631_v2 = vpack.c.bf16 %v3446_v60, %v3446_v60  ;;  %v11632_v3 = vpack.c.bf16 %v3447_v14, %v3447_v14 }
 0x160   :  { %919 = vst [vmem:[#allocation3 + $0xec] sm:$0xf] %v11658_v52  ;;  %3418 = vst [vmem:[#allocation3 + $0xc0] sm:$0xf] %v11603_v58  ;;  %2248 = vmatprep.mubr.bf16.mxu1 %v12219_v0  ;;  %v3614_v4 = vld [vmem:[#allocation2 + $0xa9] sm:$0xff]  ;;  %v3615_v7 = vld [vmem:[#allocation2 + $0xb1] sm:$0xff] }
 0x161   :  { %3419 = vst [vmem:[#allocation3 + $0xcc] sm:$0xf] %v11604_v59  ;;  %584 = vst [vmem:[#allocation3 + $0xf0] sm:$0xf] %v11603_v58  ;;  %v3280_v8 = vld [vmem:[#allocation2 + $0xb7] sm:$0xff]  ;;  %v11659_v48 = vpack.c.bf16 %v3614_v4, %v3614_v4  ;;  %v11660_v49 = vpack.c.bf16 %v3615_v7, %v3615_v7  ;;  %v3281_v10 = vld [vmem:[#allocation2 + $0xbf] sm:$0xff] }
 0x162   :  { %585 = vst [vmem:[#allocation3 + $0xfc] sm:$0xf] %v11604_v59  ;;  %3586 = vst [vmem:[#allocation3 + $0xc4] sm:$0xf] %v11631_v2  ;;  %v11605_v12 = vpack.c.bf16 %v3280_v8, %v3280_v8  ;;  %v3448_v13 = vld [vmem:[#allocation2 + $0xb8] sm:$0xff]  ;;  %v3449_v15 = vld [vmem:[#allocation2 + $0xc0] sm:$0xff]  ;;  %v11606_v17 = vpack.c.bf16 %v3281_v10, %v3281_v10 }
 0x163   :  { %3587 = vst [vmem:[#allocation3 + $0xd0] sm:$0xf] %v11632_v3  ;;  %752 = vst [vmem:[#allocation3 + $0xf4] sm:$0xf] %v11631_v2  ;;  %v13376_v16 = vld [vmem:[#allocation3 + $0xc8] ss:$12 sps:$4 sm:$0xff]   ;;  %v11633_v19 = vpack.c.bf16 %v3448_v13, %v3448_v13  ;;  %v11634_v20 = vpack.c.bf16 %v3449_v15, %v3449_v15 }
 0x164   :  { %753 = vst [vmem:[#allocation3 + $0x100] sm:$0xf] %v11632_v3  ;;  %v3616_v21 = vld [vmem:[#allocation2 + $0xb9] sm:$0xff]  ;;  %3754 = vst [vmem:[#allocation3 + $0xc8] sm:$0xf] %v11659_v48  ;;  %v3617_v26 = vld [vmem:[#allocation2 + $0xc1] sm:$0xff] }
 0x165   :  { %v12227_v23 = vld [vmem:[#allocation3 + $0x260] ss:$12 sps:$4 sm:$0xff]   ;;  %v12231_v5 = vld [vmem:[#allocation3 + $0x258] ss:$12 sps:$4 sm:$0xff]   ;;  %3755 = vst [vmem:[#allocation3 + $0xd4] sm:$0xf] %v11660_v49  ;;  %v11661_v25 = vpack.c.bf16 %v3616_v21, %v3616_v21  ;;  %v11662_v29 = vpack.c.bf16 %v3617_v26, %v3617_v26 }
 0x166   :  { %v13378_v24 = vld [vmem:[#allocation3 + $0xdc] ss:$12 sps:$4 sm:$0xff]   ;;  %920 = vst [vmem:[#allocation3 + $0xf8] sm:$0xf] %v11659_v48  ;;  %921 = vst [vmem:[#allocation3 + $0x104] sm:$0xf] %v11660_v49  ;;  %2422 = vmatmul.mubr.bf16.gmra.mxu0 %v12227_v23  ;;  %2249 = vmatmul.mubr.bf16.gmra.mxu1 %v12231_v5 }
 0x167   :  { %586 = vst [vmem:[#allocation3 + $0x108] sm:$0xf] %v11605_v12  ;;  %3420 = vst [vmem:[#allocation3 + $0xd8] sm:$0xf] %v11605_v12  ;;  %v3282_v27 = vld [vmem:[#allocation2 + $0xc7] sm:$0xff]  ;;  %v3283_v30 = vld [vmem:[#allocation2 + $0xcf] sm:$0xff]  ;;  %2431 = vmatprep.mubr.bf16.mxu0 %v15726_v11 }
 0x168   :  { %3421 = vst [vmem:[#allocation3 + $0xe4] sm:$0xf] %v11606_v17  ;;  %3588 = vst [vmem:[#allocation3 + $0xdc] sm:$0xf] %v11633_v19  ;;  %v13380_v28 = vld [vmem:[#allocation3 + $0xe0] ss:$12 sps:$4 sm:$0xff]   ;;  %v11607_v32 = vpack.c.bf16 %v3282_v27, %v3282_v27  ;;  %v11608_v38 = vpack.c.bf16 %v3283_v30, %v3283_v30 }
 0x169   :  { %3589 = vst [vmem:[#allocation3 + $0xe8] sm:$0xf] %v11634_v20  ;;  %587 = vst [vmem:[#allocation3 + $0x114] sm:$0xf] %v11606_v17  ;;  %v12232_v34 = vld [vmem:[#allocation3 + $0x274] ss:$12 sps:$4 sm:$0xff]  }
 0x16a   :  { %754 = vst [vmem:[#allocation3 + $0x10c] sm:$0xf] %v11633_v19  ;;  %755 = vst [vmem:[#allocation3 + $0x118] sm:$0xf] %v11634_v20  ;;  %v3450_v39 = vld [vmem:[#allocation2 + $0xc8] sm:$0xff]  ;;  %v3451_v40 = vld [vmem:[#allocation2 + $0xd0] sm:$0xff]  ;;  %2258 = vmatprep.mubr.bf16.mxu1 %v12232_v34 }
 0x16b   :  { %922 = vst [vmem:[#allocation3 + $0x110] sm:$0xf] %v11661_v25  ;;  %3756 = vst [vmem:[#allocation3 + $0xe0] sm:$0xf] %v11661_v25  ;;  %v13382_v41 = vld [vmem:[#allocation3 + $0xf4] ss:$12 sps:$4 sm:$0xff]   ;;  %v11635_v42 = vpack.c.bf16 %v3450_v39, %v3450_v39  ;;  %v11636_v43 = vpack.c.bf16 %v3451_v40, %v3451_v40 }
 0x16c   :  { %3757 = vst [vmem:[#allocation3 + $0xec] sm:$0xf] %v11662_v29  ;;  %923 = vst [vmem:[#allocation3 + $0x11c] sm:$0xf] %v11662_v29  ;;  %v3618_v44 = vld [vmem:[#allocation2 + $0xc9] sm:$0xff]  ;;  %v3619_v45 = vld [vmem:[#allocation2 + $0xd1] sm:$0xff] }
 0x16d   :  { %588 = vst [vmem:[#allocation3 + $0x120] sm:$0xf] %v11607_v32  ;;  %3422 = vst [vmem:[#allocation3 + $0xf0] sm:$0xf] %v11607_v32  ;;  %v11663_v46 = vpack.c.bf16 %v3618_v44, %v3618_v44  ;;  %v11664_v50 = vpack.c.bf16 %v3619_v45, %v3619_v45  ;;  %v12335_v52 = vld [vmem:[%s15721_s3 + $0x474] ss:$8 sps:$4 sm:$0xff]  }
 0x16e   :  { %3423 = vst [vmem:[#allocation3 + $0xfc] sm:$0xf] %v11608_v38  ;;  %589 = vst [vmem:[#allocation3 + $0x12c] sm:$0xf] %v11608_v38  ;;  %v3284_v53 = vld [vmem:[#allocation2 + $0xd7] sm:$0xff]  ;;  %4508 = vmatprep.subr.bf16.mxu0 %v12335_v52  ;;  %v3285_v59 = vld [vmem:[#allocation2 + $0xdf] sm:$0xff] }
 0x16f   :  { %3590 = vst [vmem:[#allocation3 + $0xf4] sm:$0xf] %v11635_v42  ;;  %3591 = vst [vmem:[#allocation3 + $0x100] sm:$0xf] %v11636_v43  ;;  %v13388_v54 = vld [vmem:[#allocation3 + $0xf8] ss:$12 sps:$4 sm:$0xff]   ;;  %v11609_v56 = vpack.c.bf16 %v3284_v53, %v3284_v53  ;;  %v11610_v3 = vpack.c.bf16 %v3285_v59, %v3285_v59 }
 0x170   :  { %756 = vst [vmem:[#allocation3 + $0x124] sm:$0xf] %v11635_v42  ;;  %757 = vst [vmem:[#allocation3 + $0x130] sm:$0xf] %v11636_v43  ;;  %v3452_v60 = vld [vmem:[#allocation2 + $0xd8] sm:$0xff]  ;;  %v3453_v14 = vld [vmem:[#allocation2 + $0xe0] sm:$0xff] }
 0x171   :  { %3758 = vst [vmem:[#allocation3 + $0xf8] sm:$0xf] %v11663_v46  ;;  %3759 = vst [vmem:[#allocation3 + $0x104] sm:$0xf] %v11664_v50  ;;  %v13390_v58 = vld [vmem:[#allocation3 + $0x10c] ss:$12 sps:$4 sm:$0xff]   ;;  %v11637_v4 = vpack.c.bf16 %v3452_v60, %v3452_v60  ;;  %v11638_v7 = vpack.c.bf16 %v3453_v14, %v3453_v14 }
 0x172   :  { %924 = vst [vmem:[#allocation3 + $0x128] sm:$0xf] %v11663_v46  ;;  %925 = vst [vmem:[#allocation3 + $0x134] sm:$0xf] %v11664_v50  ;;  %v12240_v0 = vld [vmem:[#allocation3 + $0x278] ss:$12 sps:$4 sm:$0xff]  }
 0x173   :  { %3424 = vst [vmem:[#allocation3 + $0x108] sm:$0xf] %v11609_v56  ;;  %590 = vst [vmem:[#allocation3 + $0x138] sm:$0xf] %v11609_v56  ;;  %v12244_v2 = vld [vmem:[#allocation3 + $0x270] ss:$12 sps:$4 sm:$0xff]   ;;  %2432 = vmatmul.mubr.bf16.gmra.mxu0 %v12240_v0 }
 0x174   :  { %v12245_v8 = vld [vmem:[#allocation3 + $0x28c] ss:$12 sps:$4 sm:$0xff]   ;;  %2259 = vmatmul.mubr.bf16.gmra.mxu1 %v12244_v2  ;;  %3425 = vst [vmem:[#allocation3 + $0x114] sm:$0xf] %v11610_v3  ;;  %3592 = vst [vmem:[#allocation3 + $0x10c] sm:$0xf] %v11637_v4  ;;  %2441 = vmatprep.mubr.bf16.mxu0 %v15726_v11 }
 0x175   :  { %3593 = vst [vmem:[#allocation3 + $0x118] sm:$0xf] %v11638_v7  ;;  %v3620_v48 = vld [vmem:[#allocation2 + $0xd9] sm:$0xff]  ;;  %v3621_v49 = vld [vmem:[#allocation2 + $0xe1] sm:$0xff]  ;;  %591 = vst [vmem:[#allocation3 + $0x144] sm:$0xf] %v11610_v3  ;;  %2268 = vmatprep.mubr.bf16.mxu1 %v12245_v8 }
 0x176   :  { %758 = vst [vmem:[#allocation3 + $0x13c] sm:$0xf] %v11637_v4  ;;  %759 = vst [vmem:[#allocation3 + $0x148] sm:$0xf] %v11638_v7  ;;  %v11665_v10 = vpack.c.bf16 %v3620_v48, %v3620_v48  ;;  %v11666_v12 = vpack.c.bf16 %v3621_v49, %v3621_v49  ;;  %v13393_v13 = vld [vmem:[#allocation3 + $0x110] ss:$12 sps:$4 sm:$0xff]  }
 0x177   :  { %v3286_v15 = vld [vmem:[#allocation2 + $0xe7] sm:$0xff]  ;;  %v3287_v17 = vld [vmem:[#allocation2 + $0xef] sm:$0xff]  ;;  %v3288_v43 = vld [vmem:[#allocation2 + $0xf7] sm:$0xff] }
 0x178   :  { %3760 = vst [vmem:[#allocation3 + $0x110] sm:$0xf] %v11665_v10  ;;  %3761 = vst [vmem:[#allocation3 + $0x11c] sm:$0xf] %v11666_v12  ;;  %v11611_v19 = vpack.c.bf16 %v3286_v15, %v3286_v15  ;;  %v3454_v20 = vld [vmem:[#allocation2 + $0xe8] sm:$0xff]  ;;  %v3455_v21 = vld [vmem:[#allocation2 + $0xf0] sm:$0xff]  ;;  %v11612_v5 = vpack.c.bf16 %v3287_v17, %v3287_v17  ;;  %v11613_v45 = vpack.c.bf16 %v3288_v43, %v3288_v43 }
 0x179   :  { %926 = vst [vmem:[#allocation3 + $0x140] sm:$0xf] %v11665_v10  ;;  %927 = vst [vmem:[#allocation3 + $0x14c] sm:$0xf] %v11666_v12  ;;  %v13395_v23 = vld [vmem:[#allocation3 + $0x124] ss:$12 sps:$4 sm:$0xff]   ;;  %v11639_v25 = vpack.c.bf16 %v3454_v20, %v3454_v20  ;;  %v11640_v26 = vpack.c.bf16 %v3455_v21, %v3455_v21 }
 0x17a   :  { %v12253_v27 = vld [vmem:[#allocation3 + $0x290] ss:$12 sps:$4 sm:$0xff]   ;;  %3426 = vst [vmem:[#allocation3 + $0x120] sm:$0xf] %v11611_v19  ;;  %v12257_v29 = vld [vmem:[#allocation3 + $0x288] ss:$12 sps:$4 sm:$0xff]  }
 0x17b   :  { %3427 = vst [vmem:[#allocation3 + $0x12c] sm:$0xf] %v11612_v5  ;;  %3594 = vst [vmem:[#allocation3 + $0x124] sm:$0xf] %v11639_v25  ;;  %v3622_v30 = vld [vmem:[#allocation2 + $0xe9] sm:$0xff]  ;;  %v3623_v32 = vld [vmem:[#allocation2 + $0xf1] sm:$0xff]  ;;  %2442 = vmatmul.mubr.bf16.gmra.mxu0 %v12253_v27 }
 0x17c   :  { %3595 = vst [vmem:[#allocation3 + $0x130] sm:$0xf] %v11640_v26  ;;  %v928_v34 = vld [vmem:[#allocation3] sm:$0xff]  ;;  %v11667_v38 = vpack.c.bf16 %v3622_v30, %v3622_v30  ;;  %v11668_v39 = vpack.c.bf16 %v3623_v32, %v3623_v32  ;;  %2269 = vmatmul.mubr.bf16.gmra.mxu1 %v12257_v29  ;;  %v930_v40 = vld [vmem:[#allocation3 + $0xc] sm:$0xff]  ;;  %v13397_v42 = vld [vmem:[#allocation3 + $0x128] ss:$12 sps:$4 sm:$0xff]   ;;  %3121 = vmatprep.mubr.bf16.mxu0 %v15726_v11 }
 0x17d   :  { %2948 = vmatprep.mubr.bf16.mxu1 %v13139_v35  ;;  %v3289_v44 = vld [vmem:[#allocation2 + $0xff] sm:$0xff]  ;;  %3428 = vst [vmem:[#allocation3 + $0x138] sm:$0xf] %v11613_v45  ;;  %v10429_v60 = vcombine.low %v928_v34, %v930_v40  ;;  %v12267_v35 = vld [vmem:[%s15721_s3 + $0x370] ss:$8 sps:$4 sm:$0xff]   ;;  %v940_v40 = vld [vmem:[#allocation3 + $0x48] sm:$0xff] }
 0x17e   :  { %3762 = vst [vmem:[#allocation3 + $0x128] sm:$0xf] %v11667_v38  ;;  %3763 = vst [vmem:[#allocation3 + $0x134] sm:$0xf] %v11668_v39  ;;  %v3456_v46 = vld [vmem:[#allocation2 + $0xf8] sm:$0xff]  ;;  %v3457_v50 = vld [vmem:[#allocation2 + $0x100] sm:$0xff]  ;;  %v11614_v53 = vpack.c.bf16 %v3289_v44, %v3289_v44 }
 0x17f   :  { %v13401_v52 = vld [vmem:[#allocation3 + $0x13c] ss:$12 sps:$4 sm:$0xff]   ;;  %v11641_v56 = vpack.c.bf16 %v3456_v46, %v3456_v46  ;;  %v11642_v59 = vpack.c.bf16 %v3457_v50, %v3457_v50  ;;  %v12274_v2 = vld [vmem:[%s15721_s3 + $0x364] ss:$8 sps:$4 sm:$0xff]   ;;  %v12333_v8 = vld [vmem:[%s15721_s3 + $0x470] ss:$8 sps:$4 sm:$0xff]  }
 0x180   :  { %3429 = vst [vmem:[#allocation3 + $0x144] sm:$0xf] %v11614_v53  ;;  %v3624_v14 = vld [vmem:[#allocation2 + $0xf9] sm:$0xff]  ;;  %v3625_v0 = vld [vmem:[#allocation2 + $0x101] sm:$0xff]  ;;  %v936_v25 = vld [vmem:[#allocation3 + $0x30] sm:$0xff] }
 0x181   :  { %3596 = vst [vmem:[#allocation3 + $0x13c] sm:$0xf] %v11641_v56  ;;  %3597 = vst [vmem:[#allocation3 + $0x148] sm:$0xf] %v11642_v59  ;;  %v11669_v3 = vpack.c.bf16 %v3624_v14, %v3624_v14  ;;  %v11670_v4 = vpack.c.bf16 %v3625_v0, %v3625_v0  ;;  %v13409_v7 = vld [vmem:[#allocation3 + $0x140] ss:$12 sps:$4 sm:$0xff]  }
 0x182   :  { %v12343_v48 = vld [vmem:[%s15721_s3 + $0x464] ss:$8 sps:$4 sm:$0xff]   ;;  %v12272_v10 = vld [vmem:[%s15721_s3 + $0x360] ss:$8 sps:$4 sm:$0xff]   ;;  %v932_v15 = vld [vmem:[#allocation3 + $0x18] sm:$0xff] }
 0x183   :  { %3764 = vst [vmem:[#allocation3 + $0x140] sm:$0xf] %v11669_v3  ;;  %3765 = vst [vmem:[#allocation3 + $0x14c] sm:$0xf] %v11670_v4  ;;  %3122 = vmatmul.mubr.bf16.vlgmr.msra.gmra.mxu0 %v13160_v62  ;;  %v934_v49 = vld [vmem:[#allocation3 + $0x24] sm:$0xff]  ;;  %v938_v29 = vld [vmem:[#allocation3 + $0x3c] sm:$0xff] }
 0x184   :  { %2949 = vmatmul.mubr.bf16.vlgmr.msra.gmra.mxu1 %v10429_v60  ;;  %3131 = vmatprep.mubr.bf16.mxu0 %v15726_v11  ;;  %v12280_v62 = vld [vmem:[%s15721_s3 + $0x354] ss:$8 sps:$4 sm:$0xff]   ;;  %v12341_v12 = vld [vmem:[%s15721_s3 + $0x460] ss:$8 sps:$4 sm:$0xff]   ;;  %v12286_v17 = vld [vmem:[%s15721_s3 + $0x344] ss:$8 sps:$4 sm:$0xff]   ;;  %v10432_v19 = vcombine.low %v932_v15, %v934_v49  ;;  %v10435_v30 = vcombine.low %v936_v25, %v938_v29 }
 0x185   :  { %4336 = vmatpush1.bf16.msra.mxu1 %v12267_v35  ;;  %2958 = vmatprep.mubr.bf16.mxu1 %v13196_v55  ;;  %v12278_v55 = vld [vmem:[%s15721_s3 + $0x350] ss:$8 sps:$4 sm:$0xff]   ;;  %v12347_v20 = vld [vmem:[%s15721_s3 + $0x454] ss:$8 sps:$4 sm:$0xff]   ;;  %v12355_v5 = vld [vmem:[%s15721_s3 + $0x444] ss:$8 sps:$4 sm:$0xff]  }
 0x186   :  { %4337 = vmatprep.subr.bf16.mxu1 %v12274_v2  ;;  %4509 = vmatpush1.bf16.msra.mxu0 %v12333_v8  ;;  %v12345_v21 = vld [vmem:[%s15721_s3 + $0x450] ss:$8 sps:$4 sm:$0xff]   ;;  %v12284_v26 = vld [vmem:[%s15721_s3 + $0x340] ss:$8 sps:$4 sm:$0xff]   ;;  %v12292_v27 = vld [vmem:[%s15721_s3 + $0x334] ss:$8 sps:$4 sm:$0xff]  }
 0x187   :  { %4510 = vmatprep.subr.bf16.mxu0 %v12343_v48  ;;  %v12359_v32 = vld [vmem:[%s15721_s3 + $0x434] ss:$8 sps:$4 sm:$0xff]   ;;  %v12298_v34 = vld [vmem:[%s15721_s3 + $0x324] ss:$8 sps:$4 sm:$0xff]   ;;  %v12357_v38 = vld [vmem:[%s15721_s3 + $0x430] ss:$8 sps:$4 sm:$0xff]  }
 0x188   :  { %v12367_v39 = vld [vmem:[%s15721_s3 + $0x424] ss:$8 sps:$4 sm:$0xff]   ;;  %v942_v43 = vld [vmem:[#allocation3 + $0x54] sm:$0xff]  ;;  %v12296_v44 = vld [vmem:[%s15721_s3 + $0x320] ss:$8 sps:$4 sm:$0xff]  }
 0x189   :  { %4338 = vmatpush1.bf16.msra.mxu1 %v12272_v10  ;;  %v12365_v45 = vld [vmem:[%s15721_s3 + $0x420] ss:$8 sps:$4 sm:$0xff]   ;;  %v12302_v46 = vld [vmem:[%s15721_s3 + $0x310] ss:$8 sps:$4 sm:$0xff]   ;;  %v12308_v50 = vld [vmem:[%s15721_s3 + $0x304] ss:$8 sps:$4 sm:$0xff]  }
 0x18a   :  { %4339 = vmatprep.subr.bf16.mxu1 %v12280_v62  ;;  %4511 = vmatpush1.bf16.msra.mxu0 %v12341_v12  ;;  %v12371_v53 = vld [vmem:[%s15721_s3 + $0x414] ss:$8 sps:$4 sm:$0xff]   ;;  %v12369_v56 = vld [vmem:[%s15721_s3 + $0x410] ss:$8 sps:$4 sm:$0xff]   ;;  %v12380_v59 = vld [vmem:[%s15721_s3 + $0x404] ss:$8 sps:$4 sm:$0xff]  }
 0x18b   :  { %3132 = vmatmul.mubr.bf16.gmra.mxu0 %v13319_v36  ;;  %4512 = vmatprep.subr.bf16.mxu0 %v12347_v20  ;;  %v12353_v36 = vld [vmem:[%s15721_s3 + $0x440] ss:$8 sps:$4 sm:$0xff]   ;;  %v946_v14 = vld [vmem:[#allocation3 + $0x6c] sm:$0xff]  ;;  %v948_v8 = vld [vmem:[#allocation3 + $0x78] sm:$0xff] }
 0x18c   :  { %2959 = vmatmul.mubr.bf16.gmra.mxu1 %v10432_v19  ;;  %3141 = vmatprep.mubr.bf16.mxu0 %v15726_v11  ;;  %v944_v60 = vld [vmem:[#allocation3 + $0x60] sm:$0xff]  ;;  %v12325_v49 = vld [vmem:[%s15721_s3 + $0x3d4] ss:$8 sps:$4 sm:$0xff]   ;;  %v956_v20 = vld [vmem:[#allocation3 + $0xa8] sm:$0xff] }
 0x18d   :  { %2968 = vmatprep.mubr.bf16.mxu1 %v13327_v6  ;;  %4340 = vmatpush1.bf16.msra.mxu1 %v12278_v55  ;;  %v12290_v6 = vld [vmem:[%s15721_s3 + $0x330] ss:$8 sps:$4 sm:$0xff]   ;;  %v12306_v0 = vld [vmem:[%s15721_s3 + $0x300] ss:$8 sps:$4 sm:$0xff]   ;;  %v10441_v2 = vcombine.low %v944_v60, %v946_v14  ;;  %v12319_v3 = vld [vmem:[%s15721_s3 + $0x3e4] ss:$8 sps:$4 sm:$0xff]  }
 0x18e   :  { %4341 = vmatprep.subr.bf16.mxu1 %v12286_v17  ;;  %4513 = vmatpush1.bf16.msra.mxu0 %v12345_v21  ;;  %v12378_v35 = vld [vmem:[%s15721_s3 + $0x400] ss:$8 sps:$4 sm:$0xff]   ;;  %v952_v12 = vld [vmem:[#allocation3 + $0x90] sm:$0xff] }
 0x18f   :  { %4514 = vmatprep.subr.bf16.mxu0 %v12355_v5  ;;  %v12317_v4 = vld [vmem:[%s15721_s3 + $0x3e0] ss:$8 sps:$4 sm:$0xff]   ;;  %v12340_v55 = vld [vmem:[%s15721_s3 + $0x3b4] ss:$8 sps:$4 sm:$0xff]  }
 0x190   :  { %v950_v48 = vld [vmem:[#allocation3 + $0x84] sm:$0xff]  ;;  %v954_v15 = vld [vmem:[#allocation3 + $0x9c] sm:$0xff]  ;;  %v958_v21 = vld [vmem:[#allocation3 + $0xb4] sm:$0xff] }
 0x191   :  { %4342 = vmatpush1.bf16.msra.mxu1 %v12284_v26  ;;  %v10444_v10 = vcombine.low %v948_v8, %v950_v48  ;;  %v12329_v62 = vld [vmem:[%s15721_s3 + $0x3c0] ss:$8 sps:$4 sm:$0xff]   ;;  %v10447_v17 = vcombine.low %v952_v12, %v954_v15  ;;  %v12364_v5 = vld [vmem:[%s15721_s3 + $0x394] ss:$8 sps:$4 sm:$0xff]   ;;  %v10450_v25 = vcombine.low %v956_v20, %v958_v21  ;;  %v12377_v21 = vld [vmem:[#allocation3 + $0x4] ss:$12 sps:$4 sm:$0xff]  }
 0x192   :  { %4343 = vmatprep.subr.bf16.mxu1 %v12292_v27  ;;  %4515 = vmatpush1.bf16.msra.mxu0 %v12353_v36  ;;  %v12350_v19 = vld [vmem:[%s15721_s3 + $0x3a0] ss:$8 sps:$4 sm:$0xff]   ;;  %v962_v36 = vld [vmem:[#allocation3 + $0xcc] sm:$0xff] }
 0x193   :  { %3142 = vmatmul.mubr.bf16.gmra.mxu0 %v13336_v63  ;;  %v12304_v63 = vld [vmem:[%s15721_s3 + $0x314] ss:$8 sps:$4 sm:$0xff]   ;;  %4516 = vmatprep.subr.bf16.mxu0 %v12359_v32  ;;  %v12372_v26 = vld [vmem:[%s15721_s3 + $0x380] ss:$8 sps:$4 sm:$0xff]  }
 0x194   :  { %2969 = vmatmul.mubr.bf16.gmra.mxu1 %v10435_v30  ;;  %3151 = vmatprep.mubr.bf16.mxu0 %v15726_v11  ;;  %v960_v27 = vld [vmem:[#allocation3 + $0xc0] sm:$0xff]  ;;  %v13570_v29 = vld [vmem:[%s15719_s1 + $0x10] ss:$0 sps:$4 sm:$0x33]  }
 0x195   :  { %2978 = vmatprep.mubr.bf16.mxu1 %v13347_v33  ;;  %4344 = vmatpush1.bf16.msra.mxu1 %v12290_v6  ;;  %v10438_v33 = vcombine.low %v940_v40, %v942_v43  ;;  %v10453_v6 = vcombine.low %v960_v27, %v962_v36  ;;  %v968_v32 = vld [vmem:[#allocation3 + $0xf0] sm:$0xff]  ;;  %v972_v43 = vld [vmem:[#allocation3 + $0x108] sm:$0xff] }
 0x196   :  { %4345 = vmatprep.subr.bf16.mxu1 %v12298_v34  ;;  %4517 = vmatpush1.bf16.msra.mxu0 %v12357_v38  ;;  %v970_v34 = vld [vmem:[#allocation3 + $0xfc] sm:$0xff]  ;;  %v982_v12 = vld [vmem:[#allocation3 + $0x144] sm:$0xff] }
 0x197   :  { %4518 = vmatprep.subr.bf16.mxu0 %v12367_v39  ;;  %v10459_v38 = vcombine.low %v968_v32, %v970_v34  ;;  %v12381_v32 = vld [vmem:[#allocation3 + $0x8] ss:$12 sps:$4 sm:$0xff]  }
 0x198   :  { %v12401_v34 = vld [vmem:[%s15719_s1 + $0x8] sm:$0xff]  }
 0x199   :  { %4346 = vmatpush1.bf16.msra.mxu1 %v12296_v44 }
 0x19a   :  { %4347 = vmatprep.subr.bf16.mxu1 %v12304_v63  ;;  %4519 = vmatpush1.bf16.msra.mxu0 %v12365_v45 }
 0x19b   :  { %3152 = vmatmul.mubr.bf16.gmra.mxu0 %v13353_v47  ;;  %4520 = vmatprep.subr.bf16.mxu0 %v12371_v53  ;;  %v12314_v47 = vld [vmem:[%s15721_s3 + $0x3f4] ss:$8 sps:$4 sm:$0xff]  }
 0x19c   :  { %2979 = vmatmul.mubr.bf16.gmra.mxu1 %v10438_v33  ;;  %3161 = vmatprep.mubr.bf16.mxu0 %v15726_v11 }
 0x19d   :  { %2988 = vmatprep.mubr.bf16.mxu1 %v13355_v57  ;;  %4348 = vmatpush1.bf16.msra.mxu1 %v12302_v46  ;;  %v12312_v57 = vld [vmem:[%s15721_s3 + $0x3f0] ss:$8 sps:$4 sm:$0xff]  }
 0x19e   :  { %4349 = vmatprep.subr.bf16.mxu1 %v12308_v50  ;;  %4521 = vmatpush1.bf16.msra.mxu0 %v12369_v56 }
 0x19f   :  { %4522 = vmatprep.subr.bf16.mxu0 %v12380_v59 }
 0x1a1   :  { %4350 = vmatpush1.bf16.msra.mxu1 %v12306_v0  ;;  %v976_v0 = vld [vmem:[#allocation3 + $0x120] sm:$0xff] }
 0x1a2   :  { %4351 = vmatprep.subr.bf16.mxu1 %v12314_v47  ;;  %4523 = vmatpush1.bf16.msra.mxu0 %v12378_v35  ;;  %v978_v47 = vld [vmem:[#allocation3 + $0x12c] sm:$0xff] }
 0x1a3   :  { %3162 = vmatmul.mubr.bf16.gmra.mxu0 %v13357_v61  ;;  %v12323_v61 = vld [vmem:[%s15721_s3 + $0x3d0] ss:$8 sps:$4 sm:$0xff]   ;;  %v10465_v8 = vcombine.low %v976_v0, %v978_v47  ;;  %v12387_v0 = vld [vmem:[#allocation3 + $0x34] ss:$12 sps:$4 sm:$0xff]  }
 0x1a4   :  { %2989 = vmatmul.mubr.bf16.gmra.mxu1 %v10441_v2  ;;  %3171 = vmatprep.mubr.bf16.mxu0 %v15726_v11 }
 0x1a5   :  { %2998 = vmatprep.mubr.bf16.mxu1 %v13360_v9  ;;  %4352 = vmatpush2.bf16.msra.mxu1 %v12312_v57  ;;  %v12331_v9 = vld [vmem:[%s15721_s3 + $0x3c4] ss:$8 sps:$4 sm:$0xff]  }
 0x1a6   :  { %4353 = vmatprep.subr.bf16.mxu1 %v12319_v3 }
 0x1a9   :  { %4354 = vmatpush2.bf16.msra.mxu1 %v12317_v4 }
 0x1aa   :  { %4355 = vmatprep.subr.bf16.mxu1 %v12325_v49 }
 0x1ab   :  { %3172 = vmatmul.mubr.bf16.gmra.mxu0 %v13362_v18  ;;  %v12338_v18 = vld [vmem:[%s15721_s3 + $0x3b0] ss:$8 sps:$4 sm:$0xff]  }
 0x1ac   :  { %2999 = vmatmul.mubr.bf16.gmra.mxu1 %v10444_v10  ;;  %3181 = vmatprep.mubr.bf16.mxu0 %v15726_v11 }
 0x1ad   :  { %3008 = vmatprep.mubr.bf16.mxu1 %v13364_v22  ;;  %4356 = vmatpush2.bf16.msra.mxu1 %v12323_v61  ;;  %v12352_v22 = vld [vmem:[%s15721_s3 + $0x3a4] ss:$8 sps:$4 sm:$0xff]  }
 0x1ae   :  { %4357 = vmatprep.subr.bf16.mxu1 %v12331_v9 }
 0x1b1   :  { %4358 = vmatpush2.bf16.msra.mxu1 %v12329_v62  ;;  %v980_v62 = vld [vmem:[#allocation3 + $0x138] sm:$0xff] }
 0x1b2   :  { %4359 = vmatprep.subr.bf16.mxu1 %v12340_v55 }
 0x1b3   :  { %3182 = vmatmul.mubr.bf16.gmra.mxu0 %v13366_v31  ;;  %v12362_v31 = vld [vmem:[%s15721_s3 + $0x390] ss:$8 sps:$4 sm:$0xff]  }
 0x1b4   :  { %3009 = vmatmul.mubr.bf16.gmra.mxu1 %v10447_v17  ;;  %3191 = vmatprep.mubr.bf16.mxu0 %v15726_v11 }
 0x1b5   :  { %3018 = vmatprep.mubr.bf16.mxu1 %v13369_v37  ;;  %4360 = vmatpush2.bf16.msra.mxu1 %v12338_v18  ;;  %v12374_v37 = vld [vmem:[%s15721_s3 + $0x384] ss:$8 sps:$4 sm:$0xff]  }
 0x1b6   :  { %4361 = vmatprep.subr.bf16.mxu1 %v12352_v22 }
 0x1b9   :  { %4362 = vmatpush2.bf16.msra.mxu1 %v12350_v19  ;;  %v2313_v39 = vpop.f32.mrf.mxu0  ;;  %v10468_v19 = vcombine.low %v980_v62, %v982_v12  ;;  %v12389_v12 = vld [vmem:[#allocation3 + $0x38] ss:$12 sps:$4 sm:$0xff]  }
 0x1ba   :  { %4363 = vmatprep.subr.bf16.mxu1 %v12364_v5 }
 0x1bb   :  { %3192 = vmatmul.mubr.bf16.gmra.mxu0 %v13371_v51  ;;  %v964_v51 = vld [vmem:[#allocation3 + $0xd8] sm:$0xff] }
 0x1bc   :  { %3019 = vmatmul.mubr.bf16.gmra.mxu1 %v10450_v25  ;;  %3201 = vmatprep.mubr.bf16.mxu0 %v15726_v11 }
 0x1bd   :  { %3028 = vmatprep.mubr.bf16.mxu1 %v13373_v1  ;;  %4364 = vmatpush2.bf16.msra.mxu1 %v12362_v31  ;;  %v966_v1 = vld [vmem:[#allocation3 + $0xe4] sm:$0xff] }
 0x1be   :  { %4365 = vmatprep.subr.bf16.mxu1 %v12374_v37  ;;  %v10456_v30 = vcombine.low %v964_v51, %v966_v1  ;;  %v12375_v51 = vld [vmem:[#allocation3] ss:$12 sps:$4 sm:$0xff]  }
 0x1c1   :  { %4366 = vmatpush2.bf16.msra.mxu1 %v12372_v26 }
 0x1c2   :  { %12042 = vmatprep.subr.msk.bf16.mxu1 %vm200_vm0, %v13570_v29 }
 0x1c3   :  { %3202 = vmatmul.mubr.bf16.gmra.mxu0 %v13376_v16  ;;  %v2140_v16 = vpop.f32.mrf.mxu1 }
 0x1c4   :  { %3029 = vmatmul.mubr.bf16.gmra.mxu1 %v10453_v6  ;;  %3211 = vmatprep.mubr.bf16.mxu0 %v15726_v11 }
 0x1c5   :  { %3038 = vmatprep.mubr.bf16.mxu1 %v13378_v24  ;;  %v13581_v24 = vadd.f32 %v2313_v39, %v2140_v16  ;;  %v2142_v40 = vpop.f32.mrf.mxu1  ;;  %v12383_v39 = vld [vmem:[#allocation3 + $0x1c] ss:$12 sps:$4 sm:$0xff]  }
 0x1c7   :  { %v2144_v45 = vpop.f32.mrf.mxu1 }
 0x1cb   :  { %3212 = vmatmul.mubr.bf16.gmra.mxu0 %v13380_v28  ;;  %v2315_v28 = vpop.f32.mrf.mxu0 }
 0x1cc   :  { %3039 = vmatmul.mubr.bf16.gmra.mxu1 %v10456_v30  ;;  %3221 = vmatprep.mubr.bf16.mxu0 %v15726_v11  ;;  %v13585_v44 = vadd.f32 %v2315_v28, %v2142_v40 }
 0x1cd   :  { %3048 = vmatprep.mubr.bf16.mxu1 %v13382_v41  ;;  %v974_v41 = vld [vmem:[#allocation3 + $0x114] sm:$0xff]  ;;  %v2317_v63 = vpop.f32.mrf.mxu0 }
 0x1ce   :  { %v13587_v33 = vadd.f32 %v2317_v63, %v2144_v45  ;;  %v10462_v50 = vcombine.low %v972_v43, %v974_v41 }
 0x1cf   :  { %v2319_v46 = vpop.f32.mrf.mxu0 }
 0x1d1   :  { %v2323_v56 = vpop.f32.mrf.mxu0 }
 0x1d3   :  { %3222 = vmatmul.mubr.bf16.gmra.mxu0 %v13388_v54  ;;  %v2146_v54 = vpop.f32.mrf.mxu1  ;;  %v2325_v60 = vpop.f32.mrf.mxu0 }
 0x1d4   :  { %3049 = vmatmul.mubr.bf16.gmra.mxu1 %v10459_v38  ;;  %3231 = vmatprep.mubr.bf16.mxu0 %v15726_v11  ;;  %v13589_v53 = vadd.f32 %v2319_v46, %v2146_v54 }
 0x1d5   :  { %3058 = vmatprep.mubr.bf16.mxu1 %v13390_v58  ;;  %v2150_v58 = vpop.f32.mrf.mxu1  ;;  %v2327_v57 = vpop.f32.mrf.mxu0 }
 0x1d6   :  { %v13592_v59 = vadd.f32 %v2323_v56, %v2150_v58  ;;  %v12385_v58 = vld [vmem:[#allocation3 + $0x20] ss:$12 sps:$4 sm:$0xff]  }
 0x1d7   :  { %v2152_v14 = vpop.f32.mrf.mxu1  ;;  %v2329_v4 = vpop.f32.mrf.mxu0 }
 0x1d8   :  { %v13596_v35 = vadd.f32 %v2325_v60, %v2152_v14  ;;  %v12386_v60 = vld [vmem:[#allocation3 + $0x18] ss:$12 sps:$4 sm:$0xff]  }
 0x1d9   :  { %v2154_v2 = vpop.f32.mrf.mxu1  ;;  %v2333_v49 = vpop.f32.mrf.mxu0 }
 0x1da   :  { %v13598_v3 = vadd.f32 %v2327_v57, %v2154_v2 }
 0x1db   :  { %3232 = vmatmul.mubr.bf16.gmra.mxu0 %v13393_v13  ;;  %v2156_v13 = vpop.f32.mrf.mxu1  ;;  %v2335_v61 = vpop.f32.mrf.mxu0 }
 0x1dc   :  { %3059 = vmatmul.mubr.bf16.gmra.mxu1 %v10462_v50  ;;  %3241 = vmatprep.mubr.bf16.mxu0 %v15726_v11  ;;  %v13600_v48 = vadd.f32 %v2329_v4, %v2156_v13 }
 0x1dd   :  { %3068 = vmatprep.mubr.bf16.mxu1 %v13395_v23  ;;  %v2160_v23 = vpop.f32.mrf.mxu1  ;;  %v2337_v55 = vpop.f32.mrf.mxu0 }
 0x1de   :  { %v13603_v10 = vadd.f32 %v2333_v49, %v2160_v23 }
 0x1df   :  { %v2162_v9 = vpop.f32.mrf.mxu1  ;;  %v2339_v22 = vpop.f32.mrf.mxu0 }
 0x1e0   :  { %v13607_v15 = vadd.f32 %v2335_v61, %v2162_v9 }
 0x1e1   :  { %v2164_v17 = vpop.f32.mrf.mxu1  ;;  %v2343_v5 = vpop.f32.mrf.mxu0 }
 0x1e2   :  { %v13609_v18 = vadd.f32 %v2337_v55, %v2164_v17  ;;  %v12390_v55 = vld [vmem:[#allocation3 + $0x30] ss:$12 sps:$4 sm:$0xff]  }
 0x1e3   :  { %3242 = vmatmul.mubr.bf16.gmra.mxu0 %v13397_v42  ;;  %v2166_v42 = vpop.f32.mrf.mxu1  ;;  %v2345_v31 = vpop.f32.mrf.mxu0 }
 0x1e4   :  { %3069 = vmatmul.mubr.bf16.gmra.mxu1 %v10465_v8  ;;  %3251 = vmatprep.mubr.bf16.mxu0 %v15726_v11  ;;  %v13611_v20 = vadd.f32 %v2339_v22, %v2166_v42  ;;  %v12391_v22 = vld [vmem:[#allocation3 + $0x4c] ss:$12 sps:$4 sm:$0xff]  }
 0x1e5   :  { %3078 = vmatprep.mubr.bf16.mxu1 %v13401_v52  ;;  %v2170_v52 = vpop.f32.mrf.mxu1  ;;  %v2347_v27 = vpop.f32.mrf.mxu0 }
 0x1e6   :  { %v13614_v25 = vadd.f32 %v2343_v5, %v2170_v52 }
 0x1e7   :  { %v2172_v37 = vpop.f32.mrf.mxu1  ;;  %v2349_v1 = vpop.f32.mrf.mxu0 }
 0x1e8   :  { %v13617_v26 = vadd.f32 %v2345_v31, %v2172_v37 }
 0x1e9   :  { %v2174_v36 = vpop.f32.mrf.mxu1  ;;  %v2353_v16 = vpop.f32.mrf.mxu0 }
 0x1ea   :  { %v13619_v6 = vadd.f32 %v2347_v27, %v2174_v36 }
 0x1eb   :  { %3252 = vmatmul.mubr.bf16.gmra.mxu0 %v13409_v7  ;;  %v2176_v30 = vpop.f32.mrf.mxu1  ;;  %v5224_v7 = vsel %vm200_vm0, %v13570_v29, 0  ;;  %v2355_v43 = vpop.f32.mrf.mxu0  ;;  %v12422_v29 = vld [vmem:[%s15719_s1] sm:$0xff]  }
 0x1ec   :  { %3079 = vmatmul.mubr.bf16.gmra.mxu1 %v10468_v19  ;;  %4540 = vmatprep.mubr.bf16.mxu0 %v15726_v11  ;;  %v13626_v38 = vadd.f32 %v2349_v1, %v2176_v30  ;;  %v12393_v30 = vld [vmem:[#allocation3 + $0x50] ss:$12 sps:$4 sm:$0xff]  }
 0x1ed   :  { %4367 = vmatprep.mubr.bf16.mxu1 %v12377_v21  ;;  %v2180_v28 = vpop.f32.mrf.mxu1  ;;  %v2357_v45 = vpop.f32.mrf.mxu0 }
 0x1ee   :  { %v13628_v40 = vadd.f32 %v2353_v16, %v2180_v28 }
 0x1ef   :  { %v2182_v41 = vpop.f32.mrf.mxu1  ;;  %v2359_v50 = vpop.f32.mrf.mxu0 }
 0x1f0   :  { %v13634_v63 = vadd.f32 %v2355_v43, %v2182_v41 }
 0x1f1   :  { %v2184_v46 = vpop.f32.mrf.mxu1  ;;  %v2363_v47 = vpop.f32.mrf.mxu0 }
 0x1f2   :  { %v13636_v54 = vadd.f32 %v2357_v45, %v2184_v46 }
 0x1f3   :  { %4541 = vmatmul.mubr.bf16.vlgmr.msra.gmra.mxu0 %v12381_v32  ;;  %v2186_v56 = vpop.f32.mrf.mxu1  ;;  %v2365_v4 = vpop.f32.mrf.mxu0  ;;  %v12394_v32 = vld [vmem:[#allocation3 + $0x48] ss:$12 sps:$4 sm:$0xff]  }
 0x1f4   :  { %4368 = vmatmul.mubr.bf16.vlgmr.msra.gmra.mxu1 %v12375_v51  ;;  %4550 = vmatprep.mubr.bf16.mxu0 %v15726_v11  ;;  %v13638_v14 = vadd.f32 %v2359_v50, %v2186_v56 }
 0x1f5   :  { %11992 = vmatpush3.bf16.msra.mxu1 %v5224_v7  ;;  %4377 = vmatprep.mubr.bf16.mxu1 %v12383_v39  ;;  %v2190_v57 = vpop.f32.mrf.mxu1  ;;  %v2367_v49 = vpop.f32.mrf.mxu0 }
 0x1f6   :  { %11993 = vmatprep.subr.bf16.mxu1 %v12401_v34  ;;  %v13640_v2 = vadd.f32 %v2363_v47, %v2190_v57  ;;  %v12399_v57 = vld [vmem:[#allocation3 + $0x7c] ss:$12 sps:$4 sm:$0xff]  }
 0x1f7   :  { %v2192_v13 = vpop.f32.mrf.mxu1  ;;  %v2369_v9 = vpop.f32.mrf.mxu0 }
 0x1f8   :  { %v13643_v8 = vadd.f32 %v2365_v4, %v2192_v13 }
 0x1f9   :  { %11994 = vmatpush3.bf16.msra.mxu1 %v12401_v34  ;;  %v2194_v23 = vpop.f32.mrf.mxu1  ;;  %v2373_v42 = vpop.f32.mrf.mxu0  ;;  %v12395_v34 = vld [vmem:[#allocation3 + $0x64] ss:$12 sps:$4 sm:$0xff]  }
 0x1fa   :  { %11995 = vmatprep.subr.bf16.mxu1 %v12422_v29  ;;  %v13645_v61 = vadd.f32 %v2367_v49, %v2194_v23 }
 0x1fb   :  { %4551 = vmatmul.mubr.bf16.gmra.mxu0 %v12385_v58  ;;  %v2196_v62 = vpop.f32.mrf.mxu1  ;;  %v2375_v5 = vpop.f32.mrf.mxu0 }
 0x1fc   :  { %4378 = vmatmul.mubr.bf16.gmra.mxu1 %v12386_v60  ;;  %4560 = vmatprep.mubr.bf16.mxu0 %v15726_v11  ;;  %v13647_v17 = vadd.f32 %v2369_v9, %v2196_v62  ;;  %v12397_v60 = vld [vmem:[#allocation3 + $0x68] ss:$12 sps:$4 sm:$0xff]  }
 0x1fd   :  { %4387 = vmatprep.mubr.bf16.mxu1 %v12387_v0  ;;  %11996 = vmatpush3.bf16.msra.mxu1 %v12422_v29  ;;  %v2200_v19 = vpop.f32.mrf.mxu1  ;;  %v2377_v37 = vpop.f32.mrf.mxu0  ;;  %v12398_v0 = vld [vmem:[#allocation3 + $0x60] ss:$12 sps:$4 sm:$0xff]  }
 0x1fe   :  { %v13649_v21 = vadd.f32 %v2373_v42, %v2200_v19 }
 0x1ff   :  { %v2202_v52 = vpop.f32.mrf.mxu1  ;;  %v2379_v51 = vpop.f32.mrf.mxu0 }
 0x200   :  { %v13652_v31 = vadd.f32 %v2375_v5, %v2202_v52  ;;  %v12402_v5 = vld [vmem:[#allocation3 + $0x80] ss:$12 sps:$4 sm:$0xff]   ;;  %v12403_v52 = vld [vmem:[#allocation3 + $0x78] ss:$12 sps:$4 sm:$0xff]  }
 0x201   :  { %v2204_v27 = vpop.f32.mrf.mxu1  ;;  %v2383_v39 = vpop.f32.mrf.mxu0 }
 0x202   :  { %v13654_v36 = vadd.f32 %v2377_v37, %v2204_v27  ;;  %v12404_v27 = vld [vmem:[#allocation3 + $0x94] ss:$12 sps:$4 sm:$0xff]  }
 0x203   :  { %4561 = vmatmul.mubr.bf16.gmra.mxu0 %v12389_v12  ;;  %v2206_v1 = vpop.f32.mrf.mxu1  ;;  %v2385_v43 = vpop.f32.mrf.mxu0 }
 0x204   :  { %4388 = vmatmul.mubr.bf16.gmra.mxu1 %v12390_v55  ;;  %4570 = vmatprep.mubr.bf16.mxu0 %v15726_v11  ;;  %v13656_v7 = vadd.f32 %v2379_v51, %v2206_v1 }
 0x205   :  { %4397 = vmatprep.mubr.bf16.mxu1 %v12391_v22  ;;  %v2210_v16 = vpop.f32.mrf.mxu1  ;;  %v2387_v45 = vpop.f32.mrf.mxu0 }
 0x206   :  { %v13658_v28 = vadd.f32 %v2383_v39, %v2210_v16 }
 0x207   :  { %v2212_v41 = vpop.f32.mrf.mxu1  ;;  %v2389_v56 = vpop.f32.mrf.mxu0 }
 0x208   :  { %v13661_v29 = vadd.f32 %v2385_v43, %v2212_v41 }
 0x209   :  { %v2214_v46 = vpop.f32.mrf.mxu1  ;;  %v2393_v4 = vpop.f32.mrf.mxu0 }
 0x20a   :  { %v13663_v50 = vadd.f32 %v2387_v45, %v2214_v46 }
 0x20b   :  { %4571 = vmatmul.mubr.bf16.gmra.mxu0 %v12393_v30  ;;  %v2216_v58 = vpop.f32.mrf.mxu1  ;;  %v2395_v23 = vpop.f32.mrf.mxu0 }
 0x20c   :  { %4398 = vmatmul.mubr.bf16.gmra.mxu1 %v12394_v32  ;;  %4580 = vmatprep.mubr.bf16.mxu0 %v15726_v11  ;;  %v13665_v47 = vadd.f32 %v2389_v56, %v2216_v58  ;;  %v12406_v56 = vld [vmem:[#allocation3 + $0x98] ss:$12 sps:$4 sm:$0xff]   ;;  %v12407_v58 = vld [vmem:[#allocation3 + $0x90] ss:$12 sps:$4 sm:$0xff]  }
 0x20d   :  { %4407 = vmatprep.mubr.bf16.mxu1 %v12395_v34  ;;  %v2220_v13 = vpop.f32.mrf.mxu1  ;;  %v2397_v12 = vpop.f32.mrf.mxu0 }
 0x20e   :  { %15734 = vst [vmem:[#allocation8_spill] sm:$0xff] %v13665_v47  ;;  %v13667_v49 = vadd.f32 %v2393_v4, %v2220_v13 }
 0x20f   :  { %v2222_v9 = vpop.f32.mrf.mxu1  ;;  %v2399_v42 = vpop.f32.mrf.mxu0 }
 0x210   :  { %v13670_v62 = vadd.f32 %v2395_v23, %v2222_v9 }
 0x211   :  { %v2224_v55 = vpop.f32.mrf.mxu1 }
 0x212   :  { %v13672_v22 = vadd.f32 %v2397_v12, %v2224_v55 }
 0x213   :  { %4581 = vmatmul.mubr.bf16.gmra.mxu0 %v12397_v60  ;;  %v2226_v19 = vpop.f32.mrf.mxu1  ;;  %v2403_v51 = vpop.f32.mrf.mxu0 }
 0x214   :  { %4408 = vmatmul.mubr.bf16.gmra.mxu1 %v12398_v0  ;;  %4590 = vmatprep.mubr.bf16.mxu0 %v15726_v11  ;;  %v13674_v37 = vadd.f32 %v2399_v42, %v2226_v19  ;;  %v12408_v0 = vld [vmem:[#allocation3 + $0xac] ss:$12 sps:$4 sm:$0xff]  }
 0x215   :  { %4417 = vmatprep.mubr.bf16.mxu1 %v12399_v57  ;;  %v2230_v1 = vpop.f32.mrf.mxu1  ;;  %v2405_v32 = vpop.f32.mrf.mxu0 }
 0x216   :  { %15735 = vst [vmem:[#allocation9_spill] sm:$0xff] %v13674_v37  ;;  %v13676_v30 = vadd.f32 %v2403_v51, %v2230_v1  ;;  %v12411_v51 = vld [vmem:[#allocation3 + $0xa8] ss:$12 sps:$4 sm:$0xff]   ;;  %v12424_v37 = vld [vmem:[#allocation3 + $0xf0] ss:$12 sps:$4 sm:$0xff]  }
 0x217   :  { %v2232_v34 = vpop.f32.mrf.mxu1  ;;  %v2407_v16 = vpop.f32.mrf.mxu0 }
 0x218   :  { %v13679_v39 = vadd.f32 %v2405_v32, %v2232_v34  ;;  %v12412_v32 = vld [vmem:[#allocation3 + $0xc4] ss:$12 sps:$4 sm:$0xff]  }
 0x219   :  { %v2234_v43 = vpop.f32.mrf.mxu1  ;;  %v2409_v45 = vpop.f32.mrf.mxu0 }
 0x21a   :  { %v13681_v41 = vadd.f32 %v2407_v16, %v2234_v43 }
 0x21b   :  { %4591 = vmatmul.mubr.bf16.gmra.mxu0 %v12402_v5  ;;  %v2236_v46 = vpop.f32.mrf.mxu1  ;;  %v2413_v57 = vpop.f32.mrf.mxu0 }
 0x21c   :  { %4418 = vmatmul.mubr.bf16.gmra.mxu1 %v12403_v52  ;;  %4600 = vmatprep.mubr.bf16.mxu0 %v15726_v11  ;;  %v13683_v60 = vadd.f32 %v2409_v45, %v2236_v46 }
 0x21d   :  { %4427 = vmatprep.mubr.bf16.mxu1 %v12404_v27  ;;  %v2415_v23 = vpop.f32.mrf.mxu0  ;;  %v12410_v27 = vld [vmem:[#allocation3 + $0xb0] ss:$12 sps:$4 sm:$0xff]  }
 0x21e   :  { %15736 = vst [vmem:[#allocation10_spill] sm:$0xff] %v13683_v60  ;;  %v2240_v4 = vpop.f32.mrf.mxu1 }
 0x21f   :  { %v13685_v13 = vadd.f32 %v2413_v57, %v2240_v4  ;;  %v2417_v55 = vpop.f32.mrf.mxu0 }
 0x220   :  { %v2242_v9 = vpop.f32.mrf.mxu1 }
 0x221   :  { %v13688_v12 = vadd.f32 %v2415_v23, %v2242_v9  ;;  %v2419_v5 = vpop.f32.mrf.mxu0  ;;  %v12414_v9 = vld [vmem:[#allocation3 + $0xc8] ss:$12 sps:$4 sm:$0xff]  }
 0x222   :  { %v2244_v42 = vpop.f32.mrf.mxu1 }
 0x223   :  { %4601 = vmatmul.mubr.bf16.gmra.mxu0 %v12406_v56  ;;  %v13690_v19 = vadd.f32 %v2417_v55, %v2244_v42  ;;  %v12415_v55 = vld [vmem:[#allocation3 + $0xc0] ss:$12 sps:$4 sm:$0xff]  }
 0x224   :  { %4428 = vmatmul.mubr.bf16.gmra.mxu1 %v12407_v58  ;;  %4610 = vmatprep.mubr.bf16.mxu0 %v15726_v11  ;;  %v2246_v52 = vpop.f32.mrf.mxu1 }
 0x225   :  { %4437 = vmatprep.mubr.bf16.mxu1 %v12408_v0  ;;  %v13692_v1 = vadd.f32 %v2419_v5, %v2246_v52  ;;  %v12416_v5 = vld [vmem:[#allocation3 + $0xdc] ss:$12 sps:$4 sm:$0xff]  }
 0x226   :  { %v2423_v34 = vpop.f32.mrf.mxu0  ;;  %v2250_v16 = vpop.f32.mrf.mxu1 }
 0x227   :  { %15737 = vst [vmem:[#allocation11_spill] sm:$0xff] %v13692_v1  ;;  %v13694_v43 = vadd.f32 %v2423_v34, %v2250_v16 }
 0x228   :  { %v2425_v45 = vpop.f32.mrf.mxu0  ;;  %v2252_v46 = vpop.f32.mrf.mxu1 }
 0x229   :  { %v13697_v56 = vadd.f32 %v2425_v45, %v2252_v46 }
 0x22a   :  { %v2427_v58 = vpop.f32.mrf.mxu0  ;;  %v2254_v0 = vpop.f32.mrf.mxu1 }
 0x22b   :  { %4611 = vmatmul.mubr.bf16.gmra.mxu0 %v12410_v27  ;;  %v13699_v57 = vadd.f32 %v2427_v58, %v2254_v0 }
 0x22c   :  { %4438 = vmatmul.mubr.bf16.gmra.mxu1 %v12411_v51  ;;  %4620 = vmatprep.mubr.bf16.mxu0 %v15726_v11  ;;  %v2429_v4 = vpop.f32.mrf.mxu0  ;;  %v2256_v23 = vpop.f32.mrf.mxu1 }
 0x22d   :  { %4447 = vmatprep.mubr.bf16.mxu1 %v12412_v32  ;;  %v13701_v42 = vadd.f32 %v2429_v4, %v2256_v23  ;;  %v12418_v23 = vld [vmem:[#allocation3 + $0xe0] ss:$12 sps:$4 sm:$0xff]  }
 0x22f   :  { %15738 = vst [vmem:[#allocation12_spill] sm:$0xff] %v13701_v42  ;;  %v12419_v42 = vld [vmem:[#allocation3 + $0xd8] ss:$12 sps:$4 sm:$0xff]  }
 0x233   :  { %v2433_v52 = vpop.f32.mrf.mxu0  ;;  %4621 = vmatmul.mubr.bf16.gmra.mxu0 %v12414_v9 }
 0x234   :  { %v2260_v27 = vpop.f32.mrf.mxu1  ;;  %4448 = vmatmul.mubr.bf16.gmra.mxu1 %v12415_v55  ;;  %4630 = vmatprep.mubr.bf16.mxu0 %v15726_v11  ;;  %v12420_v55 = vld [vmem:[#allocation3 + $0xf4] ss:$12 sps:$4 sm:$0xff]  }
 0x235   :  { %v13703_v51 = vadd.f32 %v2433_v52, %v2260_v27  ;;  %4457 = vmatprep.mubr.bf16.mxu1 %v12416_v5  ;;  %v2435_v32 = vpop.f32.mrf.mxu0 }
 0x236   :  { %v2262_v34 = vpop.f32.mrf.mxu1 }
 0x237   :  { %v13706_v16 = vadd.f32 %v2435_v32, %v2262_v34  ;;  %v2437_v45 = vpop.f32.mrf.mxu0 }
 0x238   :  { %v2264_v46 = vpop.f32.mrf.mxu1 }
 0x239   :  { %v13708_v58 = vadd.f32 %v2437_v45, %v2264_v46  ;;  %v2439_v0 = vpop.f32.mrf.mxu0 }
 0x23a   :  { %v2266_v4 = vpop.f32.mrf.mxu1 }
 0x23b   :  { %v13710_v9 = vadd.f32 %v2439_v0, %v2266_v4  ;;  %v2443_v52 = vpop.f32.mrf.mxu0  ;;  %4631 = vmatmul.mubr.bf16.gmra.mxu0 %v12418_v23 }
 0x23c   :  { %v2270_v5 = vpop.f32.mrf.mxu1  ;;  %4458 = vmatmul.mubr.bf16.gmra.mxu1 %v12419_v42  ;;  %4640 = vmatprep.mubr.bf16.mxu0 %v15726_v11  ;;  %v12425_v42 = vld [vmem:[#allocation3 + $0x10c] ss:$12 sps:$4 sm:$0xff]  }
 0x23d   :  { %15739 = vst [vmem:[#allocation13_spill] sm:$0xff] %v13710_v9  ;;  %v13712_v27 = vadd.f32 %v2443_v52, %v2270_v5  ;;  %4467 = vmatprep.mubr.bf16.mxu1 %v12420_v55  ;;  %v2445_v32 = vpop.f32.mrf.mxu0  ;;  %v12423_v9 = vld [vmem:[#allocation3 + $0xf8] ss:$12 sps:$4 sm:$0xff]  }
 0x23e   :  { %v2272_v34 = vpop.f32.mrf.mxu1 }
 0x23f   :  { %v13715_v45 = vadd.f32 %v2445_v32, %v2272_v34  ;;  %v2447_v46 = vpop.f32.mrf.mxu0 }
 0x240   :  { %v2274_v1 = vpop.f32.mrf.mxu1 }
 0x241   :  { %v13717_v60 = vadd.f32 %v2447_v46, %v2274_v1  ;;  %v2449_v0 = vpop.f32.mrf.mxu0 }
 0x242   :  { %v2276_v4 = vpop.f32.mrf.mxu1 }
 0x243   :  { %15740 = vst [vmem:[#allocation14_spill] sm:$0xff] %v13717_v60  ;;  %v13719_v23 = vadd.f32 %v2449_v0, %v2276_v4  ;;  %v3123_v52 = vpop.f32.mrf.mxu0  ;;  %4641 = vmatmul.mubr.bf16.gmra.mxu0 %v12423_v9 }
 0x244   :  { %v2950_v55 = vpop.f32.mrf.mxu1  ;;  %4468 = vmatmul.mubr.bf16.gmra.mxu1 %v12424_v37  ;;  %4650 = vmatprep.mubr.bf16.mxu0 %v15726_v11 }
 0x245   :  { %15741 = vst [vmem:[#allocation15_spill] sm:$0xff] %v13719_v23  ;;  %v2951_v5 = vadd.f32 %v2950_v55, %v13581_v24  ;;  %4477 = vmatprep.mubr.bf16.mxu1 %v12425_v42  ;;  %v3125_v32 = vpop.f32.mrf.mxu0  ;;  %v12427_v23 = vld [vmem:[#allocation3 + $0x110] ss:$12 sps:$4 sm:$0xff]   ;;  %v12428_v24 = vld [vmem:[#allocation3 + $0x108] ss:$12 sps:$4 sm:$0xff]  }
 0x246   :  { %v2952_v34 = vpop.f32.mrf.mxu1 }
 0x247   :  { %v13723_v1 = vadd.f32 %v3123_v52, %v2951_v5  ;;  %v2953_v46 = vadd.f32 %v2952_v34, %v13585_v44  ;;  %v3127_v47 = vpop.f32.mrf.mxu0  ;;  %v12429_v52 = vld [vmem:[#allocation3 + $0x124] ss:$12 sps:$4 sm:$0xff]  }
 0x248   :  { %v2954_v60 = vpop.f32.mrf.mxu1 }
 0x249   :  { %v13726_v0 = vadd.f32 %v3125_v32, %v2953_v46  ;;  %v2955_v4 = vadd.f32 %v2954_v60, %v13587_v33  ;;  %v13729_v9 = vpop.f32.mrf.mxu0 }
 0x24a   :  { %v2956_v37 = vpop.f32.mrf.mxu1 }
 0x24b   :  { %v13731_v42 = vadd.f32 %v3127_v47, %v2955_v4  ;;  %v13734_v55 = vadd.f32 %v2956_v37, %v13589_v53  ;;  %v3133_v5 = vpop.f32.mrf.mxu0  ;;  %4651 = vmatmul.mubr.bf16.gmra.mxu0 %v12427_v23  ;;  %v12433_v23 = vld [vmem:[#allocation3 + $0x13c] ss:$12 sps:$4 sm:$0xff]  }
 0x24c   :  { %v2960_v44 = vpop.f32.mrf.mxu1  ;;  %4478 = vmatmul.mubr.bf16.gmra.mxu1 %v12428_v24  ;;  %4660 = vmatprep.mubr.bf16.mxu0 %v15726_v11 }
 0x24d   :  { %15742 = vst [vmem:[#allocation16_spill] sm:$0xff] %v13731_v42  ;;  %v2961_v32 = vadd.f32 %v2960_v44, %v13592_v59  ;;  %4487 = vmatprep.mubr.bf16.mxu1 %v12429_v52  ;;  %v3135_v33 = vpop.f32.mrf.mxu0  ;;  %v12431_v59 = vld [vmem:[#allocation3 + $0x128] ss:$12 sps:$4 sm:$0xff]   ;;  %v12432_v52 = vld [vmem:[#allocation3 + $0x120] ss:$12 sps:$4 sm:$0xff]  }
 0x24e   :  { %v2962_v60 = vpop.f32.mrf.mxu1 }
 0x24f   :  { %v13738_v34 = vadd.f32 %v3133_v5, %v2961_v32  ;;  %v2963_v47 = vadd.f32 %v2962_v60, %v13596_v35  ;;  %v3137_v46 = vpop.f32.mrf.mxu0 }
 0x250   :  { %v2964_v4 = vpop.f32.mrf.mxu1 }
 0x251   :  { %v13741_v53 = vadd.f32 %v3135_v33, %v2963_v47  ;;  %v2965_v37 = vadd.f32 %v2964_v4, %v13598_v3  ;;  %v13744_v42 = vpop.f32.mrf.mxu0  ;;  %v15744_v33 = vmov 0  }
 0x252   :  { %15743 = vst [vmem:[#allocation17_spill] sm:$0xff] %v13744_v42  ;;  %v2966_v24 = vpop.f32.mrf.mxu1  ;;  %v12435_v42 = vld [vmem:[#allocation3 + $0x138] ss:$12 sps:$4 sm:$0xff]  }
 0x253   :  { %v13746_v44 = vadd.f32 %v3137_v46, %v2965_v37  ;;  %v13749_v11 = vadd.f32 %v2966_v24, %v13600_v48  ;;  %v3143_v5 = vpop.f32.mrf.mxu0  ;;  %4661 = vmatmul.mubr.bf16.gmra.mxu0 %v12431_v59  ;;  %v12436_v48 = vld [vmem:[#allocation3 + $0x140] ss:$12 sps:$4 sm:$0xff]  }
 0x254   :  { %v2970_v35 = vpop.f32.mrf.mxu1  ;;  %4488 = vmatmul.mubr.bf16.gmra.mxu1 %v12432_v52  ;;  %4670 = vmatprep.mubr.bf16.mxu0 %v15744_v33 }
 0x255   :  { %v2971_v32 = vadd.f32 %v2970_v35, %v13603_v10  ;;  %4497 = vmatprep.mubr.bf16.mxu1 %v12433_v23  ;;  %v3145_v3 = vpop.f32.mrf.mxu0  ;;  %v12437_v10 = vld [vmem:[%s15718_s0 + $0x70] sm:$0xff]  }
 0x256   :  { %v2972_v60 = vpop.f32.mrf.mxu1 }
 0x257   :  { %v13753_v47 = vadd.f32 %v3143_v5, %v2971_v32  ;;  %v2973_v4 = vadd.f32 %v2972_v60, %v13607_v15  ;;  %v3147_v46 = vpop.f32.mrf.mxu0 }
 0x258   :  { %v2974_v37 = vpop.f32.mrf.mxu1 }
 0x259   :  { %v13756_v24 = vadd.f32 %v3145_v3, %v2973_v4  ;;  %v2975_v59 = vadd.f32 %v2974_v37, %v13609_v18  ;;  %v13762_v23 = vpop.f32.mrf.mxu0 }
 0x25a   :  { %15745 = vst [vmem:[#allocation18_spill] sm:$0xff] %v13762_v23  ;;  %v2976_v52 = vpop.f32.mrf.mxu1 }
 0x25b   :  { %v13764_v35 = vadd.f32 %v3147_v46, %v2975_v59  ;;  %v13767_v5 = vadd.f32 %v2976_v52, %v13611_v20  ;;  %v3153_v15 = vpop.f32.mrf.mxu0  ;;  %4671 = vmatmul.mubr.bf16.gmra.mxu0 %v12436_v48  ;;  %v12438_v20 = vld [vmem:[%s15718_s0 + $0x78] sm:$0xff]  }
 0x25c   :  { %v2980_v32 = vpop.f32.mrf.mxu1  ;;  %4498 = vmatmul.mubr.bf16.gmra.mxu1 %v12435_v42  ;;  %v12451_v42 = vld [vmem:[%s15721_s3 + $0x1f0] ss:$8 sps:$4 sm:$0xff]  }
 0x25d   :  { %v2981_v3 = vadd.f32 %v2980_v32, %v13614_v25  ;;  %11997 = vmatprep.mubr.msk.bf16.mxu1 %vm157_vm1, %v12437_v10  ;;  %v3155_v18 = vpop.f32.mrf.mxu0  ;;  %v12453_v25 = vld [vmem:[%s15721_s3 + $0x1f4] ss:$8 sps:$4 sm:$0xff]  }
 0x25e   :  { %v2982_v60 = vpop.f32.mrf.mxu1  ;;  %7127 = vmatprep.subr.bf16.mxu0 %v12453_v25 }
 0x25f   :  { %v13771_v4 = vadd.f32 %v3153_v15, %v2981_v3  ;;  %v2983_v37 = vadd.f32 %v2982_v60, %v13617_v26  ;;  %v3157_v23 = vpop.f32.mrf.mxu0  ;;  %v12439_v26 = vld [vmem:[%s15718_s0 + $0x80] sm:$0xff]   ;;  %7128 = vmatpush1.bf16.msra.mxu0 %v12451_v42 }
 0x260   :  { %v2984_v46 = vpop.f32.mrf.mxu1 }
 0x261   :  { %v13783_v48 = vadd.f32 %v3155_v18, %v2983_v37  ;;  %v2985_v59 = vadd.f32 %v2984_v46, %v13619_v6  ;;  %v13789_v10 = vpop.f32.mrf.mxu0  ;;  %v12454_v46 = vld [vmem:[%s15721_s3 + $0x1e0] ss:$8 sps:$4 sm:$0xff]  }
 0x262   :  { %v2986_v52 = vpop.f32.mrf.mxu1 }
 0x263   :  { %v13791_v15 = vadd.f32 %v3157_v23, %v2985_v59  ;;  %v13794_v32 = vadd.f32 %v2986_v52, %v13626_v38  ;;  %v3163_v3 = vpop.f32.mrf.mxu0  ;;  %v12456_v38 = vld [vmem:[%s15721_s3 + $0x1e4] ss:$8 sps:$4 sm:$0xff]   ;;  %v12441_v52 = vld [vmem:[%s15718_s0 + $0x90] sm:$0xff]  }
 0x264   :  { %v2990_v60 = vpop.f32.mrf.mxu1  ;;  %11998 = vmatmul.mubr.msk.bf16.vlgmr.msra.gmra.mxu1 %vm157_vm1, %v12438_v20  ;;  %7129 = vmatprep.subr.bf16.mxu0 %v12456_v38 }
 0x265   :  { %v2991_v6 = vadd.f32 %v2990_v60, %v13628_v40  ;;  %12001 = vmatprep.mubr.msk.bf16.mxu1 %vm157_vm1, %v12439_v26  ;;  %v3165_v18 = vpop.f32.mrf.mxu0  ;;  %v12440_v40 = vld [vmem:[%s15718_s0 + $0x88] sm:$0xff]   ;;  %7130 = vmatpush1.bf16.msra.mxu0 %v12454_v46  ;;  %v12459_v46 = vld [vmem:[%s15721_s3 + $0x1d4] ss:$8 sps:$4 sm:$0xff]  }
 0x266   :  { %v2992_v37 = vpop.f32.mrf.mxu1  ;;  %7131 = vmatprep.subr.bf16.mxu0 %v12459_v46 }
 0x267   :  { %v13805_v23 = vadd.f32 %v3163_v3, %v2991_v6  ;;  %v2993_v42 = vadd.f32 %v2992_v37, %v13634_v63  ;;  %v3167_v25 = vpop.f32.mrf.mxu0 }
 0x268   :  { %v2994_v20 = vpop.f32.mrf.mxu1 }
 0x269   :  { %15746 = vst [vmem:[#allocation19_spill] sm:$0xff] %v13805_v23  ;;  %v13811_v59 = vadd.f32 %v3165_v18, %v2993_v42  ;;  %v2995_v26 = vadd.f32 %v2994_v20, %v13636_v54  ;;  %v13817_v3 = vpop.f32.mrf.mxu0  ;;  %v12457_v54 = vld [vmem:[%s15721_s3 + $0x1d0] ss:$8 sps:$4 sm:$0xff]  }
 0x26a   :  { %v2996_v60 = vpop.f32.mrf.mxu1  ;;  %7132 = vmatpush1.bf16.msra.mxu0 %v12457_v54  ;;  %v12460_v54 = vld [vmem:[%s15721_s3 + $0x1c0] ss:$8 sps:$4 sm:$0xff]  }
 0x26b   :  { %v13819_v63 = vadd.f32 %v3167_v25, %v2995_v26  ;;  %v13822_v6 = vadd.f32 %v2996_v60, %v13638_v14  ;;  %v3173_v37 = vpop.f32.mrf.mxu0 }
 0x26c   :  { %v3000_v23 = vpop.f32.mrf.mxu1  ;;  %12002 = vmatmul.mubr.msk.bf16.gmra.mxu1 %vm157_vm1, %v12440_v40 }
 0x26d   :  { %v3001_v18 = vadd.f32 %v3000_v23, %v13640_v2  ;;  %12005 = vmatprep.mubr.msk.bf16.mxu1 %vm157_vm1, %v12441_v52  ;;  %v3175_v38 = vpop.f32.mrf.mxu0  ;;  %v12442_v2 = vld [vmem:[%s15718_s0 + $0x98] sm:$0xff]   ;;  %v12443_v52 = vld [vmem:[%s15718_s0 + $0xa0] sm:$0xff]  }
 0x26e   :  { %v3002_v42 = vpop.f32.mrf.mxu1 }
 0x26f   :  { %v13833_v14 = vadd.f32 %v3173_v37, %v3001_v18  ;;  %v3003_v25 = vadd.f32 %v3002_v42, %v13643_v8  ;;  %v3177_v20 = vpop.f32.mrf.mxu0 }
 0x270   :  { %v3004_v40 = vpop.f32.mrf.mxu1 }
 0x271   :  { %v13839_v23 = vadd.f32 %v3175_v38, %v3003_v25  ;;  %v3005_v26 = vadd.f32 %v3004_v40, %v13645_v61  ;;  %v13845_v60 = vpop.f32.mrf.mxu0  ;;  %v12462_v61 = vld [vmem:[%s15721_s3 + $0x1c4] ss:$8 sps:$4 sm:$0xff]  }
 0x272   :  { %15747 = vst [vmem:[#allocation20_spill] sm:$0xff] %v13845_v60  ;;  %v3006_v37 = vpop.f32.mrf.mxu1  ;;  %7133 = vmatprep.subr.bf16.mxu0 %v12462_v61 }
 0x273   :  { %v13847_v8 = vadd.f32 %v3177_v20, %v3005_v26  ;;  %v13850_v18 = vadd.f32 %v3006_v37, %v13647_v17  ;;  %v3183_v46 = vpop.f32.mrf.mxu0  ;;  %7134 = vmatpush1.bf16.msra.mxu0 %v12460_v54 }
 0x274   :  { %v3010_v38 = vpop.f32.mrf.mxu1  ;;  %12006 = vmatmul.mubr.msk.bf16.gmra.mxu1 %vm157_vm1, %v12442_v2  ;;  %v12445_v2 = vld [vmem:[%s15718_s0 + $0xb0] sm:$0xff]  }
 0x275   :  { %15748 = vst [vmem:[#allocation21_spill] sm:$0xff] %v13847_v8  ;;  %v3011_v42 = vadd.f32 %v3010_v38, %v13649_v21  ;;  %12009 = vmatprep.mubr.msk.bf16.mxu1 %vm157_vm1, %v12443_v52  ;;  %v3185_v25 = vpop.f32.mrf.mxu0  ;;  %v12444_v8 = vld [vmem:[%s15718_s0 + $0xa8] sm:$0xff]  }
 0x276   :  { %v3012_v17 = vpop.f32.mrf.mxu1 }
 0x277   :  { %v13861_v20 = vadd.f32 %v3183_v46, %v3011_v42  ;;  %v3013_v40 = vadd.f32 %v3012_v17, %v13652_v31  ;;  %v3187_v26 = vpop.f32.mrf.mxu0  ;;  %v12463_v46 = vld [vmem:[%s15721_s3 + $0x1b0] ss:$8 sps:$4 sm:$0xff]  }
 0x278   :  { %v3014_v37 = vpop.f32.mrf.mxu1 }
 0x279   :  { %v13867_v60 = vadd.f32 %v3185_v25, %v3013_v40  ;;  %v3015_v21 = vadd.f32 %v3014_v37, %v13654_v36  ;;  %v13873_v52 = vpop.f32.mrf.mxu0  ;;  %v12465_v36 = vld [vmem:[%s15721_s3 + $0x1b4] ss:$8 sps:$4 sm:$0xff]  }
 0x27a   :  { %v3016_v54 = vpop.f32.mrf.mxu1  ;;  %7135 = vmatprep.subr.bf16.mxu0 %v12465_v36 }
 0x27b   :  { %v13875_v61 = vadd.f32 %v3187_v26, %v3015_v21  ;;  %v13878_v31 = vadd.f32 %v3016_v54, %v13656_v7  ;;  %v3193_v38 = vpop.f32.mrf.mxu0  ;;  %7136 = vmatpush1.bf16.msra.mxu0 %v12463_v46  ;;  %v12446_v54 = vld [vmem:[%s15718_s0 + $0xb8] sm:$0xff]  }
 0x27c   :  { %v3020_v42 = vpop.f32.mrf.mxu1  ;;  %12010 = vmatmul.mubr.msk.bf16.gmra.mxu1 %vm157_vm1, %v12444_v8  ;;  %v12447_v8 = vld [vmem:[%s15718_s0 + $0xc0] sm:$0xff]  }
 0x27d   :  { %15749 = vst [vmem:[#allocation22_spill] sm:$0xff] %v13875_v61  ;;  %v3021_v25 = vadd.f32 %v3020_v42, %v13658_v28  ;;  %12013 = vmatprep.mubr.msk.bf16.mxu1 %vm157_vm1, %v12445_v2  ;;  %v3195_v17 = vpop.f32.mrf.mxu0  ;;  %v12466_v2 = vld [vmem:[%s15721_s3 + $0x1a0] ss:$8 sps:$4 sm:$0xff]  }
 0x27e   :  { %v3022_v7 = vpop.f32.mrf.mxu1 }
 0x27f   :  { %v13889_v40 = vadd.f32 %v3193_v38, %v3021_v25  ;;  %v3023_v26 = vadd.f32 %v3022_v7, %v13661_v29  ;;  %v3197_v37 = vpop.f32.mrf.mxu0  ;;  %v12468_v29 = vld [vmem:[%s15721_s3 + $0x1a4] ss:$8 sps:$4 sm:$0xff]  }
 0x280   :  { %v3024_v21 = vpop.f32.mrf.mxu1  ;;  %7137 = vmatprep.subr.bf16.mxu0 %v12468_v29  ;;  %v12471_v29 = vld [vmem:[%s15721_s3 + $0x194] ss:$8 sps:$4 sm:$0xff]  }
 0x281   :  { %v13895_v61 = vadd.f32 %v3195_v17, %v3023_v26  ;;  %v3025_v28 = vadd.f32 %v3024_v21, %v13663_v50  ;;  %v13907_v46 = vpop.f32.mrf.mxu0  ;;  %7138 = vmatpush1.bf16.msra.mxu0 %v12466_v2 }
 0x282   :  { %15751 = vst [vmem:[#allocation24_spill] sm:$0xff] %v13907_v46  ;;  %v13909_v36 = vpop.f32.mrf.mxu1  ;;  %7139 = vmatprep.subr.bf16.mxu0 %v12471_v29 }
 0x283   :  { %15750 = vst [vmem:[#allocation23_spill] sm:$0xff] %v13895_v61  ;;  %v13911_v38 = vadd.f32 %v3197_v37, %v3025_v28  ;;  %v3203_v50 = vpop.f32.mrf.mxu0  ;;  %v12448_v37 = vld [vmem:[%s15718_s0 + $0xc8] sm:$0xff]  }
 0x284   :  { %v3030_v42 = vpop.f32.mrf.mxu1  ;;  %12014 = vmatmul.mubr.msk.bf16.gmra.mxu1 %vm157_vm1, %v12446_v54 }
 0x285   :  { %v3031_v25 = vadd.f32 %v3030_v42, %v13667_v49  ;;  %12017 = vmatprep.mubr.msk.bf16.mxu1 %vm157_vm1, %v12447_v8  ;;  %v3205_v17 = vpop.f32.mrf.mxu0  ;;  %v12449_v49 = vld [vmem:[%s15718_s0 + $0xd0] sm:$0xff]  }
 0x286   :  { %v3032_v7 = vpop.f32.mrf.mxu1 }
 0x287   :  { %v13916_v26 = vadd.f32 %v3203_v50, %v3031_v25  ;;  %v3033_v21 = vadd.f32 %v3032_v7, %v13670_v62  ;;  %v3207_v46 = vpop.f32.mrf.mxu0  ;;  %v12469_v62 = vld [vmem:[%s15721_s3 + $0x190] ss:$8 sps:$4 sm:$0xff]  }
 0x288   :  { %v3034_v61 = vpop.f32.mrf.mxu1  ;;  %7140 = vmatpush1.bf16.msra.mxu0 %v12469_v62 }
 0x289   :  { %v13922_v28 = vadd.f32 %v3205_v17, %v3033_v21  ;;  %v3035_v54 = vadd.f32 %v3034_v61, %v13672_v22  ;;  %v13928_v8 = vpop.f32.mrf.mxu0 }
 0x28a   :  { %15753 = vst [vmem:[#allocation26_spill] sm:$0xff] %v13928_v8  ;;  %v13930_v2 = vpop.f32.mrf.mxu1 }
 0x28b   :  { %15752 = vst [vmem:[#allocation25_spill] sm:$0xff] %v13922_v28  ;;  %v13938_v50 = vadd.f32 %v3207_v46, %v3035_v54  ;;  %v3213_v42 = vpop.f32.mrf.mxu0  ;;  %v12450_v46 = vld [vmem:[%s15718_s0 + $0xd8] sm:$0x7f]  }
 0x28c   :  { %v3040_v22 = vpop.f32.mrf.mxu1  ;;  %12018 = vmatmul.mubr.msk.bf16.gmra.mxu1 %vm157_vm1, %v12448_v37  ;;  %v12472_v37 = vld [vmem:[%s15721_s3 + $0x180] ss:$8 sps:$4 sm:$0xff]  }
 0x28d   :  { %v3041_v61 = vadd.f32 %v3040_v22, %v13676_v30  ;;  %12021 = vmatprep.mubr.msk.bf16.mxu1 %vm157_vm1, %v12449_v49  ;;  %v3215_v25 = vpop.f32.mrf.mxu0  ;;  %v12474_v30 = vld [vmem:[%s15721_s3 + $0x184] ss:$8 sps:$4 sm:$0xff]  }
 0x28e   :  { %v3042_v17 = vpop.f32.mrf.mxu1  ;;  %7141 = vmatprep.subr.bf16.mxu0 %v12474_v30 }
 0x28f   :  { %v13943_v7 = vadd.f32 %v3213_v42, %v3041_v61  ;;  %v3043_v21 = vadd.f32 %v3042_v17, %v13679_v39  ;;  %v3217_v8 = vpop.f32.mrf.mxu0  ;;  %7142 = vmatpush1.bf16.msra.mxu0 %v12472_v37 }
 0x290   :  { %v3044_v28 = vpop.f32.mrf.mxu1 }
 0x291   :  { %v13955_v54 = vadd.f32 %v3215_v25, %v3043_v21  ;;  %v3045_v49 = vadd.f32 %v3044_v28, %v13681_v41  ;;  %v13958_v62 = vpop.f32.mrf.mxu0  ;;  %v12475_v28 = vld [vmem:[%s15721_s3 + $0x270] ss:$8 sps:$4 sm:$0xff]  }
 0x292   :  { %v13960_v39 = vpop.f32.mrf.mxu1 }
 0x293   :  { %v13962_v29 = vadd.f32 %v3217_v8, %v3045_v49  ;;  %v3223_v42 = vpop.f32.mrf.mxu0  ;;  %v12477_v8 = vld [vmem:[%s15721_s3 + $0x274] ss:$8 sps:$4 sm:$0xff]  }
 0x294   :  { %v3050_v22 = vpop.f32.mrf.mxu1  ;;  %12022 = vmatmul.mubr.msk.bf16.gmra.mxu1 %vm157_vm1, %v12450_v46  ;;  %7143 = vmatprep.subr.bf16.mxu0 %v12477_v8 }
 0x295   :  { %v3051_v61 = vadd.f32 %v3050_v22, %v13685_v13  ;;  %7332 = vmatprep.mubr.bf16.mxu1 %v15744_v33  ;;  %v3225_v25 = vpop.f32.mrf.mxu0  ;;  %7144 = vmatpush2.bf16.msra.mxu0 %v12475_v28  ;;  %v12478_v33 = vld [vmem:[%s15721_s3 + $0x260] ss:$8 sps:$4 sm:$0xff]  }
 0x296   :  { %v3052_v17 = vpop.f32.mrf.mxu1 }
 0x297   :  { %v13967_v21 = vadd.f32 %v3223_v42, %v3051_v61  ;;  %v3053_v41 = vadd.f32 %v3052_v17, %v13688_v12  ;;  %v3227_v37 = vpop.f32.mrf.mxu0 }
 0x298   :  { %v3054_v46 = vpop.f32.mrf.mxu1 }
 0x299   :  { %15754 = vst [vmem:[#allocation27_spill] sm:$0xff] %v13967_v21  ;;  %v13976_v30 = vadd.f32 %v3225_v25, %v3053_v41  ;;  %v3055_v13 = vadd.f32 %v3054_v46, %v13690_v19  ;;  %v13979_v49 = vpop.f32.mrf.mxu0  ;;  %v12480_v19 = vld [vmem:[%s15721_s3 + $0x264] ss:$8 sps:$4 sm:$0xff]  }
 0x29a   :  { %15756 = vst [vmem:[#allocation29_spill] sm:$0xff] %v13979_v49  ;;  %v13981_v42 = vpop.f32.mrf.mxu1  ;;  %7145 = vmatprep.subr.bf16.mxu0 %v12480_v19 }
 0x29b   :  { %15755 = vst [vmem:[#allocation28_spill] sm:$0xff] %v13976_v30  ;;  %v13983_v12 = vadd.f32 %v3227_v37, %v3055_v13  ;;  %v3233_v22 = vpop.f32.mrf.mxu0  ;;  %7146 = vmatpush2.bf16.msra.mxu0 %v12478_v33  ;;  %v12483_v33 = vld [vmem:[%s15721_s3 + $0x254] ss:$8 sps:$4 sm:$0xff]  }
 0x29c   :  { %v3060_v61 = vpop.f32.mrf.mxu1  ;;  %7147 = vmatprep.subr.bf16.mxu0 %v12483_v33 }
 0x29d   :  { %15757 = vst [vmem:[#allocation30_spill] sm:$0xff] %v13983_v12  ;;  %v3061_v17 = vadd.f32 %v3060_v61, %v13694_v43  ;;  %v3235_v25 = vpop.f32.mrf.mxu0 }
 0x29e   :  { %v3062_v41 = vpop.f32.mrf.mxu1 }
 0x29f   :  { %v13992_v8 = vadd.f32 %v3233_v22, %v3061_v17  ;;  %v3063_v28 = vadd.f32 %v3062_v41, %v13697_v56  ;;  %v3237_v37 = vpop.f32.mrf.mxu0  ;;  %v12481_v56 = vld [vmem:[%s15721_s3 + $0x250] ss:$8 sps:$4 sm:$0xff]  }
 0x2a0   :  { %v3064_v46 = vpop.f32.mrf.mxu1  ;;  %7148 = vmatpush2.bf16.msra.mxu0 %v12481_v56 }
 0x2a1   :  { %v13995_v13 = vadd.f32 %v3235_v25, %v3063_v28  ;;  %v3065_v43 = vadd.f32 %v3064_v46, %v13699_v57  ;;  %v13998_v61 = vpop.f32.mrf.mxu0  ;;  %v12484_v46 = vld [vmem:[%s15721_s3 + $0x240] ss:$8 sps:$4 sm:$0xff]  }
 0x2a2   :  { %15758 = vst [vmem:[#allocation31_spill] sm:$0xff] %v13998_v61  ;;  %v14000_v49 = vpop.f32.mrf.mxu1 }
 0x2a3   :  { %v14002_v12 = vadd.f32 %v3237_v37, %v3065_v43  ;;  %v3243_v30 = vpop.f32.mrf.mxu0 }
 0x2a4   :  { %v3070_v21 = vpop.f32.mrf.mxu1 }
 0x2a5   :  { %15759 = vst [vmem:[#allocation32_spill] sm:$0xff] %v14002_v12  ;;  %v3071_v22 = vadd.f32 %v3070_v21, %v13703_v51  ;;  %v3245_v17 = vpop.f32.mrf.mxu0  ;;  %v15729_v21 = vlaneseq }
 0x2a6   :  { %v3072_v57 = vpop.f32.mrf.mxu1 }
 0x2a7   :  { %v14011_v19 = vadd.f32 %v3243_v30, %v3071_v22  ;;  %v3073_v25 = vadd.f32 %v3072_v57, %v13706_v16  ;;  %v3247_v41 = vpop.f32.mrf.mxu0  ;;  %v12486_v30 = vld [vmem:[%s15721_s3 + $0x244] ss:$8 sps:$4 sm:$0xff]  }
 0x2a8   :  { %v3074_v28 = vpop.f32.mrf.mxu1  ;;  %7149 = vmatprep.subr.bf16.mxu0 %v12486_v30 }
 0x2a9   :  { %15760 = vst [vmem:[#allocation33_spill] sm:$0xff] %v14011_v19  ;;  %v14014_v37 = vadd.f32 %v3245_v17, %v3073_v25  ;;  %v3075_v51 = vadd.f32 %v3074_v28, %v13708_v58  ;;  %v14023_v43 = vpop.f32.mrf.mxu0  ;;  %7150 = vmatpush2.bf16.msra.mxu0 %v12484_v46  ;;  %v12487_v58 = vld [vmem:[%s15721_s3 + $0x2f0] ss:$8 sps:$4 sm:$0xff]   ;;  %v12489_v17 = vld [vmem:[%s15721_s3 + $0x2f4] ss:$8 sps:$4 sm:$0xff]   ;;  %v14037_v25 = vshrl.u32 %v15729_v21, 7 }
 0x2aa   :  { %15762 = vst [vmem:[#allocation35_spill] sm:$0xff] %v14023_v43  ;;  %v14025_v16 = vpop.f32.mrf.mxu1  ;;  %7300 = vmatprep.subr.bf16.mxu1 %v12489_v17  ;;  %v15768_v43 = vld [vmem:[#allocation14_spill] sm:$0xff] }
 0x2ab   :  { %15761 = vst [vmem:[#allocation34_spill] sm:$0xff] %v14014_v37  ;;  %15763 = vst [vmem:[#allocation36_spill] sm:$0xff] %v14025_v16  ;;  %v14027_v22 = vadd.f32 %v3247_v41, %v3075_v51  ;;  %v3253_v56 = vpop.f32.mrf.mxu0  ;;  %7301 = vmatpush1.bf16.msra.mxu1 %v12487_v58  ;;  %v14046_v16 = vsub.s32 0, %v14037_v25 }
 0x2ac   :  { %v3080_v33 = vpop.f32.mrf.mxu1  ;;  %15765 = vst [vmem:[#allocation38_spill] sm:$0xff] %v14037_v25 }
 0x2ad   :  { %15764 = vst [vmem:[#allocation37_spill] sm:$0xff] %v14027_v22  ;;  %v3081_v57 = vadd.f32 %v3080_v33, %v13712_v27  ;;  %v3255_v28 = vpop.f32.mrf.mxu0  ;;  %15769 = vst [vmem:[#allocation14_spill] sm:$0xff] %v14046_v16 }
 0x2ae   :  { %v3082_v41 = vpop.f32.mrf.mxu1 }
 0x2af   :  { %v14039_v51 = vadd.f32 %v3253_v56, %v3081_v57  ;;  %v3083_v46 = vadd.f32 %v3082_v41, %v13715_v45  ;;  %v3257_v30 = vpop.f32.mrf.mxu0  ;;  %v4737_v56 = vld [vmem:[%s15722_s4] sm:$0x3]  ;;  %v15730_v45 = vsub.s32 1, %v14037_v25 }
 0x2b0   :  { %v3084_v22 = vpop.f32.mrf.mxu1  ;;  %v4861_v25 = vld [vmem:[%s15723_s5] sm:$0xff] }
 0x2b1   :  { %15766 = vst [vmem:[#allocation39_spill] sm:$0xff] %v14039_v51  ;;  %v14042_v37 = vadd.f32 %v3255_v28, %v3083_v46  ;;  %v3085_v19 = vadd.f32 %v3084_v22, %v15768_v43  ;;  %v14048_v27 = vpop.f32.mrf.mxu0  ;;  %v14059_v43 = vrot.slane %v4737_v56, %v14046_v16 }
 0x2b2   :  { %15770 = vst [vmem:[#allocation41_spill] sm:$0xff] %v14048_v27  ;;  %v14050_v33 = vpop.f32.mrf.mxu1  ;;  %v14064_v27 = vrot.slane %v4737_v56, %v15730_v45  ;;  %v12493_v56 = vld [vmem:[%s15721_s3 + $0x2e0] ss:$8 sps:$4 sm:$0xff]  }
 0x2b3   :  { %15767 = vst [vmem:[#allocation40_spill] sm:$0xff] %v14042_v37  ;;  %15771 = vst [vmem:[#allocation42_spill] sm:$0xff] %v14050_v33  ;;  %v14055_v17 = vadd.f32 %v3257_v30, %v3085_v19  ;;  %v4542_v58 = vpop.f32.mrf.mxu0 }
 0x2b4   :  { %v4369_v57 = vpop.f32.mrf.mxu1 }
 0x2b5   :  { %15772 = vst [vmem:[#allocation43_spill] sm:$0xff] %v14055_v17  ;;  %v4543_v28 = vadd.f32 %v4542_v58, %v4369_v57  ;;  %v4544_v22 = vpop.f32.mrf.mxu0  ;;  %v12490_v58 = vld [vmem:[%s15721_s3 + $0x230] ss:$8 sps:$4 sm:$0xff]  }
 0x2b6   :  { %v4371_v41 = vpop.f32.mrf.mxu1 }
 0x2b7   :  { %v4681_v46 = vadd.f32 %v4543_v28, %v13723_v1  ;;  %v4545_v21 = vadd.f32 %v4544_v22, %v4371_v41  ;;  %v4546_v37 = vpop.f32.mrf.mxu0  ;;  %v12492_v1 = vld [vmem:[%s15721_s3 + $0x234] ss:$8 sps:$4 sm:$0xff]   ;;  %v12495_v22 = vld [vmem:[%s15721_s3 + $0x2e4] ss:$8 sps:$4 sm:$0xff]  }
 0x2b8   :  { %v4373_v19 = vpop.f32.mrf.mxu1  ;;  %v15773_v41 = vld [vmem:[#allocation16_spill] sm:$0xff]  ;;  %7151 = vmatprep.subr.bf16.mxu0 %v12492_v1  ;;  %7302 = vmatprep.subr.bf16.mxu1 %v12495_v22 }
 0x2b9   :  { %v4749_v30 = vadd.f32 %v14059_v43, %v4681_v46  ;;  %v4682_v17 = vadd.f32 %v4545_v21, %v13726_v0  ;;  %v4547_v51 = vadd.f32 %v4546_v37, %v4373_v19  ;;  %v4548_v57 = vpop.f32.mrf.mxu0  ;;  %v12498_v0 = vld [vmem:[%s15721_s3 + $0x2d4] ss:$8 sps:$4 sm:$0xff]   ;;  %v3130_v37 = vadd.f32 %v13729_v9, %v13734_v55  ;;  %7152 = vmatpush2.bf16.msra.mxu0 %v12490_v58  ;;  %v12496_v9 = vld [vmem:[%s15721_s3 + $0x2d0] ss:$8 sps:$4 sm:$0xff]   ;;  %v12499_v55 = vld [vmem:[%s15721_s3 + $0x220] ss:$8 sps:$4 sm:$0xff]  }
 0x2ba   :  { %v4375_v28 = vpop.f32.mrf.mxu1  ;;  %7303 = vmatpush1.bf16.msra.mxu1 %v12493_v56 }
 0x2bb   :  { %v4750_v21 = vadd.f32 %v14064_v27, %v4682_v17  ;;  %v4683_v46 = vadd.f32 %v4547_v51, %v15773_v41  ;;  %v4549_v19 = vadd.f32 %v4548_v57, %v4375_v28  ;;  %v4805_v45 = vmax.f32 %v4749_v30, 0.0  ;;  %v4552_v16 = vpop.f32.mrf.mxu0  ;;  %v12501_v51 = vld [vmem:[%s15721_s3 + $0x224] ss:$8 sps:$4 sm:$0xff]   ;;  %v4863_v30 = vld [vmem:[%s15723_s5 + $0x10] sm:$0xff]  ;;  %7304 = vmatprep.subr.bf16.mxu1 %v12498_v0 }
 0x2bc   :  { %v4379_v33 = vpop.f32.mrf.mxu1  ;;  %v4862_v57 = vld [vmem:[%s15723_s5 + $0x8] sm:$0xff]  ;;  %7153 = vmatprep.subr.bf16.mxu0 %v12501_v51 }
 0x2bd   :  { %v4751_v12 = vadd.f32 %v14059_v43, %v4683_v46  ;;  %v4684_v61 = vadd.f32 %v4549_v19, %v3130_v37  ;;  %v4806_v17 = vmax.f32 %v4750_v21, 0.0  ;;  %v4553_v58 = vadd.f32 %v4552_v16, %v4379_v33  ;;  %v4554_v1 = vpop.f32.mrf.mxu0  ;;  %v4864_v21 = vld [vmem:[%s15723_s5 + $0x18] sm:$0xff]  ;;  %7154 = vmatpush2.bf16.msra.mxu0 %v12499_v55  ;;  %v12504_v0 = vld [vmem:[%s15721_s3 + $0x2c4] ss:$8 sps:$4 sm:$0xff]  }
 0x2be   :  { %v4381_v56 = vpop.f32.mrf.mxu1  ;;  %v4917_v41 = vmul.f32 %v4861_v25, %v4805_v45  ;;  %7305 = vmatpush1.bf16.msra.mxu1 %v12496_v9  ;;  %v12502_v25 = vld [vmem:[%s15721_s3 + $0x2c0] ss:$8 sps:$4 sm:$0xff]   ;;  %v12507_v55 = vld [vmem:[%s15721_s3 + $0x2b4] ss:$8 sps:$4 sm:$0xff]  }
 0x2bf   :  { %v4807_v28 = vmax.f32 %v4751_v12, 0.0  ;;  %v4752_v22 = vadd.f32 %v14064_v27, %v4684_v61  ;;  %v4555_v37 = vadd.f32 %v4554_v1, %v4381_v56  ;;  %v4685_v46 = vadd.f32 %v4553_v58, %v13738_v34  ;;  %v4556_v16 = vpop.f32.mrf.mxu0  ;;  %7306 = vmatprep.subr.bf16.mxu1 %v12504_v0 }
 0x2c0   :  { %v4383_v33 = vpop.f32.mrf.mxu1  ;;  %v4918_v45 = vmul.f32 %v4862_v57, %v4806_v17  ;;  %v15774_v17 = vld [vmem:[#allocation17_spill] sm:$0xff] }
 0x2c1   :  { %v4919_v19 = vmul.f32 %v4863_v30, %v4807_v28  ;;  %v4808_v12 = vmax.f32 %v4752_v22, 0.0  ;;  %v4686_v61 = vadd.f32 %v4555_v37, %v13741_v53  ;;  %v4557_v1 = vadd.f32 %v4556_v16, %v4383_v33  ;;  %v4558_v51 = vpop.f32.mrf.mxu0  ;;  %v4865_v53 = vld [vmem:[%s15723_s5 + $0x20] sm:$0xff]  ;;  %v4866_v37 = vld [vmem:[%s15723_s5 + $0x28] sm:$0xff] }
 0x2c2   :  { %v4753_v34 = vadd.f32 %v14059_v43, %v4685_v46  ;;  %v4385_v58 = vpop.f32.mrf.mxu1  ;;  %v3140_v57 = vadd.f32 %v15774_v17, %v13749_v11  ;;  %7307 = vmatpush1.bf16.msra.mxu1 %v12502_v25  ;;  %v4867_v11 = vld [vmem:[%s15723_s5 + $0x30] sm:$0xff] }
 0x2c3   :  { %v4973_v30 = vadd.f32 %v4919_v19, %v4917_v41  ;;  %v4920_v56 = vmul.f32 %v4864_v21, %v4808_v12  ;;  %v4754_v9 = vadd.f32 %v14064_v27, %v4686_v61  ;;  %v4687_v28 = vadd.f32 %v4557_v1, %v13746_v44  ;;  %v4562_v16 = vpop.f32.mrf.mxu0  ;;  %v12505_v44 = vld [vmem:[%s15721_s3 + $0x2b0] ss:$8 sps:$4 sm:$0xff]   ;;  %7308 = vmatprep.subr.bf16.mxu1 %v12507_v55  ;;  %v12510_v25 = vld [vmem:[%s15721_s3 + $0x214] ss:$8 sps:$4 sm:$0xff]  }
 0x2c4   :  { %v4809_v22 = vmax.f32 %v4753_v34, 0.0  ;;  %v4559_v46 = vadd.f32 %v4558_v51, %v4385_v58  ;;  %v4389_v41 = vpop.f32.mrf.mxu1  ;;  %7155 = vmatprep.subr.bf16.mxu0 %v12510_v25 }
 0x2c5   :  { %v5006_v21 = vadd.f32 %v4920_v56, %v4918_v45  ;;  %v4810_v33 = vmax.f32 %v4754_v9, 0.0  ;;  %v4755_v0 = vadd.f32 %v14059_v43, %v4687_v28  ;;  %v4563_v19 = vadd.f32 %v4562_v16, %v4389_v41  ;;  %v4564_v1 = vpop.f32.mrf.mxu0  ;;  %v12508_v45 = vld [vmem:[%s15721_s3 + $0x210] ss:$8 sps:$4 sm:$0xff]   ;;  %v12513_v9 = vld [vmem:[%s15721_s3 + $0x2a4] ss:$8 sps:$4 sm:$0xff]  }
 0x2c6   :  { %v4921_v12 = vmul.f32 %v4865_v53, %v4809_v22  ;;  %v4688_v61 = vadd.f32 %v4559_v46, %v3140_v57  ;;  %v4391_v34 = vpop.f32.mrf.mxu1  ;;  %v12519_v22 = vld [vmem:[%s15721_s3 + $0x204] ss:$8 sps:$4 sm:$0xff]   ;;  %7309 = vmatpush1.bf16.msra.mxu1 %v12505_v44  ;;  %7156 = vmatpush2.bf16.msra.mxu0 %v12508_v45  ;;  %v12517_v44 = vld [vmem:[%s15721_s3 + $0x200] ss:$8 sps:$4 sm:$0xff]  }
 0x2c7   :  { %v4922_v51 = vmul.f32 %v4866_v37, %v4810_v33  ;;  %v4811_v58 = vmax.f32 %v4755_v0, 0.0  ;;  %v4689_v56 = vadd.f32 %v4563_v19, %v13753_v47  ;;  %v4565_v53 = vadd.f32 %v4564_v1, %v4391_v34  ;;  %v4566_v17 = vpop.f32.mrf.mxu0  ;;  %v4868_v47 = vld [vmem:[%s15723_s5 + $0x38] sm:$0xff]  ;;  %7310 = vmatprep.subr.bf16.mxu1 %v12513_v9  ;;  %7157 = vmatprep.subr.bf16.mxu0 %v12519_v22  ;;  %v4870_v45 = vld [vmem:[%s15723_s5 + $0x48] sm:$0xff] }
 0x2c8   :  { %v4974_v28 = vadd.f32 %v4973_v30, %v4921_v12  ;;  %v4756_v55 = vadd.f32 %v14064_v27, %v4688_v61  ;;  %v4393_v57 = vpop.f32.mrf.mxu1  ;;  %v12511_v30 = vld [vmem:[%s15721_s3 + $0x2a0] ss:$8 sps:$4 sm:$0xff]   ;;  %v15775_v33 = vld [vmem:[#allocation18_spill] sm:$0xff] }
 0x2c9   :  { %v5007_v46 = vadd.f32 %v5006_v21, %v4922_v51  ;;  %v4923_v37 = vmul.f32 %v4867_v11, %v4811_v58  ;;  %v4757_v16 = vadd.f32 %v14059_v43, %v4689_v56  ;;  %v4690_v41 = vadd.f32 %v4565_v53, %v13756_v24  ;;  %v4869_v21 = vld [vmem:[%s15723_s5 + $0x40] sm:$0xff]  ;;  %v4568_v11 = vpop.f32.mrf.mxu0  ;;  %v12516_v24 = vld [vmem:[%s15721_s3 + $0x294] ss:$8 sps:$4 sm:$0xff]  }
 0x2ca   :  { %v3150_v0 = vadd.f32 %v15775_v33, %v13767_v5  ;;  %v4812_v19 = vmax.f32 %v4756_v55, 0.0  ;;  %v4567_v12 = vadd.f32 %v4566_v17, %v4393_v57  ;;  %v4395_v61 = vpop.f32.mrf.mxu1  ;;  %7311 = vmatpush1.bf16.msra.mxu1 %v12511_v30  ;;  %v12529_v22 = vld [vmem:[%s15721_s3 + $0x74] ss:$8 sps:$4 sm:$0xff]   ;;  %7158 = vmatpush2.bf16.msra.mxu0 %v12517_v44 }
 0x2cb   :  { %v4975_v1 = vadd.f32 %v4974_v28, %v4923_v37  ;;  %v4813_v5 = vmax.f32 %v4757_v16, 0.0  ;;  %v4758_v34 = vadd.f32 %v14064_v27, %v4690_v41  ;;  %v4569_v25 = vadd.f32 %v4568_v11, %v4395_v61  ;;  %v4572_v56 = vpop.f32.mrf.mxu0  ;;  %v12514_v28 = vld [vmem:[%s15721_s3 + $0x290] ss:$8 sps:$4 sm:$0xff]   ;;  %7312 = vmatprep.subr.bf16.mxu1 %v12516_v24  ;;  %v12522_v41 = vld [vmem:[%s15721_s3 + $0x284] ss:$8 sps:$4 sm:$0xff]   ;;  %7937 = vmatprep.subr.bf16.mxu0 %v12529_v22 }
 0x2cc   :  { %v4924_v51 = vmul.f32 %v4868_v47, %v4812_v19  ;;  %v4691_v58 = vadd.f32 %v4567_v12, %v13764_v35  ;;  %v4399_v53 = vpop.f32.mrf.mxu1  ;;  %v4872_v12 = vld [vmem:[%s15723_s5 + $0x58] sm:$0xff] }
 0x2cd   :  { %v4925_v9 = vmul.f32 %v4869_v21, %v4813_v5  ;;  %v4814_v55 = vmax.f32 %v4758_v34, 0.0  ;;  %v4692_v17 = vadd.f32 %v4569_v25, %v3150_v0  ;;  %v4573_v57 = vadd.f32 %v4572_v56, %v4399_v53  ;;  %v4574_v16 = vpop.f32.mrf.mxu0  ;;  %v4871_v0 = vld [vmem:[%s15723_s5 + $0x50] sm:$0xff]  ;;  %v12520_v25 = vld [vmem:[%s15721_s3 + $0x280] ss:$8 sps:$4 sm:$0xff]  }
 0x2ce   :  { %v5008_v37 = vadd.f32 %v5007_v46, %v4924_v51  ;;  %v4759_v47 = vadd.f32 %v14059_v43, %v4691_v58  ;;  %v4401_v35 = vpop.f32.mrf.mxu1  ;;  %7313 = vmatpush1.bf16.msra.mxu1 %v12514_v28 }
 0x2cf   :  { %v4976_v30 = vadd.f32 %v4975_v1, %v4925_v9  ;;  %v4926_v33 = vmul.f32 %v4870_v45, %v4814_v55  ;;  %v4760_v19 = vadd.f32 %v14064_v27, %v4692_v17  ;;  %v4693_v46 = vadd.f32 %v4573_v57, %v13771_v4  ;;  %v4576_v61 = vpop.f32.mrf.mxu0  ;;  %v4873_v45 = vld [vmem:[%s15723_s5 + $0x60] sm:$0xff]  ;;  %7314 = vmatprep.subr.bf16.mxu1 %v12522_v41 }
 0x2d0   :  { %v4815_v21 = vmax.f32 %v4759_v47, 0.0  ;;  %v4575_v11 = vadd.f32 %v4574_v16, %v4401_v35  ;;  %v4403_v24 = vpop.f32.mrf.mxu1  ;;  %v3160_v4 = vadd.f32 %v13789_v10, %v13794_v32  ;;  %v4874_v16 = vld [vmem:[%s15723_s5 + $0x68] sm:$0xff] }
 0x2d1   :  { %v5009_v44 = vadd.f32 %v5008_v37, %v4926_v33  ;;  %v4816_v1 = vmax.f32 %v4760_v19, 0.0  ;;  %v4761_v5 = vadd.f32 %v14059_v43, %v4693_v46  ;;  %v4577_v34 = vadd.f32 %v4576_v61, %v4403_v24  ;;  %v4578_v56 = vpop.f32.mrf.mxu0  ;;  %v4876_v61 = vld [vmem:[%s15723_s5 + $0x78] sm:$0xff] }
 0x2d2   :  { %v4927_v51 = vmul.f32 %v4871_v0, %v4815_v21  ;;  %v4694_v58 = vadd.f32 %v4575_v11, %v13783_v48  ;;  %v4405_v53 = vpop.f32.mrf.mxu1  ;;  %7315 = vmatpush1.bf16.msra.mxu1 %v12520_v25  ;;  %v15776_v24 = vld [vmem:[#allocation19_spill] sm:$0xff] }
 0x2d3   :  { %v4928_v9 = vmul.f32 %v4872_v12, %v4816_v1  ;;  %v4817_v55 = vmax.f32 %v4761_v5, 0.0  ;;  %v4695_v17 = vadd.f32 %v4577_v34, %v13791_v15  ;;  %v4579_v57 = vadd.f32 %v4578_v56, %v4405_v53  ;;  %v4582_v37 = vpop.f32.mrf.mxu0  ;;  %v4875_v15 = vld [vmem:[%s15723_s5 + $0x70] sm:$0xff] }
 0x2d4   :  { %v4977_v28 = vadd.f32 %v4976_v30, %v4927_v51  ;;  %v4762_v22 = vadd.f32 %v14064_v27, %v4694_v58  ;;  %v4409_v10 = vpop.f32.mrf.mxu1 }
 0x2d5   :  { %v5010_v32 = vadd.f32 %v5009_v44, %v4928_v9  ;;  %v4929_v47 = vmul.f32 %v4873_v45, %v4817_v55  ;;  %v4763_v48 = vadd.f32 %v14059_v43, %v4695_v17  ;;  %v4696_v35 = vadd.f32 %v4579_v57, %v3160_v4  ;;  %v4584_v33 = vpop.f32.mrf.mxu0  ;;  %v4877_v17 = vld [vmem:[%s15723_s5 + $0x80] sm:$0xff] }
 0x2d6   :  { %v4818_v41 = vmax.f32 %v4762_v22, 0.0  ;;  %v4583_v30 = vadd.f32 %v4582_v37, %v4409_v10  ;;  %v4411_v0 = vpop.f32.mrf.mxu1  ;;  %v3170_v22 = vadd.f32 %v13817_v3, %v13822_v6  ;;  %v4878_v37 = vld [vmem:[%s15723_s5 + $0x88] sm:$0xff] }
 0x2d7   :  { %v4978_v19 = vadd.f32 %v4977_v28, %v4929_v47  ;;  %v4819_v46 = vmax.f32 %v4763_v48, 0.0  ;;  %v4764_v21 = vadd.f32 %v14064_v27, %v4696_v35  ;;  %v4585_v12 = vadd.f32 %v4584_v33, %v4411_v0  ;;  %v4586_v1 = vpop.f32.mrf.mxu0 }
 0x2d8   :  { %v4930_v11 = vmul.f32 %v4874_v16, %v4818_v41  ;;  %v4697_v44 = vadd.f32 %v4583_v30, %v15776_v24  ;;  %v4413_v5 = vpop.f32.mrf.mxu1 }
 0x2d9   :  { %v4931_v34 = vmul.f32 %v4875_v15, %v4819_v46  ;;  %v4820_v25 = vmax.f32 %v4764_v21, 0.0  ;;  %v4698_v4 = vadd.f32 %v4585_v12, %v13811_v59  ;;  %v4587_v51 = vadd.f32 %v4586_v1, %v4413_v5  ;;  %v4588_v56 = vpop.f32.mrf.mxu0  ;;  %v4880_v1 = vld [vmem:[%s15723_s5 + $0x98] sm:$0xff] }
 0x2da   :  { %v5011_v45 = vadd.f32 %v5010_v32, %v4930_v11  ;;  %v4765_v58 = vadd.f32 %v14059_v43, %v4697_v44  ;;  %v4415_v53 = vpop.f32.mrf.mxu1 }
 0x2db   :  { %v4979_v9 = vadd.f32 %v4978_v19, %v4931_v34  ;;  %v4932_v55 = vmul.f32 %v4876_v61, %v4820_v25  ;;  %v4766_v57 = vadd.f32 %v14064_v27, %v4698_v4  ;;  %v4699_v28 = vadd.f32 %v4587_v51, %v13819_v63  ;;  %v4592_v32 = vpop.f32.mrf.mxu0  ;;  %v4879_v63 = vld [vmem:[%s15723_s5 + $0x90] sm:$0xff]  ;;  %v15777_v25 = vld [vmem:[#allocation20_spill] sm:$0xff] }
 0x2dc   :  { %v4821_v59 = vmax.f32 %v4765_v58, 0.0  ;;  %v4589_v10 = vadd.f32 %v4588_v56, %v4415_v53  ;;  %v4419_v47 = vpop.f32.mrf.mxu1  ;;  %v3180_v4 = vadd.f32 %v15777_v25, %v13850_v18  ;;  %v4881_v51 = vld [vmem:[%s15723_s5 + $0xa0] sm:$0xff] }
 0x2dd   :  { %v5012_v16 = vadd.f32 %v5011_v45, %v4932_v55  ;;  %v4822_v48 = vmax.f32 %v4766_v57, 0.0  ;;  %v4767_v35 = vadd.f32 %v14059_v43, %v4699_v28  ;;  %v4593_v41 = vadd.f32 %v4592_v32, %v4419_v47  ;;  %v4594_v3 = vpop.f32.mrf.mxu0  ;;  %v15778_v28 = vld [vmem:[#allocation21_spill] sm:$0xff] }
 0x2de   :  { %v4933_v15 = vmul.f32 %v4877_v17, %v4821_v59  ;;  %v4700_v30 = vadd.f32 %v4589_v10, %v3170_v22  ;;  %v4421_v6 = vpop.f32.mrf.mxu1 }
 0x2df   :  { %v4934_v33 = vmul.f32 %v4878_v37, %v4822_v48  ;;  %v4823_v0 = vmax.f32 %v4767_v35, 0.0  ;;  %v4701_v19 = vadd.f32 %v4593_v41, %v13833_v14  ;;  %v4595_v46 = vadd.f32 %v4594_v3, %v4421_v6  ;;  %v4596_v11 = vpop.f32.mrf.mxu0 }
 0x2e0   :  { %v4980_v21 = vadd.f32 %v4979_v9, %v4933_v15  ;;  %v4768_v12 = vadd.f32 %v14064_v27, %v4700_v30  ;;  %v4423_v61 = vpop.f32.mrf.mxu1  ;;  %v4883_v30 = vld [vmem:[%s15723_s5 + $0xb0] sm:$0xff] }
 0x2e1   :  { %v5013_v24 = vadd.f32 %v5012_v16, %v4934_v33  ;;  %v4935_v44 = vmul.f32 %v4879_v63, %v4823_v0  ;;  %v4769_v5 = vadd.f32 %v14059_v43, %v4701_v19  ;;  %v4702_v34 = vadd.f32 %v4595_v46, %v13839_v23  ;;  %v4598_v58 = vpop.f32.mrf.mxu0  ;;  %v4882_v23 = vld [vmem:[%s15723_s5 + $0xa8] sm:$0xff]  ;;  %v4884_v0 = vld [vmem:[%s15723_s5 + $0xb8] sm:$0xff] }
 0x2e2   :  { %v4824_v14 = vmax.f32 %v4768_v12, 0.0  ;;  %v4597_v45 = vadd.f32 %v4596_v11, %v4423_v61  ;;  %v4425_v56 = vpop.f32.mrf.mxu1 }
 0x2e3   :  { %v4981_v53 = vadd.f32 %v4980_v21, %v4935_v44  ;;  %v4825_v9 = vmax.f32 %v4769_v5, 0.0  ;;  %v4770_v55 = vadd.f32 %v14064_v27, %v4702_v34  ;;  %v4599_v17 = vadd.f32 %v4598_v58, %v4425_v56  ;;  %v4602_v22 = vpop.f32.mrf.mxu0 }
 0x2e4   :  { %v4936_v57 = vmul.f32 %v4880_v1, %v4824_v14  ;;  %v4703_v18 = vadd.f32 %v4597_v45, %v15778_v28  ;;  %v4429_v59 = vpop.f32.mrf.mxu1  ;;  %v3190_v44 = vadd.f32 %v13873_v52, %v13878_v31  ;;  %v4887_v28 = vld [vmem:[%s15723_s5 + $0xd0] sm:$0xff] }
 0x2e5   :  { %v4937_v37 = vmul.f32 %v4881_v51, %v4825_v9  ;;  %v4826_v10 = vmax.f32 %v4770_v55, 0.0  ;;  %v4704_v32 = vadd.f32 %v4599_v17, %v3180_v4  ;;  %v4603_v47 = vadd.f32 %v4602_v22, %v4429_v59  ;;  %v4604_v35 = vpop.f32.mrf.mxu0  ;;  %v15779_v51 = vld [vmem:[#allocation22_spill] sm:$0xff]  ;;  %v4886_v17 = vld [vmem:[%s15723_s5 + $0xc8] sm:$0xff] }
 0x2e6   :  { %v5014_v16 = vadd.f32 %v5013_v24, %v4936_v57  ;;  %v4771_v48 = vadd.f32 %v14059_v43, %v4703_v18  ;;  %v4431_v41 = vpop.f32.mrf.mxu1 }
 0x2e7   :  { %v4982_v15 = vadd.f32 %v4981_v53, %v4937_v37  ;;  %v4938_v63 = vmul.f32 %v4882_v23, %v4826_v10  ;;  %v4772_v3 = vadd.f32 %v14064_v27, %v4704_v32  ;;  %v4705_v6 = vadd.f32 %v4603_v47, %v13861_v20  ;;  %v4606_v46 = vpop.f32.mrf.mxu0  ;;  %v4885_v20 = vld [vmem:[%s15723_s5 + $0xc0] sm:$0xff] }
 0x2e8   :  { %v4827_v33 = vmax.f32 %v4771_v48, 0.0  ;;  %v4605_v19 = vadd.f32 %v4604_v35, %v4431_v41  ;;  %v4433_v21 = vpop.f32.mrf.mxu1  ;;  %v4888_v41 = vld [vmem:[%s15723_s5 + $0xd8] sm:$0xff] }
 0x2e9   :  { %v5015_v12 = vadd.f32 %v5014_v16, %v4938_v63  ;;  %v4828_v11 = vmax.f32 %v4772_v3, 0.0  ;;  %v4773_v61 = vadd.f32 %v14059_v43, %v4705_v6  ;;  %v4607_v24 = vadd.f32 %v4606_v46, %v4433_v21  ;;  %v4608_v34 = vpop.f32.mrf.mxu0  ;;  %v15780_v16 = vld [vmem:[#allocation8_spill] sm:$0xff] }
 0x2ea   :  { %v4939_v1 = vmul.f32 %v4883_v30, %v4827_v33  ;;  %v4706_v5 = vadd.f32 %v4605_v19, %v13867_v60  ;;  %v4435_v25 = vpop.f32.mrf.mxu1  ;;  %v3027_v48 = vadd.f32 %v13909_v36, %v15780_v16  ;;  %v15781_v33 = vld [vmem:[#allocation23_spill] sm:$0xff]  ;;  %v15784_v16 = vld [vmem:[#allocation25_spill] sm:$0xff] }
 0x2eb   :  { %v4940_v4 = vmul.f32 %v4884_v0, %v4828_v11  ;;  %v4829_v14 = vmax.f32 %v4773_v61, 0.0  ;;  %v4707_v45 = vadd.f32 %v4607_v24, %v15779_v51  ;;  %v4609_v58 = vadd.f32 %v4608_v34, %v4435_v25  ;;  %v4612_v9 = vpop.f32.mrf.mxu0  ;;  %v4889_v24 = vld [vmem:[%s15723_s5 + $0xe0] sm:$0xff]  ;;  %v4890_v34 = vld [vmem:[%s15723_s5 + $0xe8] sm:$0xff] }
 0x2ec   :  { %v4983_v56 = vadd.f32 %v4982_v15, %v4939_v1  ;;  %v4774_v53 = vadd.f32 %v14064_v27, %v4706_v5  ;;  %v4439_v55 = vpop.f32.mrf.mxu1  ;;  %v15782_v1 = vld [vmem:[#allocation24_spill] sm:$0xff] }
 0x2ed   :  { %v5016_v52 = vadd.f32 %v5015_v12, %v4940_v4  ;;  %v4941_v31 = vmul.f32 %v4885_v20, %v4829_v14  ;;  %v4775_v60 = vadd.f32 %v14059_v43, %v4707_v45  ;;  %v4708_v57 = vadd.f32 %v4609_v58, %v3190_v44  ;;  %v4614_v22 = vpop.f32.mrf.mxu0 }
 0x2ee   :  { %v4830_v23 = vmax.f32 %v4774_v53, 0.0  ;;  %v4613_v18 = vadd.f32 %v4612_v9, %v4439_v55  ;;  %v4441_v59 = vpop.f32.mrf.mxu1  ;;  %v3200_v20 = vadd.f32 %v15782_v1, %v3027_v48  ;;  %v15783_v53 = vld [vmem:[#allocation9_spill] sm:$0xff]  ;;  %v15786_v1 = vld [vmem:[#allocation10_spill] sm:$0xff] }
 0x2ef   :  { %v4984_v37 = vadd.f32 %v4983_v56, %v4941_v31  ;;  %v4831_v10 = vmax.f32 %v4775_v60, 0.0  ;;  %v4776_v32 = vadd.f32 %v14064_v27, %v4708_v57  ;;  %v4615_v47 = vadd.f32 %v4614_v22, %v4441_v59  ;;  %v4616_v63 = vpop.f32.mrf.mxu0 }
 0x2f0   :  { %v4942_v35 = vmul.f32 %v4886_v17, %v4830_v23  ;;  %v4709_v15 = vadd.f32 %v4613_v18, %v13889_v40  ;;  %v4443_v30 = vpop.f32.mrf.mxu1  ;;  %v3037_v9 = vadd.f32 %v13930_v2, %v15783_v53 }
 0x2f1   :  { %v4943_v3 = vmul.f32 %v4887_v28, %v4831_v10  ;;  %v4832_v6 = vmax.f32 %v4776_v32, 0.0  ;;  %v4710_v0 = vadd.f32 %v4615_v47, %v15781_v33  ;;  %v4617_v19 = vadd.f32 %v4616_v63, %v4443_v30  ;;  %v4618_v12 = vpop.f32.mrf.mxu0  ;;  %v4892_v32 = vld [vmem:[%s15723_s5 + $0xf8] sm:$0xff] }
 0x2f2   :  { %v5017_v46 = vadd.f32 %v5016_v52, %v4942_v35  ;;  %v4777_v21 = vadd.f32 %v14059_v43, %v4709_v15  ;;  %v4445_v11 = vpop.f32.mrf.mxu1  ;;  %v15785_v35 = vld [vmem:[#allocation26_spill] sm:$0xff] }
 0x2f3   :  { %v4985_v36 = vadd.f32 %v4984_v37, %v4943_v3  ;;  %v4944_v61 = vmul.f32 %v4888_v41, %v4832_v6  ;;  %v4778_v40 = vadd.f32 %v14064_v27, %v4710_v0  ;;  %v4711_v44 = vadd.f32 %v4617_v19, %v13911_v38  ;;  %v4622_v4 = vpop.f32.mrf.mxu0  ;;  %v4891_v38 = vld [vmem:[%s15723_s5 + $0xf0] sm:$0xff] }
 0x2f4   :  { %v4833_v5 = vmax.f32 %v4777_v21, 0.0  ;;  %v4619_v25 = vadd.f32 %v4618_v12, %v4445_v11  ;;  %v4449_v14 = vpop.f32.mrf.mxu1  ;;  %v3210_v41 = vadd.f32 %v15785_v35, %v3037_v9  ;;  %v4894_v21 = vld [vmem:[%s15723_s5 + $0x108] sm:$0xff] }
 0x2f5   :  { %v5018_v51 = vadd.f32 %v5017_v46, %v4944_v61  ;;  %v4834_v45 = vmax.f32 %v4778_v40, 0.0  ;;  %v4779_v58 = vadd.f32 %v14059_v43, %v4711_v44  ;;  %v4623_v56 = vadd.f32 %v4622_v4, %v4449_v14  ;;  %v4624_v31 = vpop.f32.mrf.mxu0  ;;  %v4898_v35 = vld [vmem:[%s15723_s5 + $0x128] sm:$0xff] }
 0x2f6   :  { %v4945_v55 = vmul.f32 %v4889_v24, %v4833_v5  ;;  %v4712_v52 = vadd.f32 %v4619_v25, %v3200_v20  ;;  %v4451_v17 = vpop.f32.mrf.mxu1  ;;  %v3047_v20 = vadd.f32 %v13960_v39, %v15786_v1  ;;  %v4896_v39 = vld [vmem:[%s15723_s5 + $0x118] sm:$0xff]  ;;  %v15789_v1 = vld [vmem:[#allocation28_spill] sm:$0xff] }
 0x2f7   :  { %v4946_v60 = vmul.f32 %v4890_v34, %v4834_v45  ;;  %v4835_v57 = vmax.f32 %v4779_v58, 0.0  ;;  %v4713_v23 = vadd.f32 %v4623_v56, %v13916_v26  ;;  %v4625_v28 = vadd.f32 %v4624_v31, %v4451_v17  ;;  %v4626_v59 = vpop.f32.mrf.mxu0  ;;  %v4893_v26 = vld [vmem:[%s15723_s5 + $0x100] sm:$0xff] }
 0x2f8   :  { %v4986_v18 = vadd.f32 %v4985_v36, %v4945_v55  ;;  %v4780_v22 = vadd.f32 %v14064_v27, %v4712_v52  ;;  %v4453_v37 = vpop.f32.mrf.mxu1 }
 0x2f9   :  { %v5019_v10 = vadd.f32 %v5018_v51, %v4946_v60  ;;  %v4947_v2 = vmul.f32 %v4891_v38, %v4835_v57  ;;  %v4781_v47 = vadd.f32 %v14059_v43, %v4713_v23  ;;  %v4714_v48 = vadd.f32 %v4625_v28, %v15784_v16  ;;  %v4628_v30 = vpop.f32.mrf.mxu0 }
 0x2fa   :  { %v4836_v15 = vmax.f32 %v4780_v22, 0.0  ;;  %v4627_v63 = vadd.f32 %v4626_v59, %v4453_v37  ;;  %v4455_v3 = vpop.f32.mrf.mxu1  ;;  %v3220_v60 = vadd.f32 %v13958_v62, %v3047_v20 }
 0x2fb   :  { %v4987_v6 = vadd.f32 %v4986_v18, %v4947_v2  ;;  %v4837_v33 = vmax.f32 %v4781_v47, 0.0  ;;  %v4782_v0 = vadd.f32 %v14064_v27, %v4714_v48  ;;  %v4629_v19 = vadd.f32 %v4628_v30, %v4455_v3  ;;  %v4632_v11 = vpop.f32.mrf.mxu0 }
 0x2fc   :  { %v4948_v46 = vmul.f32 %v4892_v32, %v4836_v15  ;;  %v4715_v12 = vadd.f32 %v4627_v63, %v13938_v50  ;;  %v4459_v36 = vpop.f32.mrf.mxu1  ;;  %v4895_v50 = vld [vmem:[%s15723_s5 + $0x110] sm:$0xff] }
 0x2fd   :  { %v4949_v61 = vmul.f32 %v4893_v26, %v4837_v33  ;;  %v4838_v24 = vmax.f32 %v4782_v0, 0.0  ;;  %v4716_v40 = vadd.f32 %v4629_v19, %v3210_v41  ;;  %v4633_v44 = vadd.f32 %v4632_v11, %v4459_v36  ;;  %v4634_v25 = vpop.f32.mrf.mxu0  ;;  %v15787_v19 = vld [vmem:[#allocation11_spill] sm:$0xff] }
 0x2fe   :  { %v5020_v5 = vadd.f32 %v5019_v10, %v4948_v46  ;;  %v4783_v34 = vadd.f32 %v14059_v43, %v4715_v12  ;;  %v4461_v4 = vpop.f32.mrf.mxu1  ;;  %v3057_v46 = vadd.f32 %v13981_v42, %v15787_v19  ;;  %v4900_v12 = vld [vmem:[%s15723_s5 + $0x138] sm:$0xff] }
 0x2ff   :  { %v4988_v14 = vadd.f32 %v4987_v6, %v4949_v61  ;;  %v4950_v51 = vmul.f32 %v4894_v21, %v4838_v24  ;;  %v4784_v45 = vadd.f32 %v14064_v27, %v4716_v40  ;;  %v4717_v58 = vadd.f32 %v4633_v44, %v13943_v7  ;;  %v4636_v9 = vpop.f32.mrf.mxu0  ;;  %v4897_v7 = vld [vmem:[%s15723_s5 + $0x120] sm:$0xff] }
 0x300   :  { %v4839_v56 = vmax.f32 %v4783_v34, 0.0  ;;  %v4635_v53 = vadd.f32 %v4634_v25, %v4461_v4  ;;  %v4463_v55 = vpop.f32.mrf.mxu1  ;;  %v15788_v11 = vld [vmem:[#allocation27_spill] sm:$0xff] }
 0x301   :  { %v5021_v38 = vadd.f32 %v5020_v5, %v4950_v51  ;;  %v4840_v52 = vmax.f32 %v4784_v45, 0.0  ;;  %v4785_v31 = vadd.f32 %v14059_v43, %v4717_v58  ;;  %v4637_v17 = vadd.f32 %v4636_v9, %v4463_v55  ;;  %v4638_v28 = vpop.f32.mrf.mxu0  ;;  %v15790_v58 = vld [vmem:[#allocation30_spill] sm:$0xff]  ;;  %v4902_v55 = vld [vmem:[%s15723_s5 + $0x148] sm:$0xff] }
 0x302   :  { %v4951_v57 = vmul.f32 %v4895_v50, %v4839_v56  ;;  %v4718_v23 = vadd.f32 %v4635_v53, %v13955_v54  ;;  %v4465_v18 = vpop.f32.mrf.mxu1  ;;  %v4901_v50 = vld [vmem:[%s15723_s5 + $0x140] sm:$0xff] }
 0x303   :  { %v4952_v22 = vmul.f32 %v4896_v39, %v4840_v52  ;;  %v4841_v59 = vmax.f32 %v4785_v31, 0.0  ;;  %v4719_v37 = vadd.f32 %v4637_v17, %v13962_v29  ;;  %v4639_v10 = vadd.f32 %v4638_v28, %v4465_v18  ;;  %v4642_v47 = vpop.f32.mrf.mxu0  ;;  %v4899_v29 = vld [vmem:[%s15723_s5 + $0x130] sm:$0xff] }
 0x304   :  { %v4989_v2 = vadd.f32 %v4988_v14, %v4951_v57  ;;  %v4786_v32 = vadd.f32 %v14064_v27, %v4718_v23  ;;  %v4469_v16 = vpop.f32.mrf.mxu1  ;;  %v15791_v39 = vld [vmem:[#allocation29_spill] sm:$0xff]  ;;  %v15792_v23 = vld [vmem:[#allocation12_spill] sm:$0xff] }
 0x305   :  { %v5022_v62 = vadd.f32 %v5021_v38, %v4952_v22  ;;  %v4953_v48 = vmul.f32 %v4897_v7, %v4841_v59  ;;  %v4787_v54 = vadd.f32 %v14059_v43, %v4719_v37  ;;  %v4720_v41 = vadd.f32 %v4639_v10, %v3220_v60  ;;  %v4644_v63 = vpop.f32.mrf.mxu0  ;;  %v4903_v22 = vld [vmem:[%s15723_s5 + $0x150] sm:$0xff] }
 0x306   :  { %v4842_v15 = vmax.f32 %v4786_v32, 0.0  ;;  %v4643_v26 = vadd.f32 %v4642_v47, %v4469_v16  ;;  %v4471_v30 = vpop.f32.mrf.mxu1  ;;  %v3230_v53 = vadd.f32 %v15791_v39, %v3057_v46  ;;  %v3067_v28 = vadd.f32 %v14000_v49, %v15792_v23  ;;  %v4907_v39 = vld [vmem:[%s15723_s5 + $0x170] sm:$0xff] }
 0x307   :  { %v4990_v3 = vadd.f32 %v4989_v2, %v4953_v48  ;;  %v4843_v6 = vmax.f32 %v4787_v54, 0.0  ;;  %v4788_v33 = vadd.f32 %v14064_v27, %v4720_v41  ;;  %v4645_v0 = vadd.f32 %v4644_v63, %v4471_v30  ;;  %v4646_v61 = vpop.f32.mrf.mxu0  ;;  %v15793_v63 = vld [vmem:[#allocation31_spill] sm:$0xff] }
 0x308   :  { %v4954_v21 = vmul.f32 %v4898_v35, %v4842_v15  ;;  %v4721_v36 = vadd.f32 %v4643_v26, %v15788_v11  ;;  %v4473_v24 = vpop.f32.mrf.mxu1  ;;  %v4904_v15 = vld [vmem:[%s15723_s5 + $0x158] sm:$0xff]  ;;  %v3240_v30 = vadd.f32 %v15793_v63, %v3067_v28 }
 0x309   :  { %v4955_v40 = vmul.f32 %v4899_v29, %v4843_v6  ;;  %v4844_v44 = vmax.f32 %v4788_v33, 0.0  ;;  %v4722_v20 = vadd.f32 %v4645_v0, %v15789_v1  ;;  %v4647_v5 = vadd.f32 %v4646_v61, %v4473_v24  ;;  %v4648_v4 = vpop.f32.mrf.mxu0 }
 0x30a   :  { %v5023_v34 = vadd.f32 %v5022_v62, %v4954_v21  ;;  %v4789_v25 = vadd.f32 %v14059_v43, %v4721_v36  ;;  %v4475_v14 = vpop.f32.mrf.mxu1  ;;  %v15794_v36 = vld [vmem:[#allocation32_spill] sm:$0xff] }
 0x30b   :  { %v4991_v42 = vadd.f32 %v4990_v3, %v4955_v40  ;;  %v4956_v51 = vmul.f32 %v4900_v12, %v4844_v44  ;;  %v4790_v45 = vadd.f32 %v14064_v27, %v4722_v20  ;;  %v4723_v56 = vadd.f32 %v4647_v5, %v15790_v58  ;;  %v4652_v52 = vpop.f32.mrf.mxu0  ;;  %v12605_v44 = vld [vmem:[%s15721_s3 + $0x174] ss:$8 sps:$4 sm:$0xff]  }
 0x30c   :  { %v4845_v9 = vmax.f32 %v4789_v25, 0.0  ;;  %v4649_v38 = vadd.f32 %v4648_v4, %v4475_v14  ;;  %v4479_v31 = vpop.f32.mrf.mxu1  ;;  %v15795_v25 = vld [vmem:[#allocation13_spill] sm:$0xff]  ;;  %v15796_v4 = vld [vmem:[#allocation36_spill] sm:$0xff]  ;;  %8110 = vmatprep.subr.bf16.mxu1 %v12605_v44 }
 0x30d   :  { %v5024_v17 = vadd.f32 %v5023_v34, %v4956_v51  ;;  %v4846_v60 = vmax.f32 %v4790_v45, 0.0  ;;  %v4791_v57 = vadd.f32 %v14059_v43, %v4723_v56  ;;  %v4653_v7 = vadd.f32 %v4652_v52, %v4479_v31  ;;  %v4654_v37 = vpop.f32.mrf.mxu0  ;;  %v4908_v52 = vld [vmem:[%s15723_s5 + $0x178] sm:$0xff] }
 0x30e   :  { %v4957_v18 = vmul.f32 %v4901_v50, %v4845_v9  ;;  %v4724_v59 = vadd.f32 %v4649_v38, %v3230_v53  ;;  %v4481_v10 = vpop.f32.mrf.mxu1  ;;  %v3077_v14 = vadd.f32 %v15796_v4, %v15795_v25  ;;  %v15797_v9 = vld [vmem:[#allocation33_spill] sm:$0xff]  ;;  %v4912_v4 = vld [vmem:[%s15723_s5 + $0x198] sm:$0xff] }
 0x30f   :  { %v4958_v2 = vmul.f32 %v4902_v55, %v4846_v60  ;;  %v4847_v32 = vmax.f32 %v4791_v57, 0.0  ;;  %v4725_v47 = vadd.f32 %v4653_v7, %v13992_v8  ;;  %v4655_v16 = vadd.f32 %v4654_v37, %v4481_v10  ;;  %v4656_v35 = vpop.f32.mrf.mxu0  ;;  %v4905_v8 = vld [vmem:[%s15723_s5 + $0x160] sm:$0xff]  ;;  %v15799_v10 = vld [vmem:[#allocation34_spill] sm:$0xff] }
 0x310   :  { %v4992_v62 = vadd.f32 %v4991_v42, %v4957_v18  ;;  %v4792_v48 = vadd.f32 %v14064_v27, %v4724_v59  ;;  %v4483_v54 = vpop.f32.mrf.mxu1  ;;  %v15798_v18 = vld [vmem:[#allocation35_spill] sm:$0xff] }
 0x311   :  { %v5025_v41 = vadd.f32 %v5024_v17, %v4958_v2  ;;  %v4959_v49 = vmul.f32 %v4903_v22, %v4847_v32  ;;  %v4793_v29 = vadd.f32 %v14059_v43, %v4725_v47  ;;  %v4726_v26 = vadd.f32 %v4655_v16, %v13995_v13  ;;  %v4658_v33 = vpop.f32.mrf.mxu0  ;;  %v4906_v13 = vld [vmem:[%s15723_s5 + $0x168] sm:$0xff]  ;;  %v4909_v37 = vld [vmem:[%s15723_s5 + $0x180] sm:$0xff] }
 0x312   :  { %v4848_v3 = vmax.f32 %v4792_v48, 0.0  ;;  %v4657_v6 = vadd.f32 %v4656_v35, %v4483_v54  ;;  %v4485_v0 = vpop.f32.mrf.mxu1  ;;  %v3250_v22 = vadd.f32 %v15798_v18, %v3077_v14  ;;  %v15800_v48 = vld [vmem:[#allocation37_spill] sm:$0xff]  ;;  %v15803_v14 = vld [vmem:[#allocation39_spill] sm:$0xff] }
 0x313   :  { %v4993_v19 = vadd.f32 %v4992_v62, %v4959_v49  ;;  %v4849_v46 = vmax.f32 %v4793_v29, 0.0  ;;  %v4794_v21 = vadd.f32 %v14064_v27, %v4726_v26  ;;  %v4659_v12 = vadd.f32 %v4658_v33, %v4485_v0  ;;  %v4662_v24 = vpop.f32.mrf.mxu0  ;;  %v5616_v49 = vld [vmem:[#allocation2 + $0x120] sm:$0xff]  ;;  %v4910_v0 = vld [vmem:[%s15723_s5 + $0x188] sm:$0xff] }
 0x314   :  { %v4960_v11 = vmul.f32 %v4904_v15, %v4848_v3  ;;  %v4727_v61 = vadd.f32 %v4657_v6, %v15794_v36  ;;  %v4489_v40 = vpop.f32.mrf.mxu1  ;;  %v15806_v18 = vld [vmem:[#allocation41_spill] sm:$0xff] }
 0x315   :  { %v4961_v1 = vmul.f32 %v4905_v8, %v4849_v46  ;;  %v4850_v20 = vmax.f32 %v4794_v21, 0.0  ;;  %v4728_v5 = vadd.f32 %v4659_v12, %v3240_v30  ;;  %v4663_v34 = vadd.f32 %v4662_v24, %v4489_v40  ;;  %v4664_v50 = vpop.f32.mrf.mxu0  ;;  %v14405_v30 = vld [vmem:[#allocation2 + $0x7] sm:$0xff]  ;;  %v4911_v12 = vld [vmem:[%s15723_s5 + $0x190] sm:$0xff] }
 0x316   :  { %v5026_v42 = vadd.f32 %v5025_v41, %v4960_v11  ;;  %v4795_v51 = vadd.f32 %v14059_v43, %v4727_v61  ;;  %v4491_v45 = vpop.f32.mrf.mxu1  ;;  %v5615_v41 = vld [vmem:[#allocation2 + $0x118] sm:$0xff]  ;;  %v11671_v3 = vpack.c.bf16 %v14405_v30, %v14405_v30  ;;  %v11700_v61 = vpack.c.bf16 %v5616_v49, %v5616_v49 }
 0x317   :  { %v4994_v58 = vadd.f32 %v4993_v19, %v4961_v1  ;;  %v4962_v56 = vmul.f32 %v4906_v13, %v4850_v20  ;;  %v4796_v53 = vadd.f32 %v14064_v27, %v4728_v5  ;;  %v4729_v55 = vadd.f32 %v4663_v34, %v15797_v9  ;;  %v4666_v17 = vpop.f32.mrf.mxu0  ;;  %v15801_v20 = vld [vmem:[#allocation15_spill] sm:$0xff]  ;;  %v15802_v5 = vld [vmem:[#allocation42_spill] sm:$0xff] }
 0x318   :  { %v4851_v38 = vmax.f32 %v4795_v51, 0.0  ;;  %v4665_v31 = vadd.f32 %v4664_v50, %v4491_v45  ;;  %v4493_v60 = vpop.f32.mrf.mxu1  ;;  %v11699_v8 = vpack.c.bf16 %v5615_v41, %v5615_v41  ;;  %5587 = vst [vmem:[#allocation3 + $0x150] sm:$0xf] %v11671_v3  ;;  %5588 = vst [vmem:[#allocation3 + $0x15c] sm:$0xf] %v11671_v3  ;;  %v3087_v34 = vadd.f32 %v15802_v5, %v15801_v20 }
 0x319   :  { %v5027_v57 = vadd.f32 %v5026_v42, %v4962_v56  ;;  %v4852_v7 = vmax.f32 %v4796_v53, 0.0  ;;  %v4797_v23 = vadd.f32 %v14059_v43, %v4729_v55  ;;  %v4667_v28 = vadd.f32 %v4666_v17, %v4493_v60  ;;  %v4668_v32 = vpop.f32.mrf.mxu0  ;;  %5756 = vst [vmem:[#allocation3 + $0x160] sm:$0xf] %v11700_v61  ;;  %v15804_v56 = vld [vmem:[#allocation40_spill] sm:$0xff] }
 0x31a   :  { %v4963_v59 = vmul.f32 %v4907_v39, %v4851_v38  ;;  %v4730_v2 = vadd.f32 %v4665_v31, %v15799_v10  ;;  %v4495_v47 = vpop.f32.mrf.mxu1  ;;  %5755 = vst [vmem:[#allocation3 + $0x154] sm:$0xf] %v11699_v8  ;;  %v14428_v31 = vld [vmem:[%s15720_s2] ss:$0 sm:$0xff] }
 0x31b   :  { %v4964_v16 = vmul.f32 %v4908_v52, %v4852_v7  ;;  %v4853_v62 = vmax.f32 %v4797_v23, 0.0  ;;  %v4731_v35 = vadd.f32 %v4667_v28, %v15800_v48  ;;  %v4669_v54 = vadd.f32 %v4668_v32, %v4495_v47  ;;  %v4672_v63 = vpop.f32.mrf.mxu0  ;;  %v15805_v23 = vld [vmem:[#allocation43_spill] sm:$0xff] }
 0x31c   :  { %v4995_v15 = vadd.f32 %v4994_v58, %v4963_v59  ;;  %v4798_v29 = vadd.f32 %v14064_v27, %v4730_v2  ;;  %v4499_v26 = vpop.f32.mrf.mxu1 }
 0x31d   :  { %v5028_v6 = vadd.f32 %v5027_v57, %v4964_v16  ;;  %v4965_v33 = vmul.f32 %v4909_v37, %v4853_v62  ;;  %v4799_v19 = vadd.f32 %v14059_v43, %v4731_v35  ;;  %v4732_v46 = vadd.f32 %v4669_v54, %v3250_v22  ;;  %v4674_v36 = vpop.f32.mrf.mxu0  ;;  %v4913_v57 = vld [vmem:[%s15723_s5 + $0x1a0] sm:$0xff]  ;;  %v4914_v37 = vld [vmem:[%s15723_s5 + $0x1a8] sm:$0xff]  ;;  %v4915_v35 = vld [vmem:[%s15723_s5 + $0x1b0] sm:$0xff] }
 0x31e   :  { %v4854_v21 = vmax.f32 %v4798_v29, 0.0  ;;  %v4673_v11 = vadd.f32 %v4672_v63, %v4499_v26  ;;  %v4501_v13 = vpop.f32.mrf.mxu1  ;;  %v3260_v22 = vadd.f32 %v15806_v18, %v3087_v34 }
 0x31f   :  { %v4996_v24 = vadd.f32 %v4995_v15, %v4965_v33  ;;  %v4855_v40 = vmax.f32 %v4799_v19, 0.0  ;;  %v4800_v44 = vadd.f32 %v14064_v27, %v4732_v46  ;;  %v4675_v1 = vadd.f32 %v4674_v36, %v4501_v13  ;;  %v4676_v50 = vpop.f32.mrf.mxu0  ;;  %v4916_v33 = vld [vmem:[%s15723_s5 + $0x1b8] sm:$0xff] }
 0x320   :  { %v4966_v25 = vmul.f32 %v4910_v0, %v4854_v21  ;;  %v4733_v42 = vadd.f32 %v4673_v11, %v15803_v14  ;;  %v4503_v51 = vpop.f32.mrf.mxu1 }
 0x321   :  { %v4967_v45 = vmul.f32 %v4911_v12, %v4855_v40  ;;  %v4856_v58 = vmax.f32 %v4800_v44, 0.0  ;;  %v4734_v39 = vadd.f32 %v4675_v1, %v15804_v56  ;;  %v4677_v53 = vadd.f32 %v4676_v50, %v4503_v51  ;;  %v4678_v52 = vpop.f32.mrf.mxu0 }
 0x322   :  { %v5029_v9 = vadd.f32 %v5028_v6, %v4966_v25  ;;  %v4801_v55 = vadd.f32 %v14059_v43, %v4733_v42  ;;  %v4505_v38 = vpop.f32.mrf.mxu1 }
 0x323   :  { %v4997_v17 = vadd.f32 %v4996_v24, %v4967_v45  ;;  %v4968_v60 = vmul.f32 %v4912_v4, %v4856_v58  ;;  %v4802_v7 = vadd.f32 %v14064_v27, %v4734_v39  ;;  %v4735_v28 = vadd.f32 %v4677_v53, %v15805_v23  ;;  %v14456_v39 = vld [vmem:[#allocation3 + $0x150] ss:$12 sps:$4 sm:$0xff]  }
 0x324   :  { %v4857_v59 = vmax.f32 %v4801_v55, 0.0  ;;  %v4679_v10 = vadd.f32 %v4678_v52, %v4505_v38  ;;  %v11999_v2 = vpop.f32.mrf.mxu1 }
 0x325   :  { %v5030_v32 = vadd.f32 %v5029_v9, %v4968_v60  ;;  %v4858_v47 = vmax.f32 %v4802_v7, 0.0  ;;  %v4803_v16 = vadd.f32 %v14059_v43, %v4735_v28  ;;  %v5269_v62 = vadd.f32 %v11999_v2, %v14428_v31 }
 0x326   :  { %v4969_v48 = vmul.f32 %v4913_v57, %v4857_v59  ;;  %v4736_v54 = vadd.f32 %v4679_v10, %v3260_v22  ;;  %v5260_v41 = vpop.f32.mrf.mxu1 }
 0x327   :  { %v4970_v49 = vmul.f32 %v4914_v37, %v4858_v47  ;;  %v4859_v15 = vmax.f32 %v4803_v16, 0.0  ;;  %v5373_v29 = vmax.f32 %v5269_v62, 0.0  ;;  %v5261_v26 = vadd.f32 %v14428_v31, %v5260_v41 }
 0x328   :  { %v4998_v63 = vadd.f32 %v4997_v17, %v4969_v48  ;;  %v4804_v3 = vadd.f32 %v14064_v27, %v4736_v54  ;;  %v12000_v8 = vpop.f32.mrf.mxu1 }
 0x329   :  { %v5031_v6 = vadd.f32 %v5030_v32, %v4970_v49  ;;  %v4971_v43 = vmul.f32 %v4915_v35, %v4859_v15  ;;  %5408 = vst [vmem:[#allocation2 + $0x138] sm:$0xff] %v5373_v29  ;;  %v11785_v0 = vpack.c.bf16 %v5373_v29, %v5373_v29  ;;  %v5371_v19 = vmax.f32 %v5261_v26, 0.0 }
 0x32a   :  { %v4860_v46 = vmax.f32 %v4804_v3, 0.0  ;;  %v5272_v21 = vadd.f32 %v12000_v8, %v14428_v31  ;;  %v5263_v12 = vpop.f32.mrf.mxu1 }
 0x32b   :  { %6365 = vst [vmem:[#allocation3 + $0x1c] sm:$0xf] %v11785_v0  ;;  %5406 = vst [vmem:[#allocation2 + $0x128] sm:$0xff] %v5371_v19  ;;  %v11783_v11 = vpack.c.bf16 %v5371_v19, %v5371_v19  ;;  %v5264_v13 = vadd.f32 %v14428_v31, %v5263_v12  ;;  %v4999_v27 = vadd.f32 %v4998_v63, %v4971_v43 }
 0x32c   :  { %v4972_v36 = vmul.f32 %v4916_v33, %v4860_v46  ;;  %v5374_v61 = vmax.f32 %v5272_v21, 0.0  ;;  %v12003_v24 = vpop.f32.mrf.mxu1 }
 0x32d   :  { %6363 = vst [vmem:[#allocation3 + $0x4] sm:$0xf] %v11783_v11  ;;  %v5372_v40 = vmax.f32 %v5264_v13, 0.0  ;;  %v5285_v44 = vadd.f32 %v12003_v24, %v14428_v31  ;;  %v5000_v1 = vrot.slane %v4999_v27, 4 }
 0x32e   :  { %5409 = vst [vmem:[#allocation2 + $0x140] sm:$0xff] %v5374_v61  ;;  %v5276_v20 = vpop.f32.mrf.mxu1  ;;  %v5032_v5 = vadd.f32 %v5031_v6, %v4972_v36 }
 0x32f   :  { %5435 = vst [vmem:[#allocation2 + $0x146] sm:$0x3] %v14405_v30  ;;  %5407 = vst [vmem:[#allocation2 + $0x130] sm:$0xff] %v5372_v40  ;;  %v5377_v34 = vmax.f32 %v5285_v44, 0.0  ;;  %v5277_v25 = vadd.f32 %v14428_v31, %v5276_v20  ;;  %v5001_v4 = vadd.f32 %v5000_v1, %v4999_v27 }
 0x330   :  { %5434 = vst [vmem:[#allocation2 + $0x136] sm:$0x3] %v14405_v30  ;;  %v12004_v14 = vpop.f32.mrf.mxu1  ;;  %v5033_v42 = vrot.slane %v5032_v5, 4  ;;  %v8451_v51 = vld [vmem:[#allocation2 + $0x138] sm:$0xff] }
 0x331   :  { %5412 = vst [vmem:[#allocation2 + $0x158] sm:$0xff] %v5377_v34  ;;  %v11789_v50 = vpack.c.bf16 %v5377_v34, %v5377_v34  ;;  %v5375_v45 = vmax.f32 %v5277_v25, 0.0  ;;  %v5288_v58 = vadd.f32 %v12004_v14, %v14428_v31  ;;  %v5002_v56 = vrot.slane %v5001_v4, 2 }
 0x332   :  { %v6055_v53 = vld [vmem:[#allocation2 + $0x127] sm:$0xff]  ;;  %v5279_v9 = vpop.f32.mrf.mxu1  ;;  %v5034_v55 = vadd.f32 %v5033_v42, %v5032_v5  ;;  %v11867_v38 = vpack.c.bf16 %v8451_v51, %v8451_v51 }
 0x333   :  { %v5784_v52 = vld [vmem:[#allocation2 + $0x121] sm:$0xff]  ;;  %v11755_v60 = vpack.c.bf16 %v6055_v53, %v6055_v53  ;;  %6369 = vst [vmem:[#allocation3 + $0x4c] sm:$0xf] %v11789_v50  ;;  %5410 = vst [vmem:[#allocation2 + $0x148] sm:$0xff] %v5375_v45  ;;  %v11787_v57 = vpack.c.bf16 %v5375_v45, %v5375_v45  ;;  %v5378_v7 = vmax.f32 %v5288_v58, 0.0  ;;  %v5280_v23 = vadd.f32 %v14428_v31, %v5279_v9 }
 0x334   :  { %v5449_v17 = vld [vmem:[#allocation2 + $0x127] sm:$0xff]  ;;  %v12007_v18 = vpop.f32.mrf.mxu1  ;;  %v5003_v22 = vadd.f32 %v5002_v56, %v5001_v4  ;;  %v5035_v59 = vrot.slane %v5034_v55, 2  ;;  %8591 = vst [vmem:[#allocation3 + $0x154] sm:$0xf] %v11867_v38  ;;  %v11728_v37 = vpack.c.bf16 %v5784_v52, %v5784_v52  ;;  %5759 = vst [vmem:[#allocation3 + $0x184] sm:$0xf] %v11867_v38 }
 0x335   :  { %v5617_v28 = vld [vmem:[#allocation2 + $0x128] sm:$0xff]  ;;  %v11673_v10 = vpack.c.bf16 %v5449_v17, %v5449_v17  ;;  %6195 = vst [vmem:[#allocation3] sm:$0xf] %v11755_v60  ;;  %v6393_v2 = vld [vmem:[#allocation2 + $0x139] sm:$0xff]  ;;  %6367 = vst [vmem:[#allocation3 + $0x34] sm:$0xf] %v11787_v57  ;;  %v5301_v47 = vadd.f32 %v12007_v18, %v14428_v31 }
 0x336   :  { %5413 = vst [vmem:[#allocation2 + $0x160] sm:$0xff] %v5378_v7  ;;  %v5376_v32 = vmax.f32 %v5280_v23, 0.0  ;;  %v8619_v16 = vld [vmem:[#allocation2 + $0x139] sm:$0xff]  ;;  %v11701_v62 = vpack.c.bf16 %v5617_v28, %v5617_v28  ;;  %v11813_v54 = vpack.c.bf16 %v6393_v2, %v6393_v2  ;;  %v6391_v41 = vld [vmem:[#allocation2 + $0x129] sm:$0xff]  ;;  %v5292_v49 = vpop.f32.mrf.mxu1  ;;  %v5004_v15 = vrot.slane %v5003_v22, 1 }
 0x337   :  { %v6058_v48 = vld [vmem:[#allocation2 + $0x13f] sm:$0xff]  ;;  %5437 = vst [vmem:[#allocation2 + $0x166] sm:$0x3] %v14405_v30  ;;  %v5036_v29 = vadd.f32 %v5035_v59, %v5034_v55  ;;  %5924 = vst [vmem:[#allocation3 + $0x164] sm:$0xf] %v11728_v37  ;;  %v14461_v26 = vpack.c.bf16 %v8619_v16, %v8619_v16  ;;  %v6056_v8 = vld [vmem:[#allocation2 + $0x12f] sm:$0xff]  ;;  %v11811_v33 = vpack.c.bf16 %v6391_v41, %v6391_v41 }
 0x338   :  { %v6226_v35 = vld [vmem:[#allocation2 + $0x140] sm:$0xff]  ;;  %5589 = vst [vmem:[#allocation3 + $0x168] sm:$0xf] %v11673_v10  ;;  %v11758_v63 = vpack.c.bf16 %v6058_v48, %v6058_v48  ;;  %v6224_v6 = vld [vmem:[#allocation2 + $0x130] sm:$0xff]  ;;  %5411 = vst [vmem:[#allocation2 + $0x150] sm:$0xff] %v5376_v32  ;;  %v5381_v0 = vmax.f32 %v5301_v47, 0.0  ;;  %v11756_v19 = vpack.c.bf16 %v6056_v8, %v6056_v8  ;;  %v5293_v12 = vadd.f32 %v14428_v31, %v5292_v49  ;;  %v12008_v11 = vpop.f32.mrf.mxu1 }
 0x339   :  { %v11786_v3 = vpack.c.bf16 %v6226_v35, %v6226_v35  ;;  %v6392_v43 = vld [vmem:[#allocation2 + $0x131] sm:$0xff]  ;;  %5757 = vst [vmem:[#allocation3 + $0x16c] sm:$0xf] %v11701_v62  ;;  %6533 = vst [vmem:[#allocation3 + $0x20] sm:$0xf] %v11813_v54  ;;  %v11784_v46 = vpack.c.bf16 %v6224_v6, %v6224_v6  ;;  %v8284_v27 = vld [vmem:[#allocation2 + $0x13f] sm:$0xff]  ;;  %v5005_v24 = vadd.f32 %v5004_v15, %v5003_v22 }
 0x33a   :  { %v11812_v21 = vpack.c.bf16 %v6392_v43, %v6392_v43  ;;  %5436 = vst [vmem:[#allocation2 + $0x156] sm:$0x3] %v14405_v30  ;;  %v6057_v13 = vld [vmem:[#allocation2 + $0x137] sm:$0xff]  ;;  %v8452_v36 = vld [vmem:[#allocation2 + $0x140] sm:$0xff]  ;;  %5927 = vst [vmem:[#allocation3 + $0x188] sm:$0xf] %v14461_v26  ;;  %v11793_v61 = vpack.c.bf16 %v5381_v0, %v5381_v0  ;;  %v5304_v44 = vadd.f32 %v12008_v11, %v14428_v31  ;;  %v5295_v4 = vpop.f32.mrf.mxu1 }
 0x33b   :  { %6198 = vst [vmem:[#allocation3 + $0x24] sm:$0xf] %v11758_v63  ;;  %6366 = vst [vmem:[#allocation3 + $0x28] sm:$0xf] %v11786_v3  ;;  %v5037_v40 = vrot.slane %v5036_v29, 1  ;;  %v5450_v1 = vld [vmem:[#allocation2 + $0x12f] sm:$0xff]  ;;  %v11757_v14 = vpack.c.bf16 %v6057_v13, %v6057_v13  ;;  %v11840_v42 = vpack.c.bf16 %v8284_v27, %v8284_v27  ;;  %v11868_v51 = vpack.c.bf16 %v8452_v36, %v8452_v36 }
 0x33c   :  { %6531 = vst [vmem:[#allocation3 + $0x8] sm:$0xf] %v11811_v33  ;;  %5416 = vst [vmem:[#allocation2 + $0x178] sm:$0xff] %v5381_v0  ;;  %v14467_v20 = vld [vmem:[#allocation2 + $0x130] sm:$0xff]  ;;  %v6059_v5 = vld [vmem:[#allocation2 + $0x147] sm:$0xff]  ;;  %v5379_v25 = vmax.f32 %v5293_v12, 0.0  ;;  %v5296_v17 = vadd.f32 %v14428_v31, %v5295_v4  ;;  %v12011_v60 = vpop.f32.mrf.mxu1  ;;  %v11674_v7 = vpack.c.bf16 %v5450_v1, %v5450_v1 }
 0x33d   :  { %6532 = vst [vmem:[#allocation3 + $0x14] sm:$0xf] %v11812_v21  ;;  %6196 = vst [vmem:[#allocation3 + $0xc] sm:$0xf] %v11756_v19  ;;  %v6394_v34 = vld [vmem:[#allocation2 + $0x141] sm:$0xff]  ;;  %v11759_v45 = vpack.c.bf16 %v6059_v5, %v6059_v5  ;;  %v5038_v56 = vadd.f32 %v5037_v40, %v5036_v29  ;;  %v5382_v53 = vmax.f32 %v5304_v44, 0.0  ;;  %v5317_v37 = vadd.f32 %v12011_v60, %v14428_v31 }
 0x33e   :  { %6364 = vst [vmem:[#allocation3 + $0x10] sm:$0xf] %v11784_v46  ;;  %v8620_v50 = vld [vmem:[#allocation2 + $0x141] sm:$0xff]  ;;  %v11814_v58 = vpack.c.bf16 %v6394_v34, %v6394_v34  ;;  %6373 = vst [vmem:[#allocation3 + $0x7c] sm:$0xf] %v11793_v61  ;;  %v6397_v38 = vld [vmem:[#allocation2 + $0x159] sm:$0xff]  ;;  %v11791_v52 = vpack.c.bf16 %v5379_v25, %v5379_v25  ;;  %v11702_v10 = vpack.c.bf16 %v14467_v20, %v14467_v20  ;;  %v5308_v62 = vpop.f32.mrf.mxu1 }
 0x33f   :  { %v8285_v9 = vld [vmem:[#allocation2 + $0x147] sm:$0xff]  ;;  %5414 = vst [vmem:[#allocation2 + $0x168] sm:$0xff] %v5379_v25  ;;  %6197 = vst [vmem:[#allocation3 + $0x18] sm:$0xf] %v11757_v14  ;;  %v11896_v57 = vpack.c.bf16 %v8620_v50, %v8620_v50  ;;  %v6062_v28 = vld [vmem:[#allocation2 + $0x15f] sm:$0xff]  ;;  %v11817_v22 = vpack.c.bf16 %v6397_v38, %v6397_v38  ;;  %v5039_v59 = vadd.f32 %v5038_v56, %v5005_v24  ;;  %v5380_v16 = vmax.f32 %v5296_v17, 0.0 }
 0x340   :  { %v8453_v55 = vld [vmem:[#allocation2 + $0x148] sm:$0xff]  ;;  %8423 = vst [vmem:[#allocation3 + $0x150] sm:$0xf] %v11757_v14  ;;  %8424 = vst [vmem:[#allocation3 + $0x15c] sm:$0xf] %v11840_v42  ;;  %v6230_v18 = vld [vmem:[#allocation2 + $0x160] sm:$0xff]  ;;  %v11762_v2 = vpack.c.bf16 %v6062_v28, %v6062_v28  ;;  %v14476_v35 = vpack.c.bf16 %v8285_v9, %v8285_v9  ;;  %v5309_v63 = vadd.f32 %v14428_v31, %v5308_v62  ;;  %v12012_v19 = vpop.f32.mrf.mxu1 }
 0x341   :  { %8592 = vst [vmem:[#allocation3 + $0x160] sm:$0xf] %v11868_v51  ;;  %v5785_v23 = vld [vmem:[#allocation2 + $0x129] sm:$0xff]  ;;  %5592 = vst [vmem:[#allocation3 + $0x18c] sm:$0xf] %v11840_v42  ;;  %v11790_v32 = vpack.c.bf16 %v6230_v18, %v6230_v18  ;;  %v6396_v49 = vld [vmem:[#allocation2 + $0x151] sm:$0xff]  ;;  %5040 = vadd.xlane.f32.xlu0 %v5039_v59  ;;  %v14483_v8 = vpack.c.bf16 %v8453_v55, %v8453_v55  ;;  %v5320_v13 = vadd.f32 %v12012_v19, %v14428_v31 }
 0x342   :  { %5760 = vst [vmem:[#allocation3 + $0x190] sm:$0xf] %v11868_v51  ;;  %6199 = vst [vmem:[#allocation3 + $0x30] sm:$0xf] %v11759_v45  ;;  %v6395_v47 = vld [vmem:[#allocation2 + $0x149] sm:$0xff]  ;;  %v5385_v29 = vmax.f32 %v5317_v37, 0.0  ;;  %v11816_v33 = vpack.c.bf16 %v6396_v49, %v6396_v49  ;;  %v11729_v46 = vpack.c.bf16 %v5785_v23, %v5785_v23  ;;  %v5311_v61 = vpop.f32.mrf.mxu1 }
 0x343   :  { %6534 = vst [vmem:[#allocation3 + $0x2c] sm:$0xf] %v11814_v58  ;;  %5417 = vst [vmem:[#allocation2 + $0x180] sm:$0xff] %v5382_v53  ;;  %v14474_v48 = vld [vmem:[#allocation3 + $0x158] ss:$12 sps:$4 sm:$0xff]   ;;  %v6060_v54 = vld [vmem:[#allocation2 + $0x14f] sm:$0xff]  ;;  %v11815_v15 = vpack.c.bf16 %v6395_v47, %v6395_v47  ;;  %v5312_v34 = vadd.f32 %v14428_v31, %v5311_v61 }
 0x344   :  { %6371 = vst [vmem:[#allocation3 + $0x64] sm:$0xf] %v11791_v52  ;;  %5439 = vst [vmem:[#allocation2 + $0x186] sm:$0x3] %v14405_v30  ;;  %v6228_v41 = vld [vmem:[#allocation2 + $0x150] sm:$0xff]  ;;  %v11760_v6 = vpack.c.bf16 %v6060_v54, %v6060_v54  ;;  %v5383_v21 = vmax.f32 %v5309_v63, 0.0  ;;  %v12015_v50 = vpop.f32.mrf.mxu1 }
 0x345   :  { %5590 = vst [vmem:[#allocation3 + $0x174] sm:$0xf] %v11674_v7  ;;  %5928 = vst [vmem:[#allocation3 + $0x194] sm:$0xf] %v11896_v57  ;;  %v12527_v3 = vld [vmem:[%s15721_s3 + $0x70] ss:$8 sps:$4 sm:$0xff]   ;;  %v11788_v43 = vpack.c.bf16 %v6228_v41, %v6228_v41  ;;  %v5333_v38 = vadd.f32 %v12015_v50, %v14428_v31 }
 0x346   :  { %6537 = vst [vmem:[#allocation3 + $0x50] sm:$0xf] %v11817_v22  ;;  %8759 = vst [vmem:[#allocation3 + $0x158] sm:$0xf] %v14461_v26  ;;  %v12535_v0 = vld [vmem:[%s15721_s3 + $0x64] ss:$8 sps:$4 sm:$0xff]   ;;  %v11797_v26 = vpack.c.bf16 %v5385_v29, %v5385_v29  ;;  %v11795_v1 = vpack.c.bf16 %v5383_v21, %v5383_v21 }
 0x347   :  { %8760 = vst [vmem:[#allocation3 + $0x164] sm:$0xf] %v11896_v57  ;;  %5758 = vst [vmem:[#allocation3 + $0x178] sm:$0xf] %v11702_v10  ;;  %v12523_v12 = vld [vmem:[#allocation3] ss:$12 sps:$4 sm:$0xff]   ;;  %v5324_v57 = vpop.f32.mrf.mxu1 }
 0x348   :  { %6202 = vst [vmem:[#allocation3 + $0x54] sm:$0xf] %v11762_v2  ;;  %6370 = vst [vmem:[#allocation3 + $0x58] sm:$0xf] %v11790_v32  ;;  %v12525_v11 = vld [vmem:[#allocation3 + $0x4] ss:$12 sps:$4 sm:$0xff]   ;;  %v5325_v28 = vadd.f32 %v14428_v31, %v5324_v57 }
 0x349   :  { %5415 = vst [vmem:[#allocation2 + $0x170] sm:$0xff] %v5380_v16  ;;  %5593 = vst [vmem:[#allocation3 + $0x198] sm:$0xf] %v14476_v35  ;;  %v12603_v27 = vld [vmem:[%s15721_s3 + $0x170] ss:$8 sps:$4 sm:$0xff]   ;;  %v6063_v40 = vld [vmem:[#allocation2 + $0x167] sm:$0xff]  ;;  %7159 = vmatprep.mubr.bf16.mxu0 %v12525_v11  ;;  %v12016_v32 = vpop.f32.mrf.mxu1 }
 0x34a   :  { %6535 = vst [vmem:[#allocation3 + $0x38] sm:$0xf] %v11815_v15  ;;  %5438 = vst [vmem:[#allocation2 + $0x176] sm:$0x3] %v14405_v30  ;;  %v12526_v36 = vld [vmem:[#allocation3 + $0x8] ss:$12 sps:$4 sm:$0xff]   ;;  %v11763_v4 = vpack.c.bf16 %v6063_v40, %v6063_v40  ;;  %7160 = vmatmul.mubr.bf16.vlgmr.msra.gmra.mxu0 %v12523_v12 }
 0x34b   :  { %5420 = vst [vmem:[#allocation2 + $0x198] sm:$0xff] %v5385_v29  ;;  %5761 = vst [vmem:[#allocation3 + $0x19c] sm:$0xf] %v14483_v8  ;;  %v6061_v24 = vld [vmem:[#allocation2 + $0x157] sm:$0xff]  ;;  %v6398_v44 = vld [vmem:[#allocation2 + $0x161] sm:$0xff]  ;;  %v5386_v5 = vmax.f32 %v5320_v13, 0.0  ;;  %7333 = vmatmul.mubr.bf16.vlgmr.msra.gmra.mxu1 %v12526_v36  ;;  %7938 = vmatpush1.bf16.msra.mxu0 %v12527_v3 }
 0x34c   :  { %6200 = vst [vmem:[#allocation3 + $0x3c] sm:$0xf] %v11760_v6  ;;  %6368 = vst [vmem:[#allocation3 + $0x40] sm:$0xf] %v11788_v43  ;;  %v12533_v20 = vld [vmem:[%s15721_s3 + $0x60] ss:$8 sps:$4 sm:$0xff]   ;;  %v11761_v25 = vpack.c.bf16 %v6061_v24, %v6061_v24  ;;  %v11818_v14 = vpack.c.bf16 %v6398_v44, %v6398_v44  ;;  %7939 = vmatprep.subr.bf16.mxu0 %v12535_v0  ;;  %8111 = vmatpush1.bf16.msra.mxu1 %v12603_v27  ;;  %v5327_v0 = vpop.f32.mrf.mxu1 }
 0x34d   :  { %6536 = vst [vmem:[#allocation3 + $0x44] sm:$0xf] %v11816_v33  ;;  %5925 = vst [vmem:[#allocation3 + $0x170] sm:$0xf] %v11729_v46  ;;  %v6401_v42 = vld [vmem:[#allocation2 + $0x179] sm:$0xff]  ;;  %v15807_v9 = vmov 0   ;;  %v5336_v33 = vadd.f32 %v12016_v32, %v14428_v31 }
 0x34e   :  { %6377 = vst [vmem:[#allocation3 + $0xac] sm:$0xf] %v11797_v26  ;;  %5418 = vst [vmem:[#allocation2 + $0x188] sm:$0xff] %v5383_v21  ;;  %v12532_v51 = vld [vmem:[#allocation3 + $0x1c] ss:$12 sps:$4 sm:$0xff]   ;;  %v6234_v56 = vld [vmem:[#allocation2 + $0x180] sm:$0xff]  ;;  %v11821_v53 = vpack.c.bf16 %v6401_v42, %v6401_v42  ;;  %7342 = vmatprep.mubr.bf16.mxu1 %v15807_v9  ;;  %v5328_v21 = vadd.f32 %v14428_v31, %v5327_v0  ;;  %v12019_v61 = vpop.f32.mrf.mxu1 }
 0x34f   :  { %v12614_v45 = vld [vmem:[%s15721_s3 + $0x164] ss:$8 sps:$4 sm:$0xff]   ;;  %6375 = vst [vmem:[#allocation3 + $0x94] sm:$0xf] %v11795_v1  ;;  %5421 = vst [vmem:[#allocation2 + $0x1a0] sm:$0xff] %v5386_v5  ;;  %v5384_v55 = vmax.f32 %v5312_v34, 0.0  ;;  %v11794_v17 = vpack.c.bf16 %v6234_v56, %v6234_v56  ;;  %7169 = vmatprep.mubr.bf16.mxu0 %v12532_v51  ;;  %7940 = vmatpush1.bf16.msra.mxu0 %v12533_v20 }
 0x350   :  { %v6066_v58 = vld [vmem:[#allocation2 + $0x17f] sm:$0xff]  ;;  %6201 = vst [vmem:[#allocation3 + $0x48] sm:$0xf] %v11761_v25  ;;  %6203 = vst [vmem:[#allocation3 + $0x60] sm:$0xf] %v11763_v4  ;;  %v6399_v7 = vld [vmem:[#allocation2 + $0x169] sm:$0xff]  ;;  %8112 = vmatprep.subr.bf16.mxu1 %v12614_v45  ;;  %v5349_v25 = vadd.f32 %v12019_v61, %v14428_v31  ;;  %v5340_v51 = vpop.f32.mrf.mxu1 }
 0x351   :  { %6538 = vst [vmem:[#allocation3 + $0x5c] sm:$0xf] %v11818_v14  ;;  %v11766_v52 = vpack.c.bf16 %v6066_v58, %v6066_v58  ;;  %5441 = vst [vmem:[#allocation2 + $0x1a6] sm:$0x3] %v14405_v30  ;;  %v12542_v60 = vld [vmem:[%s15721_s3 + $0x54] ss:$8 sps:$4 sm:$0xff]   ;;  %v11819_v10 = vpack.c.bf16 %v6399_v7, %v6399_v7 }
 0x352   :  { %6541 = vst [vmem:[#allocation3 + $0x80] sm:$0xf] %v11821_v53  ;;  %5419 = vst [vmem:[#allocation2 + $0x190] sm:$0xff] %v5384_v55  ;;  %v5389_v23 = vmax.f32 %v5333_v38, 0.0  ;;  %v12612_v18 = vld [vmem:[%s15721_s3 + $0x160] ss:$8 sps:$4 sm:$0xff]   ;;  %7941 = vmatprep.subr.bf16.mxu0 %v12542_v60  ;;  %v5341_v38 = vadd.f32 %v14428_v31, %v5340_v51 }
 0x353   :  { %6206 = vst [vmem:[#allocation3 + $0x84] sm:$0xf] %v11766_v52  ;;  %6374 = vst [vmem:[#allocation3 + $0x88] sm:$0xf] %v11794_v17  ;;  %v6064_v22 = vld [vmem:[#allocation2 + $0x16f] sm:$0xff]  ;;  %v5387_v43 = vmax.f32 %v5325_v28, 0.0  ;;  %8113 = vmatpush1.bf16.msra.mxu1 %v12612_v18 }
 0x354   :  { %v6232_v59 = vld [vmem:[#allocation2 + $0x170] sm:$0xff]  ;;  %5440 = vst [vmem:[#allocation2 + $0x196] sm:$0x3] %v14405_v30  ;;  %v11764_v16 = vpack.c.bf16 %v6064_v22, %v6064_v22  ;;  %v12530_v41 = vld [vmem:[#allocation3 + $0x18] ss:$12 sps:$4 sm:$0xff]   ;;  %5424 = vst [vmem:[#allocation2 + $0x1b8] sm:$0xff] %v5389_v23  ;;  %v11801_v15 = vpack.c.bf16 %v5389_v23, %v5389_v23  ;;  %v12020_v23 = vpop.f32.mrf.mxu1 }
 0x355   :  { %v6400_v37 = vld [vmem:[#allocation2 + $0x171] sm:$0xff]  ;;  %v11792_v62 = vpack.c.bf16 %v6232_v59, %v6232_v59  ;;  %v12536_v49 = vld [vmem:[#allocation3 + $0x20] ss:$12 sps:$4 sm:$0xff]   ;;  %6539 = vst [vmem:[#allocation3 + $0x68] sm:$0xf] %v11819_v10  ;;  %7170 = vmatmul.mubr.bf16.gmra.mxu0 %v12530_v41  ;;  %5422 = vst [vmem:[#allocation2 + $0x1a8] sm:$0xff] %v5387_v43  ;;  %v11799_v13 = vpack.c.bf16 %v5387_v43, %v5387_v43 }
 0x356   :  { %v12540_v2 = vld [vmem:[%s15721_s3 + $0x50] ss:$8 sps:$4 sm:$0xff]   ;;  %v12618_v47 = vld [vmem:[%s15721_s3 + $0x154] ss:$8 sps:$4 sm:$0xff]   ;;  %v11820_v54 = vpack.c.bf16 %v6400_v37, %v6400_v37  ;;  %v12549_v29 = vld [vmem:[%s15721_s3 + $0x44] ss:$8 sps:$4 sm:$0xff]   ;;  %7343 = vmatmul.mubr.bf16.gmra.mxu1 %v12536_v49  ;;  %v5352_v37 = vadd.f32 %v12020_v23, %v14428_v31 }
 0x357   :  { %v12616_v63 = vld [vmem:[%s15721_s3 + $0x150] ss:$8 sps:$4 sm:$0xff]   ;;  %v6067_v3 = vld [vmem:[#allocation2 + $0x187] sm:$0xff]  ;;  %6204 = vst [vmem:[#allocation3 + $0x6c] sm:$0xf] %v11764_v16  ;;  %v5390_v36 = vmax.f32 %v5336_v33, 0.0  ;;  %7352 = vmatprep.mubr.bf16.mxu1 %v15807_v9  ;;  %7942 = vmatpush1.bf16.msra.mxu0 %v12540_v2 }
 0x358   :  { %v6402_v6 = vld [vmem:[#allocation2 + $0x181] sm:$0xff]  ;;  %6372 = vst [vmem:[#allocation3 + $0x70] sm:$0xf] %v11792_v62  ;;  %6540 = vst [vmem:[#allocation3 + $0x74] sm:$0xf] %v11820_v54  ;;  %v11767_v19 = vpack.c.bf16 %v6067_v3, %v6067_v3  ;;  %v6065_v12 = vld [vmem:[#allocation2 + $0x177] sm:$0xff]  ;;  %8114 = vmatprep.subr.bf16.mxu1 %v12618_v47  ;;  %7943 = vmatprep.subr.bf16.mxu0 %v12549_v29  ;;  %v5343_v62 = vpop.f32.mrf.mxu1 }
 0x359   :  { %v11822_v46 = vpack.c.bf16 %v6402_v6, %v6402_v6  ;;  %v12539_v26 = vld [vmem:[#allocation3 + $0x34] ss:$12 sps:$4 sm:$0xff]   ;;  %6381 = vst [vmem:[#allocation3 + $0xdc] sm:$0xf] %v11801_v15  ;;  %v11765_v24 = vpack.c.bf16 %v6065_v12, %v6065_v12  ;;  %v12627_v40 = vld [vmem:[%s15721_s3 + $0x144] ss:$8 sps:$4 sm:$0xff]   ;;  %8115 = vmatpush1.bf16.msra.mxu1 %v12616_v63  ;;  %v5344_v63 = vadd.f32 %v14428_v31, %v5343_v62 }
 0x35a   :  { %v6405_v11 = vld [vmem:[#allocation2 + $0x199] sm:$0xff]  ;;  %6207 = vst [vmem:[#allocation3 + $0x90] sm:$0xf] %v11767_v19  ;;  %7179 = vmatprep.mubr.bf16.mxu0 %v12539_v26  ;;  %v5388_v5 = vmax.f32 %v5328_v21, 0.0  ;;  %v6403_v42 = vld [vmem:[#allocation2 + $0x189] sm:$0xff]  ;;  %5425 = vst [vmem:[#allocation2 + $0x1c0] sm:$0xff] %v5390_v36  ;;  %8116 = vmatprep.subr.bf16.mxu1 %v12627_v40  ;;  %v12023_v43 = vpop.f32.mrf.mxu1 }
 0x35b   :  { %v12547_v27 = vld [vmem:[%s15721_s3 + $0x40] ss:$8 sps:$4 sm:$0xff]   ;;  %6542 = vst [vmem:[#allocation3 + $0x8c] sm:$0xf] %v11822_v46  ;;  %v11825_v20 = vpack.c.bf16 %v6405_v11, %v6405_v11  ;;  %v12556_v34 = vld [vmem:[%s15721_s3 + $0x34] ss:$8 sps:$4 sm:$0xff]   ;;  %v11823_v53 = vpack.c.bf16 %v6403_v42, %v6403_v42  ;;  %v5365_v46 = vadd.f32 %v12023_v43, %v14428_v31 }
 0x35c   :  { %v6070_v44 = vld [vmem:[#allocation2 + $0x19f] sm:$0xff]  ;;  %6379 = vst [vmem:[#allocation3 + $0xc4] sm:$0xf] %v11799_v13  ;;  %6205 = vst [vmem:[#allocation3 + $0x78] sm:$0xf] %v11765_v24  ;;  %v6068_v45 = vld [vmem:[#allocation2 + $0x18f] sm:$0xff]  ;;  %7944 = vmatpush1.bf16.msra.mxu0 %v12547_v27  ;;  %v5356_v27 = vpop.f32.mrf.mxu1 }
 0x35d   :  { %v6238_v1 = vld [vmem:[#allocation2 + $0x1a0] sm:$0xff]  ;;  %v11770_v4 = vpack.c.bf16 %v6070_v44, %v6070_v44  ;;  %6545 = vst [vmem:[#allocation3 + $0xb0] sm:$0xf] %v11825_v20  ;;  %v6236_v58 = vld [vmem:[#allocation2 + $0x190] sm:$0xff]  ;;  %5443 = vst [vmem:[#allocation2 + $0x1c6] sm:$0x3] %v14405_v30  ;;  %v11768_v17 = vpack.c.bf16 %v6068_v45, %v6068_v45  ;;  %7945 = vmatprep.subr.bf16.mxu0 %v12556_v34 }
 0x35e   :  { %v11798_v14 = vpack.c.bf16 %v6238_v1, %v6238_v1  ;;  %v12625_v50 = vld [vmem:[%s15721_s3 + $0x140] ss:$8 sps:$4 sm:$0xff]   ;;  %v6404_v56 = vld [vmem:[#allocation2 + $0x191] sm:$0xff]  ;;  %5423 = vst [vmem:[#allocation2 + $0x1b0] sm:$0xff] %v5388_v5  ;;  %v5393_v55 = vmax.f32 %v5349_v25, 0.0  ;;  %v11796_v60 = vpack.c.bf16 %v6236_v58, %v6236_v58  ;;  %v5391_v22 = vmax.f32 %v5341_v38, 0.0  ;;  %v12024_v42 = vpop.f32.mrf.mxu1 }
 0x35f   :  { %6210 = vst [vmem:[#allocation3 + $0xb4] sm:$0xf] %v11770_v4  ;;  %v12537_v52 = vld [vmem:[#allocation3 + $0x30] ss:$12 sps:$4 sm:$0xff]   ;;  %v11824_v57 = vpack.c.bf16 %v6404_v56, %v6404_v56  ;;  %5442 = vst [vmem:[#allocation2 + $0x1b6] sm:$0x3] %v14405_v30  ;;  %8117 = vmatpush1.bf16.msra.mxu1 %v12625_v50 }
 0x360   :  { %6378 = vst [vmem:[#allocation3 + $0xb8] sm:$0xf] %v11798_v14  ;;  %v12554_v7 = vld [vmem:[%s15721_s3 + $0x30] ss:$8 sps:$4 sm:$0xff]   ;;  %v12631_v28 = vld [vmem:[%s15721_s3 + $0x134] ss:$8 sps:$4 sm:$0xff]   ;;  %v11805_v18 = vpack.c.bf16 %v5393_v55, %v5393_v55  ;;  %v11803_v15 = vpack.c.bf16 %v5391_v22, %v5391_v22  ;;  %7180 = vmatmul.mubr.bf16.gmra.mxu0 %v12537_v52  ;;  %v5357_v14 = vadd.f32 %v14428_v31, %v5356_v27 }
 0x361   :  { %6543 = vst [vmem:[#allocation3 + $0x98] sm:$0xf] %v11823_v53  ;;  %5428 = vst [vmem:[#allocation2 + $0x1d8] sm:$0xff] %v5393_v55  ;;  %v12563_v59 = vld [vmem:[%s15721_s3 + $0x24] ss:$8 sps:$4 sm:$0xff]   ;;  %v6069_v10 = vld [vmem:[#allocation2 + $0x197] sm:$0xff]  ;;  %7946 = vmatpush1.bf16.msra.mxu0 %v12554_v7  ;;  %8118 = vmatprep.subr.bf16.mxu1 %v12631_v28 }
 0x362   :  { %v12629_v2 = vld [vmem:[%s15721_s3 + $0x130] ss:$8 sps:$4 sm:$0xff]   ;;  %6208 = vst [vmem:[#allocation3 + $0x9c] sm:$0xf] %v11768_v17  ;;  %6376 = vst [vmem:[#allocation3 + $0xa0] sm:$0xf] %v11796_v60  ;;  %v11769_v54 = vpack.c.bf16 %v6069_v10, %v6069_v10  ;;  %7947 = vmatprep.subr.bf16.mxu0 %v12563_v59  ;;  %v5359_v17 = vpop.f32.mrf.mxu1 }
 0x363   :  { %v14557_v32 = vld [vmem:[#allocation3 + $0x16c] ss:$12 sps:$4 sm:$0xff]   ;;  %6544 = vst [vmem:[#allocation3 + $0xa4] sm:$0xf] %v11824_v57  ;;  %8425 = vst [vmem:[#allocation3 + $0x168] sm:$0xf] %v14476_v35  ;;  %8119 = vmatpush1.bf16.msra.mxu1 %v12629_v2  ;;  %v5360_v28 = vadd.f32 %v14428_v31, %v5359_v17 }
 0x364   :  { %v12543_v47 = vld [vmem:[#allocation3 + $0x38] ss:$12 sps:$4 sm:$0xff]   ;;  %8593 = vst [vmem:[#allocation3 + $0x16c] sm:$0xf] %v14483_v8  ;;  %6385 = vst [vmem:[#allocation3 + $0x10c] sm:$0xf] %v11805_v18 }
 0x365   :  { %v12546_v16 = vld [vmem:[#allocation3 + $0x4c] ss:$12 sps:$4 sm:$0xff]   ;;  %v6406_v49 = vld [vmem:[#allocation2 + $0x1a1] sm:$0xff]  ;;  %5426 = vst [vmem:[#allocation2 + $0x1c8] sm:$0xff] %v5391_v22  ;;  %v5394_v29 = vmax.f32 %v5352_v37, 0.0  ;;  %7353 = vmatmul.mubr.bf16.gmra.mxu1 %v12543_v47  ;;  %v5392_v19 = vmax.f32 %v5344_v63, 0.0 }
 0x366   :  { %v6071_v41 = vld [vmem:[#allocation2 + $0x1a7] sm:$0xff]  ;;  %v11826_v6 = vpack.c.bf16 %v6406_v49, %v6406_v49  ;;  %6209 = vst [vmem:[#allocation3 + $0xa8] sm:$0xf] %v11769_v54  ;;  %7189 = vmatprep.mubr.bf16.mxu0 %v12546_v16  ;;  %7362 = vmatprep.mubr.bf16.mxu1 %v15807_v9  ;;  %v6409_v33 = vld [vmem:[#allocation2 + $0x1b9] sm:$0xff]  ;;  %6383 = vst [vmem:[#allocation3 + $0xf4] sm:$0xf] %v11803_v15 }
 0x367   :  { %v11771_v3 = vpack.c.bf16 %v6071_v41, %v6071_v41  ;;  %v12561_v35 = vld [vmem:[%s15721_s3 + $0x20] ss:$8 sps:$4 sm:$0xff]   ;;  %v12640_v8 = vld [vmem:[%s15721_s3 + $0x124] ss:$8 sps:$4 sm:$0xff]   ;;  %5429 = vst [vmem:[#allocation2 + $0x1e0] sm:$0xff] %v5394_v29  ;;  %v11829_v11 = vpack.c.bf16 %v6409_v33, %v6409_v33  ;;  %v6240_v40 = vld [vmem:[#allocation2 + $0x1b0] sm:$0xff] }
 0x368   :  { %v12570_v0 = vld [vmem:[%s15721_s3 + $0x14] ss:$8 sps:$4 sm:$0xff]   ;;  %v12638_v26 = vld [vmem:[%s15721_s3 + $0x120] ss:$8 sps:$4 sm:$0xff]   ;;  %6546 = vst [vmem:[#allocation3 + $0xbc] sm:$0xf] %v11826_v6  ;;  %v11800_v34 = vpack.c.bf16 %v6240_v40, %v6240_v40  ;;  %8120 = vmatprep.subr.bf16.mxu1 %v12640_v8  ;;  %7948 = vmatpush1.bf16.msra.mxu0 %v12561_v35 }
 0x369   :  { %6211 = vst [vmem:[#allocation3 + $0xc0] sm:$0xf] %v11771_v3  ;;  %v6074_v21 = vld [vmem:[#allocation2 + $0x1bf] sm:$0xff]  ;;  %v6407_v13 = vld [vmem:[#allocation2 + $0x1a9] sm:$0xff]  ;;  %5445 = vst [vmem:[#allocation2 + $0x1e6] sm:$0x3] %v14405_v30  ;;  %7949 = vmatprep.subr.bf16.mxu0 %v12570_v0  ;;  %8121 = vmatpush1.bf16.msra.mxu1 %v12638_v26 }
 0x36a   :  { %v6242_v12 = vld [vmem:[#allocation2 + $0x1c0] sm:$0xff]  ;;  %v11774_v36 = vpack.c.bf16 %v6074_v21, %v6074_v21  ;;  %v6072_v24 = vld [vmem:[#allocation2 + $0x1af] sm:$0xff]  ;;  %v11827_v1 = vpack.c.bf16 %v6407_v13, %v6407_v13  ;;  %5427 = vst [vmem:[#allocation2 + $0x1d0] sm:$0xff] %v5392_v19  ;;  %v5397_v20 = vmax.f32 %v5365_v46, 0.0  ;;  %6549 = vst [vmem:[#allocation3 + $0xe0] sm:$0xf] %v11829_v11 }
 0x36b   :  { %v11802_v61 = vpack.c.bf16 %v6242_v12, %v6242_v12  ;;  %v6408_v44 = vld [vmem:[#allocation2 + $0x1b1] sm:$0xff]  ;;  %v11772_v5 = vpack.c.bf16 %v6072_v24, %v6072_v24  ;;  %5444 = vst [vmem:[#allocation2 + $0x1d6] sm:$0x3] %v14405_v30  ;;  %v12574_v56 = vld [vmem:[%s15721_s3 + $0x4] ss:$8 sps:$4 sm:$0xff]   ;;  %v5368_v30 = vadd.f32 %v12024_v42, %v14428_v31  ;;  %v5395_v52 = vmax.f32 %v5357_v14, 0.0 }
 0x36c   :  { %v11828_v25 = vpack.c.bf16 %v6408_v44, %v6408_v44  ;;  %v12568_v4 = vld [vmem:[%s15721_s3 + $0x10] ss:$8 sps:$4 sm:$0xff]   ;;  %v12644_v51 = vld [vmem:[%s15721_s3 + $0x114] ss:$8 sps:$4 sm:$0xff]   ;;  %6214 = vst [vmem:[#allocation3 + $0xe4] sm:$0xf] %v11774_v36  ;;  %v11809_v58 = vpack.c.bf16 %v5397_v20, %v5397_v20 }
 0x36d   :  { %v12544_v50 = vld [vmem:[#allocation3 + $0x48] ss:$12 sps:$4 sm:$0xff]   ;;  %v12550_v45 = vld [vmem:[#allocation3 + $0x50] ss:$12 sps:$4 sm:$0xff]   ;;  %6382 = vst [vmem:[#allocation3 + $0xe8] sm:$0xf] %v11802_v61  ;;  %v11807_v22 = vpack.c.bf16 %v5395_v52, %v5395_v52  ;;  %7950 = vmatpush1.bf16.msra.mxu0 %v12568_v4  ;;  %8122 = vmatprep.subr.bf16.mxu1 %v12644_v51 }
 0x36e   :  { %6547 = vst [vmem:[#allocation3 + $0xc8] sm:$0xf] %v11827_v1  ;;  %5432 = vst [vmem:[#allocation2 + $0x1f8] sm:$0xff] %v5397_v20  ;;  %v12642_v53 = vld [vmem:[%s15721_s3 + $0x110] ss:$8 sps:$4 sm:$0xff]   ;;  %v6075_v55 = vld [vmem:[#allocation2 + $0x1c7] sm:$0xff]  ;;  %7363 = vmatmul.mubr.bf16.gmra.mxu1 %v12550_v45  ;;  %7190 = vmatmul.mubr.bf16.gmra.mxu0 %v12544_v50 }
 0x36f   :  { %6212 = vst [vmem:[#allocation3 + $0xcc] sm:$0xf] %v11772_v5  ;;  %6380 = vst [vmem:[#allocation3 + $0xd0] sm:$0xf] %v11800_v34  ;;  %v6410_v38 = vld [vmem:[#allocation2 + $0x1c1] sm:$0xff]  ;;  %v11775_v57 = vpack.c.bf16 %v6075_v55, %v6075_v55  ;;  %v5398_v23 = vmax.f32 %v5368_v30, 0.0  ;;  %7372 = vmatprep.mubr.bf16.mxu1 %v15807_v9  ;;  %7951 = vmatprep.subr.bf16.mxu0 %v12574_v56 }
 0x370   :  { %6548 = vst [vmem:[#allocation3 + $0xd4] sm:$0xf] %v11828_v25  ;;  %v12553_v60 = vld [vmem:[#allocation3 + $0x64] ss:$12 sps:$4 sm:$0xff]   ;;  %v11830_v7 = vpack.c.bf16 %v6410_v38, %v6410_v38  ;;  %6389 = vst [vmem:[#allocation3 + $0x13c] sm:$0xf] %v11809_v58  ;;  %8123 = vmatpush1.bf16.msra.mxu1 %v12642_v53 }
 0x371   :  { %v6413_v18 = vld [vmem:[#allocation2 + $0x1d9] sm:$0xff]  ;;  %5430 = vst [vmem:[#allocation2 + $0x1e8] sm:$0xff] %v5395_v52  ;;  %v12650_v37 = vld [vmem:[%s15721_s3 + $0x104] ss:$8 sps:$4 sm:$0xff]   ;;  %7199 = vmatprep.mubr.bf16.mxu0 %v12553_v60  ;;  %6215 = vst [vmem:[#allocation3 + $0xf0] sm:$0xf] %v11775_v57 }
 0x372   :  { %v12572_v59 = vld [vmem:[%s15721_s3] ss:$8 sps:$4 sm:$0xff]   ;;  %6550 = vst [vmem:[#allocation3 + $0xec] sm:$0xf] %v11830_v7  ;;  %v11833_v2 = vpack.c.bf16 %v6413_v18, %v6413_v18  ;;  %v12581_v47 = vld [vmem:[%s15721_s3 + $0xf4] ss:$8 sps:$4 sm:$0xff]   ;;  %8124 = vmatprep.subr.bf16.mxu1 %v12650_v37 }
 0x373   :  { %v6078_v31 = vld [vmem:[#allocation2 + $0x1df] sm:$0xff]  ;;  %5433 = vst [vmem:[#allocation2 + $0x200] sm:$0x3f] %v5398_v23  ;;  %v5396_v16 = vmax.f32 %v5360_v28, 0.0  ;;  %v6411_v41 = vld [vmem:[#allocation2 + $0x1c9] sm:$0xff]  ;;  %v6412_v63 = vld [vmem:[#allocation2 + $0x1d1] sm:$0xff]  ;;  %7952 = vmatpush1.bf16.msra.mxu0 %v12572_v59 }
 0x374   :  { %v6246_v10 = vld [vmem:[#allocation2 + $0x1e0] sm:$0xff]  ;;  %v11778_v62 = vpack.c.bf16 %v6078_v31, %v6078_v31  ;;  %6387 = vst [vmem:[#allocation3 + $0x124] sm:$0xf] %v11807_v22  ;;  %6553 = vst [vmem:[#allocation3 + $0x110] sm:$0xf] %v11833_v2  ;;  %v6076_v15 = vld [vmem:[#allocation2 + $0x1cf] sm:$0xff]  ;;  %v11831_v3 = vpack.c.bf16 %v6411_v41, %v6411_v41  ;;  %v11832_v43 = vpack.c.bf16 %v6412_v63, %v6412_v63  ;;  %7953 = vmatprep.subr.bf16.mxu0 %v12581_v47 }
 0x375   :  { %v11806_v54 = vpack.c.bf16 %v6246_v10, %v6246_v10  ;;  %v12648_v49 = vld [vmem:[%s15721_s3 + $0x100] ss:$8 sps:$4 sm:$0xff]   ;;  %v6244_v29 = vld [vmem:[#allocation2 + $0x1d0] sm:$0xff]  ;;  %5431 = vst [vmem:[#allocation2 + $0x1f0] sm:$0xff] %v5396_v16  ;;  %v11776_v6 = vpack.c.bf16 %v6076_v15, %v6076_v15  ;;  %v12587_v26 = vld [vmem:[%s15721_s3 + $0xe4] ss:$8 sps:$4 sm:$0xff]  }
 0x376   :  { %6218 = vst [vmem:[#allocation3 + $0x114] sm:$0xf] %v11778_v62  ;;  %v11804_v35 = vpack.c.bf16 %v6244_v29, %v6244_v29  ;;  %v12579_v8 = vld [vmem:[%s15721_s3 + $0xf0] ss:$8 sps:$4 sm:$0xff]   ;;  %v12824_v33 = vld [vmem:[#allocation2 + $0x7] sm:$0xff]  ;;  %8125 = vmatpush1.bf16.msra.mxu1 %v12648_v49 }
 0x377   :  { %6386 = vst [vmem:[#allocation3 + $0x118] sm:$0xf] %v11806_v54  ;;  %5446 = vst [vmem:[#allocation2 + $0x1f6] sm:$0x3] %v12824_v33  ;;  %v6073_v0 = vld [vmem:[#allocation2 + $0x1b7] sm:$0xff]  ;;  %7954 = vmatpush2.bf16.msra.mxu0 %v12579_v8  ;;  %v8286_v28 = vld [vmem:[#allocation2 + $0x14f] sm:$0xff] }
 0x378   :  { %v12551_v19 = vld [vmem:[#allocation3 + $0x60] ss:$12 sps:$4 sm:$0xff]   ;;  %v12557_v46 = vld [vmem:[#allocation3 + $0x68] ss:$12 sps:$4 sm:$0xff]   ;;  %6551 = vst [vmem:[#allocation3 + $0xf8] sm:$0xf] %v11831_v3  ;;  %v11773_v21 = vpack.c.bf16 %v6073_v0, %v6073_v0  ;;  %7955 = vmatprep.subr.bf16.mxu0 %v12587_v26  ;;  %v11842_v37 = vpack.c.bf16 %v8286_v28, %v8286_v28 }
 0x379   :  { %v12560_v12 = vld [vmem:[#allocation3 + $0x7c] ss:$12 sps:$4 sm:$0xff]   ;;  %6216 = vst [vmem:[#allocation3 + $0xfc] sm:$0xf] %v11776_v6  ;;  %6384 = vst [vmem:[#allocation3 + $0x100] sm:$0xf] %v11804_v35  ;;  %7373 = vmatmul.mubr.bf16.gmra.mxu1 %v12557_v46  ;;  %7200 = vmatmul.mubr.bf16.gmra.mxu0 %v12551_v19 }
 0x37a   :  { %6552 = vst [vmem:[#allocation3 + $0x104] sm:$0xf] %v11832_v43  ;;  %v6079_v11 = vld [vmem:[#allocation2 + $0x1e7] sm:$0xff]  ;;  %6213 = vst [vmem:[#allocation3 + $0xd8] sm:$0xf] %v11773_v21  ;;  %v6082_v61 = vld [vmem:[#allocation2 + $0x1ff] sm:$0xff]  ;;  %7209 = vmatprep.mubr.bf16.mxu0 %v12560_v12  ;;  %7382 = vmatprep.mubr.bf16.mxu1 %v15807_v9 }
 0x37b   :  { %v6414_v13 = vld [vmem:[#allocation2 + $0x1e1] sm:$0xff]  ;;  %v11779_v27 = vpack.c.bf16 %v6079_v11, %v6079_v11  ;;  %v6417_v40 = vld [vmem:[#allocation2 + $0x1f9] sm:$0xff]  ;;  %v11782_v1 = vpack.c.bf16 %v6082_v61, %v6082_v61  ;;  %v8454_v18 = vld [vmem:[#allocation2 + $0x150] sm:$0xff]  ;;  %8426 = vst [vmem:[#allocation3 + $0x174] sm:$0xf] %v11842_v37 }
 0x37c   :  { %v11834_v36 = vpack.c.bf16 %v6414_v13, %v6414_v13  ;;  %v6250_v24 = vld [vmem:[#allocation2 + $0x200] sm:$0xff]  ;;  %v11837_v34 = vpack.c.bf16 %v6417_v40, %v6417_v40  ;;  %v12594_v25 = vld [vmem:[%s15721_s3 + $0xd4] ss:$8 sps:$4 sm:$0xff]   ;;  %v6415_v14 = vld [vmem:[#allocation2 + $0x1e9] sm:$0xff]  ;;  %v11870_v31 = vpack.c.bf16 %v8454_v18, %v8454_v18  ;;  %5594 = vst [vmem:[#allocation3 + $0x1a4] sm:$0xf] %v11842_v37 }
 0x37d   :  { %v12585_v44 = vld [vmem:[%s15721_s3 + $0xe0] ss:$8 sps:$4 sm:$0xff]   ;;  %v11810_v20 = vpack.c.bf16 %v6250_v24, %v6250_v24  ;;  %6219 = vst [vmem:[#allocation3 + $0x120] sm:$0xf] %v11779_v27  ;;  %v6077_v42 = vld [vmem:[#allocation2 + $0x1d7] sm:$0xff]  ;;  %v11835_v58 = vpack.c.bf16 %v6415_v14, %v6415_v14 }
 0x37e   :  { %v6418_v5 = vld [vmem:[#allocation2 + $0x201] sm:$0xff]  ;;  %6554 = vst [vmem:[#allocation3 + $0x11c] sm:$0xf] %v11834_v36  ;;  %6222 = vst [vmem:[#allocation3 + $0x144] sm:$0xf] %v11782_v1  ;;  %v6080_v51 = vld [vmem:[#allocation2 + $0x1ef] sm:$0xff]  ;;  %v11777_v56 = vpack.c.bf16 %v6077_v42, %v6077_v42  ;;  %7956 = vmatpush2.bf16.msra.mxu0 %v12585_v44 }
 0x37f   :  { %v11838_v4 = vpack.c.bf16 %v6418_v5, %v6418_v5  ;;  %6390 = vst [vmem:[#allocation3 + $0x148] sm:$0xf] %v11810_v20  ;;  %6557 = vst [vmem:[#allocation3 + $0x140] sm:$0xf] %v11837_v34  ;;  %v6248_v50 = vld [vmem:[#allocation2 + $0x1f0] sm:$0xff]  ;;  %v11780_v30 = vpack.c.bf16 %v6080_v51, %v6080_v51  ;;  %7957 = vmatprep.subr.bf16.mxu0 %v12594_v25  ;;  %v8288_v43 = vld [vmem:[#allocation2 + $0x15f] sm:$0xff] }
 0x380   :  { %v6416_v45 = vld [vmem:[#allocation2 + $0x1f1] sm:$0xff]  ;;  %v11808_v53 = vpack.c.bf16 %v6248_v50, %v6248_v50  ;;  %6555 = vst [vmem:[#allocation3 + $0x128] sm:$0xf] %v11835_v58  ;;  %v12601_v52 = vld [vmem:[%s15721_s3 + $0xc4] ss:$8 sps:$4 sm:$0xff]   ;;  %v11844_v19 = vpack.c.bf16 %v8288_v43, %v8288_v43  ;;  %v8623_v36 = vld [vmem:[#allocation2 + $0x159] sm:$0xff] }
 0x381   :  { %6558 = vst [vmem:[#allocation3 + $0x14c] sm:$0xf] %v11838_v4  ;;  %v11836_v55 = vpack.c.bf16 %v6416_v45, %v6416_v45  ;;  %v12592_v38 = vld [vmem:[%s15721_s3 + $0xd0] ss:$8 sps:$4 sm:$0xff]   ;;  %6217 = vst [vmem:[#allocation3 + $0x108] sm:$0xf] %v11777_v56  ;;  %v11899_v44 = vpack.c.bf16 %v8623_v36, %v8623_v36 }
 0x382   :  { %v12558_v17 = vld [vmem:[#allocation3 + $0x78] ss:$12 sps:$4 sm:$0xff]   ;;  %v12564_v60 = vld [vmem:[#allocation3 + $0x80] ss:$12 sps:$4 sm:$0xff]   ;;  %6220 = vst [vmem:[#allocation3 + $0x12c] sm:$0xf] %v11780_v30  ;;  %7958 = vmatpush2.bf16.msra.mxu0 %v12592_v38 }
 0x383   :  { %6388 = vst [vmem:[#allocation3 + $0x130] sm:$0xf] %v11808_v53  ;;  %6556 = vst [vmem:[#allocation3 + $0x134] sm:$0xf] %v11836_v55  ;;  %v12567_v57 = vld [vmem:[#allocation3 + $0x94] ss:$12 sps:$4 sm:$0xff]   ;;  %7383 = vmatmul.mubr.bf16.gmra.mxu1 %v12564_v60  ;;  %7210 = vmatmul.mubr.bf16.gmra.mxu0 %v12558_v17 }
 0x384   :  { %v6081_v7 = vld [vmem:[#allocation2 + $0x1f7] sm:$0xff]  ;;  %7219 = vmatprep.mubr.bf16.mxu0 %v12567_v57  ;;  %7392 = vmatprep.mubr.bf16.mxu1 %v15807_v9  ;;  %v12599_v59 = vld [vmem:[%s15721_s3 + $0xc0] ss:$8 sps:$4 sm:$0xff]   ;;  %8594 = vst [vmem:[#allocation3 + $0x178] sm:$0xf] %v11870_v31  ;;  %v8290_v34 = vld [vmem:[#allocation2 + $0x16f] sm:$0xff] }
 0x385   :  { %v11781_v23 = vpack.c.bf16 %v6081_v7, %v6081_v7  ;;  %v5786_v22 = vld [vmem:[#allocation2 + $0x131] sm:$0xff]  ;;  %7959 = vmatprep.subr.bf16.mxu0 %v12601_v52  ;;  %v8621_v47 = vld [vmem:[#allocation2 + $0x149] sm:$0xff]  ;;  %5762 = vst [vmem:[#allocation3 + $0x1a8] sm:$0xf] %v11870_v31  ;;  %v8456_v21 = vld [vmem:[#allocation2 + $0x160] sm:$0xff]  ;;  %v11846_v14 = vpack.c.bf16 %v8290_v34, %v8290_v34 }
 0x386   :  { %v11730_v10 = vpack.c.bf16 %v5786_v22, %v5786_v22  ;;  %v12611_v2 = vld [vmem:[%s15721_s3 + $0xb4] ss:$8 sps:$4 sm:$0xff]   ;;  %v12609_v16 = vld [vmem:[%s15721_s3 + $0xb0] ss:$8 sps:$4 sm:$0xff]   ;;  %v11897_v62 = vpack.c.bf16 %v8621_v47, %v8621_v47  ;;  %v12624_v41 = vld [vmem:[%s15721_s3 + $0xa4] ss:$8 sps:$4 sm:$0xff]   ;;  %7960 = vmatpush2.bf16.msra.mxu0 %v12599_v59  ;;  %v11872_v11 = vpack.c.bf16 %v8456_v21, %v8456_v21 }
 0x387   :  { %6221 = vst [vmem:[#allocation3 + $0x138] sm:$0xf] %v11781_v23  ;;  %v12565_v54 = vld [vmem:[#allocation3 + $0x90] ss:$12 sps:$4 sm:$0xff]   ;;  %v12571_v49 = vld [vmem:[#allocation3 + $0x98] ss:$12 sps:$4 sm:$0xff]   ;;  %7961 = vmatprep.subr.bf16.mxu0 %v12611_v2 }
 0x388   :  { %5926 = vst [vmem:[#allocation3 + $0x17c] sm:$0xf] %v11730_v10  ;;  %5929 = vst [vmem:[#allocation3 + $0x1a0] sm:$0xf] %v11897_v62  ;;  %v12577_v15 = vld [vmem:[#allocation3 + $0xac] ss:$12 sps:$4 sm:$0xff]  }
 0x389   :  { %v8622_v29 = vld [vmem:[#allocation2 + $0x151] sm:$0xff]  ;;  %v12622_v33 = vld [vmem:[%s15721_s3 + $0xa0] ss:$8 sps:$4 sm:$0xff]   ;;  %5596 = vst [vmem:[#allocation3 + $0x1bc] sm:$0xf] %v11844_v19 }
 0x38a   :  { %v5451_v63 = vld [vmem:[#allocation2 + $0x137] sm:$0xff]  ;;  %v11898_v3 = vpack.c.bf16 %v8622_v29, %v8622_v29  ;;  %7962 = vmatpush2.bf16.msra.mxu0 %v12609_v16  ;;  %v12647_v24 = vld [vmem:[%s15721_s3 + $0x84] ss:$8 sps:$4 sm:$0xff]   ;;  %5764 = vst [vmem:[#allocation3 + $0x1c0] sm:$0xf] %v11872_v11 }
 0x38b   :  { %7393 = vmatmul.mubr.bf16.gmra.mxu1 %v12571_v49  ;;  %7220 = vmatmul.mubr.bf16.gmra.mxu0 %v12565_v54  ;;  %v11675_v6 = vpack.c.bf16 %v5451_v63, %v5451_v63  ;;  %v8287_v35 = vld [vmem:[#allocation2 + $0x157] sm:$0xff]  ;;  %v8624_v40 = vld [vmem:[#allocation2 + $0x161] sm:$0xff]  ;;  %5931 = vst [vmem:[#allocation3 + $0x1b8] sm:$0xf] %v11899_v44  ;;  %8430 = vst [vmem:[#allocation3 + $0x1a4] sm:$0xf] %v11846_v14 }
 0x38c   :  { %v8455_v8 = vld [vmem:[#allocation2 + $0x158] sm:$0xff]  ;;  %7229 = vmatprep.mubr.bf16.mxu0 %v12577_v15  ;;  %7402 = vmatprep.mubr.bf16.mxu1 %v15807_v9  ;;  %v11843_v0 = vpack.c.bf16 %v8287_v35, %v8287_v35  ;;  %5930 = vst [vmem:[#allocation3 + $0x1ac] sm:$0xf] %v11898_v3  ;;  %v14650_v27 = vld [vmem:[#allocation3 + $0x188] ss:$12 sps:$4 sm:$0xff]   ;;  %v11900_v20 = vpack.c.bf16 %v8624_v40, %v8624_v40  ;;  %v8460_v10 = vld [vmem:[#allocation2 + $0x180] sm:$0xff] }
 0x38d   :  { %v11871_v46 = vpack.c.bf16 %v8455_v8, %v8455_v8  ;;  %5591 = vst [vmem:[#allocation3 + $0x180] sm:$0xf] %v11675_v6  ;;  %7963 = vmatprep.subr.bf16.mxu0 %v12624_v41  ;;  %v12637_v12 = vld [vmem:[%s15721_s3 + $0x94] ss:$8 sps:$4 sm:$0xff]   ;;  %v12635_v13 = vld [vmem:[%s15721_s3 + $0x90] ss:$8 sps:$4 sm:$0xff]   ;;  %v11876_v47 = vpack.c.bf16 %v8460_v10, %v8460_v10 }
 0x38e   :  { %5595 = vst [vmem:[#allocation3 + $0x1b0] sm:$0xf] %v11843_v0  ;;  %v12575_v61 = vld [vmem:[#allocation3 + $0xa8] ss:$12 sps:$4 sm:$0xff]   ;;  %v12578_v1 = vld [vmem:[#allocation3 + $0xb0] ss:$12 sps:$4 sm:$0xff]   ;;  %7964 = vmatpush2.bf16.msra.mxu0 %v12622_v33 }
 0x38f   :  { %v14642_v26 = vld [vmem:[#allocation3 + $0x170] ss:$12 sps:$4 sm:$0xff]   ;;  %5763 = vst [vmem:[#allocation3 + $0x1b4] sm:$0xf] %v11871_v46  ;;  %v8289_v5 = vld [vmem:[#allocation2 + $0x167] sm:$0xff]  ;;  %7965 = vmatprep.subr.bf16.mxu0 %v12637_v12 }
 0x390   :  { %8761 = vst [vmem:[#allocation3 + $0x170] sm:$0xf] %v11897_v62  ;;  %8762 = vst [vmem:[#allocation3 + $0x17c] sm:$0xf] %v11898_v3  ;;  %v12584_v25 = vld [vmem:[#allocation3 + $0xc4] ss:$12 sps:$4 sm:$0xff]   ;;  %v11845_v4 = vpack.c.bf16 %v8289_v5, %v8289_v5 }
 0x391   :  { %8763 = vst [vmem:[#allocation3 + $0x188] sm:$0xf] %v11899_v44  ;;  %v8457_v42 = vld [vmem:[#allocation2 + $0x168] sm:$0xff]  ;;  %v8458_v51 = vld [vmem:[#allocation2 + $0x170] sm:$0xff]  ;;  %8764 = vst [vmem:[#allocation3 + $0x194] sm:$0xf] %v11900_v20 }
 0x392   :  { %v14655_v50 = vld [vmem:[#allocation3 + $0x19c] ss:$12 sps:$4 sm:$0xff]   ;;  %v11873_v45 = vpack.c.bf16 %v8457_v42, %v8457_v42  ;;  %v11874_v58 = vpack.c.bf16 %v8458_v51, %v8458_v51  ;;  %5932 = vst [vmem:[#allocation3 + $0x1c4] sm:$0xf] %v11900_v20  ;;  %v14658_v56 = vld [vmem:[#allocation3 + $0x184] ss:$12 sps:$4 sm:$0xff]   ;;  %7966 = vmatpush2.bf16.msra.mxu0 %v12635_v13 }
 0x393   :  { %7403 = vmatmul.mubr.bf16.gmra.mxu1 %v12578_v1  ;;  %7230 = vmatmul.mubr.bf16.gmra.mxu0 %v12575_v61  ;;  %8429 = vst [vmem:[#allocation3 + $0x198] sm:$0xf] %v11845_v4  ;;  %5597 = vst [vmem:[#allocation3 + $0x1c8] sm:$0xf] %v11845_v4  ;;  %v12645_v30 = vld [vmem:[%s15721_s3 + $0x80] ss:$8 sps:$4 sm:$0xff]  }
 0x394   :  { %7239 = vmatprep.mubr.bf16.mxu0 %v12584_v25  ;;  %7412 = vmatprep.mubr.bf16.mxu1 %v15807_v9  ;;  %5598 = vst [vmem:[#allocation3 + $0x1d4] sm:$0xf] %v11846_v14  ;;  %8427 = vst [vmem:[#allocation3 + $0x180] sm:$0xf] %v11843_v0  ;;  %v8625_v53 = vld [vmem:[#allocation2 + $0x169] sm:$0xff]  ;;  %v8626_v55 = vld [vmem:[#allocation2 + $0x171] sm:$0xff] }
 0x395   :  { %8428 = vst [vmem:[#allocation3 + $0x18c] sm:$0xf] %v11844_v19  ;;  %8595 = vst [vmem:[#allocation3 + $0x184] sm:$0xf] %v11871_v46  ;;  %7967 = vmatprep.subr.bf16.mxu0 %v12647_v24  ;;  %v12657_v38 = vld [vmem:[%s15721_s3 + $0x374] ss:$8 sps:$4 sm:$0xff]   ;;  %v11901_v52 = vpack.c.bf16 %v8625_v53, %v8625_v53  ;;  %v11902_v17 = vpack.c.bf16 %v8626_v55, %v8626_v55 }
 0x396   :  { %8596 = vst [vmem:[#allocation3 + $0x190] sm:$0xf] %v11872_v11  ;;  %8597 = vst [vmem:[#allocation3 + $0x19c] sm:$0xf] %v11873_v45  ;;  %v8291_v60 = vld [vmem:[#allocation2 + $0x177] sm:$0xff]  ;;  %v8292_v57 = vld [vmem:[#allocation2 + $0x17f] sm:$0xff]  ;;  %7968 = vmatpush2.bf16.msra.mxu0 %v12645_v30 }
 0x397   :  { %8598 = vst [vmem:[#allocation3 + $0x1a8] sm:$0xf] %v11874_v58  ;;  %5765 = vst [vmem:[#allocation3 + $0x1cc] sm:$0xf] %v11873_v45  ;;  %v12582_v7 = vld [vmem:[#allocation3 + $0xc0] ss:$12 sps:$4 sm:$0xff]   ;;  %v11847_v18 = vpack.c.bf16 %v8291_v60, %v8291_v60  ;;  %v11848_v22 = vpack.c.bf16 %v8292_v57, %v8292_v57  ;;  %9355 = vmatprep.subr.bf16.mxu0 %v12657_v38 }
 0x398   :  { %5766 = vst [vmem:[#allocation3 + $0x1d8] sm:$0xf] %v11874_v58  ;;  %v12588_v23 = vld [vmem:[#allocation3 + $0xc8] ss:$12 sps:$4 sm:$0xff]   ;;  %v14666_v28 = vld [vmem:[#allocation3 + $0x1a0] ss:$12 sps:$4 sm:$0xff]  }
 0x399   :  { %v8459_v59 = vld [vmem:[#allocation2 + $0x178] sm:$0xff]  ;;  %8765 = vst [vmem:[#allocation3 + $0x1a0] sm:$0xf] %v11901_v52  ;;  %8766 = vst [vmem:[#allocation3 + $0x1ac] sm:$0xf] %v11902_v17  ;;  %v8628_v62 = vld [vmem:[#allocation2 + $0x181] sm:$0xff] }
 0x39a   :  { %v12591_v37 = vld [vmem:[#allocation3 + $0xdc] ss:$12 sps:$4 sm:$0xff]   ;;  %v14668_v31 = vld [vmem:[#allocation3 + $0x1b4] ss:$12 sps:$4 sm:$0xff]   ;;  %v11875_v2 = vpack.c.bf16 %v8459_v59, %v8459_v59  ;;  %5933 = vst [vmem:[#allocation3 + $0x1d0] sm:$0xf] %v11901_v52  ;;  %v11904_v49 = vpack.c.bf16 %v8628_v62, %v8628_v62 }
 0x39b   :  { %5934 = vst [vmem:[#allocation3 + $0x1dc] sm:$0xf] %v11902_v17  ;;  %8431 = vst [vmem:[#allocation3 + $0x1b0] sm:$0xf] %v11847_v18  ;;  %v8627_v16 = vld [vmem:[#allocation2 + $0x179] sm:$0xff]  ;;  %v8293_v15 = vld [vmem:[#allocation2 + $0x187] sm:$0xff]  ;;  %7413 = vmatmul.mubr.bf16.gmra.mxu1 %v12588_v23  ;;  %7240 = vmatmul.mubr.bf16.gmra.mxu0 %v12582_v7 }
 0x39c   :  { %8432 = vst [vmem:[#allocation3 + $0x1bc] sm:$0xf] %v11848_v22  ;;  %5599 = vst [vmem:[#allocation3 + $0x1e0] sm:$0xf] %v11847_v18  ;;  %v14670_v54 = vld [vmem:[#allocation3 + $0x1b8] ss:$12 sps:$4 sm:$0xff]   ;;  %v11903_v41 = vpack.c.bf16 %v8627_v16, %v8627_v16  ;;  %v11849_v63 = vpack.c.bf16 %v8293_v15, %v8293_v15  ;;  %7249 = vmatprep.mubr.bf16.mxu0 %v12591_v37  ;;  %7422 = vmatprep.mubr.bf16.mxu1 %v15807_v9 }
 0x39d   :  { %5600 = vst [vmem:[#allocation3 + $0x1ec] sm:$0xf] %v11848_v22  ;;  %8599 = vst [vmem:[#allocation3 + $0x1b4] sm:$0xf] %v11875_v2  ;;  %v8294_v29 = vld [vmem:[#allocation2 + $0x18f] sm:$0xff]  ;;  %v8295_v21 = vld [vmem:[#allocation2 + $0x197] sm:$0xff] }
 0x39e   :  { %5767 = vst [vmem:[#allocation3 + $0x1e4] sm:$0xf] %v11875_v2  ;;  %8600 = vst [vmem:[#allocation3 + $0x1c0] sm:$0xf] %v11876_v47  ;;  %v8461_v3 = vld [vmem:[#allocation2 + $0x188] sm:$0xff]  ;;  %v8462_v6 = vld [vmem:[#allocation2 + $0x190] sm:$0xff]  ;;  %v11850_v43 = vpack.c.bf16 %v8294_v29, %v8294_v29  ;;  %v11851_v36 = vpack.c.bf16 %v8295_v21, %v8295_v21 }
 0x39f   :  { %5768 = vst [vmem:[#allocation3 + $0x1f0] sm:$0xf] %v11876_v47  ;;  %8767 = vst [vmem:[#allocation3 + $0x1b8] sm:$0xf] %v11903_v41  ;;  %v14673_v35 = vld [vmem:[#allocation3 + $0x1cc] ss:$12 sps:$4 sm:$0xff]   ;;  %v11877_v8 = vpack.c.bf16 %v8461_v3, %v8461_v3  ;;  %v11878_v33 = vpack.c.bf16 %v8462_v6, %v8462_v6 }
 0x3a0   :  { %8768 = vst [vmem:[#allocation3 + $0x1c4] sm:$0xf] %v11904_v49  ;;  %5935 = vst [vmem:[#allocation3 + $0x1e8] sm:$0xf] %v11903_v41  ;;  %v8629_v0 = vld [vmem:[#allocation2 + $0x189] sm:$0xff]  ;;  %v8630_v19 = vld [vmem:[#allocation2 + $0x191] sm:$0xff] }
 0x3a1   :  { %5936 = vst [vmem:[#allocation3 + $0x1f4] sm:$0xf] %v11904_v49  ;;  %8433 = vst [vmem:[#allocation3 + $0x1c8] sm:$0xf] %v11849_v63  ;;  %v11905_v46 = vpack.c.bf16 %v8629_v0, %v8629_v0  ;;  %v8296_v12 = vld [vmem:[#allocation2 + $0x19f] sm:$0xff]  ;;  %v11906_v13 = vpack.c.bf16 %v8630_v19, %v8630_v19  ;;  %v8297_v58 = vld [vmem:[#allocation2 + $0x1a7] sm:$0xff] }
 0x3a2   :  { %5601 = vst [vmem:[#allocation3 + $0x1f8] sm:$0xf] %v11849_v63  ;;  %8434 = vst [vmem:[#allocation3 + $0x1d4] sm:$0xf] %v11850_v43  ;;  %v14675_v11 = vld [vmem:[#allocation3 + $0x1d0] ss:$12 sps:$4 sm:$0xff]   ;;  %v11852_v61 = vpack.c.bf16 %v8296_v12, %v8296_v12  ;;  %v11853_v53 = vpack.c.bf16 %v8297_v58, %v8297_v58 }
 0x3a3   :  { %8601 = vst [vmem:[#allocation3 + $0x1cc] sm:$0xf] %v11877_v8  ;;  %8602 = vst [vmem:[#allocation3 + $0x1d8] sm:$0xf] %v11878_v33  ;;  %v8463_v24 = vld [vmem:[#allocation2 + $0x198] sm:$0xff]  ;;  %v8464_v40 = vld [vmem:[#allocation2 + $0x1a0] sm:$0xff] }
 0x3a4   :  { %5602 = vst [vmem:[#allocation3 + $0x204] sm:$0xf] %v11850_v43  ;;  %5769 = vst [vmem:[#allocation3 + $0x1fc] sm:$0xf] %v11877_v8  ;;  %v12589_v44 = vld [vmem:[#allocation3 + $0xd8] ss:$12 sps:$4 sm:$0xff]   ;;  %v11879_v20 = vpack.c.bf16 %v8463_v24, %v8463_v24  ;;  %v11880_v5 = vpack.c.bf16 %v8464_v40, %v8464_v40 }
 0x3a5   :  { %5770 = vst [vmem:[#allocation3 + $0x208] sm:$0xf] %v11878_v33  ;;  %8769 = vst [vmem:[#allocation3 + $0x1d0] sm:$0xf] %v11905_v46  ;;  %v12595_v1 = vld [vmem:[#allocation3 + $0xe0] ss:$12 sps:$4 sm:$0xff]   ;;  %7250 = vmatmul.mubr.bf16.gmra.mxu0 %v12589_v44 }
 0x3a6   :  { %5937 = vst [vmem:[#allocation3 + $0x200] sm:$0xf] %v11905_v46  ;;  %8770 = vst [vmem:[#allocation3 + $0x1dc] sm:$0xf] %v11906_v13  ;;  %v8631_v34 = vld [vmem:[#allocation2 + $0x199] sm:$0xff]  ;;  %v8632_v14 = vld [vmem:[#allocation2 + $0x1a1] sm:$0xff]  ;;  %7423 = vmatmul.mubr.bf16.gmra.mxu1 %v12595_v1 }
 0x3a7   :  { %5938 = vst [vmem:[#allocation3 + $0x20c] sm:$0xf] %v11906_v13  ;;  %5603 = vst [vmem:[#allocation3 + $0x210] sm:$0xf] %v11851_v36  ;;  %v12598_v25 = vld [vmem:[#allocation3 + $0xf4] ss:$12 sps:$4 sm:$0xff]   ;;  %v11907_v42 = vpack.c.bf16 %v8631_v34, %v8631_v34  ;;  %v11908_v45 = vpack.c.bf16 %v8632_v14, %v8632_v14  ;;  %7432 = vmatprep.mubr.bf16.mxu1 %v15807_v9 }
 0x3a8   :  { %5604 = vst [vmem:[#allocation3 + $0x21c] sm:$0xf] %v11852_v61  ;;  %v14677_v4 = vld [vmem:[#allocation3 + $0x1e4] ss:$12 sps:$4 sm:$0xff]   ;;  %8435 = vst [vmem:[#allocation3 + $0x1e0] sm:$0xf] %v11851_v36  ;;  %7259 = vmatprep.mubr.bf16.mxu0 %v12598_v25 }
 0x3a9   :  { %8436 = vst [vmem:[#allocation3 + $0x1ec] sm:$0xf] %v11852_v61  ;;  %8603 = vst [vmem:[#allocation3 + $0x1e4] sm:$0xf] %v11879_v20  ;;  %v14679_v51 = vld [vmem:[#allocation3 + $0x1e8] ss:$12 sps:$4 sm:$0xff]  }
 0x3aa   :  { %8604 = vst [vmem:[#allocation3 + $0x1f0] sm:$0xf] %v11880_v5  ;;  %5771 = vst [vmem:[#allocation3 + $0x214] sm:$0xf] %v11879_v20  ;;  %v8298_v55 = vld [vmem:[#allocation2 + $0x1af] sm:$0xff]  ;;  %v8299_v2 = vld [vmem:[#allocation2 + $0x1b7] sm:$0xff] }
 0x3ab   :  { %5772 = vst [vmem:[#allocation3 + $0x220] sm:$0xf] %v11880_v5  ;;  %8771 = vst [vmem:[#allocation3 + $0x1e8] sm:$0xf] %v11907_v42  ;;  %v8465_v38 = vld [vmem:[#allocation2 + $0x1a8] sm:$0xff]  ;;  %v8466_v52 = vld [vmem:[#allocation2 + $0x1b0] sm:$0xff]  ;;  %v11854_v17 = vpack.c.bf16 %v8298_v55, %v8298_v55  ;;  %v11855_v62 = vpack.c.bf16 %v8299_v2, %v8299_v2 }
 0x3ac   :  { %5939 = vst [vmem:[#allocation3 + $0x218] sm:$0xf] %v11907_v42  ;;  %8772 = vst [vmem:[#allocation3 + $0x1f4] sm:$0xf] %v11908_v45  ;;  %v14682_v30 = vld [vmem:[#allocation3 + $0x1fc] ss:$12 sps:$4 sm:$0xff]   ;;  %v11881_v60 = vpack.c.bf16 %v8465_v38, %v8465_v38  ;;  %v11882_v57 = vpack.c.bf16 %v8466_v52, %v8466_v52 }
 0x3ad   :  { %5940 = vst [vmem:[#allocation3 + $0x224] sm:$0xf] %v11908_v45  ;;  %8437 = vst [vmem:[#allocation3 + $0x1f8] sm:$0xf] %v11853_v53  ;;  %v8633_v7 = vld [vmem:[#allocation2 + $0x1a9] sm:$0xff]  ;;  %v8634_v23 = vld [vmem:[#allocation2 + $0x1b1] sm:$0xff] }
 0x3ae   :  { %5605 = vst [vmem:[#allocation3 + $0x228] sm:$0xf] %v11853_v53  ;;  %v12596_v18 = vld [vmem:[#allocation3 + $0xf0] ss:$12 sps:$4 sm:$0xff]   ;;  %v12602_v22 = vld [vmem:[#allocation3 + $0xf8] ss:$12 sps:$4 sm:$0xff]   ;;  %v11909_v59 = vpack.c.bf16 %v8633_v7, %v8633_v7  ;;  %v11910_v37 = vpack.c.bf16 %v8634_v23, %v8634_v23 }
 0x3af   :  { %8438 = vst [vmem:[#allocation3 + $0x204] sm:$0xf] %v11854_v17  ;;  %8605 = vst [vmem:[#allocation3 + $0x1fc] sm:$0xf] %v11881_v60  ;;  %v14684_v10 = vld [vmem:[#allocation3 + $0x200] ss:$12 sps:$4 sm:$0xff]   ;;  %7433 = vmatmul.mubr.bf16.gmra.mxu1 %v12602_v22  ;;  %7260 = vmatmul.mubr.bf16.gmra.mxu0 %v12596_v18 }
 0x3b0   :  { %8606 = vst [vmem:[#allocation3 + $0x208] sm:$0xf] %v11882_v57  ;;  %v8300_v47 = vld [vmem:[#allocation2 + $0x1bf] sm:$0xff]  ;;  %5606 = vst [vmem:[#allocation3 + $0x234] sm:$0xf] %v11854_v17  ;;  %7442 = vmatprep.mubr.bf16.mxu1 %v15807_v9  ;;  %v8301_v0 = vld [vmem:[#allocation2 + $0x1c7] sm:$0xff] }
 0x3b1   :  { %5773 = vst [vmem:[#allocation3 + $0x22c] sm:$0xf] %v11881_v60  ;;  %5774 = vst [vmem:[#allocation3 + $0x238] sm:$0xf] %v11882_v57  ;;  %v12608_v16 = vld [vmem:[#allocation3 + $0x10c] ss:$12 sps:$4 sm:$0xff]   ;;  %v11856_v41 = vpack.c.bf16 %v8300_v47, %v8300_v47  ;;  %v11857_v12 = vpack.c.bf16 %v8301_v0, %v8301_v0 }
 0x3b2   :  { %8773 = vst [vmem:[#allocation3 + $0x200] sm:$0xf] %v11909_v59  ;;  %8774 = vst [vmem:[#allocation3 + $0x20c] sm:$0xf] %v11910_v37  ;;  %v14686_v49 = vld [vmem:[#allocation3 + $0x214] ss:$12 sps:$4 sm:$0xff]   ;;  %7269 = vmatprep.mubr.bf16.mxu0 %v12608_v16 }
 0x3b3   :  { %5941 = vst [vmem:[#allocation3 + $0x230] sm:$0xf] %v11909_v59  ;;  %5942 = vst [vmem:[#allocation3 + $0x23c] sm:$0xf] %v11910_v37  ;;  %v8467_v15 = vld [vmem:[#allocation2 + $0x1b8] sm:$0xff]  ;;  %v8468_v29 = vld [vmem:[#allocation2 + $0x1c0] sm:$0xff] }
 0x3b4   :  { %8439 = vst [vmem:[#allocation3 + $0x210] sm:$0xf] %v11855_v62  ;;  %8440 = vst [vmem:[#allocation3 + $0x21c] sm:$0xf] %v11856_v41  ;;  %v11883_v63 = vpack.c.bf16 %v8467_v15, %v8467_v15  ;;  %v11884_v3 = vpack.c.bf16 %v8468_v29, %v8468_v29  ;;  %v8635_v6 = vld [vmem:[#allocation2 + $0x1b9] sm:$0xff]  ;;  %v8636_v43 = vld [vmem:[#allocation2 + $0x1c1] sm:$0xff] }
 0x3b5   :  { %5607 = vst [vmem:[#allocation3 + $0x240] sm:$0xf] %v11855_v62  ;;  %5608 = vst [vmem:[#allocation3 + $0x24c] sm:$0xf] %v11856_v41  ;;  %v11911_v8 = vpack.c.bf16 %v8635_v6, %v8635_v6  ;;  %v11912_v33 = vpack.c.bf16 %v8636_v43, %v8636_v43  ;;  %v8302_v19 = vld [vmem:[#allocation2 + $0x1cf] sm:$0xff]  ;;  %v8303_v25 = vld [vmem:[#allocation2 + $0x1d7] sm:$0xff] }
 0x3b6   :  { %8607 = vst [vmem:[#allocation3 + $0x214] sm:$0xf] %v11883_v63  ;;  %8608 = vst [vmem:[#allocation3 + $0x220] sm:$0xf] %v11884_v3  ;;  %v8469_v46 = vld [vmem:[#allocation2 + $0x1c8] sm:$0xff]  ;;  %v11858_v13 = vpack.c.bf16 %v8302_v19, %v8302_v19  ;;  %v8470_v36 = vld [vmem:[#allocation2 + $0x1d0] sm:$0xff]  ;;  %v11859_v58 = vpack.c.bf16 %v8303_v25, %v8303_v25 }
 0x3b7   :  { %5775 = vst [vmem:[#allocation3 + $0x244] sm:$0xf] %v11883_v63  ;;  %5776 = vst [vmem:[#allocation3 + $0x250] sm:$0xf] %v11884_v3  ;;  %v14689_v21 = vld [vmem:[#allocation3 + $0x218] ss:$12 sps:$4 sm:$0xff]   ;;  %v11885_v61 = vpack.c.bf16 %v8469_v46, %v8469_v46  ;;  %v11886_v1 = vpack.c.bf16 %v8470_v36, %v8470_v36 }
 0x3b8   :  { %v12606_v24 = vld [vmem:[#allocation3 + $0x108] ss:$12 sps:$4 sm:$0xff]   ;;  %v12615_v40 = vld [vmem:[#allocation3 + $0x110] ss:$12 sps:$4 sm:$0xff]   ;;  %8775 = vst [vmem:[#allocation3 + $0x218] sm:$0xf] %v11911_v8 }
 0x3b9   :  { %8776 = vst [vmem:[#allocation3 + $0x224] sm:$0xf] %v11912_v33  ;;  %v14691_v44 = vld [vmem:[#allocation3 + $0x22c] ss:$12 sps:$4 sm:$0xff]   ;;  %5943 = vst [vmem:[#allocation3 + $0x248] sm:$0xf] %v11911_v8  ;;  %7443 = vmatmul.mubr.bf16.gmra.mxu1 %v12615_v40  ;;  %7270 = vmatmul.mubr.bf16.gmra.mxu0 %v12606_v24 }
 0x3ba   :  { %5944 = vst [vmem:[#allocation3 + $0x254] sm:$0xf] %v11912_v33  ;;  %v12621_v20 = vld [vmem:[#allocation3 + $0x124] ss:$12 sps:$4 sm:$0xff]   ;;  %8441 = vst [vmem:[#allocation3 + $0x228] sm:$0xf] %v11857_v12  ;;  %7452 = vmatprep.mubr.bf16.mxu1 %v15807_v9 }
 0x3bb   :  { %8442 = vst [vmem:[#allocation3 + $0x234] sm:$0xf] %v11858_v13  ;;  %8609 = vst [vmem:[#allocation3 + $0x22c] sm:$0xf] %v11885_v61  ;;  %v8637_v5 = vld [vmem:[#allocation2 + $0x1c9] sm:$0xff]  ;;  %v8638_v34 = vld [vmem:[#allocation2 + $0x1d1] sm:$0xff]  ;;  %7279 = vmatprep.mubr.bf16.mxu0 %v12621_v20 }
 0x3bc   :  { %5609 = vst [vmem:[#allocation3 + $0x258] sm:$0xf] %v11857_v12  ;;  %5610 = vst [vmem:[#allocation3 + $0x264] sm:$0xf] %v11858_v13  ;;  %v11913_v14 = vpack.c.bf16 %v8637_v5, %v8637_v5  ;;  %v11914_v42 = vpack.c.bf16 %v8638_v34, %v8638_v34  ;;  %v8304_v45 = vld [vmem:[#allocation2 + $0x1df] sm:$0xff]  ;;  %v8305_v2 = vld [vmem:[#allocation2 + $0x1e7] sm:$0xff] }
 0x3bd   :  { %5777 = vst [vmem:[#allocation3 + $0x25c] sm:$0xf] %v11885_v61  ;;  %8610 = vst [vmem:[#allocation3 + $0x238] sm:$0xf] %v11886_v1  ;;  %v8471_v53 = vld [vmem:[#allocation2 + $0x1d8] sm:$0xff]  ;;  %v8472_v55 = vld [vmem:[#allocation2 + $0x1e0] sm:$0xff]  ;;  %v11860_v52 = vpack.c.bf16 %v8304_v45, %v8304_v45  ;;  %v11861_v41 = vpack.c.bf16 %v8305_v2, %v8305_v2 }
 0x3be   :  { %5778 = vst [vmem:[#allocation3 + $0x268] sm:$0xf] %v11886_v1  ;;  %v14694_v38 = vld [vmem:[#allocation3 + $0x230] ss:$12 sps:$4 sm:$0xff]   ;;  %v11887_v17 = vpack.c.bf16 %v8471_v53, %v8471_v53  ;;  %v11888_v60 = vpack.c.bf16 %v8472_v55, %v8472_v55  ;;  %5945 = vst [vmem:[#allocation3 + $0x260] sm:$0xf] %v11913_v14 }
 0x3bf   :  { %v8639_v57 = vld [vmem:[#allocation2 + $0x1d9] sm:$0xff]  ;;  %8777 = vst [vmem:[#allocation3 + $0x230] sm:$0xf] %v11913_v14  ;;  %8778 = vst [vmem:[#allocation3 + $0x23c] sm:$0xf] %v11914_v42  ;;  %v8640_v18 = vld [vmem:[#allocation2 + $0x1e1] sm:$0xff] }
 0x3c0   :  { %v14696_v7 = vld [vmem:[#allocation3 + $0x244] ss:$12 sps:$4 sm:$0xff]   ;;  %v11915_v23 = vpack.c.bf16 %v8639_v57, %v8639_v57  ;;  %5946 = vst [vmem:[#allocation3 + $0x26c] sm:$0xf] %v11914_v42  ;;  %5611 = vst [vmem:[#allocation3 + $0x270] sm:$0xf] %v11859_v58  ;;  %v11916_v37 = vpack.c.bf16 %v8640_v18, %v8640_v18 }
 0x3c1   :  { %8443 = vst [vmem:[#allocation3 + $0x240] sm:$0xf] %v11859_v58  ;;  %8444 = vst [vmem:[#allocation3 + $0x24c] sm:$0xf] %v11860_v52  ;;  %v14701_v22 = vld [vmem:[%s15721_s3 + $0x474] ss:$8 sps:$4 sm:$0xff]  }
 0x3c2   :  { %8611 = vst [vmem:[#allocation3 + $0x244] sm:$0xf] %v11887_v17  ;;  %8612 = vst [vmem:[#allocation3 + $0x250] sm:$0xf] %v11888_v60  ;;  %v14703_v59 = vld [vmem:[#allocation3 + $0x248] ss:$12 sps:$4 sm:$0xff]   ;;  %12025 = vmatprep.subr.bf16.mxu1 %v14701_v22 }
 0x3c3   :  { %5612 = vst [vmem:[#allocation3 + $0x27c] sm:$0xf] %v11860_v52  ;;  %5779 = vst [vmem:[#allocation3 + $0x274] sm:$0xf] %v11887_v17  ;;  %v8306_v47 = vld [vmem:[#allocation2 + $0x1ef] sm:$0xff]  ;;  %v8307_v13 = vld [vmem:[#allocation2 + $0x1f7] sm:$0xff] }
 0x3c4   :  { %5780 = vst [vmem:[#allocation3 + $0x280] sm:$0xf] %v11888_v60  ;;  %5947 = vst [vmem:[#allocation3 + $0x278] sm:$0xf] %v11915_v23  ;;  %v12619_v16 = vld [vmem:[#allocation3 + $0x120] ss:$12 sps:$4 sm:$0xff]   ;;  %v11862_v15 = vpack.c.bf16 %v8306_v47, %v8306_v47  ;;  %v11863_v1 = vpack.c.bf16 %v8307_v13, %v8307_v13 }
 0x3c5   :  { %8779 = vst [vmem:[#allocation3 + $0x248] sm:$0xf] %v11915_v23  ;;  %v12628_v62 = vld [vmem:[#allocation3 + $0x128] ss:$12 sps:$4 sm:$0xff]   ;;  %8780 = vst [vmem:[#allocation3 + $0x254] sm:$0xf] %v11916_v37  ;;  %7280 = vmatmul.mubr.bf16.gmra.mxu0 %v12619_v16 }
 0x3c6   :  { %v8473_v29 = vld [vmem:[#allocation2 + $0x1e8] sm:$0xff]  ;;  %5948 = vst [vmem:[#allocation3 + $0x284] sm:$0xf] %v11916_v37  ;;  %v8474_v6 = vld [vmem:[#allocation2 + $0x1f0] sm:$0xff]  ;;  %7453 = vmatmul.mubr.bf16.gmra.mxu1 %v12628_v62  ;;  %8445 = vst [vmem:[#allocation3 + $0x258] sm:$0xf] %v11861_v41 }
 0x3c7   :  { %v12634_v63 = vld [vmem:[#allocation3 + $0x13c] ss:$12 sps:$4 sm:$0xff]   ;;  %v11889_v43 = vpack.c.bf16 %v8473_v29, %v8473_v29  ;;  %8446 = vst [vmem:[#allocation3 + $0x264] sm:$0xf] %v11862_v15  ;;  %v11890_v8 = vpack.c.bf16 %v8474_v6, %v8474_v6  ;;  %5613 = vst [vmem:[#allocation3 + $0x288] sm:$0xf] %v11861_v41  ;;  %7462 = vmatprep.mubr.bf16.mxu1 %v15807_v9 }
 0x3c8   :  { %v14706_v3 = vld [vmem:[#allocation3 + $0x25c] ss:$12 sps:$4 sm:$0xff]   ;;  %5614 = vst [vmem:[#allocation3 + $0x294] sm:$0xf] %v11862_v15  ;;  %7289 = vmatprep.mubr.bf16.mxu0 %v12634_v63  ;;  %v14709_v19 = vld [vmem:[#allocation3 + $0x260] ss:$12 sps:$4 sm:$0xff]  }
 0x3c9   :  { %v8641_v33 = vld [vmem:[#allocation2 + $0x1e9] sm:$0xff]  ;;  %8613 = vst [vmem:[#allocation3 + $0x25c] sm:$0xf] %v11889_v43  ;;  %5781 = vst [vmem:[#allocation3 + $0x28c] sm:$0xf] %v11889_v43  ;;  %v8642_v46 = vld [vmem:[#allocation2 + $0x1f1] sm:$0xff] }
 0x3ca   :  { %v11917_v0 = vpack.c.bf16 %v8641_v33, %v8641_v33  ;;  %8614 = vst [vmem:[#allocation3 + $0x268] sm:$0xf] %v11890_v8  ;;  %5782 = vst [vmem:[#allocation3 + $0x298] sm:$0xf] %v11890_v8  ;;  %v11918_v12 = vpack.c.bf16 %v8642_v46, %v8642_v46  ;;  %v8308_v36 = vld [vmem:[#allocation2 + $0x1ff] sm:$0xff]  ;;  %v8309_v17 = vld [vmem:[#allocation2 + $0x207] sm:$0xff] }
 0x3cb   :  { %v8475_v61 = vld [vmem:[#allocation2 + $0x1f8] sm:$0xff]  ;;  %v12641_v24 = vld [vmem:[#allocation3 + $0x140] ss:$12 sps:$4 sm:$0xff]   ;;  %v11864_v20 = vpack.c.bf16 %v8308_v36, %v8308_v36  ;;  %8447 = vst [vmem:[#allocation3 + $0x270] sm:$0xf] %v11863_v1  ;;  %v11865_v23 = vpack.c.bf16 %v8309_v17, %v8309_v17  ;;  %v8478_v37 = vld [vmem:[#allocation2 + $0x210] sm:$0xff] }
 0x3cc   :  { %8781 = vst [vmem:[#allocation3 + $0x260] sm:$0xf] %v11917_v0  ;;  %5949 = vst [vmem:[#allocation3 + $0x290] sm:$0xf] %v11917_v0  ;;  %v12653_v40 = vld [vmem:[#allocation3 + $0x154] ss:$12 sps:$4 sm:$0xff]   ;;  %v11891_v34 = vpack.c.bf16 %v8475_v61, %v8475_v61  ;;  %v11894_v16 = vpack.c.bf16 %v8478_v37, %v8478_v37 }
 0x3cd   :  { %8782 = vst [vmem:[#allocation3 + $0x26c] sm:$0xf] %v11918_v12  ;;  %v8476_v5 = vld [vmem:[#allocation2 + $0x200] sm:$0xff]  ;;  %5950 = vst [vmem:[#allocation3 + $0x29c] sm:$0xf] %v11918_v12  ;;  %v8310_v60 = vld [vmem:[#allocation2 + $0x20f] sm:$0xff] }
 0x3ce   :  { %v12632_v25 = vld [vmem:[#allocation3 + $0x138] ss:$12 sps:$4 sm:$0xff]   ;;  %v14711_v14 = vld [vmem:[#allocation3 + $0x274] ss:$12 sps:$4 sm:$0xff]   ;;  %v11892_v42 = vpack.c.bf16 %v8476_v5, %v8476_v5  ;;  %8448 = vst [vmem:[#allocation3 + $0x27c] sm:$0xf] %v11864_v20  ;;  %7463 = vmatmul.mubr.bf16.gmra.mxu1 %v12641_v24  ;;  %v11866_v18 = vpack.c.bf16 %v8310_v60, %v8310_v60 }
 0x3cf   :  { %8615 = vst [vmem:[#allocation3 + $0x274] sm:$0xf] %v11891_v34  ;;  %v8643_v45 = vld [vmem:[#allocation2 + $0x1f9] sm:$0xff]  ;;  %7290 = vmatmul.mubr.bf16.gmra.mxu0 %v12632_v25  ;;  %v8644_v58 = vld [vmem:[#allocation2 + $0x201] sm:$0xff]  ;;  %8142 = vmatprep.mubr.bf16.mxu1 %v15807_v9  ;;  %8449 = vst [vmem:[#allocation3 + $0x288] sm:$0xf] %v11865_v23  ;;  %v5041_v23 = vpop.xlane.xlu0 %5040 }
 0x3d0   :  { %8616 = vst [vmem:[#allocation3 + $0x280] sm:$0xf] %v11892_v42  ;;  %v11919_v53 = vpack.c.bf16 %v8643_v45, %v8643_v45  ;;  %7969 = vmatprep.mubr.bf16.mxu0 %v12653_v40  ;;  %v14714_v55 = vld [vmem:[#allocation3 + $0x278] ss:$12 sps:$4 sm:$0xff]   ;;  %v11920_v52 = vpack.c.bf16 %v8644_v58, %v8644_v58  ;;  %v8477_v57 = vld [vmem:[#allocation2 + $0x208] sm:$0xff] }
 0x3d1   :  { %v11893_v2 = vpack.c.bf16 %v8477_v57, %v8477_v57  ;;  %v14716_v47 = vld [vmem:[#allocation3 + $0x28c] ss:$12 sps:$4 sm:$0xff]   ;;  %8450 = vst [vmem:[#allocation3 + $0x294] sm:$0xf] %v11866_v18  ;;  %v12660_v0 = vld [vmem:[%s15721_s3 + $0x360] ss:$8 sps:$4 sm:$0xff]  }
 0x3d2   :  { %8783 = vst [vmem:[#allocation3 + $0x278] sm:$0xf] %v11919_v53  ;;  %8784 = vst [vmem:[#allocation3 + $0x284] sm:$0xf] %v11920_v52  ;;  %v12655_v62 = vld [vmem:[%s15721_s3 + $0x370] ss:$8 sps:$4 sm:$0xff]  }
 0x3d3   :  { %8617 = vst [vmem:[#allocation3 + $0x28c] sm:$0xf] %v11893_v2  ;;  %v8645_v41 = vld [vmem:[#allocation2 + $0x209] sm:$0xff]  ;;  %8618 = vst [vmem:[#allocation3 + $0x298] sm:$0xf] %v11894_v16  ;;  %v8646_v29 = vld [vmem:[#allocation2 + $0x211] sm:$0xff] }
 0x3d4   :  { %v12662_v15 = vld [vmem:[%s15721_s3 + $0x364] ss:$8 sps:$4 sm:$0xff]   ;;  %v11921_v63 = vpack.c.bf16 %v8645_v41, %v8645_v41  ;;  %v14727_v6 = vld [vmem:[%s15721_s3 + $0x470] ss:$8 sps:$4 sm:$0xff]   ;;  %v11922_v8 = vpack.c.bf16 %v8646_v29, %v8646_v29  ;;  %v14762_v61 = vld [vmem:[%s15721_s3 + $0x454] ss:$8 sps:$4 sm:$0xff]  }
 0x3d5   :  { %v14729_v43 = vld [vmem:[#allocation3 + $0x290] ss:$12 sps:$4 sm:$0xff]   ;;  %v14736_v33 = vld [vmem:[%s15721_s3 + $0x464] ss:$8 sps:$4 sm:$0xff]   ;;  %v5957_v46 = vld [vmem:[#allocation3 + $0x174] sm:$0xff] }
 0x3d6   :  { %8143 = vmatmul.mubr.bf16.vlgmr.msra.gmra.mxu1 %v14474_v48  ;;  %8785 = vst [vmem:[#allocation3 + $0x290] sm:$0xf] %v11921_v63  ;;  %8786 = vst [vmem:[#allocation3 + $0x29c] sm:$0xf] %v11922_v8  ;;  %v5955_v48 = vld [vmem:[#allocation3 + $0x168] sm:$0xff]  ;;  %v5959_v20 = vld [vmem:[#allocation3 + $0x180] sm:$0xff] }
 0x3d7   :  { %7970 = vmatmul.mubr.bf16.vlgmr.msra.gmra.mxu0 %v14456_v39  ;;  %8152 = vmatprep.mubr.bf16.mxu1 %v15807_v9  ;;  %v12668_v39 = vld [vmem:[%s15721_s3 + $0x354] ss:$8 sps:$4 sm:$0xff]   ;;  %v12666_v12 = vld [vmem:[%s15721_s3 + $0x350] ss:$8 sps:$4 sm:$0xff]   ;;  %v12674_v13 = vld [vmem:[%s15721_s3 + $0x344] ss:$8 sps:$4 sm:$0xff]   ;;  %v11110_v36 = vcombine.low %v5955_v48, %v5957_v46 }
 0x3d8   :  { %9356 = vmatpush1.bf16.msra.mxu0 %v12655_v62  ;;  %7979 = vmatprep.mubr.bf16.mxu0 %v14557_v32  ;;  %v14750_v32 = vld [vmem:[%s15721_s3 + $0x460] ss:$8 sps:$4 sm:$0xff]   ;;  %v14768_v24 = vld [vmem:[%s15721_s3 + $0x450] ss:$8 sps:$4 sm:$0xff]   ;;  %v14774_v40 = vld [vmem:[%s15721_s3 + $0x444] ss:$8 sps:$4 sm:$0xff]  }
 0x3d9   :  { %9357 = vmatprep.subr.bf16.mxu0 %v12662_v15  ;;  %12033 = vmatpush1.bf16.msra.mxu1 %v14727_v6  ;;  %v12672_v1 = vld [vmem:[%s15721_s3 + $0x340] ss:$8 sps:$4 sm:$0xff]   ;;  %v5961_v5 = vld [vmem:[#allocation3 + $0x18c] sm:$0xff]  ;;  %v14798_v42 = vld [vmem:[%s15721_s3 + $0x434] ss:$8 sps:$4 sm:$0xff]  }
 0x3da   :  { %12026 = vmatprep.subr.bf16.mxu1 %v14736_v33  ;;  %v12678_v34 = vld [vmem:[%s15721_s3 + $0x330] ss:$8 sps:$4 sm:$0xff]   ;;  %v11113_v25 = vcombine.low %v5959_v20, %v5961_v5  ;;  %v12686_v45 = vld [vmem:[%s15721_s3 + $0x324] ss:$8 sps:$4 sm:$0xff]   ;;  %v5042_v17 = vld [vmem:[#allocation4] sm:$0x1] }
 0x3db   :  { %v14807_v58 = vld [vmem:[%s15721_s3 + $0x430] ss:$8 sps:$4 sm:$0xff]   ;;  %v14813_v53 = vld [vmem:[%s15721_s3 + $0x424] ss:$8 sps:$4 sm:$0xff]   ;;  %v12684_v60 = vld [vmem:[%s15721_s3 + $0x320] ss:$8 sps:$4 sm:$0xff]  }
 0x3dc   :  { %9358 = vmatpush1.bf16.msra.mxu0 %v12660_v0  ;;  %v5963_v52 = vld [vmem:[#allocation3 + $0x198] sm:$0xff]  ;;  %v12696_v2 = vld [vmem:[%s15721_s3 + $0x304] ss:$8 sps:$4 sm:$0xff]   ;;  %v14835_v16 = vld [vmem:[%s15721_s3 + $0x420] ss:$8 sps:$4 sm:$0xff]  }
 0x3dd   :  { %9359 = vmatprep.subr.bf16.mxu0 %v12668_v39  ;;  %12034 = vmatpush1.bf16.msra.mxu1 %v14750_v32  ;;  %v12692_v57 = vld [vmem:[%s15721_s3 + $0x314] ss:$8 sps:$4 sm:$0xff]   ;;  %v12690_v18 = vld [vmem:[%s15721_s3 + $0x310] ss:$8 sps:$4 sm:$0xff]   ;;  %v12694_v29 = vld [vmem:[%s15721_s3 + $0x300] ss:$8 sps:$4 sm:$0xff]  }
 0x3de   :  { %8153 = vmatmul.mubr.bf16.gmra.mxu1 %v14642_v26  ;;  %v12680_v26 = vld [vmem:[%s15721_s3 + $0x334] ss:$8 sps:$4 sm:$0xff]   ;;  %12027 = vmatprep.subr.bf16.mxu1 %v14762_v61  ;;  %v14852_v63 = vld [vmem:[%s15721_s3 + $0x410] ss:$8 sps:$4 sm:$0xff]   ;;  %v14870_v39 = vld [vmem:[%s15721_s3 + $0x400] ss:$8 sps:$4 sm:$0xff]  }
 0x3df   :  { %7980 = vmatmul.mubr.bf16.gmra.mxu0 %v11110_v36  ;;  %8162 = vmatprep.mubr.bf16.mxu1 %v15807_v9  ;;  %v14840_v62 = vld [vmem:[%s15721_s3 + $0x414] ss:$8 sps:$4 sm:$0xff]   ;;  %v12700_v8 = vld [vmem:[%s15721_s3 + $0x3f0] ss:$8 sps:$4 sm:$0xff]   ;;  %v12707_v48 = vld [vmem:[%s15721_s3 + $0x3e4] ss:$8 sps:$4 sm:$0xff]  }
 0x3e0   :  { %7989 = vmatprep.mubr.bf16.mxu0 %v14658_v56  ;;  %9360 = vmatpush1.bf16.msra.mxu0 %v12666_v12  ;;  %v14789_v56 = vld [vmem:[%s15721_s3 + $0x440] ss:$8 sps:$4 sm:$0xff]   ;;  %v5967_v41 = vld [vmem:[#allocation3 + $0x1b0] sm:$0xff] }
 0x3e1   :  { %9361 = vmatprep.subr.bf16.mxu0 %v12674_v13  ;;  %12035 = vmatpush1.bf16.msra.mxu1 %v14768_v24  ;;  %v5969_v15 = vld [vmem:[#allocation3 + $0x1bc] sm:$0xff]  ;;  %v5971_v12 = vld [vmem:[#allocation3 + $0x1c8] sm:$0xff]  ;;  %v5973_v13 = vld [vmem:[#allocation3 + $0x1d4] sm:$0xff] }
 0x3e2   :  { %12028 = vmatprep.subr.bf16.mxu1 %v14774_v40  ;;  %v11119_v0 = vcombine.low %v5967_v41, %v5969_v15  ;;  %v12705_v46 = vld [vmem:[%s15721_s3 + $0x3e0] ss:$8 sps:$4 sm:$0xff]   ;;  %v12713_v36 = vld [vmem:[%s15721_s3 + $0x3d4] ss:$8 sps:$4 sm:$0xff]   ;;  %v5977_v5 = vld [vmem:[#allocation3 + $0x1ec] sm:$0xff] }
 0x3e3   :  { %v12717_v20 = vld [vmem:[%s15721_s3 + $0x3c0] ss:$8 sps:$4 sm:$0xff]   ;;  %v5993_v41 = vld [vmem:[#allocation3 + $0x24c] sm:$0xff] }
 0x3e4   :  { %9362 = vmatpush1.bf16.msra.mxu0 %v12672_v1  ;;  %v12719_v1 = vld [vmem:[%s15721_s3 + $0x3c4] ss:$8 sps:$4 sm:$0xff]  }
 0x3e5   :  { %9363 = vmatprep.subr.bf16.mxu0 %v12680_v26  ;;  %12036 = vmatpush1.bf16.msra.mxu1 %v14789_v56  ;;  %v5975_v26 = vld [vmem:[#allocation3 + $0x1e0] sm:$0xff] }
 0x3e6   :  { %8163 = vmatmul.mubr.bf16.gmra.mxu1 %v14650_v27  ;;  %12029 = vmatprep.subr.bf16.mxu1 %v14798_v42  ;;  %v5965_v27 = vld [vmem:[#allocation3 + $0x1a4] sm:$0xff] }
 0x3e7   :  { %7990 = vmatmul.mubr.bf16.gmra.mxu0 %v11113_v25  ;;  %8172 = vmatprep.mubr.bf16.mxu1 %v15807_v9  ;;  %v11116_v37 = vcombine.low %v5963_v52, %v5965_v27  ;;  %v11125_v25 = vcombine.low %v5975_v26, %v5977_v5  ;;  %v5979_v52 = vld [vmem:[#allocation3 + $0x1f8] sm:$0xff]  ;;  %v5999_v26 = vld [vmem:[#allocation3 + $0x270] sm:$0xff] }
 0x3e8   :  { %7999 = vmatprep.mubr.bf16.mxu0 %v14655_v50  ;;  %9364 = vmatpush1.bf16.msra.mxu0 %v12678_v34  ;;  %v5043_v50 = vadd.f32 %v5042_v17, %v5041_v23  ;;  %v12728_v34 = vld [vmem:[%s15721_s3 + $0x3b4] ss:$8 sps:$4 sm:$0xff]   ;;  %v5981_v17 = vld [vmem:[#allocation3 + $0x204] sm:$0xff] }
 0x3e9   :  { %9365 = vmatprep.subr.bf16.mxu0 %v12686_v45  ;;  %12037 = vmatpush1.bf16.msra.mxu1 %v14807_v58  ;;  %v12738_v45 = vld [vmem:[%s15721_s3 + $0x3a0] ss:$8 sps:$4 sm:$0xff]   ;;  %v11128_v27 = vcombine.low %v5979_v52, %v5981_v17  ;;  %v5983_v23 = vld [vmem:[#allocation3 + $0x210] sm:$0xff] }
 0x3ea   :  { %12030 = vmatprep.subr.bf16.mxu1 %v14813_v53  ;;  %5047 = vperm.xlu1 %12046, %v5043_v50   ;;  %v5985_v50 = vld [vmem:[#allocation3 + $0x21c] sm:$0xff] }
 0x3eb   :  { %v6001_v5 = vld [vmem:[#allocation3 + $0x27c] sm:$0xff] }
 0x3ec   :  { %9366 = vmatpush1.bf16.msra.mxu0 %v12684_v60  ;;  %v12752_v60 = vld [vmem:[%s15721_s3 + $0x394] ss:$8 sps:$4 sm:$0xff]   ;;  %v11143_v52 = vcombine.low %v5999_v26, %v6001_v5 }
 0x3ed   :  { %9367 = vmatprep.subr.bf16.mxu0 %v12692_v57  ;;  %12038 = vmatpush1.bf16.msra.mxu1 %v14835_v16  ;;  %v12760_v57 = vld [vmem:[%s15721_s3 + $0x380] ss:$8 sps:$4 sm:$0xff]  }
 0x3ee   :  { %8173 = vmatmul.mubr.bf16.gmra.mxu1 %v14666_v28  ;;  %v12702_v28 = vld [vmem:[%s15721_s3 + $0x3f4] ss:$8 sps:$4 sm:$0xff]   ;;  %12031 = vmatprep.subr.bf16.mxu1 %v14840_v62 }
 0x3ef   :  { %8000 = vmatmul.mubr.bf16.gmra.mxu0 %v11116_v37  ;;  %8182 = vmatprep.mubr.bf16.mxu1 %v15807_v9 }
 0x3f0   :  { %8009 = vmatprep.mubr.bf16.mxu0 %v14668_v31  ;;  %9368 = vmatpush1.bf16.msra.mxu0 %v12690_v18  ;;  %v14861_v31 = vld [vmem:[%s15721_s3 + $0x404] ss:$8 sps:$4 sm:$0xff]   ;;  %v11131_v18 = vcombine.low %v5983_v23, %v5985_v50  ;;  %v6005_v23 = vld [vmem:[#allocation3 + $0x294] sm:$0xff] }
 0x3f1   :  { %9369 = vmatprep.subr.bf16.mxu0 %v12696_v2  ;;  %12039 = vmatpush1.bf16.msra.mxu1 %v14852_v63  ;;  %v5991_v2 = vld [vmem:[#allocation3 + $0x240] sm:$0xff] }
 0x3f2   :  { %12032 = vmatprep.subr.bf16.mxu1 %v14861_v31 }
 0x3f4   :  { %9370 = vmatpush1.bf16.msra.mxu0 %v12694_v29 }
 0x3f5   :  { %9371 = vmatprep.subr.bf16.mxu0 %v12702_v28  ;;  %12040 = vmatpush1.bf16.msra.mxu1 %v14870_v39  ;;  %v5995_v28 = vld [vmem:[#allocation3 + $0x258] sm:$0xff] }
 0x3f6   :  { %8183 = vmatmul.mubr.bf16.gmra.mxu1 %v14670_v54  ;;  %v11122_v54 = vcombine.low %v5971_v12, %v5973_v13 }
 0x3f7   :  { %8010 = vmatmul.mubr.bf16.gmra.mxu0 %v11119_v0  ;;  %8192 = vmatprep.mubr.bf16.mxu1 %v15807_v9 }
 0x3f8   :  { %8019 = vmatprep.mubr.bf16.mxu0 %v14673_v35  ;;  %9372 = vmatpush2.bf16.msra.mxu0 %v12700_v8  ;;  %v12711_v35 = vld [vmem:[%s15721_s3 + $0x3d0] ss:$8 sps:$4 sm:$0xff]  }
 0x3f9   :  { %9373 = vmatprep.subr.bf16.mxu0 %v12707_v48 }
 0x3fc   :  { %9374 = vmatpush2.bf16.msra.mxu0 %v12705_v46 }
 0x3fd   :  { %9375 = vmatprep.subr.bf16.mxu0 %v12713_v36 }
 0x3fe   :  { %8193 = vmatmul.mubr.bf16.gmra.mxu1 %v14675_v11  ;;  %v12726_v11 = vld [vmem:[%s15721_s3 + $0x3b0] ss:$8 sps:$4 sm:$0xff]  }
 0x3ff   :  { %8020 = vmatmul.mubr.bf16.gmra.mxu0 %v11122_v54  ;;  %8202 = vmatprep.mubr.bf16.mxu1 %v15807_v9 }
 0x400   :  { %8029 = vmatprep.mubr.bf16.mxu0 %v14677_v4  ;;  %9376 = vmatpush2.bf16.msra.mxu0 %v12711_v35  ;;  %v12740_v4 = vld [vmem:[%s15721_s3 + $0x3a4] ss:$8 sps:$4 sm:$0xff]  }
 0x401   :  { %9377 = vmatprep.subr.bf16.mxu0 %v12719_v1 }
 0x404   :  { %9378 = vmatpush2.bf16.msra.mxu0 %v12717_v20 }
 0x405   :  { %9379 = vmatprep.subr.bf16.mxu0 %v12728_v34 }
 0x406   :  { %8203 = vmatmul.mubr.bf16.gmra.mxu1 %v14679_v51  ;;  %v12750_v51 = vld [vmem:[%s15721_s3 + $0x390] ss:$8 sps:$4 sm:$0xff]  }
 0x407   :  { %8030 = vmatmul.mubr.bf16.gmra.mxu0 %v11125_v25  ;;  %8212 = vmatprep.mubr.bf16.mxu1 %v15807_v9 }
 0x408   :  { %8039 = vmatprep.mubr.bf16.mxu0 %v14682_v30  ;;  %9380 = vmatpush2.bf16.msra.mxu0 %v12726_v11  ;;  %v12762_v30 = vld [vmem:[%s15721_s3 + $0x384] ss:$8 sps:$4 sm:$0xff]  }
 0x409   :  { %9381 = vmatprep.subr.bf16.mxu0 %v12740_v4 }
 0x40b   :  { %v7334_v15 = vpop.f32.mrf.mxu1 }
 0x40c   :  { %9382 = vmatpush2.bf16.msra.mxu0 %v12738_v45 }
 0x40d   :  { %9383 = vmatprep.subr.bf16.mxu0 %v12752_v60 }
 0x40e   :  { %8213 = vmatmul.mubr.bf16.gmra.mxu1 %v14684_v10  ;;  %v5987_v10 = vld [vmem:[#allocation3 + $0x228] sm:$0xff] }
 0x40f   :  { %8040 = vmatmul.mubr.bf16.gmra.mxu0 %v11128_v27  ;;  %8222 = vmatprep.mubr.bf16.mxu1 %v15807_v9 }
 0x410   :  { %8049 = vmatprep.mubr.bf16.mxu0 %v14686_v49  ;;  %9384 = vmatpush2.bf16.msra.mxu0 %v12750_v51  ;;  %v5989_v49 = vld [vmem:[#allocation3 + $0x234] sm:$0xff] }
 0x411   :  { %9385 = vmatprep.subr.bf16.mxu0 %v12762_v30  ;;  %v11134_v37 = vcombine.low %v5987_v10, %v5989_v49 }
 0x414   :  { %9386 = vmatpush2.bf16.msra.mxu0 %v12760_v57  ;;  %v6003_v57 = vld [vmem:[#allocation3 + $0x288] sm:$0xff] }
 0x415   :  { %9528 = vmatprep.subr.bf16.mxu0 %v14701_v22  ;;  %v11137_v22 = vcombine.low %v5991_v2, %v5993_v41  ;;  %v11146_v2 = vcombine.low %v6003_v57, %v6005_v23  ;;  %v12776_v57 = vld [vmem:[#allocation3 + $0x184] ss:$12 sps:$4 sm:$0xff]  }
 0x416   :  { %8223 = vmatmul.mubr.bf16.gmra.mxu1 %v14689_v21  ;;  %v7161_v21 = vpop.f32.mrf.mxu0 }
 0x417   :  { %8050 = vmatmul.mubr.bf16.gmra.mxu0 %v11131_v18  ;;  %8232 = vmatprep.mubr.bf16.mxu1 %v15807_v9 }
 0x418   :  { %8059 = vmatprep.mubr.bf16.mxu0 %v14691_v44  ;;  %v14936_v44 = vadd.f32 %v7334_v15, %v7161_v21  ;;  %v7163_v29 = vpop.f32.mrf.mxu0 }
 0x41a   :  { %v7165_v48 = vpop.f32.mrf.mxu0 }
 0x41e   :  { %8233 = vmatmul.mubr.bf16.gmra.mxu1 %v14694_v38  ;;  %v7336_v38 = vpop.f32.mrf.mxu1 }
 0x41f   :  { %8060 = vmatmul.mubr.bf16.gmra.mxu0 %v11134_v37  ;;  %8242 = vmatprep.mubr.bf16.mxu1 %v15807_v9  ;;  %v14940_v8 = vadd.f32 %v7336_v38, %v7163_v29 }
 0x420   :  { %8069 = vmatprep.mubr.bf16.mxu0 %v14696_v7  ;;  %v5997_v7 = vld [vmem:[#allocation3 + $0x264] sm:$0xff]  ;;  %v7338_v0 = vpop.f32.mrf.mxu1 }
 0x421   :  { %v14942_v46 = vadd.f32 %v7338_v0, %v7165_v48  ;;  %v11140_v13 = vcombine.low %v5995_v28, %v5997_v7 }
 0x422   :  { %v7340_v12 = vpop.f32.mrf.mxu1 }
 0x424   :  { %v7344_v54 = vpop.f32.mrf.mxu1 }
 0x426   :  { %8243 = vmatmul.mubr.bf16.gmra.mxu1 %v14703_v59  ;;  %v7167_v59 = vpop.f32.mrf.mxu0  ;;  %v7346_v1 = vpop.f32.mrf.mxu1 }
 0x427   :  { %8070 = vmatmul.mubr.bf16.gmra.mxu0 %v11137_v22  ;;  %8252 = vmatprep.mubr.bf16.mxu1 %v15807_v9  ;;  %v14944_v36 = vadd.f32 %v7340_v12, %v7167_v59  ;;  %v12765_v22 = vld [vmem:[#allocation3 + $0x154] ss:$12 sps:$4 sm:$0xff]   ;;  %v12763_v12 = vld [vmem:[#allocation3 + $0x150] ss:$12 sps:$4 sm:$0xff]  }
 0x428   :  { %8079 = vmatprep.mubr.bf16.mxu0 %v14706_v3  ;;  %v7171_v3 = vpop.f32.mrf.mxu0  ;;  %v7348_v25 = vpop.f32.mrf.mxu1 }
 0x429   :  { %v14947_v35 = vadd.f32 %v7344_v54, %v7171_v3  ;;  %v12769_v54 = vld [vmem:[#allocation3 + $0x1a0] ss:$12 sps:$4 sm:$0xff]  }
 0x42a   :  { %v7173_v20 = vpop.f32.mrf.mxu0  ;;  %v7350_v45 = vpop.f32.mrf.mxu1  ;;  %v12772_v3 = vld [vmem:[#allocation3 + $0x16c] ss:$12 sps:$4 sm:$0xff]  }
 0x42b   :  { %v14951_v34 = vadd.f32 %v7346_v1, %v7173_v20 }
 0x42c   :  { %v7175_v11 = vpop.f32.mrf.mxu0  ;;  %v7354_v60 = vpop.f32.mrf.mxu1 }
 0x42d   :  { %v14953_v4 = vadd.f32 %v7348_v25, %v7175_v11 }
 0x42e   :  { %8253 = vmatmul.mubr.bf16.gmra.mxu1 %v14709_v19  ;;  %v7177_v19 = vpop.f32.mrf.mxu0  ;;  %v7356_v51 = vpop.f32.mrf.mxu1 }
 0x42f   :  { %8080 = vmatmul.mubr.bf16.gmra.mxu0 %v11140_v13  ;;  %8262 = vmatprep.mubr.bf16.mxu1 %v15807_v9  ;;  %v14955_v17 = vadd.f32 %v7350_v45, %v7177_v19 }
 0x430   :  { %8089 = vmatprep.mubr.bf16.mxu0 %v14711_v14  ;;  %v7181_v14 = vpop.f32.mrf.mxu0  ;;  %v7358_v18 = vpop.f32.mrf.mxu1 }
 0x431   :  { %v14958_v27 = vadd.f32 %v7354_v60, %v7181_v14  ;;  %v12770_v60 = vld [vmem:[#allocation3 + $0x168] ss:$12 sps:$4 sm:$0xff]  }
 0x432   :  { %v7183_v30 = vpop.f32.mrf.mxu0  ;;  %v7360_v37 = vpop.f32.mrf.mxu1 }
 0x433   :  { %v14962_v50 = vadd.f32 %v7356_v51, %v7183_v30  ;;  %v12773_v30 = vld [vmem:[#allocation3 + $0x1b8] ss:$12 sps:$4 sm:$0xff]  }
 0x434   :  { %v7185_v10 = vpop.f32.mrf.mxu0  ;;  %v7364_v15 = vpop.f32.mrf.mxu1 }
 0x435   :  { %v14964_v49 = vadd.f32 %v7358_v18, %v7185_v10 }
 0x436   :  { %8263 = vmatmul.mubr.bf16.gmra.mxu1 %v14714_v55  ;;  %v7187_v55 = vpop.f32.mrf.mxu0  ;;  %v7366_v38 = vpop.f32.mrf.mxu1 }
 0x437   :  { %8090 = vmatmul.mubr.bf16.gmra.mxu0 %v11143_v52  ;;  %8272 = vmatprep.mubr.bf16.mxu1 %v15807_v9  ;;  %v14966_v41 = vadd.f32 %v7360_v37, %v7187_v55 }
 0x438   :  { %8099 = vmatprep.mubr.bf16.mxu0 %v14716_v47  ;;  %v7191_v47 = vpop.f32.mrf.mxu0  ;;  %v7368_v7 = vpop.f32.mrf.mxu1 }
 0x439   :  { %v14969_v21 = vadd.f32 %v7364_v15, %v7191_v47 }
 0x43a   :  { %v7193_v29 = vpop.f32.mrf.mxu0  ;;  %v7370_v59 = vpop.f32.mrf.mxu1 }
 0x43b   :  { %v14972_v28 = vadd.f32 %v7366_v38, %v7193_v29  ;;  %v12777_v38 = vld [vmem:[#allocation3 + $0x1d0] ss:$12 sps:$4 sm:$0xff]  }
 0x43c   :  { %v7195_v0 = vpop.f32.mrf.mxu0  ;;  %v7374_v1 = vpop.f32.mrf.mxu1 }
 0x43d   :  { %v14974_v48 = vadd.f32 %v7368_v7, %v7195_v0  ;;  %v12780_v7 = vld [vmem:[#allocation3 + $0x19c] ss:$12 sps:$4 sm:$0xff]  }
 0x43e   :  { %8273 = vmatmul.mubr.bf16.gmra.mxu1 %v14729_v43  ;;  %v7197_v13 = vpop.f32.mrf.mxu0  ;;  %v7376_v5 = vpop.f32.mrf.mxu1 }
 0x43f   :  { %8100 = vmatmul.mubr.bf16.gmra.mxu0 %v11146_v2  ;;  %9590 = vmatprep.mubr.bf16.mxu1 %v15807_v9  ;;  %v14976_v43 = vadd.f32 %v7370_v59, %v7197_v13 }
 0x440   :  { %9387 = vmatprep.mubr.bf16.mxu0 %v12765_v22  ;;  %v7201_v20 = vpop.f32.mrf.mxu0  ;;  %v7378_v45 = vpop.f32.mrf.mxu1  ;;  %v12774_v22 = vld [vmem:[#allocation3 + $0x180] ss:$12 sps:$4 sm:$0xff]  }
 0x441   :  { %v14978_v26 = vadd.f32 %v7374_v1, %v7201_v20 }
 0x442   :  { %v7203_v25 = vpop.f32.mrf.mxu0  ;;  %v7380_v14 = vpop.f32.mrf.mxu1 }
 0x443   :  { %v14983_v11 = vadd.f32 %v7376_v5, %v7203_v25  ;;  %v12781_v5 = vld [vmem:[#allocation3 + $0x1e8] ss:$12 sps:$4 sm:$0xff]  }
 0x444   :  { %v7205_v19 = vpop.f32.mrf.mxu0  ;;  %v7384_v23 = vpop.f32.mrf.mxu1 }
 0x445   :  { %v14985_v52 = vadd.f32 %v7378_v45, %v7205_v19  ;;  %v12784_v45 = vld [vmem:[#allocation3 + $0x1b4] ss:$12 sps:$4 sm:$0xff]  }
 0x446   :  { %9591 = vmatmul.mubr.bf16.vlgmr.msra.gmra.mxu1 %v12769_v54  ;;  %v7207_v51 = vpop.f32.mrf.mxu0  ;;  %v7386_v10 = vpop.f32.mrf.mxu1 }
 0x447   :  { %9388 = vmatmul.mubr.bf16.vlgmr.msra.gmra.mxu0 %v12763_v12  ;;  %9600 = vmatprep.mubr.bf16.mxu1 %v15807_v9 }
 0x448   :  { %9529 = vmatpush1.bf16.msra.mxu0 %v14727_v6  ;;  %9397 = vmatprep.mubr.bf16.mxu0 %v12772_v3  ;;  %v14989_v6 = vadd.f32 %v7380_v14, %v7207_v51  ;;  %v12778_v3 = vld [vmem:[#allocation3 + $0x198] ss:$12 sps:$4 sm:$0xff]  }
 0x449   :  { %9530 = vmatprep.subr.bf16.mxu0 %v14736_v33  ;;  %v7211_v33 = vpop.f32.mrf.mxu0 }
 0x44a   :  { %v14991_v18 = vadd.f32 %v7384_v23, %v7211_v33 }
 0x44c   :  { %9531 = vmatpush1.bf16.msra.mxu0 %v14750_v32  ;;  %v7213_v32 = vpop.f32.mrf.mxu0 }
 0x44d   :  { %9532 = vmatprep.subr.bf16.mxu0 %v14762_v61  ;;  %v14995_v37 = vadd.f32 %v7386_v10, %v7213_v32  ;;  %v7388_v61 = vpop.f32.mrf.mxu1  ;;  %v12785_v10 = vld [vmem:[#allocation3 + $0x200] ss:$12 sps:$4 sm:$0xff]  }
 0x44e   :  { %9601 = vmatmul.mubr.bf16.gmra.mxu1 %v12773_v30  ;;  %v7215_v55 = vpop.f32.mrf.mxu0 }
 0x44f   :  { %9398 = vmatmul.mubr.bf16.gmra.mxu0 %v12770_v60  ;;  %9610 = vmatprep.mubr.bf16.mxu1 %v15807_v9  ;;  %v14998_v2 = vadd.f32 %v7388_v61, %v7215_v55  ;;  %v7390_v15 = vpop.f32.mrf.mxu1  ;;  %v12788_v61 = vld [vmem:[#allocation3 + $0x1cc] ss:$12 sps:$4 sm:$0xff]  }
 0x450   :  { %9407 = vmatprep.mubr.bf16.mxu0 %v12776_v57  ;;  %9533 = vmatpush1.bf16.msra.mxu0 %v14768_v24  ;;  %v7217_v47 = vpop.f32.mrf.mxu0  ;;  %v12782_v57 = vld [vmem:[#allocation3 + $0x1b0] ss:$12 sps:$4 sm:$0xff]  }
 0x451   :  { %9534 = vmatprep.subr.bf16.mxu0 %v14774_v40  ;;  %v15001_v29 = vadd.f32 %v7390_v15, %v7217_v47  ;;  %v7394_v24 = vpop.f32.mrf.mxu1 }
 0x452   :  { %v7221_v0 = vpop.f32.mrf.mxu0 }
 0x453   :  { %v15004_v40 = vadd.f32 %v7394_v24, %v7221_v0  ;;  %v7396_v12 = vpop.f32.mrf.mxu1  ;;  %v12786_v24 = vld [vmem:[#allocation3 + $0x1c8] ss:$12 sps:$4 sm:$0xff]  }
 0x454   :  { %9535 = vmatpush1.bf16.msra.mxu0 %v14789_v56  ;;  %v7223_v59 = vpop.f32.mrf.mxu0 }
 0x455   :  { %9536 = vmatprep.subr.bf16.mxu0 %v14798_v42  ;;  %v15008_v13 = vadd.f32 %v7396_v12, %v7223_v59  ;;  %v7398_v56 = vpop.f32.mrf.mxu1  ;;  %v12789_v12 = vld [vmem:[#allocation3 + $0x218] ss:$12 sps:$4 sm:$0xff]  }
 0x456   :  { %9611 = vmatmul.mubr.bf16.gmra.mxu1 %v12777_v38  ;;  %v7225_v54 = vpop.f32.mrf.mxu0 }
 0x457   :  { %9408 = vmatmul.mubr.bf16.gmra.mxu0 %v12774_v22  ;;  %9620 = vmatprep.mubr.bf16.mxu1 %v15807_v9  ;;  %v15011_v42 = vadd.f32 %v7398_v56, %v7225_v54  ;;  %v7400_v1 = vpop.f32.mrf.mxu1  ;;  %v12792_v56 = vld [vmem:[#allocation3 + $0x1e4] ss:$12 sps:$4 sm:$0xff]  }
 0x458   :  { %9417 = vmatprep.mubr.bf16.mxu0 %v12780_v7  ;;  %9537 = vmatpush1.bf16.msra.mxu0 %v14807_v58  ;;  %v7227_v20 = vpop.f32.mrf.mxu0 }
 0x459   :  { %9538 = vmatprep.subr.bf16.mxu0 %v14813_v53  ;;  %v15014_v25 = vadd.f32 %v7400_v1, %v7227_v20  ;;  %v7404_v58 = vpop.f32.mrf.mxu1 }
 0x45a   :  { %v7231_v19 = vpop.f32.mrf.mxu0 }
 0x45b   :  { %v15017_v53 = vadd.f32 %v7404_v58, %v7231_v19  ;;  %v7406_v60 = vpop.f32.mrf.mxu1 }
 0x45c   :  { %9539 = vmatpush1.bf16.msra.mxu0 %v14835_v16  ;;  %v7233_v14 = vpop.f32.mrf.mxu0 }
 0x45d   :  { %9540 = vmatprep.subr.bf16.mxu0 %v14840_v62  ;;  %v15021_v51 = vadd.f32 %v7406_v60, %v7233_v14  ;;  %v7408_v16 = vpop.f32.mrf.mxu1  ;;  %v12790_v14 = vld [vmem:[#allocation3 + $0x1e0] ss:$12 sps:$4 sm:$0xff]  }
 0x45e   :  { %9621 = vmatmul.mubr.bf16.gmra.mxu1 %v12781_v5  ;;  %v7235_v30 = vpop.f32.mrf.mxu0 }
 0x45f   :  { %9418 = vmatmul.mubr.bf16.gmra.mxu0 %v12778_v3  ;;  %9630 = vmatprep.mubr.bf16.mxu1 %v15807_v9  ;;  %v15024_v62 = vadd.f32 %v7408_v16, %v7235_v30  ;;  %v7410_v23 = vpop.f32.mrf.mxu1 }
 0x460   :  { %9427 = vmatprep.mubr.bf16.mxu0 %v12784_v45  ;;  %9541 = vmatpush1.bf16.msra.mxu0 %v14852_v63  ;;  %v7237_v33 = vpop.f32.mrf.mxu0 }
 0x461   :  { %9542 = vmatprep.subr.bf16.mxu0 %v14861_v31  ;;  %v15027_v32 = vadd.f32 %v7410_v23, %v7237_v33  ;;  %v7414_v55 = vpop.f32.mrf.mxu1  ;;  %v12796_v33 = vld [vmem:[#allocation3 + $0x1fc] ss:$12 sps:$4 sm:$0xff]  }
 0x462   :  { %v7241_v63 = vpop.f32.mrf.mxu0 }
 0x463   :  { %v15029_v22 = vadd.f32 %v7414_v55, %v7241_v63  ;;  %v7416_v31 = vpop.f32.mrf.mxu1 }
 0x464   :  { %9543 = vmatpush1.bf16.msra.mxu0 %v14870_v39  ;;  %v7243_v15 = vpop.f32.mrf.mxu0 }
 0x465   :  { %v15032_v47 = vadd.f32 %v7416_v31, %v7243_v15  ;;  %v7418_v38 = vpop.f32.mrf.mxu1 }
 0x466   :  { %9631 = vmatmul.mubr.bf16.gmra.mxu1 %v12785_v10  ;;  %v7245_v7 = vpop.f32.mrf.mxu0 }
 0x467   :  { %9428 = vmatmul.mubr.bf16.gmra.mxu0 %v12782_v57  ;;  %9640 = vmatprep.mubr.bf16.mxu1 %v15807_v9  ;;  %v15034_v39 = vadd.f32 %v7418_v38, %v7245_v7  ;;  %v7420_v0 = vpop.f32.mrf.mxu1  ;;  %v12793_v57 = vld [vmem:[#allocation3 + $0x230] ss:$12 sps:$4 sm:$0xff]  }
 0x468   :  { %9437 = vmatprep.mubr.bf16.mxu0 %v12788_v61  ;;  %v7247_v59 = vpop.f32.mrf.mxu0 }
 0x469   :  { %v15036_v54 = vadd.f32 %v7420_v0, %v7247_v59  ;;  %v7424_v3 = vpop.f32.mrf.mxu1  ;;  %v12794_v0 = vld [vmem:[#allocation3 + $0x1f8] ss:$12 sps:$4 sm:$0xff]  }
 0x46a   :  { %v7251_v1 = vpop.f32.mrf.mxu0 }
 0x46b   :  { %v15039_v20 = vadd.f32 %v7424_v3, %v7251_v1  ;;  %v7426_v5 = vpop.f32.mrf.mxu1  ;;  %v12800_v1 = vld [vmem:[#allocation3 + $0x214] ss:$12 sps:$4 sm:$0xff]  }
 0x46c   :  { %v7253_v45 = vpop.f32.mrf.mxu0 }
 0x46d   :  { %v15041_v58 = vadd.f32 %v7426_v5, %v7253_v45  ;;  %v7428_v19 = vpop.f32.mrf.mxu1 }
 0x46e   :  { %9641 = vmatmul.mubr.bf16.gmra.mxu1 %v12789_v12  ;;  %v7255_v60 = vpop.f32.mrf.mxu0 }
 0x46f   :  { %9438 = vmatmul.mubr.bf16.gmra.mxu0 %v12786_v24  ;;  %9650 = vmatprep.mubr.bf16.mxu1 %v15807_v9  ;;  %v15043_v16 = vadd.f32 %v7428_v19, %v7255_v60  ;;  %v7430_v30 = vpop.f32.mrf.mxu1 }
 0x470   :  { %9447 = vmatprep.mubr.bf16.mxu0 %v12792_v56  ;;  %v7257_v23 = vpop.f32.mrf.mxu0  ;;  %v12797_v56 = vld [vmem:[#allocation3 + $0x248] ss:$12 sps:$4 sm:$0xff]  }
 0x471   :  { %v15045_v10 = vadd.f32 %v7430_v30, %v7257_v23  ;;  %v7434_v61 = vpop.f32.mrf.mxu1 }
 0x472   :  { %v7261_v55 = vpop.f32.mrf.mxu0 }
 0x473   :  { %v15048_v63 = vadd.f32 %v7434_v61, %v7261_v55  ;;  %v7436_v31 = vpop.f32.mrf.mxu1  ;;  %v12798_v61 = vld [vmem:[#allocation3 + $0x210] ss:$12 sps:$4 sm:$0xff]  }
 0x474   :  { %v7263_v15 = vpop.f32.mrf.mxu0 }
 0x475   :  { %v15050_v38 = vadd.f32 %v7436_v31, %v7263_v15  ;;  %v7438_v7 = vpop.f32.mrf.mxu1  ;;  %v12801_v15 = vld [vmem:[#allocation3 + $0x260] ss:$12 sps:$4 sm:$0xff]  }
 0x476   :  { %9651 = vmatmul.mubr.bf16.gmra.mxu1 %v12793_v57  ;;  %v7265_v24 = vpop.f32.mrf.mxu0 }
 0x477   :  { %9448 = vmatmul.mubr.bf16.gmra.mxu0 %v12790_v14  ;;  %9660 = vmatprep.mubr.bf16.mxu1 %v15807_v9  ;;  %v15052_v12 = vadd.f32 %v7438_v7, %v7265_v24  ;;  %v7440_v59 = vpop.f32.mrf.mxu1  ;;  %v12804_v24 = vld [vmem:[#allocation3 + $0x22c] ss:$12 sps:$4 sm:$0xff]  }
 0x478   :  { %9457 = vmatprep.mubr.bf16.mxu0 %v12796_v33  ;;  %v7267_v3 = vpop.f32.mrf.mxu0 }
 0x479   :  { %v15054_v5 = vadd.f32 %v7440_v59, %v7267_v3  ;;  %v7444_v45 = vpop.f32.mrf.mxu1 }
 0x47a   :  { %v7271_v19 = vpop.f32.mrf.mxu0 }
 0x47b   :  { %v15057_v60 = vadd.f32 %v7444_v45, %v7271_v19  ;;  %v7446_v14 = vpop.f32.mrf.mxu1 }
 0x47c   :  { %v7273_v30 = vpop.f32.mrf.mxu0 }
 0x47d   :  { %v15059_v57 = vadd.f32 %v7446_v14, %v7273_v30  ;;  %v7448_v23 = vpop.f32.mrf.mxu1 }
 0x47e   :  { %9661 = vmatmul.mubr.bf16.gmra.mxu1 %v12797_v56  ;;  %v7275_v33 = vpop.f32.mrf.mxu0 }
 0x47f   :  { %9458 = vmatmul.mubr.bf16.gmra.mxu0 %v12794_v0  ;;  %9670 = vmatprep.mubr.bf16.mxu1 %v15807_v9  ;;  %v15061_v55 = vadd.f32 %v7448_v23, %v7275_v33  ;;  %v7450_v31 = vpop.f32.mrf.mxu1  ;;  %v12802_v23 = vld [vmem:[#allocation3 + $0x228] ss:$12 sps:$4 sm:$0xff]  }
 0x480   :  { %9467 = vmatprep.mubr.bf16.mxu0 %v12800_v1  ;;  %v7277_v7 = vpop.f32.mrf.mxu0 }
 0x481   :  { %15808 = vst [vmem:[#allocation16_spill] sm:$0xff] %v15061_v55  ;;  %v15063_v0 = vadd.f32 %v7450_v31, %v7277_v7  ;;  %v12805_v7 = vld [vmem:[#allocation3 + $0x278] ss:$12 sps:$4 sm:$0xff]  }
 0x483   :  { %15809 = vst [vmem:[#allocation17_spill] sm:$0xff] %v15063_v0 }
 0x485   :  { %v7281_v56 = vpop.f32.mrf.mxu0 }
 0x486   :  { %v7454_v59 = vpop.f32.mrf.mxu1  ;;  %9671 = vmatmul.mubr.bf16.gmra.mxu1 %v12801_v15  ;;  %v12808_v15 = vld [vmem:[#allocation3 + $0x244] ss:$12 sps:$4 sm:$0xff]  }
 0x487   :  { %9468 = vmatmul.mubr.bf16.gmra.mxu0 %v12798_v61  ;;  %9680 = vmatprep.mubr.bf16.mxu1 %v15807_v9  ;;  %v15066_v3 = vadd.f32 %v7454_v59, %v7281_v56  ;;  %v7283_v45 = vpop.f32.mrf.mxu0 }
 0x488   :  { %9477 = vmatprep.mubr.bf16.mxu0 %v12804_v24  ;;  %v7456_v1 = vpop.f32.mrf.mxu1 }
 0x489   :  { %15810 = vst [vmem:[#allocation18_spill] sm:$0xff] %v15066_v3  ;;  %v15068_v19 = vadd.f32 %v7456_v1, %v7283_v45  ;;  %v7285_v30 = vpop.f32.mrf.mxu0  ;;  %v12806_v3 = vld [vmem:[#allocation3 + $0x240] ss:$12 sps:$4 sm:$0xff]  }
 0x48a   :  { %v7458_v14 = vpop.f32.mrf.mxu1 }
 0x48b   :  { %15811 = vst [vmem:[#allocation19_spill] sm:$0xff] %v15068_v19  ;;  %v15070_v33 = vadd.f32 %v7458_v14, %v7285_v30  ;;  %v7287_v0 = vpop.f32.mrf.mxu0  ;;  %v12818_v30 = vld [vmem:[#allocation3 + $0x290] ss:$12 sps:$4 sm:$0xff]  }
 0x48c   :  { %v7460_v31 = vpop.f32.mrf.mxu1 }
 0x48d   :  { %15812 = vst [vmem:[#allocation20_spill] sm:$0xff] %v15070_v33  ;;  %v15072_v61 = vadd.f32 %v7460_v31, %v7287_v0 }
 0x48e   :  { %v7464_v24 = vpop.f32.mrf.mxu1  ;;  %9681 = vmatmul.mubr.bf16.gmra.mxu1 %v12805_v7  ;;  %v12811_v7 = vld [vmem:[#allocation3 + $0x25c] ss:$12 sps:$4 sm:$0xff]  }
 0x48f   :  { %15813 = vst [vmem:[#allocation21_spill] sm:$0xff] %v15072_v61  ;;  %9478 = vmatmul.mubr.bf16.gmra.mxu0 %v12802_v23  ;;  %v7291_v59 = vpop.f32.mrf.mxu0  ;;  %9690 = vmatprep.mubr.bf16.mxu1 %v15807_v9 }
 0x490   :  { %9487 = vmatprep.mubr.bf16.mxu0 %v12808_v15  ;;  %v15075_v56 = vadd.f32 %v7464_v24, %v7291_v59  ;;  %v7466_v1 = vpop.f32.mrf.mxu1 }
 0x491   :  { %v7293_v45 = vpop.f32.mrf.mxu0 }
 0x492   :  { %15814 = vst [vmem:[#allocation22_spill] sm:$0xff] %v15075_v56  ;;  %v15077_v19 = vadd.f32 %v7466_v1, %v7293_v45  ;;  %v7468_v14 = vpop.f32.mrf.mxu1 }
 0x493   :  { %v7295_v33 = vpop.f32.mrf.mxu0 }
 0x494   :  { %15815 = vst [vmem:[#allocation8_spill] sm:$0xff] %v15077_v19  ;;  %v15079_v55 = vadd.f32 %v7468_v14, %v7295_v33  ;;  %v7470_v0 = vpop.f32.mrf.mxu1 }
 0x495   :  { %v7297_v31 = vpop.f32.mrf.mxu0 }
 0x496   :  { %15816 = vst [vmem:[#allocation23_spill] sm:$0xff] %v15079_v55  ;;  %v15081_v23 = vadd.f32 %v7470_v0, %v7297_v31  ;;  %v8144_v15 = vpop.f32.mrf.mxu1  ;;  %9691 = vmatmul.mubr.bf16.gmra.mxu1 %v12818_v30  ;;  %v12809_v55 = vld [vmem:[#allocation3 + $0x258] ss:$12 sps:$4 sm:$0xff]   ;;  %v12814_v30 = vld [vmem:[#allocation3 + $0x274] ss:$12 sps:$4 sm:$0xff]  }
 0x497   :  { %9488 = vmatmul.mubr.bf16.gmra.mxu0 %v12806_v3  ;;  %v7971_v24 = vpop.f32.mrf.mxu0 }
 0x498   :  { %15817 = vst [vmem:[#allocation24_spill] sm:$0xff] %v15081_v23  ;;  %9497 = vmatprep.mubr.bf16.mxu0 %v12811_v7  ;;  %v7972_v59 = vadd.f32 %v7971_v24, %v14936_v44  ;;  %v8146_v1 = vpop.f32.mrf.mxu1 }
 0x499   :  { %v7973_v45 = vpop.f32.mrf.mxu0 }
 0x49a   :  { %v15084_v19 = vadd.f32 %v8144_v15, %v7972_v59  ;;  %v7974_v56 = vadd.f32 %v7973_v45, %v14940_v8  ;;  %v8148_v33 = vpop.f32.mrf.mxu1 }
 0x49b   :  { %v7975_v14 = vpop.f32.mrf.mxu0 }
 0x49c   :  { %15818 = vst [vmem:[#allocation9_spill] sm:$0xff] %v15084_v19  ;;  %v15087_v61 = vadd.f32 %v8146_v1, %v7974_v56  ;;  %v7976_v0 = vadd.f32 %v7975_v14, %v14942_v46  ;;  %v8150_v31 = vpop.f32.mrf.mxu1 }
 0x49d   :  { %v7977_v3 = vpop.f32.mrf.mxu0 }
 0x49e   :  { %15819 = vst [vmem:[#allocation25_spill] sm:$0xff] %v15087_v61  ;;  %v15090_v23 = vadd.f32 %v8148_v33, %v7976_v0  ;;  %v7978_v44 = vadd.f32 %v7977_v3, %v14944_v36  ;;  %v8154_v7 = vpop.f32.mrf.mxu1  ;;  %v12817_v33 = vld [vmem:[#allocation3 + $0x28c] ss:$12 sps:$4 sm:$0xff]   ;;  %v12812_v0 = vld [vmem:[#allocation3 + $0x270] ss:$12 sps:$4 sm:$0xff]  }
 0x49f   :  { %9498 = vmatmul.mubr.bf16.gmra.mxu0 %v12809_v55  ;;  %v7981_v15 = vpop.f32.mrf.mxu0 }
 0x4a0   :  { %15820 = vst [vmem:[#allocation26_spill] sm:$0xff] %v15090_v23  ;;  %9507 = vmatprep.mubr.bf16.mxu0 %v12814_v30  ;;  %v15093_v24 = vadd.f32 %v8150_v31, %v7978_v44  ;;  %v7982_v8 = vadd.f32 %v7981_v15, %v14947_v35  ;;  %v8156_v59 = vpop.f32.mrf.mxu1 }
 0x4a1   :  { %v7983_v56 = vpop.f32.mrf.mxu0 }
 0x4a2   :  { %15821 = vst [vmem:[#allocation10_spill] sm:$0xff] %v15093_v24  ;;  %v15096_v1 = vadd.f32 %v8154_v7, %v7982_v8  ;;  %v7984_v46 = vadd.f32 %v7983_v56, %v14951_v34  ;;  %v8158_v45 = vpop.f32.mrf.mxu1 }
 0x4a3   :  { %v7985_v14 = vpop.f32.mrf.mxu0 }
 0x4a4   :  { %15822 = vst [vmem:[#allocation11_spill] sm:$0xff] %v15096_v1  ;;  %v15099_v23 = vadd.f32 %v8156_v59, %v7984_v46  ;;  %v7986_v36 = vadd.f32 %v7985_v14, %v14953_v4  ;;  %v8160_v55 = vpop.f32.mrf.mxu1  ;;  %v12815_v46 = vld [vmem:[#allocation3 + $0x288] ss:$12 sps:$4 sm:$0xff]  }
 0x4a5   :  { %v7987_v3 = vpop.f32.mrf.mxu0 }
 0x4a6   :  { %15823 = vst [vmem:[#allocation27_spill] sm:$0xff] %v15099_v23  ;;  %v15102_v31 = vadd.f32 %v8158_v45, %v7986_v36  ;;  %v7988_v35 = vadd.f32 %v7987_v3, %v14955_v17  ;;  %v8164_v30 = vpop.f32.mrf.mxu1 }
 0x4a7   :  { %9508 = vmatmul.mubr.bf16.gmra.mxu0 %v12812_v0  ;;  %v7991_v44 = vpop.f32.mrf.mxu0 }
 0x4a8   :  { %15824 = vst [vmem:[#allocation28_spill] sm:$0xff] %v15102_v31  ;;  %9517 = vmatprep.mubr.bf16.mxu0 %v12817_v33  ;;  %v15105_v7 = vadd.f32 %v8160_v55, %v7988_v35  ;;  %v7992_v34 = vadd.f32 %v7991_v44, %v14958_v27  ;;  %v8166_v15 = vpop.f32.mrf.mxu1 }
 0x4a9   :  { %v7993_v8 = vpop.f32.mrf.mxu0 }
 0x4aa   :  { %15825 = vst [vmem:[#allocation30_spill] sm:$0xff] %v15105_v7  ;;  %v15108_v59 = vadd.f32 %v8164_v30, %v7992_v34  ;;  %v7994_v4 = vadd.f32 %v7993_v8, %v14962_v50  ;;  %v8168_v56 = vpop.f32.mrf.mxu1 }
 0x4ab   :  { %v7995_v45 = vpop.f32.mrf.mxu0 }
 0x4ac   :  { %15826 = vst [vmem:[#allocation29_spill] sm:$0xff] %v15108_v59  ;;  %v15111_v14 = vadd.f32 %v8166_v15, %v7994_v4  ;;  %v7996_v17 = vadd.f32 %v7995_v45, %v14964_v49  ;;  %v8170_v0 = vpop.f32.mrf.mxu1 }
 0x4ad   :  { %v7997_v36 = vpop.f32.mrf.mxu0 }
 0x4ae   :  { %15827 = vst [vmem:[#allocation12_spill] sm:$0xff] %v15111_v14  ;;  %v15114_v33 = vadd.f32 %v8168_v56, %v7996_v17  ;;  %v7998_v55 = vadd.f32 %v7997_v36, %v14966_v41  ;;  %v8174_v27 = vpop.f32.mrf.mxu1 }
 0x4af   :  { %9518 = vmatmul.mubr.bf16.gmra.mxu0 %v12815_v46  ;;  %v8001_v3 = vpop.f32.mrf.mxu0  ;;  %v12819_v46 = vld [vmem:[#allocation3 + $0x158] ss:$12 sps:$4 sm:$0xff]  }
 0x4b0   :  { %15828 = vst [vmem:[#allocation31_spill] sm:$0xff] %v15114_v33  ;;  %9560 = vmatprep.mubr.bf16.mxu0 %v15807_v9  ;;  %v15118_v35 = vadd.f32 %v8170_v0, %v7998_v55  ;;  %v8002_v50 = vadd.f32 %v8001_v3, %v14969_v21  ;;  %v8176_v30 = vpop.f32.mrf.mxu1 }
 0x4b1   :  { %v8003_v44 = vpop.f32.mrf.mxu0 }
 0x4b2   :  { %15829 = vst [vmem:[#allocation32_spill] sm:$0xff] %v15118_v35  ;;  %v15121_v34 = vadd.f32 %v8174_v27, %v8002_v50  ;;  %v8004_v49 = vadd.f32 %v8003_v44, %v14972_v28  ;;  %v8178_v15 = vpop.f32.mrf.mxu1 }
 0x4b3   :  { %v8005_v8 = vpop.f32.mrf.mxu0 }
 0x4b4   :  { %v15124_v4 = vadd.f32 %v8176_v30, %v8004_v49  ;;  %v8006_v41 = vadd.f32 %v8005_v8, %v14974_v48  ;;  %v8180_v56 = vpop.f32.mrf.mxu1  ;;  %v12820_v8 = vld [vmem:[#allocation3 + $0x170] ss:$12 sps:$4 sm:$0xff]  }
 0x4b5   :  { %v8007_v45 = vpop.f32.mrf.mxu0 }
 0x4b6   :  { %v15127_v17 = vadd.f32 %v8178_v15, %v8006_v41  ;;  %v8008_v0 = vadd.f32 %v8007_v45, %v14976_v43  ;;  %v8184_v21 = vpop.f32.mrf.mxu1 }
 0x4b7   :  { %9561 = vmatmul.mubr.bf16.vlgmr.msra.gmra.mxu0 %v12819_v46  ;;  %v8011_v36 = vpop.f32.mrf.mxu0 }
 0x4b8   :  { %9570 = vmatprep.mubr.bf16.mxu0 %v15807_v9  ;;  %v15131_v55 = vadd.f32 %v8180_v56, %v8008_v0  ;;  %v8012_v28 = vadd.f32 %v8011_v36, %v14978_v26  ;;  %v8186_v27 = vpop.f32.mrf.mxu1 }
 0x4b9   :  { %v8013_v3 = vpop.f32.mrf.mxu0 }
 0x4ba   :  { %v15134_v50 = vadd.f32 %v8184_v21, %v8012_v28  ;;  %v8014_v48 = vadd.f32 %v8013_v3, %v14983_v11  ;;  %v8188_v30 = vpop.f32.mrf.mxu1 }
 0x4bb   :  { %v8015_v44 = vpop.f32.mrf.mxu0 }
 0x4bc   :  { %v15137_v49 = vadd.f32 %v8186_v27, %v8014_v48  ;;  %v8016_v43 = vadd.f32 %v8015_v44, %v14985_v52  ;;  %v8190_v15 = vpop.f32.mrf.mxu1  ;;  %v12821_v44 = vld [vmem:[#allocation3 + $0x188] ss:$12 sps:$4 sm:$0xff]  }
 0x4bd   :  { %v8017_v41 = vpop.f32.mrf.mxu0 }
 0x4be   :  { %v15140_v46 = vadd.f32 %v8188_v30, %v8016_v43  ;;  %v8018_v56 = vadd.f32 %v8017_v41, %v14989_v6  ;;  %v8194_v26 = vpop.f32.mrf.mxu1 }
 0x4bf   :  { %9571 = vmatmul.mubr.bf16.gmra.mxu0 %v12820_v8  ;;  %v8021_v45 = vpop.f32.mrf.mxu0 }
 0x4c0   :  { %9580 = vmatprep.mubr.bf16.mxu0 %v15807_v9  ;;  %v15144_v0 = vadd.f32 %v8190_v15, %v8018_v56  ;;  %v8022_v11 = vadd.f32 %v8021_v45, %v14991_v18  ;;  %v8196_v21 = vpop.f32.mrf.mxu1 }
 0x4c1   :  { %v8023_v36 = vpop.f32.mrf.mxu0 }
 0x4c2   :  { %v15147_v28 = vadd.f32 %v8194_v26, %v8022_v11  ;;  %v8024_v52 = vadd.f32 %v8023_v36, %v14995_v37  ;;  %v8198_v27 = vpop.f32.mrf.mxu1 }
 0x4c3   :  { %v8025_v3 = vpop.f32.mrf.mxu0 }
 0x4c4   :  { %v15150_v48 = vadd.f32 %v8196_v21, %v8024_v52  ;;  %v8026_v6 = vadd.f32 %v8025_v3, %v14998_v2  ;;  %v8200_v30 = vpop.f32.mrf.mxu1 }
 0x4c5   :  { %v8027_v43 = vpop.f32.mrf.mxu0 }
 0x4c6   :  { %v15153_v9 = vadd.f32 %v8198_v27, %v8026_v6  ;;  %v8028_v15 = vadd.f32 %v8027_v43, %v15001_v29  ;;  %v8204_v18 = vpop.f32.mrf.mxu1 }
 0x4c7   :  { %9581 = vmatmul.mubr.bf16.gmra.mxu0 %v12821_v44  ;;  %v8031_v8 = vpop.f32.mrf.mxu0 }
 0x4c8   :  { %v15156_v41 = vadd.f32 %v8200_v30, %v8028_v15  ;;  %v8032_v37 = vadd.f32 %v8031_v8, %v15004_v40  ;;  %v8206_v56 = vpop.f32.mrf.mxu1 }
 0x4c9   :  { %v8033_v26 = vpop.f32.mrf.mxu0 }
 0x4ca   :  { %v15159_v45 = vadd.f32 %v8204_v18, %v8032_v37  ;;  %v8034_v2 = vadd.f32 %v8033_v26, %v15008_v13  ;;  %v8208_v11 = vpop.f32.mrf.mxu1 }
 0x4cb   :  { %v8035_v21 = vpop.f32.mrf.mxu0 }
 0x4cc   :  { %v15162_v36 = vadd.f32 %v8206_v56, %v8034_v2  ;;  %v8036_v52 = vadd.f32 %v8035_v21, %v15011_v42  ;;  %v8210_v29 = vpop.f32.mrf.mxu1 }
 0x4cd   :  { %v8037_v27 = vpop.f32.mrf.mxu0 }
 0x4ce   :  { %v15165_v3 = vadd.f32 %v8208_v11, %v8036_v52  ;;  %v8038_v6 = vadd.f32 %v8037_v27, %v15014_v25  ;;  %v8214_v30 = vpop.f32.mrf.mxu1 }
 0x4cf   :  { %v8041_v40 = vpop.f32.mrf.mxu0 }
 0x4d0   :  { %v15168_v44 = vadd.f32 %v8210_v29, %v8038_v6  ;;  %v8042_v43 = vadd.f32 %v8041_v40, %v15017_v53  ;;  %v8216_v15 = vpop.f32.mrf.mxu1 }
 0x4d1   :  { %v8043_v13 = vpop.f32.mrf.mxu0 }
 0x4d2   :  { %v15171_v18 = vadd.f32 %v8214_v30, %v8042_v43  ;;  %v8044_v8 = vadd.f32 %v8043_v13, %v15021_v51  ;;  %v8218_v37 = vpop.f32.mrf.mxu1 }
 0x4d3   :  { %v8045_v42 = vpop.f32.mrf.mxu0 }
 0x4d4   :  { %v15174_v56 = vadd.f32 %v8216_v15, %v8044_v8  ;;  %v8046_v26 = vadd.f32 %v8045_v42, %v15024_v62  ;;  %v8220_v2 = vpop.f32.mrf.mxu1 }
 0x4d5   :  { %v8047_v25 = vpop.f32.mrf.mxu0 }
 0x4d6   :  { %v15177_v11 = vadd.f32 %v8218_v37, %v8046_v26  ;;  %v8048_v21 = vadd.f32 %v8047_v25, %v15027_v32  ;;  %v8224_v52 = vpop.f32.mrf.mxu1 }
 0x4d7   :  { %v8051_v53 = vpop.f32.mrf.mxu0 }
 0x4d8   :  { %v15180_v29 = vadd.f32 %v8220_v2, %v8048_v21  ;;  %v8052_v27 = vadd.f32 %v8051_v53, %v15029_v22  ;;  %v8226_v6 = vpop.f32.mrf.mxu1 }
 0x4d9   :  { %v8053_v51 = vpop.f32.mrf.mxu0 }
 0x4da   :  { %v15183_v30 = vadd.f32 %v8224_v52, %v8052_v27  ;;  %v8054_v40 = vadd.f32 %v8053_v51, %v15032_v47  ;;  %v8228_v43 = vpop.f32.mrf.mxu1 }
 0x4db   :  { %v8055_v62 = vpop.f32.mrf.mxu0 }
 0x4dc   :  { %v15186_v15 = vadd.f32 %v8226_v6, %v8054_v40  ;;  %v8056_v13 = vadd.f32 %v8055_v62, %v15034_v39  ;;  %v8230_v8 = vpop.f32.mrf.mxu1 }
 0x4dd   :  { %v8057_v32 = vpop.f32.mrf.mxu0 }
 0x4de   :  { %v15189_v37 = vadd.f32 %v8228_v43, %v8056_v13  ;;  %v8058_v42 = vadd.f32 %v8057_v32, %v15036_v54  ;;  %v8234_v26 = vpop.f32.mrf.mxu1 }
 0x4df   :  { %v8061_v22 = vpop.f32.mrf.mxu0 }
 0x4e0   :  { %v15192_v2 = vadd.f32 %v8230_v8, %v8058_v42  ;;  %v8062_v25 = vadd.f32 %v8061_v22, %v15039_v20  ;;  %v8236_v21 = vpop.f32.mrf.mxu1 }
 0x4e1   :  { %v8063_v47 = vpop.f32.mrf.mxu0 }
 0x4e2   :  { %v15195_v52 = vadd.f32 %v8234_v26, %v8062_v25  ;;  %v8064_v53 = vadd.f32 %v8063_v47, %v15041_v58  ;;  %v8238_v27 = vpop.f32.mrf.mxu1 }
 0x4e3   :  { %v8065_v39 = vpop.f32.mrf.mxu0 }
 0x4e4   :  { %v15198_v6 = vadd.f32 %v8236_v21, %v8064_v53  ;;  %v8066_v51 = vadd.f32 %v8065_v39, %v15043_v16  ;;  %v8240_v40 = vpop.f32.mrf.mxu1 }
 0x4e5   :  { %v8067_v54 = vpop.f32.mrf.mxu0 }
 0x4e6   :  { %v15201_v43 = vadd.f32 %v8238_v27, %v8066_v51  ;;  %v8068_v62 = vadd.f32 %v8067_v54, %v15045_v10  ;;  %v8244_v13 = vpop.f32.mrf.mxu1 }
 0x4e7   :  { %v8071_v20 = vpop.f32.mrf.mxu0 }
 0x4e8   :  { %v15204_v8 = vadd.f32 %v8240_v40, %v8068_v62  ;;  %v8072_v32 = vadd.f32 %v8071_v20, %v15048_v63  ;;  %v8246_v42 = vpop.f32.mrf.mxu1 }
 0x4e9   :  { %v8073_v58 = vpop.f32.mrf.mxu0 }
 0x4ea   :  { %v15207_v26 = vadd.f32 %v8244_v13, %v8072_v32  ;;  %v8074_v22 = vadd.f32 %v8073_v58, %v15050_v38  ;;  %v8248_v25 = vpop.f32.mrf.mxu1  ;;  %v15830_v58 = vld [vmem:[#allocation16_spill] sm:$0xff] }
 0x4eb   :  { %v8075_v16 = vpop.f32.mrf.mxu0 }
 0x4ec   :  { %v15210_v21 = vadd.f32 %v8246_v42, %v8074_v22  ;;  %v8076_v47 = vadd.f32 %v8075_v16, %v15052_v12  ;;  %v8250_v53 = vpop.f32.mrf.mxu1 }
 0x4ed   :  { %v8077_v10 = vpop.f32.mrf.mxu0 }
 0x4ee   :  { %v15213_v27 = vadd.f32 %v8248_v25, %v8076_v47  ;;  %v8078_v39 = vadd.f32 %v8077_v10, %v15054_v5  ;;  %v8254_v51 = vpop.f32.mrf.mxu1  ;;  %v15831_v47 = vld [vmem:[#allocation17_spill] sm:$0xff] }
 0x4ef   :  { %v8081_v63 = vpop.f32.mrf.mxu0 }
 0x4f0   :  { %v15216_v40 = vadd.f32 %v8250_v53, %v8078_v39  ;;  %v8082_v54 = vadd.f32 %v8081_v63, %v15057_v60  ;;  %v8256_v62 = vpop.f32.mrf.mxu1 }
 0x4f1   :  { %v8083_v38 = vpop.f32.mrf.mxu0 }
 0x4f2   :  { %v15219_v13 = vadd.f32 %v8254_v51, %v8082_v54  ;;  %v8084_v20 = vadd.f32 %v8083_v38, %v15059_v57  ;;  %v8258_v32 = vpop.f32.mrf.mxu1  ;;  %v15832_v51 = vld [vmem:[#allocation18_spill] sm:$0xff] }
 0x4f3   :  { %v8085_v12 = vpop.f32.mrf.mxu0 }
 0x4f4   :  { %v15222_v42 = vadd.f32 %v8256_v62, %v8084_v20  ;;  %v8086_v22 = vadd.f32 %v8085_v12, %v15830_v58  ;;  %v8260_v25 = vpop.f32.mrf.mxu1  ;;  %v15834_v62 = vld [vmem:[#allocation19_spill] sm:$0xff] }
 0x4f5   :  { %v8087_v5 = vpop.f32.mrf.mxu0 }
 0x4f6   :  { %v15225_v16 = vadd.f32 %v8258_v32, %v8086_v22  ;;  %v8088_v53 = vadd.f32 %v8087_v5, %v15831_v47  ;;  %v8264_v10 = vpop.f32.mrf.mxu1  ;;  %v15836_v32 = vld [vmem:[#allocation20_spill] sm:$0xff] }
 0x4f7   :  { %v8091_v60 = vpop.f32.mrf.mxu0 }
 0x4f8   :  { %v15228_v39 = vadd.f32 %v8260_v25, %v8088_v53  ;;  %v8092_v63 = vadd.f32 %v8091_v60, %v15832_v51  ;;  %v8266_v54 = vpop.f32.mrf.mxu1  ;;  %v15838_v25 = vld [vmem:[#allocation21_spill] sm:$0xff] }
 0x4f9   :  { %v8093_v57 = vpop.f32.mrf.mxu0 }
 0x4fa   :  { %v15231_v38 = vadd.f32 %v8264_v10, %v8092_v63  ;;  %v8094_v20 = vadd.f32 %v8093_v57, %v15834_v62  ;;  %v8268_v35 = vpop.f32.mrf.mxu1  ;;  %v15840_v10 = vld [vmem:[#allocation22_spill] sm:$0xff] }
 0x4fb   :  { %v8095_v12 = vpop.f32.mrf.mxu0 }
 0x4fc   :  { %15833 = vst [vmem:[#allocation13_spill] sm:$0xff] %v15231_v38  ;;  %v15234_v58 = vadd.f32 %v8266_v54, %v8094_v20  ;;  %v8096_v22 = vadd.f32 %v8095_v12, %v15836_v32  ;;  %v8270_v33 = vpop.f32.mrf.mxu1  ;;  %v15842_v54 = vld [vmem:[#allocation8_spill] sm:$0xff] }
 0x4fd   :  { %v8097_v5 = vpop.f32.mrf.mxu0 }
 0x4fe   :  { %15835 = vst [vmem:[#allocation36_spill] sm:$0xff] %v15234_v58  ;;  %v15237_v47 = vadd.f32 %v8268_v35, %v8096_v22  ;;  %v8098_v53 = vadd.f32 %v8097_v5, %v15838_v25  ;;  %v8274_v14 = vpop.f32.mrf.mxu1  ;;  %v15844_v35 = vld [vmem:[#allocation23_spill] sm:$0xff] }
 0x4ff   :  { %v8101_v60 = vpop.f32.mrf.mxu0 }
 0x500   :  { %15837 = vst [vmem:[#allocation33_spill] sm:$0xff] %v15237_v47  ;;  %v15240_v51 = vadd.f32 %v8270_v33, %v8098_v53  ;;  %v8102_v63 = vadd.f32 %v8101_v60, %v15840_v10  ;;  %v8276_v59 = vpop.f32.mrf.mxu1  ;;  %v15846_v33 = vld [vmem:[#allocation24_spill] sm:$0xff] }
 0x501   :  { %v8103_v57 = vpop.f32.mrf.mxu0 }
 0x502   :  { %15839 = vst [vmem:[#allocation35_spill] sm:$0xff] %v15240_v51  ;;  %v15243_v62 = vadd.f32 %v8274_v14, %v8102_v63  ;;  %v8104_v20 = vadd.f32 %v8103_v57, %v15842_v54  ;;  %v8278_v7 = vpop.f32.mrf.mxu1 }
 0x503   :  { %v8105_v12 = vpop.f32.mrf.mxu0 }
 0x504   :  { %15841 = vst [vmem:[#allocation34_spill] sm:$0xff] %v15243_v62  ;;  %v15246_v32 = vadd.f32 %v8276_v59, %v8104_v20  ;;  %v8106_v22 = vadd.f32 %v8105_v12, %v15844_v35  ;;  %v8280_v31 = vpop.f32.mrf.mxu1 }
 0x505   :  { %v8107_v5 = vpop.f32.mrf.mxu0 }
 0x506   :  { %15843 = vst [vmem:[#allocation37_spill] sm:$0xff] %v15246_v32  ;;  %v15249_v25 = vadd.f32 %v8278_v7, %v8106_v22  ;;  %v8108_v53 = vadd.f32 %v8107_v5, %v15846_v33  ;;  %v9592_v23 = vpop.f32.mrf.mxu1 }
 0x507   :  { %v15252_v60 = vpop.f32.mrf.mxu0 }
 0x508   :  { %15845 = vst [vmem:[#allocation15_spill] sm:$0xff] %v15249_v25  ;;  %15847 = vst [vmem:[#allocation42_spill] sm:$0xff] %v15252_v60  ;;  %v15254_v10 = vadd.f32 %v8280_v31, %v8108_v53  ;;  %v9594_v14 = vpop.f32.mrf.mxu1 }
 0x509   :  { %v15256_v63 = vpop.f32.mrf.mxu0 }
 0x50a   :  { %15848 = vst [vmem:[#allocation39_spill] sm:$0xff] %v15254_v10  ;;  %15849 = vst [vmem:[#allocation40_spill] sm:$0xff] %v15256_v63  ;;  %v9596_v57 = vpop.f32.mrf.mxu1 }
 0x50b   :  { %v15258_v54 = vpop.f32.mrf.mxu0 }
 0x50c   :  { %15850 = vst [vmem:[#allocation43_spill] sm:$0xff] %v15258_v54  ;;  %v9598_v59 = vpop.f32.mrf.mxu1 }
 0x50d   :  { %v15260_v20 = vpop.f32.mrf.mxu0 }
 0x50e   :  { %15851 = vst [vmem:[#allocation41_spill] sm:$0xff] %v15260_v20  ;;  %v9602_v12 = vpop.f32.mrf.mxu1 }
 0x50f   :  { %v15262_v35 = vpop.f32.mrf.mxu0 }
 0x510   :  { %15852 = vst [vmem:[#allocation16_spill] sm:$0xff] %v15262_v35  ;;  %v9604_v7 = vpop.f32.mrf.mxu1 }
 0x511   :  { %v15264_v22 = vpop.f32.mrf.mxu0 }
 0x512   :  { %15853 = vst [vmem:[#allocation17_spill] sm:$0xff] %v15264_v22  ;;  %v9606_v5 = vpop.f32.mrf.mxu1 }
 0x513   :  { %v15266_v33 = vpop.f32.mrf.mxu0 }
 0x514   :  { %15854 = vst [vmem:[#allocation18_spill] sm:$0xff] %v15266_v33  ;;  %v9608_v31 = vpop.f32.mrf.mxu1 }
 0x515   :  { %v15268_v53 = vpop.f32.mrf.mxu0 }
 0x516   :  { %15855 = vst [vmem:[#allocation19_spill] sm:$0xff] %v15268_v53  ;;  %v9612_v1 = vpop.f32.mrf.mxu1 }
 0x517   :  { %v15270_v24 = vpop.f32.mrf.mxu0 }
 0x518   :  { %15856 = vst [vmem:[#allocation20_spill] sm:$0xff] %v15270_v24  ;;  %v9614_v61 = vpop.f32.mrf.mxu1 }
 0x519   :  { %v15272_v54 = vpop.f32.mrf.mxu0 }
 0x51a   :  { %15857 = vst [vmem:[#allocation21_spill] sm:$0xff] %v15272_v54  ;;  %v9616_v19 = vpop.f32.mrf.mxu1 }
 0x51b   :  { %v15274_v20 = vpop.f32.mrf.mxu0 }
 0x51c   :  { %15858 = vst [vmem:[#allocation22_spill] sm:$0xff] %v15274_v20  ;;  %v9618_v63 = vpop.f32.mrf.mxu1 }
 0x51d   :  { %v15276_v35 = vpop.f32.mrf.mxu0 }
 0x51e   :  { %15859 = vst [vmem:[#allocation8_spill] sm:$0xff] %v15276_v35  ;;  %v9622_v60 = vpop.f32.mrf.mxu1 }
 0x51f   :  { %v9419_v22 = vpop.f32.mrf.mxu0 }
 0x520   :  { %v9593_v10 = vadd.f32 %v9592_v23, %v9419_v22  ;;  %v9624_v25 = vpop.f32.mrf.mxu1 }
 0x521   :  { %v9421_v33 = vpop.f32.mrf.mxu0 }
 0x522   :  { %v15279_v32 = vadd.f32 %v9593_v10, %v15121_v34  ;;  %v9595_v53 = vadd.f32 %v9594_v14, %v9421_v33  ;;  %v9626_v62 = vpop.f32.mrf.mxu1 }
 0x523   :  { %v9423_v24 = vpop.f32.mrf.mxu0 }
 0x524   :  { %15860 = vst [vmem:[#allocation23_spill] sm:$0xff] %v15279_v32  ;;  %v15282_v51 = vadd.f32 %v9595_v53, %v15124_v4  ;;  %v9597_v54 = vadd.f32 %v9596_v57, %v9423_v24  ;;  %v9628_v47 = vpop.f32.mrf.mxu1 }
 0x525   :  { %v9425_v20 = vpop.f32.mrf.mxu0 }
 0x526   :  { %v15285_v58 = vadd.f32 %v9597_v54, %v15127_v17  ;;  %v9599_v35 = vadd.f32 %v9598_v59, %v9425_v20  ;;  %v9632_v38 = vpop.f32.mrf.mxu1 }
 0x527   :  { %v9429_v23 = vpop.f32.mrf.mxu0 }
 0x528   :  { %v15288_v22 = vadd.f32 %v9599_v35, %v15131_v55  ;;  %v9634_v34 = vpop.f32.mrf.mxu1  ;;  %v9603_v10 = vadd.f32 %v9602_v12, %v9429_v23 }
 0x529   :  { %v9431_v14 = vpop.f32.mrf.mxu0 }
 0x52a   :  { %v9605_v33 = vadd.f32 %v9604_v7, %v9431_v14  ;;  %v9636_v32 = vpop.f32.mrf.mxu1  ;;  %v15291_v4 = vadd.f32 %v9603_v10, %v15134_v50 }
 0x52b   :  { %v9433_v24 = vpop.f32.mrf.mxu0 }
 0x52c   :  { %v15294_v57 = vadd.f32 %v9605_v33, %v15137_v49  ;;  %v9607_v17 = vadd.f32 %v9606_v5, %v9433_v24  ;;  %v9638_v54 = vpop.f32.mrf.mxu1 }
 0x52d   :  { %v9435_v59 = vpop.f32.mrf.mxu0 }
 0x52e   :  { %v15297_v20 = vadd.f32 %v9607_v17, %v15140_v46  ;;  %v9609_v55 = vadd.f32 %v9608_v31, %v9435_v59  ;;  %v9642_v35 = vpop.f32.mrf.mxu1 }
 0x52f   :  { %v9439_v53 = vpop.f32.mrf.mxu0 }
 0x530   :  { %v15300_v12 = vadd.f32 %v9609_v55, %v15144_v0  ;;  %v9613_v7 = vadd.f32 %v9612_v1, %v9439_v53  ;;  %v9644_v23 = vpop.f32.mrf.mxu1 }
 0x531   :  { %v9441_v50 = vpop.f32.mrf.mxu0 }
 0x532   :  { %v15303_v10 = vadd.f32 %v9613_v7, %v15147_v28  ;;  %v9646_v49 = vpop.f32.mrf.mxu1  ;;  %v9615_v14 = vadd.f32 %v9614_v61, %v9441_v50 }
 0x533   :  { %v9443_v5 = vpop.f32.mrf.mxu0 }
 0x534   :  { %v9617_v33 = vadd.f32 %v9616_v19, %v9443_v5  ;;  %v9648_v24 = vpop.f32.mrf.mxu1  ;;  %v15306_v46 = vadd.f32 %v9615_v14, %v15150_v48 }
 0x535   :  { %v9445_v31 = vpop.f32.mrf.mxu0 }
 0x536   :  { %v15309_v17 = vadd.f32 %v9617_v33, %v15153_v9  ;;  %v9619_v0 = vadd.f32 %v9618_v63, %v9445_v31  ;;  %v9652_v59 = vpop.f32.mrf.mxu1 }
 0x537   :  { %v9449_v1 = vpop.f32.mrf.mxu0 }
 0x538   :  { %v15312_v55 = vadd.f32 %v9619_v0, %v15156_v41  ;;  %v9623_v28 = vadd.f32 %v9622_v60, %v9449_v1  ;;  %v9654_v53 = vpop.f32.mrf.mxu1 }
 0x539   :  { %v9451_v7 = vpop.f32.mrf.mxu0 }
 0x53a   :  { %v15315_v61 = vadd.f32 %v9623_v28, %v15159_v45  ;;  %v9625_v19 = vadd.f32 %v9624_v25, %v9451_v7  ;;  %v9656_v50 = vpop.f32.mrf.mxu1 }
 0x53b   :  { %v9453_v48 = vpop.f32.mrf.mxu0 }
 0x53c   :  { %v15318_v14 = vadd.f32 %v9625_v19, %v15162_v36  ;;  %v9658_v9 = vpop.f32.mrf.mxu1  ;;  %v9627_v5 = vadd.f32 %v9626_v62, %v9453_v48 }
 0x53d   :  { %v9455_v63 = vpop.f32.mrf.mxu0 }
 0x53e   :  { %v9629_v33 = vadd.f32 %v9628_v47, %v9455_v63  ;;  %v9662_v31 = vpop.f32.mrf.mxu1  ;;  %v15321_v41 = vadd.f32 %v9627_v5, %v15165_v3 }
 0x53f   :  { %v9459_v60 = vpop.f32.mrf.mxu0 }
 0x540   :  { %v15324_v0 = vadd.f32 %v9629_v33, %v15168_v44  ;;  %v9633_v45 = vadd.f32 %v9632_v38, %v9459_v60  ;;  %v9664_v1 = vpop.f32.mrf.mxu1 }
 0x541   :  { %v9461_v25 = vpop.f32.mrf.mxu0 }
 0x542   :  { %v15327_v28 = vadd.f32 %v9633_v45, %v15171_v18  ;;  %v9635_v36 = vadd.f32 %v9634_v34, %v9461_v25  ;;  %v9666_v7 = vpop.f32.mrf.mxu1 }
 0x543   :  { %v9463_v19 = vpop.f32.mrf.mxu0 }
 0x544   :  { %v15330_v62 = vadd.f32 %v9635_v36, %v15174_v56  ;;  %v9637_v47 = vadd.f32 %v9636_v32, %v9463_v19  ;;  %v9668_v48 = vpop.f32.mrf.mxu1 }
 0x545   :  { %v9465_v3 = vpop.f32.mrf.mxu0 }
 0x546   :  { %v15333_v5 = vadd.f32 %v9637_v47, %v15177_v11  ;;  %v9639_v44 = vadd.f32 %v9638_v54, %v9465_v3  ;;  %v9672_v18 = vpop.f32.mrf.mxu1 }
 0x547   :  { %v9469_v63 = vpop.f32.mrf.mxu0 }
 0x548   :  { %v9643_v38 = vadd.f32 %v9642_v35, %v9469_v63  ;;  %v15336_v33 = vadd.f32 %v9639_v44, %v15180_v29  ;;  %v9674_v36 = vpop.f32.mrf.mxu1 }
 0x549   :  { %v9471_v60 = vpop.f32.mrf.mxu0 }
 0x54a   :  { %v15339_v34 = vadd.f32 %v9643_v38, %v15183_v30  ;;  %v9645_v45 = vadd.f32 %v9644_v23, %v9471_v60  ;;  %v9676_v47 = vpop.f32.mrf.mxu1 }
 0x54b   :  { %v9473_v56 = vpop.f32.mrf.mxu0 }
 0x54c   :  { %v15342_v32 = vadd.f32 %v9645_v45, %v15186_v15  ;;  %v9647_v25 = vadd.f32 %v9646_v49, %v9473_v56  ;;  %v9678_v38 = vpop.f32.mrf.mxu1 }
 0x54d   :  { %v9475_v11 = vpop.f32.mrf.mxu0 }
 0x54e   :  { %v15345_v54 = vadd.f32 %v9647_v25, %v15189_v37  ;;  %v9649_v35 = vadd.f32 %v9648_v24, %v9475_v11 }
 0x54f   :  { %v9479_v19 = vpop.f32.mrf.mxu0 }
 0x550   :  { %v15348_v29 = vadd.f32 %v9649_v35, %v15192_v2  ;;  %v9653_v3 = vadd.f32 %v9652_v59, %v9479_v19 }
 0x551   :  { %v9481_v30 = vpop.f32.mrf.mxu0 }
 0x552   :  { %v9655_v44 = vadd.f32 %v9654_v53, %v9481_v30  ;;  %v15351_v23 = vadd.f32 %v9653_v3, %v15195_v52  ;;  %v9682_v53 = vpop.f32.mrf.mxu1 }
 0x553   :  { %v9483_v15 = vpop.f32.mrf.mxu0 }
 0x554   :  { %v15354_v49 = vadd.f32 %v9655_v44, %v15198_v6  ;;  %v9657_v63 = vadd.f32 %v9656_v50, %v9483_v15  ;;  %v9684_v50 = vpop.f32.mrf.mxu1 }
 0x555   :  { %v9485_v37 = vpop.f32.mrf.mxu0 }
 0x556   :  { %v15357_v24 = vadd.f32 %v9657_v63, %v15201_v43  ;;  %v9659_v60 = vadd.f32 %v9658_v9, %v9485_v37  ;;  %v9686_v30 = vpop.f32.mrf.mxu1 }
 0x557   :  { %v9489_v2 = vpop.f32.mrf.mxu0 }
 0x558   :  { %v15360_v45 = vadd.f32 %v9659_v60, %v15204_v8  ;;  %v9663_v59 = vadd.f32 %v9662_v31, %v9489_v2  ;;  %v9688_v15 = vpop.f32.mrf.mxu1 }
 0x559   :  { %v9491_v56 = vpop.f32.mrf.mxu0 }
 0x55a   :  { %v15363_v52 = vadd.f32 %v9663_v59, %v15207_v26  ;;  %v9665_v25 = vadd.f32 %v9664_v1, %v9491_v56  ;;  %v9692_v60 = vpop.f32.mrf.mxu1  ;;  %v15861_v59 = vld [vmem:[#allocation13_spill] sm:$0xff] }
 0x55b   :  { %v9493_v6 = vpop.f32.mrf.mxu0 }
 0x55c   :  { %v9667_v11 = vadd.f32 %v9666_v7, %v9493_v6  ;;  %v15366_v35 = vadd.f32 %v9665_v25, %v15210_v21  ;;  %v9694_v25 = vpop.f32.mrf.mxu1  ;;  %v15862_v6 = vld [vmem:[#allocation36_spill] sm:$0xff] }
 0x55d   :  { %v9495_v43 = vpop.f32.mrf.mxu0 }
 0x55e   :  { %v15369_v9 = vadd.f32 %v9667_v11, %v15213_v27  ;;  %v9669_v19 = vadd.f32 %v9668_v48, %v9495_v43 }
 0x55f   :  { %v9499_v8 = vpop.f32.mrf.mxu0 }
 0x560   :  { %v15372_v31 = vadd.f32 %v9669_v19, %v15216_v40  ;;  %v9673_v3 = vadd.f32 %v9672_v18, %v9499_v8 }
 0x561   :  { %v9501_v26 = vpop.f32.mrf.mxu0 }
 0x562   :  { %v15375_v1 = vadd.f32 %v9673_v3, %v15219_v13  ;;  %v9675_v7 = vadd.f32 %v9674_v36, %v9501_v26 }
 0x563   :  { %v9503_v44 = vpop.f32.mrf.mxu0 }
 0x564   :  { %v15378_v21 = vadd.f32 %v9675_v7, %v15222_v42  ;;  %v9677_v63 = vadd.f32 %v9676_v47, %v9503_v44  ;;  %v15868_v44 = vld [vmem:[#allocation34_spill] sm:$0xff] }
 0x565   :  { %v9505_v27 = vpop.f32.mrf.mxu0 }
 0x566   :  { %v9679_v37 = vadd.f32 %v9678_v38, %v9505_v27  ;;  %v15381_v48 = vadd.f32 %v9677_v63, %v15225_v16  ;;  %v15864_v16 = vld [vmem:[#allocation33_spill] sm:$0xff] }
 0x567   :  { %v9509_v40 = vpop.f32.mrf.mxu0 }
 0x568   :  { %v15384_v18 = vadd.f32 %v9679_v37, %v15228_v39  ;;  %v9683_v2 = vadd.f32 %v9682_v53, %v9509_v40  ;;  %v9696_v39 = vpop.f32.mrf.mxu1  ;;  %v15866_v53 = vld [vmem:[#allocation35_spill] sm:$0xff]  ;;  %v15870_v40 = vld [vmem:[#allocation37_spill] sm:$0xff] }
 0x569   :  { %v9511_v13 = vpop.f32.mrf.mxu0 }
 0x56a   :  { %v15387_v36 = vadd.f32 %v9683_v2, %v15861_v59  ;;  %v9685_v56 = vadd.f32 %v9684_v50, %v9511_v13  ;;  %v9698_v37 = vpop.f32.mrf.mxu1  ;;  %v15872_v59 = vld [vmem:[#allocation15_spill] sm:$0xff] }
 0x56b   :  { %v9513_v42 = vpop.f32.mrf.mxu0 }
 0x56c   :  { %v15390_v47 = vadd.f32 %v9685_v56, %v15862_v6  ;;  %v9687_v38 = vadd.f32 %v9686_v30, %v9513_v42  ;;  %v9757_v42 = vld [vmem:[%s15722_s4] sm:$0x3] }
 0x56d   :  { %v9515_v11 = vpop.f32.mrf.mxu0  ;;  %v15874_v6 = vld [vmem:[#allocation39_spill] sm:$0xff] }
 0x56e   :  { %15863 = vst [vmem:[#allocation24_spill] sm:$0xff] %v15390_v47  ;;  %v15393_v43 = vadd.f32 %v9687_v38, %v15864_v16  ;;  %v9689_v19 = vadd.f32 %v9688_v15, %v9515_v11 }
 0x56f   :  { %v9519_v8 = vpop.f32.mrf.mxu0 }
 0x570   :  { %15865 = vst [vmem:[#allocation13_spill] sm:$0xff] %v15393_v43  ;;  %v9693_v3 = vadd.f32 %v9692_v60, %v9519_v8  ;;  %v15396_v26 = vadd.f32 %v9689_v19, %v15866_v53  ;;  %v15877_v19 = vld [vmem:[#allocation40_spill] sm:$0xff]  ;;  %v15879_v53 = vld [vmem:[#allocation9_spill] sm:$0xff] }
 0x571   :  { %v9521_v7 = vpop.f32.mrf.mxu0  ;;  %v15892_v43 = vld [vmem:[#allocation28_spill] sm:$0xff] }
 0x572   :  { %15867 = vst [vmem:[#allocation36_spill] sm:$0xff] %v15396_v26  ;;  %v15399_v50 = vadd.f32 %v9693_v3, %v15868_v44  ;;  %v9695_v63 = vadd.f32 %v9694_v25, %v9521_v7  ;;  %v15876_v25 = vld [vmem:[#allocation42_spill] sm:$0xff] }
 0x573   :  { %v9523_v27 = vpop.f32.mrf.mxu0  ;;  %v15878_v3 = vld [vmem:[#allocation14_spill] sm:$0xff] }
 0x574   :  { %15869 = vst [vmem:[#allocation33_spill] sm:$0xff] %v15399_v50  ;;  %v15402_v30 = vadd.f32 %v9695_v63, %v15870_v40  ;;  %v9697_v2 = vadd.f32 %v9696_v39, %v9523_v27  ;;  %v15416_v39 = vrot.slane %v9757_v42, %v15878_v3  ;;  %v15880_v63 = vld [vmem:[#allocation38_spill] sm:$0xff]  ;;  %v15882_v40 = vld [vmem:[#allocation25_spill] sm:$0xff] }
 0x575   :  { %v9525_v13 = vpop.f32.mrf.mxu0  ;;  %v15881_v27 = vsub.s32 1, %v15880_v63 }
 0x576   :  { %15871 = vst [vmem:[#allocation35_spill] sm:$0xff] %v15402_v30  ;;  %v15405_v15 = vadd.f32 %v9697_v2, %v15872_v59  ;;  %v9699_v56 = vadd.f32 %v9698_v37, %v9525_v13  ;;  %v15883_v13 = vld [vmem:[#allocation43_spill] sm:$0xff] }
 0x577   :  { %v9562_v60 = vpop.f32.mrf.mxu0  ;;  %v15421_v37 = vrot.slane %v9757_v42, %v15881_v27  ;;  %v9881_v42 = vld [vmem:[%s15723_s5] sm:$0xff] }
 0x578   :  { %15873 = vst [vmem:[#allocation34_spill] sm:$0xff] %v15405_v15  ;;  %v15411_v38 = vadd.f32 %v9699_v56, %v15874_v6  ;;  %v9563_v11 = vadd.f32 %v9562_v60, %v15876_v25  ;;  %v15884_v25 = vld [vmem:[#allocation26_spill] sm:$0xff] }
 0x579   :  { %v9564_v16 = vpop.f32.mrf.mxu0  ;;  %v15890_v15 = vld [vmem:[#allocation18_spill] sm:$0xff] }
 0x57a   :  { %15875 = vst [vmem:[#allocation37_spill] sm:$0xff] %v15411_v38  ;;  %v9565_v8 = vadd.f32 %v9564_v16, %v15877_v19  ;;  %v9701_v7 = vadd.f32 %v9563_v11, %v15879_v53  ;;  %v15885_v19 = vld [vmem:[#allocation41_spill] sm:$0xff] }
 0x57b   :  { %v9566_v44 = vpop.f32.mrf.mxu0 }
 0x57c   :  { %v9702_v2 = vadd.f32 %v9565_v8, %v15882_v40  ;;  %v9567_v59 = vadd.f32 %v9566_v44, %v15883_v13  ;;  %v9769_v56 = vadd.f32 %v15416_v39, %v9701_v7  ;;  %v15886_v8 = vld [vmem:[#allocation10_spill] sm:$0xff]  ;;  %v15887_v44 = vld [vmem:[#allocation16_spill] sm:$0xff] }
 0x57d   :  { %v9568_v60 = vpop.f32.mrf.mxu0  ;;  %v9883_v40 = vld [vmem:[%s15723_s5 + $0x10] sm:$0xff]  ;;  %v9882_v13 = vld [vmem:[%s15723_s5 + $0x8] sm:$0xff] }
 0x57e   :  { %v9770_v6 = vadd.f32 %v15421_v37, %v9702_v2  ;;  %v9703_v16 = vadd.f32 %v9567_v59, %v15884_v25  ;;  %v9569_v3 = vadd.f32 %v9568_v60, %v15885_v19  ;;  %v9825_v38 = vmax.f32 %v9769_v56, 0.0  ;;  %v15888_v60 = vld [vmem:[#allocation11_spill] sm:$0xff] }
 0x57f   :  { %v9572_v11 = vpop.f32.mrf.mxu0 }
 0x580   :  { %v9771_v53 = vadd.f32 %v15416_v39, %v9703_v16  ;;  %v9704_v63 = vadd.f32 %v9569_v3, %v15886_v8  ;;  %v9573_v27 = vadd.f32 %v9572_v11, %v15887_v44  ;;  %v9826_v7 = vmax.f32 %v9770_v6, 0.0  ;;  %v9884_v3 = vld [vmem:[%s15723_s5 + $0x18] sm:$0xff]  ;;  %v15889_v6 = vld [vmem:[#allocation17_spill] sm:$0xff] }
 0x581   :  { %v9574_v2 = vpop.f32.mrf.mxu0  ;;  %v9937_v16 = vmul.f32 %v9881_v42, %v9825_v38 }
 0x582   :  { %v9827_v59 = vmax.f32 %v9771_v53, 0.0  ;;  %v9772_v56 = vadd.f32 %v15421_v37, %v9704_v63  ;;  %v9705_v25 = vadd.f32 %v9573_v27, %v15888_v60  ;;  %v9575_v19 = vadd.f32 %v9574_v2, %v15889_v6  ;;  %v9885_v53 = vld [vmem:[%s15723_s5 + $0x20] sm:$0xff] }
 0x583   :  { %v9576_v11 = vpop.f32.mrf.mxu0  ;;  %v9938_v50 = vmul.f32 %v9882_v13, %v9826_v7  ;;  %v15891_v63 = vld [vmem:[#allocation27_spill] sm:$0xff]  ;;  %v9886_v7 = vld [vmem:[%s15723_s5 + $0x28] sm:$0xff] }
 0x584   :  { %v9939_v8 = vmul.f32 %v9883_v40, %v9827_v59  ;;  %v9828_v44 = vmax.f32 %v9772_v56, 0.0  ;;  %v9773_v30 = vadd.f32 %v15416_v39, %v9705_v25  ;;  %v9577_v26 = vadd.f32 %v9576_v11, %v15890_v15  ;;  %v15893_v59 = vld [vmem:[#allocation19_spill] sm:$0xff] }
 0x585   :  { %v9706_v38 = vadd.f32 %v9575_v19, %v15891_v63  ;;  %v9578_v42 = vpop.f32.mrf.mxu0  ;;  %v15894_v19 = vld [vmem:[#allocation20_spill] sm:$0xff] }
 0x586   :  { %v9993_v27 = vadd.f32 %v9939_v8, %v9937_v16  ;;  %v9940_v60 = vmul.f32 %v9884_v3, %v9828_v44  ;;  %v9829_v47 = vmax.f32 %v9773_v30, 0.0  ;;  %v9707_v2 = vadd.f32 %v9577_v26, %v15892_v43  ;;  %v9887_v43 = vld [vmem:[%s15723_s5 + $0x30] sm:$0xff] }
 0x587   :  { %v9774_v40 = vadd.f32 %v15421_v37, %v9706_v38  ;;  %v9579_v56 = vadd.f32 %v9578_v42, %v15893_v59  ;;  %v9582_v25 = vpop.f32.mrf.mxu0  ;;  %v15895_v26 = vld [vmem:[#allocation30_spill] sm:$0xff] }
 0x588   :  { %v10026_v6 = vadd.f32 %v9940_v60, %v9938_v50  ;;  %v9941_v15 = vmul.f32 %v9885_v53, %v9829_v47  ;;  %v9775_v13 = vadd.f32 %v15416_v39, %v9707_v2  ;;  %v9583_v11 = vadd.f32 %v9582_v25, %v15894_v19  ;;  %v15896_v50 = vld [vmem:[#allocation29_spill] sm:$0xff]  ;;  %v15898_v25 = vld [vmem:[#allocation12_spill] sm:$0xff]  ;;  %v15899_v19 = vld [vmem:[#allocation22_spill] sm:$0xff] }
 0x589   :  { %v9830_v16 = vmax.f32 %v9774_v40, 0.0  ;;  %v9708_v30 = vadd.f32 %v9579_v56, %v15895_v26  ;;  %v9584_v3 = vpop.f32.mrf.mxu0  ;;  %v15897_v53 = vld [vmem:[#allocation21_spill] sm:$0xff]  ;;  %v9888_v40 = vld [vmem:[%s15723_s5 + $0x38] sm:$0xff] }
 0x58a   :  { %v9994_v8 = vadd.f32 %v9993_v27, %v9941_v15  ;;  %v9831_v44 = vmax.f32 %v9775_v13, 0.0  ;;  %v9709_v47 = vadd.f32 %v9583_v11, %v15896_v50  ;;  %v9585_v63 = vadd.f32 %v9584_v3, %v15897_v53  ;;  %v15900_v15 = vld [vmem:[#allocation23_spill] sm:$0xff]  ;;  %v9890_v53 = vld [vmem:[%s15723_s5 + $0x48] sm:$0xff] }
 0x58b   :  { %v9942_v38 = vmul.f32 %v9886_v7, %v9830_v16  ;;  %v9776_v42 = vadd.f32 %v15421_v37, %v9708_v30  ;;  %v9586_v60 = vpop.f32.mrf.mxu0  ;;  %v9781_v13 = vadd.f32 %v15416_v39, %v15900_v15  ;;  %v9889_v7 = vld [vmem:[%s15723_s5 + $0x40] sm:$0xff] }
 0x58c   :  { %v9943_v2 = vmul.f32 %v9887_v43, %v9831_v44  ;;  %v9777_v59 = vadd.f32 %v15416_v39, %v9709_v47  ;;  %v9710_v56 = vadd.f32 %v9585_v63, %v15898_v25  ;;  %v9587_v27 = vadd.f32 %v9586_v60, %v15899_v19  ;;  %v15901_v44 = vld [vmem:[#allocation31_spill] sm:$0xff]  ;;  %v15902_v63 = vld [vmem:[#allocation8_spill] sm:$0xff] }
 0x58d   :  { %v10027_v11 = vadd.f32 %v10026_v6, %v9942_v38  ;;  %v9832_v26 = vmax.f32 %v9776_v42, 0.0  ;;  %v9588_v16 = vpop.f32.mrf.mxu0  ;;  %v9783_v6 = vadd.f32 %v15416_v39, %v15285_v58 }
 0x58e   :  { %v9995_v43 = vadd.f32 %v9994_v8, %v9943_v2  ;;  %v9833_v30 = vmax.f32 %v9777_v59, 0.0  ;;  %v9778_v3 = vadd.f32 %v15421_v37, %v9710_v56  ;;  %v9711_v50 = vadd.f32 %v9587_v27, %v15901_v44  ;;  %v15903_v56 = vld [vmem:[#allocation32_spill] sm:$0xff]  ;;  %v9895_v44 = vld [vmem:[%s15723_s5 + $0x70] sm:$0xff] }
 0x58f   :  { %v9944_v47 = vmul.f32 %v9888_v40, %v9832_v26  ;;  %v9589_v60 = vadd.f32 %v9588_v16, %v15902_v63  ;;  %v9837_v8 = vmax.f32 %v9781_v13, 0.0  ;;  %v9782_v2 = vadd.f32 %v15421_v37, %v15282_v51  ;;  %v9891_v40 = vld [vmem:[%s15723_s5 + $0x50] sm:$0xff]  ;;  %v9893_v13 = vld [vmem:[%s15723_s5 + $0x60] sm:$0xff] }
 0x590   :  { %v9945_v38 = vmul.f32 %v9889_v7, %v9833_v30  ;;  %v9834_v42 = vmax.f32 %v9778_v3, 0.0  ;;  %v9779_v25 = vadd.f32 %v15416_v39, %v9711_v50  ;;  %v9785_v27 = vadd.f32 %v15416_v39, %v15291_v4  ;;  %v9892_v4 = vld [vmem:[%s15723_s5 + $0x58] sm:$0xff] }
 0x591   :  { %v10028_v59 = vadd.f32 %v10027_v11, %v9944_v47  ;;  %v9712_v19 = vadd.f32 %v9589_v60, %v15903_v56  ;;  %v9784_v51 = vadd.f32 %v15421_v37, %v15288_v22  ;;  %v9839_v7 = vmax.f32 %v9783_v6, 0.0 }
 0x592   :  { %v9996_v15 = vadd.f32 %v9995_v43, %v9945_v38  ;;  %v9946_v58 = vmul.f32 %v9890_v53, %v9834_v42  ;;  %v9835_v26 = vmax.f32 %v9779_v25, 0.0  ;;  %v9787_v16 = vadd.f32 %v15416_v39, %v15297_v20  ;;  %v9894_v20 = vld [vmem:[%s15723_s5 + $0x68] sm:$0xff]  ;;  %v9897_v38 = vld [vmem:[%s15723_s5 + $0x80] sm:$0xff] }
 0x593   :  { %v9780_v11 = vadd.f32 %v15421_v37, %v9712_v19  ;;  %v9838_v43 = vmax.f32 %v9782_v2, 0.0  ;;  %v9786_v22 = vadd.f32 %v15421_v37, %v15294_v57  ;;  %v9949_v47 = vmul.f32 %v9893_v13, %v9837_v8  ;;  %v9896_v8 = vld [vmem:[%s15723_s5 + $0x78] sm:$0xff]  ;;  %v9899_v19 = vld [vmem:[%s15723_s5 + $0x90] sm:$0xff] }
 0x594   :  { %v10029_v30 = vadd.f32 %v10028_v59, %v9946_v58  ;;  %v9947_v3 = vmul.f32 %v9891_v40, %v9835_v26  ;;  %v9841_v53 = vmax.f32 %v9785_v27, 0.0  ;;  %v9789_v63 = vadd.f32 %v15416_v39, %v15303_v10  ;;  %v9898_v58 = vld [vmem:[%s15723_s5 + $0x88] sm:$0xff] }
 0x595   :  { %v9836_v50 = vmax.f32 %v9780_v11, 0.0  ;;  %v9840_v6 = vmax.f32 %v9784_v51, 0.0  ;;  %v9788_v42 = vadd.f32 %v15421_v37, %v15300_v12  ;;  %v9951_v25 = vmul.f32 %v9895_v44, %v9839_v7  ;;  %v9901_v7 = vld [vmem:[%s15723_s5 + $0xa0] sm:$0xff] }
 0x596   :  { %v9997_v60 = vadd.f32 %v9996_v15, %v9947_v3  ;;  %v9843_v2 = vmax.f32 %v9787_v16, 0.0  ;;  %v9791_v59 = vadd.f32 %v15416_v39, %v15309_v17  ;;  %v9950_v40 = vmul.f32 %v9894_v20, %v9838_v43  ;;  %v9900_v3 = vld [vmem:[%s15723_s5 + $0x98] sm:$0xff] }
 0x597   :  { %v9948_v57 = vmul.f32 %v9892_v4, %v9836_v50  ;;  %v9842_v56 = vmax.f32 %v9786_v22, 0.0  ;;  %v9790_v12 = vadd.f32 %v15421_v37, %v15306_v46  ;;  %v9953_v15 = vmul.f32 %v9897_v38, %v9841_v53  ;;  %v9903_v50 = vld [vmem:[%s15723_s5 + $0xb0] sm:$0xff]  ;;  %v9902_v53 = vld [vmem:[%s15723_s5 + $0xa8] sm:$0xff] }
 0x598   :  { %v9998_v10 = vadd.f32 %v9997_v60, %v9949_v47  ;;  %v9845_v26 = vmax.f32 %v9789_v63, 0.0  ;;  %v9793_v17 = vadd.f32 %v15416_v39, %v15315_v61  ;;  %v9952_v51 = vmul.f32 %v9896_v8, %v9840_v6  ;;  %v9904_v8 = vld [vmem:[%s15723_s5 + $0xb8] sm:$0xff] }
 0x599   :  { %v10030_v27 = vadd.f32 %v10029_v30, %v9948_v57  ;;  %v9844_v11 = vmax.f32 %v9788_v42, 0.0  ;;  %v9792_v46 = vadd.f32 %v15421_v37, %v15312_v55  ;;  %v9955_v30 = vmul.f32 %v9899_v19, %v9843_v2  ;;  %v9905_v42 = vld [vmem:[%s15723_s5 + $0xc0] sm:$0xff] }
 0x59a   :  { %v9999_v13 = vadd.f32 %v9998_v10, %v9951_v25  ;;  %v9847_v4 = vmax.f32 %v9791_v59, 0.0  ;;  %v9795_v61 = vadd.f32 %v15416_v39, %v15321_v41  ;;  %v9954_v44 = vmul.f32 %v9898_v58, %v9842_v56  ;;  %v9907_v56 = vld [vmem:[%s15723_s5 + $0xd0] sm:$0xff] }
 0x59b   :  { %v10031_v16 = vadd.f32 %v10030_v27, %v9950_v40  ;;  %v9846_v22 = vmax.f32 %v9790_v12, 0.0  ;;  %v9794_v55 = vadd.f32 %v15421_v37, %v15318_v14  ;;  %v9957_v20 = vmul.f32 %v9901_v7, %v9845_v26  ;;  %v9906_v27 = vld [vmem:[%s15723_s5 + $0xc8] sm:$0xff]  ;;  %v9908_v7 = vld [vmem:[%s15723_s5 + $0xd8] sm:$0xff] }
 0x59c   :  { %v10000_v43 = vadd.f32 %v9999_v13, %v9953_v15  ;;  %v9849_v63 = vmax.f32 %v9793_v17, 0.0  ;;  %v9797_v41 = vadd.f32 %v15416_v39, %v15327_v28  ;;  %v9956_v6 = vmul.f32 %v9900_v3, %v9844_v11  ;;  %v9909_v13 = vld [vmem:[%s15723_s5 + $0xe0] sm:$0xff] }
 0x59d   :  { %v10032_v47 = vadd.f32 %v10031_v16, %v9952_v51  ;;  %v9848_v38 = vmax.f32 %v9792_v46, 0.0  ;;  %v9796_v14 = vadd.f32 %v15421_v37, %v15324_v0  ;;  %v9959_v25 = vmul.f32 %v9903_v50, %v9847_v4  ;;  %v9911_v4 = vld [vmem:[%s15723_s5 + $0xf0] sm:$0xff] }
 0x59e   :  { %v10001_v60 = vadd.f32 %v10000_v43, %v9955_v30  ;;  %v9851_v2 = vmax.f32 %v9795_v61, 0.0  ;;  %v9799_v28 = vadd.f32 %v15416_v39, %v15333_v5  ;;  %v9958_v10 = vmul.f32 %v9902_v53, %v9846_v22 }
 0x59f   :  { %v10033_v57 = vadd.f32 %v10032_v47, %v9954_v44  ;;  %v9850_v40 = vmax.f32 %v9794_v55, 0.0  ;;  %v9798_v0 = vadd.f32 %v15421_v37, %v15330_v62  ;;  %v9961_v12 = vmul.f32 %v9905_v42, %v9849_v63  ;;  %v9910_v44 = vld [vmem:[%s15723_s5 + $0xe8] sm:$0xff] }
 0x5a0   :  { %v10002_v59 = vadd.f32 %v10001_v60, %v9957_v20  ;;  %v9853_v15 = vmax.f32 %v9797_v41, 0.0  ;;  %v9801_v5 = vadd.f32 %v15416_v39, %v15339_v34  ;;  %v9960_v26 = vmul.f32 %v9904_v8, %v9848_v38  ;;  %v9913_v20 = vld [vmem:[%s15723_s5 + $0x100] sm:$0xff]  ;;  %v9912_v41 = vld [vmem:[%s15723_s5 + $0xf8] sm:$0xff]  ;;  %v9914_v8 = vld [vmem:[%s15723_s5 + $0x108] sm:$0xff] }
 0x5a1   :  { %v10034_v19 = vadd.f32 %v10033_v57, %v9956_v6  ;;  %v9852_v17 = vmax.f32 %v9796_v14, 0.0  ;;  %v9800_v62 = vadd.f32 %v15421_v37, %v15336_v33  ;;  %v9963_v11 = vmul.f32 %v9907_v56, %v9851_v2  ;;  %v9915_v14 = vld [vmem:[%s15723_s5 + $0x110] sm:$0xff] }
 0x5a2   :  { %v10003_v58 = vadd.f32 %v10002_v59, %v9959_v25  ;;  %v9855_v46 = vmax.f32 %v9799_v28, 0.0  ;;  %v9803_v34 = vadd.f32 %v15416_v39, %v15345_v54  ;;  %v9962_v30 = vmul.f32 %v9906_v27, %v9850_v40  ;;  %v9917_v40 = vld [vmem:[%s15723_s5 + $0x120] sm:$0xff] }
 0x5a3   :  { %v10035_v51 = vadd.f32 %v10034_v19, %v9958_v10  ;;  %v9854_v3 = vmax.f32 %v9798_v0, 0.0  ;;  %v9802_v33 = vadd.f32 %v15421_v37, %v15342_v32  ;;  %v9965_v43 = vmul.f32 %v9909_v13, %v9853_v15  ;;  %v9916_v19 = vld [vmem:[%s15723_s5 + $0x118] sm:$0xff]  ;;  %v9918_v13 = vld [vmem:[%s15723_s5 + $0x128] sm:$0xff] }
 0x5a4   :  { %v10004_v16 = vadd.f32 %v10003_v58, %v9961_v12  ;;  %v9857_v22 = vmax.f32 %v9801_v5, 0.0  ;;  %v9805_v54 = vadd.f32 %v15416_v39, %v15351_v23  ;;  %v9964_v55 = vmul.f32 %v9908_v7, %v9852_v17  ;;  %v9919_v58 = vld [vmem:[%s15723_s5 + $0x130] sm:$0xff] }
 0x5a5   :  { %v10036_v61 = vadd.f32 %v10035_v51, %v9960_v26  ;;  %v9856_v47 = vmax.f32 %v9800_v62, 0.0  ;;  %v9804_v32 = vadd.f32 %v15421_v37, %v15348_v29  ;;  %v9967_v63 = vmul.f32 %v9911_v4, %v9855_v46  ;;  %v9921_v46 = vld [vmem:[%s15723_s5 + $0x140] sm:$0xff] }
 0x5a6   :  { %v10005_v50 = vadd.f32 %v10004_v16, %v9963_v11  ;;  %v9859_v60 = vmax.f32 %v9803_v34, 0.0  ;;  %v9807_v23 = vadd.f32 %v15416_v39, %v15357_v24  ;;  %v9966_v38 = vmul.f32 %v9910_v44, %v9854_v3 }
 0x5a7   :  { %v10037_v53 = vadd.f32 %v10036_v61, %v9962_v30  ;;  %v9858_v42 = vmax.f32 %v9802_v33, 0.0  ;;  %v9806_v29 = vadd.f32 %v15421_v37, %v15354_v49  ;;  %v9969_v25 = vmul.f32 %v9913_v20, %v9857_v22  ;;  %v9920_v30 = vld [vmem:[%s15723_s5 + $0x138] sm:$0xff] }
 0x5a8   :  { %v10006_v6 = vadd.f32 %v10005_v50, %v9965_v43  ;;  %v9861_v2 = vmax.f32 %v9805_v54, 0.0  ;;  %v9809_v24 = vadd.f32 %v15416_v39, %v15363_v52  ;;  %v9968_v59 = vmul.f32 %v9912_v41, %v9856_v47  ;;  %v9923_v43 = vld [vmem:[%s15723_s5 + $0x150] sm:$0xff]  ;;  %v9922_v54 = vld [vmem:[%s15723_s5 + $0x148] sm:$0xff]  ;;  %v9924_v41 = vld [vmem:[%s15723_s5 + $0x158] sm:$0xff] }
 0x5a9   :  { %v10038_v57 = vadd.f32 %v10037_v53, %v9964_v55  ;;  %v9860_v10 = vmax.f32 %v9804_v32, 0.0  ;;  %v9808_v49 = vadd.f32 %v15421_v37, %v15360_v45  ;;  %v9971_v0 = vmul.f32 %v9915_v14, %v9859_v60  ;;  %v9925_v32 = vld [vmem:[%s15723_s5 + $0x160] sm:$0xff]  ;;  %v9927_v14 = vld [vmem:[%s15723_s5 + $0x170] sm:$0xff] }
 0x5aa   :  { %v10007_v28 = vadd.f32 %v10006_v6, %v9967_v63  ;;  %v9863_v12 = vmax.f32 %v9807_v23, 0.0  ;;  %v9811_v52 = vadd.f32 %v15416_v39, %v15369_v9  ;;  %v9970_v15 = vmul.f32 %v9914_v8, %v9858_v42  ;;  %v15904_v23 = vld [vmem:[#allocation13_spill] sm:$0xff] }
 0x5ab   :  { %v10039_v56 = vadd.f32 %v10038_v57, %v9966_v38  ;;  %v9862_v5 = vmax.f32 %v9806_v29, 0.0  ;;  %v9810_v45 = vadd.f32 %v15421_v37, %v15366_v35  ;;  %v9973_v17 = vmul.f32 %v9917_v40, %v9861_v2  ;;  %v15905_v29 = vld [vmem:[#allocation24_spill] sm:$0xff] }
 0x5ac   :  { %v10008_v27 = vadd.f32 %v10007_v28, %v9969_v25  ;;  %v9865_v62 = vmax.f32 %v9809_v24, 0.0  ;;  %v9813_v9 = vadd.f32 %v15416_v39, %v15375_v1  ;;  %v9972_v11 = vmul.f32 %v9916_v19, %v9860_v10  ;;  %v9926_v8 = vld [vmem:[%s15723_s5 + $0x168] sm:$0xff] }
 0x5ad   :  { %v10040_v26 = vadd.f32 %v10039_v56, %v9968_v59  ;;  %v9864_v7 = vmax.f32 %v9808_v49, 0.0  ;;  %v9812_v35 = vadd.f32 %v15421_v37, %v15372_v31  ;;  %v9975_v16 = vmul.f32 %v9919_v58, %v9863_v12  ;;  %v15906_v24 = vld [vmem:[#allocation33_spill] sm:$0xff]  ;;  %v9929_v49 = vld [vmem:[%s15723_s5 + $0x180] sm:$0xff] }
 0x5ae   :  { %v10009_v51 = vadd.f32 %v10008_v27, %v9971_v0  ;;  %v9867_v3 = vmax.f32 %v9811_v52, 0.0  ;;  %v9815_v1 = vadd.f32 %v15416_v39, %v15381_v48  ;;  %v9974_v33 = vmul.f32 %v9918_v13, %v9862_v5  ;;  %v15907_v56 = vld [vmem:[#allocation36_spill] sm:$0xff]  ;;  %v9928_v52 = vld [vmem:[%s15723_s5 + $0x178] sm:$0xff] }
 0x5af   :  { %v10041_v34 = vadd.f32 %v10040_v26, %v9970_v15  ;;  %v9866_v61 = vmax.f32 %v9810_v45, 0.0  ;;  %v9814_v31 = vadd.f32 %v15421_v37, %v15378_v21  ;;  %v9977_v22 = vmul.f32 %v9921_v46, %v9865_v62  ;;  %v15908_v15 = vld [vmem:[#allocation34_spill] sm:$0xff]  ;;  %v15909_v13 = vld [vmem:[#allocation35_spill] sm:$0xff] }
 0x5b0   :  { %v10010_v4 = vadd.f32 %v10009_v51, %v9973_v17  ;;  %v9869_v50 = vmax.f32 %v9813_v9, 0.0  ;;  %v9817_v48 = vadd.f32 %v15416_v39, %v15387_v36  ;;  %v9976_v47 = vmul.f32 %v9920_v30, %v9864_v7  ;;  %v9931_v17 = vld [vmem:[%s15723_s5 + $0x190] sm:$0xff] }
 0x5b1   :  { %v10042_v44 = vadd.f32 %v10041_v34, %v9972_v11  ;;  %v9868_v20 = vmax.f32 %v9812_v35, 0.0  ;;  %v9816_v21 = vadd.f32 %v15421_v37, %v15384_v18  ;;  %v9979_v63 = vmul.f32 %v9923_v43, %v9867_v3  ;;  %v9930_v11 = vld [vmem:[%s15723_s5 + $0x188] sm:$0xff]  ;;  %v9933_v34 = vld [vmem:[%s15723_s5 + $0x1a0] sm:$0xff] }
 0x5b2   :  { %v10011_v55 = vadd.f32 %v10010_v4, %v9975_v16  ;;  %v9871_v60 = vmax.f32 %v9815_v1, 0.0  ;;  %v9819_v36 = vadd.f32 %v15416_v39, %v15904_v23  ;;  %v9978_v38 = vmul.f32 %v9922_v54, %v9866_v61  ;;  %v15910_v16 = vld [vmem:[#allocation37_spill] sm:$0xff]  ;;  %v9932_v4 = vld [vmem:[%s15723_s5 + $0x198] sm:$0xff] }
 0x5b3   :  { %v10043_v53 = vadd.f32 %v10042_v44, %v9974_v33  ;;  %v9870_v42 = vmax.f32 %v9814_v31, 0.0  ;;  %v9818_v18 = vadd.f32 %v15421_v37, %v15905_v29  ;;  %v9981_v25 = vmul.f32 %v9925_v32, %v9869_v50  ;;  %v9935_v44 = vld [vmem:[%s15723_s5 + $0x1b0] sm:$0xff]  ;;  %v9936_v32 = vld [vmem:[%s15723_s5 + $0x1b8] sm:$0xff] }
 0x5b4   :  { %v10012_v6 = vadd.f32 %v10011_v55, %v9977_v22  ;;  %v9873_v2 = vmax.f32 %v9817_v48, 0.0  ;;  %v9821_v28 = vadd.f32 %v15416_v39, %v15906_v24  ;;  %v9980_v10 = vmul.f32 %v9924_v41, %v9868_v20 }
 0x5b5   :  { %v10044_v57 = vadd.f32 %v10043_v53, %v9976_v47  ;;  %v9872_v40 = vmax.f32 %v9816_v21, 0.0  ;;  %v9820_v0 = vadd.f32 %v15421_v37, %v15907_v56  ;;  %v9983_v12 = vmul.f32 %v9927_v14, %v9871_v60  ;;  %v5048_v56 = vpop.permute.xlu1 %5047 }
 0x5b6   :  { %v10013_v59 = vadd.f32 %v10012_v6, %v9979_v63  ;;  %v9875_v27 = vmax.f32 %v9819_v36, 0.0  ;;  %v9823_v5 = vadd.f32 %v15416_v39, %v15908_v15  ;;  %v9982_v45 = vmul.f32 %v9926_v8, %v9870_v42 }
 0x5b7   :  { %v10045_v19 = vadd.f32 %v10044_v57, %v9978_v38  ;;  %v9874_v26 = vmax.f32 %v9818_v18, 0.0  ;;  %v9822_v62 = vadd.f32 %v15421_v37, %v15909_v13  ;;  %v9985_v51 = vmul.f32 %v9929_v49, %v9873_v2 }
 0x5b8   :  { %v10014_v58 = vadd.f32 %v10013_v59, %v9981_v25  ;;  %v9877_v7 = vmax.f32 %v9821_v28, 0.0  ;;  %v9984_v35 = vmul.f32 %v9928_v52, %v9872_v40  ;;  %v9876_v39 = vmax.f32 %v9820_v0, 0.0 }
 0x5b9   :  { %v10046_v9 = vadd.f32 %v10045_v19, %v9980_v10  ;;  %v9824_v30 = vadd.f32 %v15421_v37, %v15910_v16  ;;  %v9987_v1 = vmul.f32 %v9931_v17, %v9875_v27  ;;  %v9879_v33 = vmax.f32 %v9823_v5, 0.0  ;;  %v9934_v37 = vld [vmem:[%s15723_s5 + $0x1a8] sm:$0xff]  ;;  %v10062_v10 = vld [vmem:[#allocation4] sm:$0x1]  ;;  %s12850_s5 = smov [#allocation5]  }
 0x5ba   :  { %v10015_v46 = vadd.f32 %v10014_v58, %v9983_v12  ;;  %v9986_v43 = vmul.f32 %v9930_v11, %v9874_v26  ;;  %v9878_v31 = vmax.f32 %v9822_v62, 0.0  ;;  %v9989_v54 = vmul.f32 %v9933_v34, %v9877_v7  ;;  %v15912_v12 = vld [vmem:[#allocation14_spill] sm:$0xff]  ;;  %s10083_s27 = sshll.u32 %s12850_s5, 4  ;;  %s10084_s27 = int_to_ptr.vmem [resolvable:$true] %s10083_s27 }
 0x5bb   :  { %v10047_v3 = vadd.f32 %v10046_v9, %v9982_v45  ;;  %v9988_v48 = vmul.f32 %v9932_v4, %v9876_v39  ;;  %v9880_v55 = vmax.f32 %v9824_v30, 0.0  ;;  %v9991_v20 = vmul.f32 %v9935_v44, %v9879_v33  ;;  %s12825_s28 = scalar_lea.vmem %s10084_s27, 16  ;;  %s12829_s3 = scalar_lea.vmem %s10084_s27, 32 }
 0x5bc   :  { %v10016_v61 = vadd.f32 %v10015_v46, %v9985_v51  ;;  %v9990_v53 = vmul.f32 %v9934_v37, %v9878_v31  ;;  %v15911_v0 = vlaneseq  ;;  %v5053_v52 = vrot.slane %v5048_v56, %v15912_v12  ;;  %p12826_p0 = scmp.ne.s32.totalorder %s10084_s27, %s12825_s28  ;;  %p12830_p1 = scmp.lt.s32.totalorder %s10084_s27, %s10084_s27 }
 0x5bd   :  { %v10048_v22 = vadd.f32 %v10047_v3, %v9984_v35  ;;  %v9992_v60 = vmul.f32 %v9936_v32, %v9880_v55  ;;  %p12831_p2 = scmp.lt.s32.totalorder %s12829_s3, %s12825_s28 }
 0x5be   :  { %v10017_v50 = vadd.f32 %v10016_v61, %v9987_v1  ;;  %v31_v19 = vand.u32 127, %v15911_v0 }
 0x5bf   :  { %v10049_v47 = vadd.f32 %v10048_v22, %v9986_v43  ;;  %p12832_p3 = por %p12831_p2, %p12830_p1 }
 0x5c0   :  { %v10018_v21 = vadd.f32 %v10017_v50, %v9989_v54  ;;  %vm5044_vm2 = vcmp.eq.s32.totalorder %v31_v19, 0  ;;  %vm10064_vm3 = vcmp.eq.s32.totalorder %v31_v19, 1 }
 0x5c1   :  { %v10050_v63 = vadd.f32 %v10049_v47, %v9988_v48  ;;  %v5054_v5 = vsel %vm5044_vm2, %v5053_v52, 0.0  ;;  %p12833_p4 = pnand %p12832_p3, %p12826_p0 }
 0x5c2   :  { %v10019_v41 = vadd.f32 %v10018_v21, %v9991_v20 }
 0x5c3   :  { %v10051_v23 = vadd.f32 %v10050_v63, %v9990_v53 }
 0x5c4   :  { %v10020_v36 = vrot.slane %v10019_v41, 4 }
 0x5c5   :  { %v10052_v6 = vadd.f32 %v10051_v23, %v9992_v60 }
 0x5c6   :  { %v10021_v38 = vadd.f32 %v10020_v36, %v10019_v41 }
 0x5c7   :  { %v10053_v42 = vrot.slane %v10052_v6, 4 }
 0x5c8   :  { %v10022_v14 = vrot.slane %v10021_v38, 2 }
 0x5c9   :  { %v10054_v29 = vadd.f32 %v10053_v42, %v10052_v6 }
 0x5ca   :  { %v10023_v18 = vadd.f32 %v10022_v14, %v10021_v38 }
 0x5cb   :  { %v10055_v57 = vrot.slane %v10054_v29, 2 }
 0x5cc   :  { %v10024_v25 = vrot.slane %v10023_v18, 1 }
 0x5cd   :  { %v10056_v8 = vadd.f32 %v10055_v57, %v10054_v29 }
 0x5ce   :  { %v10025_v24 = vadd.f32 %v10024_v25, %v10023_v18 }
 0x5cf   :  { %v10057_v2 = vrot.slane %v10056_v8, 1 }
 0x5d1   :  { %v10058_v28 = vadd.f32 %v10057_v2, %v10056_v8 }
 0x5d3   :  { %v10059_v59 = vadd.f32 %v10058_v28, %v10025_v24 }
 0x5d5   :  { %10060 = vadd.xlane.f32.xlu0 %v10059_v59 }
 0x65e   :  { %v10061_v40 = vpop.xlane.xlu0 %10060 }
 0x65f   :  { %v10063_v49 = vadd.f32 %v10062_v10, %v10061_v40 }
 0x661   :  { %10067 = vperm.xlu1 %12046, %v10063_v49  }
 0x6dc   :  { %v10068_v27 = vpop.permute.xlu1 %10067 }
 0x6dd   :  { %v10073_v15 = vrot.slane %v10068_v27, %v15912_v12 }
 0x6df   :  { %v10074_v58 = vsel %vm10064_vm3, %v10073_v15, %v5054_v5 }
 0x6e0   :  { %10076 = vst.msk [vmem:[#allocation5] sm:$0x1] %vm10075_vm4, %v10074_v58 }
 0x6e1   :  { %12836 = shalt.err (!%p12833_p4)
}
 0x6e2   :  { %10086 = dma.vmem_to_hbm [thread:$0]  %s10084_s27, 16, %s15725_s7, [#allocation6]  }
 0x6e3   :  { %12845 = dma.done.wait [#allocation6], 16  }
 0x6e4   :  { %12846 = vsyncadd [#allocation6], 4294967280 }
 0x6e5   :  { %10090 = vsyncpa [#allocation6], 1 }

</bundles_post_ra>
